<compile_context>
chip_gen: v7x
topology: tpu7x:2x2x1
jax: 0.10.0
libtpu: 0.0.40
codegen_flags: <defaults>
</compile_context>

<pallas_src>
import functools

import jax
import jax.numpy as jnp
from jax import lax
from jax.experimental import pallas as pl
from jax.experimental.pallas import tpu as pltpu


def _round_up(x, m):
    return ((x + m - 1) // m) * m


_VMEM_LIMIT = 32 * 1024 * 1024          # safe on v5e/v6e (128 MiB) and v7x (64 MiB)
_FUSED_VMEM_BUDGET = 20 * 1024 * 1024   # target per-kernel tile footprint


# ---------------------------------------------------------------------------
# im2col (JAX glue, bf16).
# ---------------------------------------------------------------------------

def _im2col(x, KH, KW, stride, pad):
    """x: (B,H,W,Cin) -> patches (B, Ho, Wo, KH*KW*Cin) in bf16."""
    B, H, W, Cin = x.shape
    xp = jnp.pad(x.astype(jnp.bfloat16),
                 ((0, 0), (pad, pad), (pad, pad), (0, 0)))
    Hp, Wp = H + 2 * pad, W + 2 * pad
    Ho = (Hp - KH) // stride + 1
    Wo = (Wp - KW) // stride + 1
    cols = []
    for i in range(KH):
        for j in range(KW):
            cols.append(xp[:, i::stride, j::stride, :][:, :Ho, :Wo, :])
    patches = jnp.stack(cols, axis=3)                 # (B,Ho,Wo,KH*KW,Cin)
    return patches.reshape(B, Ho, Wo, KH * KW * Cin), Ho, Wo


# ---------------------------------------------------------------------------
# Generic tiled matmul + bias (+ LeakyReLU):  (M,K) @ (K,N) -> (M,N)
# Used for conv1 (no norm) and as the large-resolution fallback.
# ---------------------------------------------------------------------------

def _matmul_bias_act_kernel(x_ref, w_ref, b_ref, o_ref, acc_ref, *,
                            negative_slope):
    k = pl.program_id(2)

    @pl.when(k == 0)
    def _():
        acc_ref[...] = jnp.zeros_like(acc_ref)

    acc_ref[...] += jnp.dot(x_ref[...], w_ref[...],
                            preferred_element_type=jnp.float32)

    @pl.when(k == pl.num_programs(2) - 1)
    def _():
        out = acc_ref[...] + b_ref[...]          # bias once per output tile
        if negative_slope is not None:           # LeakyReLU epilogue (once)
            out = jnp.where(out >= 0, out, negative_slope * out)
        o_ref[...] = out.astype(o_ref.dtype)


def matmul_bias_act(x, w, b, negative_slope=None, out_dtype=jnp.float32):
    """x: (M,K), w: (K,N), b: (N,) -> (M,N) in out_dtype (bf16 MXU matmul)."""
    M, K = x.shape
    N = w.shape[1]

    # K: lane-aligned tiles when K % 128 == 0; otherwise one full-extent block
    # (conv1: K = 16*3 = 48 -> no 48->128 pad waste on the largest A matrix).
    if K % 128 == 0:
        tk = next(t for t in (2048, 1024, 512, 256, 128) if K % t == 0)
    else:
        tk = K
    # N: pad to a lane-dense multiple of 128 (unmasked vst on the output).
    Np = _round_up(max(N, 128), 128)
    tn = next(t for t in (512, 384, 256, 128) if Np % t == 0)
    # M: prefer a tile that divides M exactly so the (large) A matrix needs no
    # jnp.pad round trip; tiles are multiples of 16 (bf16 sublane packing).
    tm = None
    for cand in (512, 384, 256, 192, 128, 64, 32, 16):
        if M % cand == 0 and (cand >= 128 or M <= 8192):
            tm = cand
            break
    if tm is None:
        tm = min(256, _round_up(M, 16))
    Mp = _round_up(M, tm)

    xb = x.astype(jnp.bfloat16)
    if Mp != M:
        xb = jnp.pad(xb, ((0, Mp - M), (0, 0)))
    wb = w.astype(jnp.bfloat16)
    bb = b.reshape(1, N).astype(jnp.float32)
    if Np != N:
        wb = jnp.pad(wb, ((0, 0), (0, Np - N)))
        bb = jnp.pad(bb, ((0, 0), (0, Np - N)))

    grid = (Mp // tm, Np // tn, K // tk)
    kern = functools.partial(_matmul_bias_act_kernel,
                             negative_slope=negative_slope)
    cost = pl.CostEstimate(
        flops=2 * Mp * Np * K,
        transcendentals=0,
        bytes_accessed=Mp * K * 2 + K * Np * 2 + Np * 4
        + Mp * Np * jnp.dtype(out_dtype).itemsize)

    out = pl.pallas_call(
        kern,
        out_shape=jax.ShapeDtypeStruct((Mp, Np), out_dtype),
        grid_spec=pltpu.PrefetchScalarGridSpec(
            num_scalar_prefetch=0,
            grid=grid,
            in_specs=[
                pl.BlockSpec((tm, tk), lambda i, j, k: (i, k)),
                pl.BlockSpec((tk, tn), lambda i, j, k: (k, j)),
                pl.BlockSpec((1, tn), lambda i, j, k: (0, j)),
            ],
            out_specs=pl.BlockSpec((tm, tn), lambda i, j, k: (i, j)),
            scratch_shapes=[pltpu.VMEM((tm, tn), jnp.float32)],
        ),
        compiler_params=pltpu.CompilerParams(
            dimension_semantics=("parallel", "parallel", "arbitrary"),
            vmem_limit_bytes=_VMEM_LIMIT),
        cost_estimate=cost,
    )(xb, wb, bb)

    if Mp != M or Np != N:
        out = out[:M, :N]
    return out


def conv2d_lrelu(x, w, b, *, stride, pad, neg_slope=0.2):
    """Conv2d + LeakyReLU via the generic tiled matmul (layer 1)."""
    B, H, W, Cin = x.shape
    Cout, _, KH, KW = w.shape
    patches, Ho, Wo = _im2col(x, KH, KW, stride, pad)
    K = KH * KW * Cin
    # (Cout,Cin,KH,KW) -> (KH,KW,Cin,Cout) -> (K, Cout): matches the
    # (kh, kw, cin) flattening order of the im2col patches.
    wmat = jnp.transpose(w, (2, 3, 1, 0)).reshape(K, Cout)
    out = matmul_bias_act(patches.reshape(B * Ho * Wo, K), wmat, b,
                          negative_slope=neg_slope, out_dtype=jnp.bfloat16)
    return out.reshape(B, Ho, Wo, Cout)


# ---------------------------------------------------------------------------
# Conv2d (+ InstanceNorm2d) + LeakyReLU, fused into one kernel.
# Grid = (batch, Cout blocks, K blocks); the full spatial extent of one batch
# element is resident in the f32 accumulator so the per-(instance, channel)
# statistics are computed in the matmul epilogue.
# ---------------------------------------------------------------------------

def _conv_norm_lrelu_kernel(x_ref, w_ref, b_ref, o_ref, acc_ref, *,
                            inv_hw, eps, neg_slope, apply_norm):
    k = pl.program_id(2)

    @pl.when(k == 0)
    def _():
        acc_ref[...] = jnp.zeros_like(acc_ref)

    acc_ref[...] += jnp.dot(x_ref[0], w_ref[...],
                            preferred_element_type=jnp.float32)

    @pl.when(k == pl.num_programs(2) - 1)
    def _():
        y = acc_ref[...] + b_ref[...]                    # (HW, tn) pre-act, f32
        if apply_norm:
            # One-pass per-channel statistics over the spatial (HW) axis.
            s1 = jnp.sum(y, axis=0, keepdims=True)
            s2 = jnp.sum(y * y, axis=0, keepdims=True)
            mean = s1 * inv_hw
            var = jnp.maximum(s2 * inv_hw - mean * mean, 0.0)
            y = (y - mean) * lax.rsqrt(var + eps)
        y = jnp.where(y >= 0, y, neg_slope * y)
        o_ref[0] = y.astype(o_ref.dtype)


def _choose_fused_tiles(HW, K, N, out_bytes, budget=_FUSED_VMEM_BUDGET):
    if N >= 128:
        tn_cands = [t for t in (512, 256, 128) if t <= N and N % t == 0]
    else:
        tn_cands = [N]
    tk_cands = [t for t in (2048, 1024, 512, 256, 128) if t <= K and K % t == 0]
    if not tk_cands:
        tk_cands = [K]
    for tn in tn_cands:
        for tk in tk_cands:
            vmem = (HW * tn * 4                 # f32 accumulator scratch
                    + 2 * HW * tk * 2           # double-buffered bf16 A block
                    + 2 * tk * tn * 2           # double-buffered bf16 W block
                    + 2 * HW * tn * out_bytes   # double-buffered output block
                    + 2 * tn * 4)               # bias
            if vmem <= budget:
                return tn, tk
    return None


def conv2d_in_lrelu(x, w, b, *, stride, pad, apply_norm=True, neg_slope=0.2,
                    eps=1e-5, out_dtype=jnp.bfloat16):
    B, H, W, Cin = x.shape
    Cout, _, KH, KW = w.shape
    patches, Ho, Wo = _im2col(x, KH, KW, stride, pad)
    HW = Ho * Wo
    K = KH * KW * Cin
    patches3 = patches.reshape(B, HW, K)
    wmat = jnp.transpose(w, (2, 3, 1, 0)).reshape(K, Cout).astype(jnp.bfloat16)
    brow = b.reshape(1, Cout).astype(jnp.float32)

    tiles = _choose_fused_tiles(HW, K, Cout, jnp.dtype(out_dtype).itemsize)
    if tiles is None:
        # Large-resolution fallback (keeps v7x's 64 MiB VMEM budget honest):
        # generic tiled matmul, then the standalone InstanceNorm+LReLU kernel.
        out2d = matmul_bias_act(
            patches3.reshape(B * HW, K), wmat, b,
            negative_slope=None if apply_norm else neg_slope,
            out_dtype=out_dtype)
        out3d = out2d.reshape(B, HW, Cout)
        if apply_norm:
            out3d = instance_norm_lrelu(out3d, eps=eps, neg_slope=neg_slope)
        return out3d.reshape(B, Ho, Wo, Cout)

    tn, tk = tiles
    grid = (B, Cout // tn, K // tk)
    kern = functools.partial(_conv_norm_lrelu_kernel, inv_hw=1.0 / HW, eps=eps,
                             neg_slope=neg_slope, apply_norm=apply_norm)
    cost = pl.CostEstimate(
        flops=2 * B * HW * Cout * K,
        transcendentals=0,
        bytes_accessed=B * HW * K * 2 + B * K * Cout * 2
        + B * HW * Cout * jnp.dtype(out_dtype).itemsize)

    out = pl.pallas_call(
        kern,
        out_shape=jax.ShapeDtypeStruct((B, HW, Cout), out_dtype),
        grid_spec=pltpu.PrefetchScalarGridSpec(
            num_scalar_prefetch=0,
            grid=grid,
            in_specs=[
                pl.BlockSpec((1, HW, tk), lambda b_, n, k: (b_, 0, k)),
                pl.BlockSpec((tk, tn), lambda b_, n, k: (k, n)),
                pl.BlockSpec((1, tn), lambda b_, n, k: (0, n)),
            ],
            out_specs=pl.BlockSpec((1, HW, tn), lambda b_, n, k: (b_, 0, n)),
            scratch_shapes=[pltpu.VMEM((HW, tn), jnp.float32)],
        ),
        compiler_params=pltpu.CompilerParams(
            dimension_semantics=("parallel", "parallel", "arbitrary"),
            vmem_limit_bytes=_VMEM_LIMIT),
        cost_estimate=cost,
    )(patches3, wmat, brow)
    return out.reshape(B, Ho, Wo, Cout)


# ---------------------------------------------------------------------------
# Standalone InstanceNorm2d(affine=False) + LeakyReLU (fallback only).
# ---------------------------------------------------------------------------

def _inorm_lrelu_kernel(x_ref, o_ref, *, inv_hw, eps, neg_slope):
    x = x_ref[0].astype(jnp.float32)                      # (HW, c_blk)
    s1 = jnp.sum(x, axis=0, keepdims=True)
    s2 = jnp.sum(x * x, axis=0, keepdims=True)
    mean = s1 * inv_hw
    var = jnp.maximum(s2 * inv_hw - mean * mean, 0.0)
    y = (x - mean) * lax.rsqrt(var + eps)
    o_ref[0] = jnp.where(y >= 0, y, neg_slope * y).astype(o_ref.dtype)


def instance_norm_lrelu(x, *, eps=1e-5, neg_slope=0.2):
    """x: (B, HW, C) -> same shape/dtype; stats accumulated in f32."""
    B, HW, C = x.shape
    itemsize = jnp.dtype(x.dtype).itemsize
    c_blk = None
    for cand in (512, 256, 128):
        if C % cand == 0 and HW * cand * (4 * itemsize + 4) <= _FUSED_VMEM_BUDGET:
            c_blk = cand
            break
    if c_blk is None:
        c_blk = 128 if C % 128 == 0 else C
    # TODO(synk): stream the HW axis (sum / sum-of-squares scratch) so the
    # block footprint is resolution-independent on v7x's smaller VMEM.
    kern = functools.partial(_inorm_lrelu_kernel, inv_hw=1.0 / HW, eps=eps,
                             neg_slope=neg_slope)
    return pl.pallas_call(
        kern,
        out_shape=jax.ShapeDtypeStruct((B, HW, C), x.dtype),
        grid_spec=pltpu.PrefetchScalarGridSpec(
            num_scalar_prefetch=0,
            grid=(B, C // c_blk),
            in_specs=[pl.BlockSpec((1, HW, c_blk), lambda b_, c: (b_, 0, c))],
            out_specs=pl.BlockSpec((1, HW, c_blk), lambda b_, c: (b_, 0, c)),
        ),
        compiler_params=pltpu.CompilerParams(
            dimension_semantics=("parallel", "parallel"),
            vmem_limit_bytes=_VMEM_LIMIT),
    )(x)


# ---------------------------------------------------------------------------
# Final Conv2d(512->1, k4) fused with the global average pool.
# Grid = (batch, K blocks): batch-parallel (v7x megacore), K reduction.
# ---------------------------------------------------------------------------

def _conv_avgpool_kernel(x_ref, w_ref, b_ref, o_ref, acc_ref, *, inv_m):
    k = pl.program_id(1)

    @pl.when(k == 0)
    def _():
        acc_ref[...] = jnp.zeros_like(acc_ref)

    # mean_m(patch[m,:] . w) == (sum_m patch[m,:]) . w / M  -> pool before dot.
    xs = jnp.sum(x_ref[0].astype(jnp.float32), axis=0, keepdims=True)  # (1,tk)
    wv = w_ref[...].astype(jnp.float32)                                # (1,tk)
    acc_ref[...] += jnp.sum(xs * wv, axis=1, keepdims=True)            # (1,1)

    @pl.when(k == pl.num_programs(1) - 1)
    def _():
        o_ref[0] = acc_ref[...] * inv_m + b_ref[...]


def conv2d_avgpool(x, w, b, *, stride, pad):
    """Final Conv2d(Cin->1, k4) + F.avg_pool2d over the full output: (B, 1)."""
    B, H, W, Cin = x.shape
    Cout, _, KH, KW = w.shape
    assert Cout == 1
    patches, Ho, Wo = _im2col(x, KH, KW, stride, pad)
    M5 = Ho * Wo
    K = KH * KW * Cin
    patches3 = patches.reshape(B, M5, K)
    wvec = jnp.transpose(w, (2, 3, 1, 0)).reshape(1, K).astype(jnp.bfloat16)
    b2d = b.reshape(1, 1).astype(jnp.float32)

    tk = next((t for t in (2048, 1024, 512, 256, 128) if K % t == 0), K)

    kern = functools.partial(_conv_avgpool_kernel, inv_m=1.0 / M5)
    out = pl.pallas_call(
        kern,
        out_shape=jax.ShapeDtypeStruct((B, 1, 1), jnp.float32),
        grid_spec=pltpu.PrefetchScalarGridSpec(
            num_scalar_prefetch=0,
            grid=(B, K // tk),
            in_specs=[
                pl.BlockSpec((1, M5, tk), lambda b_, k: (b_, 0, k)),
                pl.BlockSpec((1, tk), lambda b_, k: (0, k)),
                pl.BlockSpec((1, 1), lambda b_, k: (0, 0)),
            ],
            out_specs=pl.BlockSpec((1, 1, 1), lambda b_, k: (b_, 0, 0)),
            scratch_shapes=[pltpu.VMEM((1, 1), jnp.float32)],
        ),
        compiler_params=pltpu.CompilerParams(
            dimension_semantics=("parallel", "arbitrary")),
    )(patches3, wvec, b2d)
    return out.reshape(B, 1)


# ---------------------------------------------------------------------------
# Discriminator forward
# ---------------------------------------------------------------------------

def init_params(key, input_nc):
    specs = [(input_nc, 64), (64, 128), (128, 256), (256, 512), (512, 1)]
    params = []
    for cin, cout in specs:
        key, kw, kb = jax.random.split(key, 3)
        w = jax.random.normal(kw, (cout, cin, 4, 4), jnp.float32) * 0.05
        b = jax.random.normal(kb, (cout,), jnp.float32) * 0.01
        params.append((w, b))
    return params


def discriminator_forward(params, x_nchw):
    (w1, b1), (w2, b2), (w3, b3), (w4, b4), (w5, b5) = params
    x = jnp.transpose(x_nchw, (0, 2, 3, 1)).astype(jnp.float32)   # NCHW -> NHWC

    # Conv(input_nc->64, k4 s2 p1) + LeakyReLU(0.2): generic tiled matmul with
    # a full-extent K=48 block and a lane-dense 128-wide (padded) output.
    x = conv2d_lrelu(x, w1, b1, stride=2, pad=1)

    # Conv + InstanceNorm + LeakyReLU, all fused in the matmul epilogue.
    x = conv2d_in_lrelu(x, w2, b2, stride=2, pad=1)
    x = conv2d_in_lrelu(x, w3, b3, stride=2, pad=1)
    x = conv2d_in_lrelu(x, w4, b4, stride=1, pad=1)

    # Conv(512->1, k4 s1 p1) fused with F.avg_pool2d(x, x.size()[2:]).
    return conv2d_avgpool(x, w5, b5, stride=1, pad=1)             # (B, 1)


if __name__ == "__main__":
    key = jax.random.PRNGKey(0)
    kparams, kx = jax.random.split(key)

    input_nc = 3
    params = init_params(kparams, input_nc)

    # Small input consistent with the module: NCHW, spatial 32 so that the
    # final conv output is 2x2 (the two k4/s1/p1 layers each shrink by 1).
    x = jax.random.normal(kx, (2, input_nc, 32, 32), jnp.float32)

    fwd = jax.jit(discriminator_forward)
    out = jax.block_until_ready(fwd(params, x))
    assert out.shape == (2, 1), out.shape
    assert bool(jnp.all(jnp.isfinite(out)))
    print("KERNEL_OK")
</pallas_src>

<mosaic_0001>
module attributes {stable_mosaic.version = 11 : i64} {
  func.func @_matmul_bias_act_kernel(%arg0: i32, %arg1: i32, %arg2: i32, %arg3: memref<512x48xbf16, #tpu.memory_space<vmem>>, %arg4: memref<48x128xbf16, #tpu.memory_space<vmem>>, %arg5: memref<1x128xf32, #tpu.memory_space<vmem>>, %arg6: memref<512x128xbf16, #tpu.memory_space<vmem>>, %arg7: memref<512x128xf32, #tpu.memory_space<vmem>>) attributes {dimension_semantics = [#tpu.dimension_semantics<parallel>, #tpu.dimension_semantics<parallel>, #tpu.dimension_semantics<arbitrary>], iteration_bounds = array<i64: 1, 1, 1>, scalar_prefetch = 0 : i64, scratch_operands = 1 : i64, tpu.core_type = #tpu.core_type<tc>, window_params = [{transform_indices = @transform_0, window_bounds = array<i64: 512, 48>}, {transform_indices = @transform_1, window_bounds = array<i64: 48, 128>}, {transform_indices = @transform_2, window_bounds = array<i64: 1, 128>}, {transform_indices = @transform_3, window_bounds = array<i64: 512, 128>}]} {
    %c0_i32 = arith.constant 0 : i32
    %0 = arith.cmpi eq, %arg2, %c0_i32 : i32
    %1 = arith.extui %0 : i1 to i32
    %c0_i32_0 = arith.constant 0 : i32
    %2 = arith.cmpi ne, %1, %c0_i32_0 : i32
    scf.if %2 {
      %cst_10 = arith.constant 0.000000e+00 : f32
      %12 = vector.broadcast %cst_10 : f32 to vector<512x128xf32>
      %c0_11 = arith.constant 0 : index
      %c0_12 = arith.constant 0 : index
      %13 = vector.load %arg7[%c0_11, %c0_12] : memref<512x128xf32, #tpu.memory_space<vmem>>, vector<512x128xf32>
      tpu.vector_store %arg7[%c0_11, %c0_12], %12 {strides = array<i32>} : memref<512x128xf32, #tpu.memory_space<vmem>>, vector<512x128xf32>,
    } else {
    }
    %c0 = arith.constant 0 : index
    %c0_1 = arith.constant 0 : index
    %3 = vector.load %arg7[%c0, %c0_1] : memref<512x128xf32, #tpu.memory_space<vmem>>, vector<512x128xf32>
    %c0_2 = arith.constant 0 : index
    %c0_3 = arith.constant 0 : index
    %4 = vector.load %arg3[%c0_2, %c0_3] : memref<512x48xbf16, #tpu.memory_space<vmem>>, vector<512x48xbf16>
    %c0_4 = arith.constant 0 : index
    %c0_5 = arith.constant 0 : index
    %5 = vector.load %arg4[%c0_4, %c0_5] : memref<48x128xbf16, #tpu.memory_space<vmem>>, vector<48x128xbf16>
    %cst = arith.constant dense<0.000000e+00> : vector<512x128xf32>
    %6 = tpu.matmul %4, %5, %cst {dimension_numbers = #tpu.dot_dimension_numbers<[1], [0], [0], [1], [0, 0, 1, 1], [], []>} : vector<512x48xbf16>, vector<48x128xbf16>, vector<512x128xf32> -> vector<512x128xf32>
    %7 = arith.addf %3, %6 : vector<512x128xf32>
    %c0_6 = arith.constant 0 : index
    %c0_7 = arith.constant 0 : index
    %8 = vector.load %arg7[%c0_6, %c0_7] : memref<512x128xf32, #tpu.memory_space<vmem>>, vector<512x128xf32>
    tpu.vector_store %arg7[%c0_6, %c0_7], %7 {strides = array<i32>} : memref<512x128xf32, #tpu.memory_space<vmem>>, vector<512x128xf32>,
    %c0_i32_8 = arith.constant 0 : i32
    %9 = arith.cmpi eq, %arg2, %c0_i32_8 : i32
    %10 = arith.extui %9 : i1 to i32
    %c0_i32_9 = arith.constant 0 : i32
    %11 = arith.cmpi ne, %10, %c0_i32_9 : i32
    scf.if %11 {
      %c0_10 = arith.constant 0 : index
      %c0_11 = arith.constant 0 : index
      %12 = vector.load %arg7[%c0_10, %c0_11] : memref<512x128xf32, #tpu.memory_space<vmem>>, vector<512x128xf32>
      %c0_12 = arith.constant 0 : index
      %c0_13 = arith.constant 0 : index
      %13 = vector.load %arg5[%c0_12, %c0_13] : memref<1x128xf32, #tpu.memory_space<vmem>>, vector<1x128xf32>
      %14 = vector.broadcast %13 : vector<1x128xf32> to vector<512x128xf32>
      %15 = arith.addf %12, %14 : vector<512x128xf32>
      %cst_14 = arith.constant 0.000000e+00 : f32
      %16 = vector.broadcast %cst_14 : f32 to vector<512x128xf32>
      %17 = arith.cmpf oge, %15, %16 : vector<512x128xf32>
      %cst_15 = arith.constant 2.000000e-01 : f32
      %18 = vector.broadcast %cst_15 : f32 to vector<512x128xf32>
      %19 = arith.mulf %18, %15 : vector<512x128xf32>
      %20 = arith.select %17, %15, %19 : vector<512x128xi1>, vector<512x128xf32>
      %21 = arith.truncf %20 : vector<512x128xf32> to vector<512x128xbf16>
      %c0_16 = arith.constant 0 : index
      %c0_17 = arith.constant 0 : index
      %22 = vector.load %arg6[%c0_16, %c0_17] : memref<512x128xbf16, #tpu.memory_space<vmem>>, vector<512x128xbf16>
      tpu.vector_store %arg6[%c0_16, %c0_17], %21 {strides = array<i32>} : memref<512x128xbf16, #tpu.memory_space<vmem>>, vector<512x128xbf16>,
    } else {
    }
    return
  }
  func.func @transform_0(%arg0: i32, %arg1: i32, %arg2: i32) -> (i32, i32) {
    %c0_i32 = arith.constant 0 : i32
    return %arg0, %arg2 : i32, i32
  }
  func.func @transform_1(%arg0: i32, %arg1: i32, %arg2: i32) -> (i32, i32) {
    %c0_i32 = arith.constant 0 : i32
    return %arg2, %arg1 : i32, i32
  }
  func.func @transform_2(%arg0: i32, %arg1: i32, %arg2: i32) -> (i32, i32) {
    %c0_i32 = arith.constant 0 : i32
    %c0_i32_0 = arith.constant 0 : i32
    return %c0_i32, %arg1 : i32, i32
  }
  func.func @transform_3(%arg0: i32, %arg1: i32, %arg2: i32) -> (i32, i32) {
    %c0_i32 = arith.constant 0 : i32
    return %arg0, %arg1 : i32, i32
  }
}

module attributes {stable_mosaic.version = 11 : i64} {
  func.func @_conv_norm_lrelu_kernel(%arg0: i32, %arg1: i32, %arg2: i32, %arg3: memref<1x64x1024xbf16, #tpu.memory_space<vmem>>, %arg4: memref<1024x128xbf16, #tpu.memory_space<vmem>>, %arg5: memref<1x128xf32, #tpu.memory_space<vmem>>, %arg6: memref<1x64x128xbf16, #tpu.memory_space<vmem>>, %arg7: memref<64x128xf32, #tpu.memory_space<vmem>>) attributes {dimension_semantics = [#tpu.dimension_semantics<parallel>, #tpu.dimension_semantics<parallel>, #tpu.dimension_semantics<arbitrary>], iteration_bounds = array<i64: 2, 1, 1>, scalar_prefetch = 0 : i64, scratch_operands = 1 : i64, tpu.core_type = #tpu.core_type<tc>, window_params = [{transform_indices = @transform_0, window_bounds = array<i64: 1, 64, 1024>}, {transform_indices = @transform_1, window_bounds = array<i64: 1024, 128>}, {transform_indices = @transform_2, window_bounds = array<i64: 1, 128>}, {transform_indices = @transform_3, window_bounds = array<i64: 1, 64, 128>}]} {
    %c0_i32 = arith.constant 0 : i32
    %0 = arith.cmpi eq, %arg2, %c0_i32 : i32
    %1 = arith.extui %0 : i1 to i32
    %c0_i32_0 = arith.constant 0 : i32
    %2 = arith.cmpi ne, %1, %c0_i32_0 : i32
    scf.if %2 {
      %cst_11 = arith.constant 0.000000e+00 : f32
      %13 = vector.broadcast %cst_11 : f32 to vector<64x128xf32>
      %c0_12 = arith.constant 0 : index
      %c0_13 = arith.constant 0 : index
      %14 = vector.load %arg7[%c0_12, %c0_13] : memref<64x128xf32, #tpu.memory_space<vmem>>, vector<64x128xf32>
      tpu.vector_store %arg7[%c0_12, %c0_13], %13 {strides = array<i32>} : memref<64x128xf32, #tpu.memory_space<vmem>>, vector<64x128xf32>,
    } else {
    }
    %c0 = arith.constant 0 : index
    %c0_1 = arith.constant 0 : index
    %3 = vector.load %arg7[%c0, %c0_1] : memref<64x128xf32, #tpu.memory_space<vmem>>, vector<64x128xf32>
    %c0_2 = arith.constant 0 : index
    %c0_3 = arith.constant 0 : index
    %c0_4 = arith.constant 0 : index
    %4 = vector.load %arg3[%c0_2, %c0_3, %c0_4] : memref<1x64x1024xbf16, #tpu.memory_space<vmem>>, vector<1x64x1024xbf16>
    %5 = vector.shape_cast %4 : vector<1x64x1024xbf16> to vector<64x1024xbf16>
    %c0_5 = arith.constant 0 : index
    %c0_6 = arith.constant 0 : index
    %6 = vector.load %arg4[%c0_5, %c0_6] : memref<1024x128xbf16, #tpu.memory_space<vmem>>, vector<1024x128xbf16>
    %cst = arith.constant dense<0.000000e+00> : vector<64x128xf32>
    %7 = tpu.matmul %5, %6, %cst {dimension_numbers = #tpu.dot_dimension_numbers<[1], [0], [0], [1], [0, 0, 1, 1], [], []>} : vector<64x1024xbf16>, vector<1024x128xbf16>, vector<64x128xf32> -> vector<64x128xf32>
    %8 = arith.addf %3, %7 : vector<64x128xf32>
    %c0_7 = arith.constant 0 : index
    %c0_8 = arith.constant 0 : index
    %9 = vector.load %arg7[%c0_7, %c0_8] : memref<64x128xf32, #tpu.memory_space<vmem>>, vector<64x128xf32>
    tpu.vector_store %arg7[%c0_7, %c0_8], %8 {strides = array<i32>} : memref<64x128xf32, #tpu.memory_space<vmem>>, vector<64x128xf32>,
    %c0_i32_9 = arith.constant 0 : i32
    %10 = arith.cmpi eq, %arg2, %c0_i32_9 : i32
    %11 = arith.extui %10 : i1 to i32
    %c0_i32_10 = arith.constant 0 : i32
    %12 = arith.cmpi ne, %11, %c0_i32_10 : i32
    scf.if %12 {
      %c0_11 = arith.constant 0 : index
      %c0_12 = arith.constant 0 : index
      %13 = vector.load %arg7[%c0_11, %c0_12] : memref<64x128xf32, #tpu.memory_space<vmem>>, vector<64x128xf32>
      %c0_13 = arith.constant 0 : index
      %c0_14 = arith.constant 0 : index
      %14 = vector.load %arg5[%c0_13, %c0_14] : memref<1x128xf32, #tpu.memory_space<vmem>>, vector<1x128xf32>
      %15 = vector.broadcast %14 : vector<1x128xf32> to vector<64x128xf32>
      %16 = arith.addf %13, %15 : vector<64x128xf32>
      %cst_15 = arith.constant dense<0.000000e+00> : vector<128xf32>
      %17 = vector.multi_reduction <add>, %16, %cst_15 [0] : vector<64x128xf32> to vector<128xf32>
      %18 = vector.shape_cast %17 : vector<128xf32> to vector<1x128xf32>
      %19 = arith.mulf %16, %16 : vector<64x128xf32>
      %cst_16 = arith.constant dense<0.000000e+00> : vector<128xf32>
      %20 = vector.multi_reduction <add>, %19, %cst_16 [0] : vector<64x128xf32> to vector<128xf32>
      %21 = vector.shape_cast %20 : vector<128xf32> to vector<1x128xf32>
      %cst_17 = arith.constant 1.562500e-02 : f32
      %22 = vector.broadcast %cst_17 : f32 to vector<1x128xf32>
      %23 = arith.mulf %18, %22 : vector<1x128xf32>
      %cst_18 = arith.constant 1.562500e-02 : f32
      %24 = vector.broadcast %cst_18 : f32 to vector<1x128xf32>
      %25 = arith.mulf %21, %24 : vector<1x128xf32>
      %26 = arith.mulf %23, %23 : vector<1x128xf32>
      %27 = arith.subf %25, %26 : vector<1x128xf32>
      %cst_19 = arith.constant 0.000000e+00 : f32
      %28 = vector.broadcast %cst_19 : f32 to vector<1x128xf32>
      %29 = arith.maximumf %27, %28 : vector<1x128xf32>
      %30 = vector.broadcast %23 : vector<1x128xf32> to vector<64x128xf32>
      %31 = arith.subf %16, %30 : vector<64x128xf32>
      %cst_20 = arith.constant 9.99999974E-6 : f32
      %32 = vector.broadcast %cst_20 : f32 to vector<1x128xf32>
      %33 = arith.addf %29, %32 : vector<1x128xf32>
      %34 = math.rsqrt %33 : vector<1x128xf32>
      %35 = vector.broadcast %34 : vector<1x128xf32> to vector<64x128xf32>
      %36 = arith.mulf %31, %35 : vector<64x128xf32>
      %cst_21 = arith.constant 0.000000e+00 : f32
      %37 = vector.broadcast %cst_21 : f32 to vector<64x128xf32>
      %38 = arith.cmpf oge, %36, %37 : vector<64x128xf32>
      %cst_22 = arith.constant 2.000000e-01 : f32
      %39 = vector.broadcast %cst_22 : f32 to vector<64x128xf32>
      %40 = arith.mulf %39, %36 : vector<64x128xf32>
      %41 = arith.select %38, %36, %40 : vector<64x128xi1>, vector<64x128xf32>
      %42 = arith.truncf %41 : vector<64x128xf32> to vector<64x128xbf16>
      %c0_23 = arith.constant 0 : index
      %c0_24 = arith.constant 0 : index
      %c0_25 = arith.constant 0 : index
      %43 = vector.load %arg6[%c0_23, %c0_24, %c0_25] : memref<1x64x128xbf16, #tpu.memory_space<vmem>>, vector<1x64x128xbf16>
      %44 = vector.shape_cast %43 : vector<1x64x128xbf16> to vector<64x128xbf16>
      %45 = vector.shape_cast %42 : vector<64x128xbf16> to vector<1x64x128xbf16>
      tpu.vector_store %arg6[%c0_23, %c0_24, %c0_25], %45 {strides = array<i32>} : memref<1x64x128xbf16, #tpu.memory_space<vmem>>, vector<1x64x128xbf16>,
    } else {
    }
    return
  }
  func.func @transform_0(%arg0: i32, %arg1: i32, %arg2: i32) -> (i32, i32, i32) {
    %c0_i32 = arith.constant 0 : i32
    %c0_i32_0 = arith.constant 0 : i32
    return %arg0, %c0_i32, %arg2 : i32, i32, i32
  }
  func.func @transform_1(%arg0: i32, %arg1: i32, %arg2: i32) -> (i32, i32) {
    %c0_i32 = arith.constant 0 : i32
    return %arg2, %arg1 : i32, i32
  }
  func.func @transform_2(%arg0: i32, %arg1: i32, %arg2: i32) -> (i32, i32) {
    %c0_i32 = arith.constant 0 : i32
    %c0_i32_0 = arith.constant 0 : i32
    return %c0_i32, %arg1 : i32, i32
  }
  func.func @transform_3(%arg0: i32, %arg1: i32, %arg2: i32) -> (i32, i32, i32) {
    %c0_i32 = arith.constant 0 : i32
    %c0_i32_0 = arith.constant 0 : i32
    return %arg0, %c0_i32, %arg1 : i32, i32, i32
  }
}

module attributes {stable_mosaic.version = 11 : i64} {
  func.func @_conv_norm_lrelu_kernel(%arg0: i32, %arg1: i32, %arg2: i32, %arg3: memref<1x16x2048xbf16, #tpu.memory_space<vmem>>, %arg4: memref<2048x256xbf16, #tpu.memory_space<vmem>>, %arg5: memref<1x256xf32, #tpu.memory_space<vmem>>, %arg6: memref<1x16x256xbf16, #tpu.memory_space<vmem>>, %arg7: memref<16x256xf32, #tpu.memory_space<vmem>>) attributes {dimension_semantics = [#tpu.dimension_semantics<parallel>, #tpu.dimension_semantics<parallel>, #tpu.dimension_semantics<arbitrary>], iteration_bounds = array<i64: 2, 1, 1>, scalar_prefetch = 0 : i64, scratch_operands = 1 : i64, tpu.core_type = #tpu.core_type<tc>, window_params = [{transform_indices = @transform_0, window_bounds = array<i64: 1, 16, 2048>}, {transform_indices = @transform_1, window_bounds = array<i64: 2048, 256>}, {transform_indices = @transform_2, window_bounds = array<i64: 1, 256>}, {transform_indices = @transform_3, window_bounds = array<i64: 1, 16, 256>}]} {
    %c0_i32 = arith.constant 0 : i32
    %0 = arith.cmpi eq, %arg2, %c0_i32 : i32
    %1 = arith.extui %0 : i1 to i32
    %c0_i32_0 = arith.constant 0 : i32
    %2 = arith.cmpi ne, %1, %c0_i32_0 : i32
    scf.if %2 {
      %cst_11 = arith.constant 0.000000e+00 : f32
      %13 = vector.broadcast %cst_11 : f32 to vector<16x256xf32>
      %c0_12 = arith.constant 0 : index
      %c0_13 = arith.constant 0 : index
      %14 = vector.load %arg7[%c0_12, %c0_13] : memref<16x256xf32, #tpu.memory_space<vmem>>, vector<16x256xf32>
      tpu.vector_store %arg7[%c0_12, %c0_13], %13 {strides = array<i32>} : memref<16x256xf32, #tpu.memory_space<vmem>>, vector<16x256xf32>,
    } else {
    }
    %c0 = arith.constant 0 : index
    %c0_1 = arith.constant 0 : index
    %3 = vector.load %arg7[%c0, %c0_1] : memref<16x256xf32, #tpu.memory_space<vmem>>, vector<16x256xf32>
    %c0_2 = arith.constant 0 : index
    %c0_3 = arith.constant 0 : index
    %c0_4 = arith.constant 0 : index
    %4 = vector.load %arg3[%c0_2, %c0_3, %c0_4] : memref<1x16x2048xbf16, #tpu.memory_space<vmem>>, vector<1x16x2048xbf16>
    %5 = vector.shape_cast %4 : vector<1x16x2048xbf16> to vector<16x2048xbf16>
    %c0_5 = arith.constant 0 : index
    %c0_6 = arith.constant 0 : index
    %6 = vector.load %arg4[%c0_5, %c0_6] : memref<2048x256xbf16, #tpu.memory_space<vmem>>, vector<2048x256xbf16>
    %cst = arith.constant dense<0.000000e+00> : vector<16x256xf32>
    %7 = tpu.matmul %5, %6, %cst {dimension_numbers = #tpu.dot_dimension_numbers<[1], [0], [0], [1], [0, 0, 1, 1], [], []>} : vector<16x2048xbf16>, vector<2048x256xbf16>, vector<16x256xf32> -> vector<16x256xf32>
    %8 = arith.addf %3, %7 : vector<16x256xf32>
    %c0_7 = arith.constant 0 : index
    %c0_8 = arith.constant 0 : index
    %9 = vector.load %arg7[%c0_7, %c0_8] : memref<16x256xf32, #tpu.memory_space<vmem>>, vector<16x256xf32>
    tpu.vector_store %arg7[%c0_7, %c0_8], %8 {strides = array<i32>} : memref<16x256xf32, #tpu.memory_space<vmem>>, vector<16x256xf32>,
    %c0_i32_9 = arith.constant 0 : i32
    %10 = arith.cmpi eq, %arg2, %c0_i32_9 : i32
    %11 = arith.extui %10 : i1 to i32
    %c0_i32_10 = arith.constant 0 : i32
    %12 = arith.cmpi ne, %11, %c0_i32_10 : i32
    scf.if %12 {
      %c0_11 = arith.constant 0 : index
      %c0_12 = arith.constant 0 : index
      %13 = vector.load %arg7[%c0_11, %c0_12] : memref<16x256xf32, #tpu.memory_space<vmem>>, vector<16x256xf32>
      %c0_13 = arith.constant 0 : index
      %c0_14 = arith.constant 0 : index
      %14 = vector.load %arg5[%c0_13, %c0_14] : memref<1x256xf32, #tpu.memory_space<vmem>>, vector<1x256xf32>
      %15 = vector.broadcast %14 : vector<1x256xf32> to vector<16x256xf32>
      %16 = arith.addf %13, %15 : vector<16x256xf32>
      %cst_15 = arith.constant dense<0.000000e+00> : vector<256xf32>
      %17 = vector.multi_reduction <add>, %16, %cst_15 [0] : vector<16x256xf32> to vector<256xf32>
      %18 = vector.shape_cast %17 : vector<256xf32> to vector<1x256xf32>
      %19 = arith.mulf %16, %16 : vector<16x256xf32>
      %cst_16 = arith.constant dense<0.000000e+00> : vector<256xf32>
      %20 = vector.multi_reduction <add>, %19, %cst_16 [0] : vector<16x256xf32> to vector<256xf32>
      %21 = vector.shape_cast %20 : vector<256xf32> to vector<1x256xf32>
      %cst_17 = arith.constant 6.250000e-02 : f32
      %22 = vector.broadcast %cst_17 : f32 to vector<1x256xf32>
      %23 = arith.mulf %18, %22 : vector<1x256xf32>
      %cst_18 = arith.constant 6.250000e-02 : f32
      %24 = vector.broadcast %cst_18 : f32 to vector<1x256xf32>
      %25 = arith.mulf %21, %24 : vector<1x256xf32>
      %26 = arith.mulf %23, %23 : vector<1x256xf32>
      %27 = arith.subf %25, %26 : vector<1x256xf32>
      %cst_19 = arith.constant 0.000000e+00 : f32
      %28 = vector.broadcast %cst_19 : f32 to vector<1x256xf32>
      %29 = arith.maximumf %27, %28 : vector<1x256xf32>
      %30 = vector.broadcast %23 : vector<1x256xf32> to vector<16x256xf32>
      %31 = arith.subf %16, %30 : vector<16x256xf32>
      %cst_20 = arith.constant 9.99999974E-6 : f32
      %32 = vector.broadcast %cst_20 : f32 to vector<1x256xf32>
      %33 = arith.addf %29, %32 : vector<1x256xf32>
      %34 = math.rsqrt %33 : vector<1x256xf32>
      %35 = vector.broadcast %34 : vector<1x256xf32> to vector<16x256xf32>
      %36 = arith.mulf %31, %35 : vector<16x256xf32>
      %cst_21 = arith.constant 0.000000e+00 : f32
      %37 = vector.broadcast %cst_21 : f32 to vector<16x256xf32>
      %38 = arith.cmpf oge, %36, %37 : vector<16x256xf32>
      %cst_22 = arith.constant 2.000000e-01 : f32
      %39 = vector.broadcast %cst_22 : f32 to vector<16x256xf32>
      %40 = arith.mulf %39, %36 : vector<16x256xf32>
      %41 = arith.select %38, %36, %40 : vector<16x256xi1>, vector<16x256xf32>
      %42 = arith.truncf %41 : vector<16x256xf32> to vector<16x256xbf16>
      %c0_23 = arith.constant 0 : index
      %c0_24 = arith.constant 0 : index
      %c0_25 = arith.constant 0 : index
      %43 = vector.load %arg6[%c0_23, %c0_24, %c0_25] : memref<1x16x256xbf16, #tpu.memory_space<vmem>>, vector<1x16x256xbf16>
      %44 = vector.shape_cast %43 : vector<1x16x256xbf16> to vector<16x256xbf16>
      %45 = vector.shape_cast %42 : vector<16x256xbf16> to vector<1x16x256xbf16>
      tpu.vector_store %arg6[%c0_23, %c0_24, %c0_25], %45 {strides = array<i32>} : memref<1x16x256xbf16, #tpu.memory_space<vmem>>, vector<1x16x256xbf16>,
    } else {
    }
    return
  }
  func.func @transform_0(%arg0: i32, %arg1: i32, %arg2: i32) -> (i32, i32, i32) {
    %c0_i32 = arith.constant 0 : i32
    %c0_i32_0 = arith.constant 0 : i32
    return %arg0, %c0_i32, %arg2 : i32, i32, i32
  }
  func.func @transform_1(%arg0: i32, %arg1: i32, %arg2: i32) -> (i32, i32) {
    %c0_i32 = arith.constant 0 : i32
    return %arg2, %arg1 : i32, i32
  }
  func.func @transform_2(%arg0: i32, %arg1: i32, %arg2: i32) -> (i32, i32) {
    %c0_i32 = arith.constant 0 : i32
    %c0_i32_0 = arith.constant 0 : i32
    return %c0_i32, %arg1 : i32, i32
  }
  func.func @transform_3(%arg0: i32, %arg1: i32, %arg2: i32) -> (i32, i32, i32) {
    %c0_i32 = arith.constant 0 : i32
    %c0_i32_0 = arith.constant 0 : i32
    return %arg0, %c0_i32, %arg1 : i32, i32, i32
  }
}

module attributes {stable_mosaic.version = 11 : i64} {
  func.func @_conv_norm_lrelu_kernel(%arg0: i32, %arg1: i32, %arg2: i32, %arg3: memref<1x9x2048xbf16, #tpu.memory_space<vmem>>, %arg4: memref<2048x512xbf16, #tpu.memory_space<vmem>>, %arg5: memref<1x512xf32, #tpu.memory_space<vmem>>, %arg6: memref<1x9x512xbf16, #tpu.memory_space<vmem>>, %arg7: memref<9x512xf32, #tpu.memory_space<vmem>>) attributes {dimension_semantics = [#tpu.dimension_semantics<parallel>, #tpu.dimension_semantics<parallel>, #tpu.dimension_semantics<arbitrary>], iteration_bounds = array<i64: 2, 1, 2>, scalar_prefetch = 0 : i64, scratch_operands = 1 : i64, tpu.core_type = #tpu.core_type<tc>, window_params = [{transform_indices = @transform_0, window_bounds = array<i64: 1, 9, 2048>}, {transform_indices = @transform_1, window_bounds = array<i64: 2048, 512>}, {transform_indices = @transform_2, window_bounds = array<i64: 1, 512>}, {transform_indices = @transform_3, window_bounds = array<i64: 1, 9, 512>}]} {
    %c0_i32 = arith.constant 0 : i32
    %0 = arith.cmpi eq, %arg2, %c0_i32 : i32
    %1 = arith.extui %0 : i1 to i32
    %c0_i32_0 = arith.constant 0 : i32
    %2 = arith.cmpi ne, %1, %c0_i32_0 : i32
    scf.if %2 {
      %cst_10 = arith.constant 0.000000e+00 : f32
      %13 = vector.broadcast %cst_10 : f32 to vector<9x512xf32>
      %c0_11 = arith.constant 0 : index
      %c0_12 = arith.constant 0 : index
      %14 = vector.load %arg7[%c0_11, %c0_12] : memref<9x512xf32, #tpu.memory_space<vmem>>, vector<9x512xf32>
      tpu.vector_store %arg7[%c0_11, %c0_12], %13 {strides = array<i32>} : memref<9x512xf32, #tpu.memory_space<vmem>>, vector<9x512xf32>,
    } else {
    }
    %c0 = arith.constant 0 : index
    %c0_1 = arith.constant 0 : index
    %3 = vector.load %arg7[%c0, %c0_1] : memref<9x512xf32, #tpu.memory_space<vmem>>, vector<9x512xf32>
    %c0_2 = arith.constant 0 : index
    %c0_3 = arith.constant 0 : index
    %c0_4 = arith.constant 0 : index
    %4 = vector.load %arg3[%c0_2, %c0_3, %c0_4] : memref<1x9x2048xbf16, #tpu.memory_space<vmem>>, vector<1x9x2048xbf16>
    %5 = vector.shape_cast %4 : vector<1x9x2048xbf16> to vector<9x2048xbf16>
    %c0_5 = arith.constant 0 : index
    %c0_6 = arith.constant 0 : index
    %6 = vector.load %arg4[%c0_5, %c0_6] : memref<2048x512xbf16, #tpu.memory_space<vmem>>, vector<2048x512xbf16>
    %cst = arith.constant dense<0.000000e+00> : vector<9x512xf32>
    %7 = tpu.matmul %5, %6, %cst {dimension_numbers = #tpu.dot_dimension_numbers<[1], [0], [0], [1], [0, 0, 1, 1], [], []>} : vector<9x2048xbf16>, vector<2048x512xbf16>, vector<9x512xf32> -> vector<9x512xf32>
    %8 = arith.addf %3, %7 : vector<9x512xf32>
    %c0_7 = arith.constant 0 : index
    %c0_8 = arith.constant 0 : index
    %9 = vector.load %arg7[%c0_7, %c0_8] : memref<9x512xf32, #tpu.memory_space<vmem>>, vector<9x512xf32>
    tpu.vector_store %arg7[%c0_7, %c0_8], %8 {strides = array<i32>} : memref<9x512xf32, #tpu.memory_space<vmem>>, vector<9x512xf32>,
    %c1_i32 = arith.constant 1 : i32
    %10 = arith.cmpi eq, %arg2, %c1_i32 : i32
    %11 = arith.extui %10 : i1 to i32
    %c0_i32_9 = arith.constant 0 : i32
    %12 = arith.cmpi ne, %11, %c0_i32_9 : i32
    scf.if %12 {
      %c0_10 = arith.constant 0 : index
      %c0_11 = arith.constant 0 : index
      %13 = vector.load %arg7[%c0_10, %c0_11] : memref<9x512xf32, #tpu.memory_space<vmem>>, vector<9x512xf32>
      %c0_12 = arith.constant 0 : index
      %c0_13 = arith.constant 0 : index
      %14 = vector.load %arg5[%c0_12, %c0_13] : memref<1x512xf32, #tpu.memory_space<vmem>>, vector<1x512xf32>
      %15 = vector.broadcast %14 : vector<1x512xf32> to vector<9x512xf32>
      %16 = arith.addf %13, %15 : vector<9x512xf32>
      %cst_14 = arith.constant dense<0.000000e+00> : vector<512xf32>
      %17 = vector.multi_reduction <add>, %16, %cst_14 [0] : vector<9x512xf32> to vector<512xf32>
      %18 = vector.shape_cast %17 : vector<512xf32> to vector<1x512xf32>
      %19 = arith.mulf %16, %16 : vector<9x512xf32>
      %cst_15 = arith.constant dense<0.000000e+00> : vector<512xf32>
      %20 = vector.multi_reduction <add>, %19, %cst_15 [0] : vector<9x512xf32> to vector<512xf32>
      %21 = vector.shape_cast %20 : vector<512xf32> to vector<1x512xf32>
      %cst_16 = arith.constant 0.111111112 : f32
      %22 = vector.broadcast %cst_16 : f32 to vector<1x512xf32>
      %23 = arith.mulf %18, %22 : vector<1x512xf32>
      %cst_17 = arith.constant 0.111111112 : f32
      %24 = vector.broadcast %cst_17 : f32 to vector<1x512xf32>
      %25 = arith.mulf %21, %24 : vector<1x512xf32>
      %26 = arith.mulf %23, %23 : vector<1x512xf32>
      %27 = arith.subf %25, %26 : vector<1x512xf32>
      %cst_18 = arith.constant 0.000000e+00 : f32
      %28 = vector.broadcast %cst_18 : f32 to vector<1x512xf32>
      %29 = arith.maximumf %27, %28 : vector<1x512xf32>
      %30 = vector.broadcast %23 : vector<1x512xf32> to vector<9x512xf32>
      %31 = arith.subf %16, %30 : vector<9x512xf32>
      %cst_19 = arith.constant 9.99999974E-6 : f32
      %32 = vector.broadcast %cst_19 : f32 to vector<1x512xf32>
      %33 = arith.addf %29, %32 : vector<1x512xf32>
      %34 = math.rsqrt %33 : vector<1x512xf32>
      %35 = vector.broadcast %34 : vector<1x512xf32> to vector<9x512xf32>
      %36 = arith.mulf %31, %35 : vector<9x512xf32>
      %cst_20 = arith.constant 0.000000e+00 : f32
      %37 = vector.broadcast %cst_20 : f32 to vector<9x512xf32>
      %38 = arith.cmpf oge, %36, %37 : vector<9x512xf32>
      %cst_21 = arith.constant 2.000000e-01 : f32
      %39 = vector.broadcast %cst_21 : f32 to vector<9x512xf32>
      %40 = arith.mulf %39, %36 : vector<9x512xf32>
      %41 = arith.select %38, %36, %40 : vector<9x512xi1>, vector<9x512xf32>
      %42 = arith.truncf %41 : vector<9x512xf32> to vector<9x512xbf16>
      %c0_22 = arith.constant 0 : index
      %c0_23 = arith.constant 0 : index
      %c0_24 = arith.constant 0 : index
      %43 = vector.load %arg6[%c0_22, %c0_23, %c0_24] : memref<1x9x512xbf16, #tpu.memory_space<vmem>>, vector<1x9x512xbf16>
      %44 = vector.shape_cast %43 : vector<1x9x512xbf16> to vector<9x512xbf16>
      %45 = vector.shape_cast %42 : vector<9x512xbf16> to vector<1x9x512xbf16>
      tpu.vector_store %arg6[%c0_22, %c0_23, %c0_24], %45 {strides = array<i32>} : memref<1x9x512xbf16, #tpu.memory_space<vmem>>, vector<1x9x512xbf16>,
    } else {
    }
    return
  }
  func.func @transform_0(%arg0: i32, %arg1: i32, %arg2: i32) -> (i32, i32, i32) {
    %c0_i32 = arith.constant 0 : i32
    %c0_i32_0 = arith.constant 0 : i32
    return %arg0, %c0_i32, %arg2 : i32, i32, i32
  }
  func.func @transform_1(%arg0: i32, %arg1: i32, %arg2: i32) -> (i32, i32) {
    %c0_i32 = arith.constant 0 : i32
    return %arg2, %arg1 : i32, i32
  }
  func.func @transform_2(%arg0: i32, %arg1: i32, %arg2: i32) -> (i32, i32) {
    %c0_i32 = arith.constant 0 : i32
    %c0_i32_0 = arith.constant 0 : i32
    return %c0_i32, %arg1 : i32, i32
  }
  func.func @transform_3(%arg0: i32, %arg1: i32, %arg2: i32) -> (i32, i32, i32) {
    %c0_i32 = arith.constant 0 : i32
    %c0_i32_0 = arith.constant 0 : i32
    return %arg0, %c0_i32, %arg1 : i32, i32, i32
  }
}

module attributes {stable_mosaic.version = 11 : i64} {
  func.func @_conv_avgpool_kernel(%arg0: i32, %arg1: i32, %arg2: memref<1x4x2048xbf16, #tpu.memory_space<vmem>>, %arg3: memref<1x2048xbf16, #tpu.memory_space<vmem>>, %arg4: memref<1x1xf32, #tpu.memory_space<vmem>>, %arg5: memref<1x1x1xf32, #tpu.memory_space<vmem>>, %arg6: memref<1x1xf32, #tpu.memory_space<vmem>>) attributes {dimension_semantics = [#tpu.dimension_semantics<parallel>, #tpu.dimension_semantics<arbitrary>], iteration_bounds = array<i64: 2, 4>, scalar_prefetch = 0 : i64, scratch_operands = 1 : i64, tpu.core_type = #tpu.core_type<tc>, window_params = [{transform_indices = @transform_0, window_bounds = array<i64: 1, 4, 2048>}, {transform_indices = @transform_1, window_bounds = array<i64: 1, 2048>}, {pipeline_mode = #tpu.pipeline_mode<synchronous>, transform_indices = @transform_2, window_bounds = array<i64: 1, 1>}, {transform_indices = @transform_3, window_bounds = array<i64: 1, 1, 1>}]} {
    %c0_i32 = arith.constant 0 : i32
    %0 = arith.cmpi eq, %arg1, %c0_i32 : i32
    %1 = arith.extui %0 : i1 to i32
    %c0_i32_0 = arith.constant 0 : i32
    %2 = arith.cmpi ne, %1, %c0_i32_0 : i32
    scf.if %2 {
      %cst_11 = arith.constant 0.000000e+00 : f32
      %19 = vector.broadcast %cst_11 : f32 to vector<1x1xf32>
      %c0_12 = arith.constant 0 : index
      %c0_13 = arith.constant 0 : index
      %20 = vector.load %arg6[%c0_12, %c0_13] : memref<1x1xf32, #tpu.memory_space<vmem>>, vector<1x1xf32>
      tpu.vector_store %arg6[%c0_12, %c0_13], %19 {strides = array<i32>} : memref<1x1xf32, #tpu.memory_space<vmem>>, vector<1x1xf32>,
    } else {
    }
    %c0 = arith.constant 0 : index
    %c0_1 = arith.constant 0 : index
    %c0_2 = arith.constant 0 : index
    %3 = vector.load %arg2[%c0, %c0_1, %c0_2] : memref<1x4x2048xbf16, #tpu.memory_space<vmem>>, vector<1x4x2048xbf16>
    %4 = vector.shape_cast %3 : vector<1x4x2048xbf16> to vector<4x2048xbf16>
    %5 = arith.extf %4 : vector<4x2048xbf16> to vector<4x2048xf32>
    %cst = arith.constant dense<0.000000e+00> : vector<2048xf32>
    %6 = vector.multi_reduction <add>, %5, %cst [0] : vector<4x2048xf32> to vector<2048xf32>
    %7 = vector.shape_cast %6 : vector<2048xf32> to vector<1x2048xf32>
    %c0_3 = arith.constant 0 : index
    %c0_4 = arith.constant 0 : index
    %8 = vector.load %arg3[%c0_3, %c0_4] : memref<1x2048xbf16, #tpu.memory_space<vmem>>, vector<1x2048xbf16>
    %9 = arith.extf %8 : vector<1x2048xbf16> to vector<1x2048xf32>
    %c0_5 = arith.constant 0 : index
    %c0_6 = arith.constant 0 : index
    %10 = vector.load %arg6[%c0_5, %c0_6] : memref<1x1xf32, #tpu.memory_space<vmem>>, vector<1x1xf32>
    %11 = arith.mulf %7, %9 : vector<1x2048xf32>
    %cst_7 = arith.constant dense<0.000000e+00> : vector<1xf32>
    %12 = vector.multi_reduction <add>, %11, %cst_7 [1] : vector<1x2048xf32> to vector<1xf32>
    %13 = vector.shape_cast %12 : vector<1xf32> to vector<1x1xf32>
    %14 = arith.addf %10, %13 : vector<1x1xf32>
    %c0_8 = arith.constant 0 : index
    %c0_9 = arith.constant 0 : index
    %15 = vector.load %arg6[%c0_8, %c0_9] : memref<1x1xf32, #tpu.memory_space<vmem>>, vector<1x1xf32>
    tpu.vector_store %arg6[%c0_8, %c0_9], %14 {strides = array<i32>} : memref<1x1xf32, #tpu.memory_space<vmem>>, vector<1x1xf32>,
    %c3_i32 = arith.constant 3 : i32
    %16 = arith.cmpi eq, %arg1, %c3_i32 : i32
    %17 = arith.extui %16 : i1 to i32
    %c0_i32_10 = arith.constant 0 : i32
    %18 = arith.cmpi ne, %17, %c0_i32_10 : i32
    scf.if %18 {
      %c0_11 = arith.constant 0 : index
      %c0_12 = arith.constant 0 : index
      %19 = vector.load %arg6[%c0_11, %c0_12] : memref<1x1xf32, #tpu.memory_space<vmem>>, vector<1x1xf32>
      %cst_13 = arith.constant 2.500000e-01 : f32
      %20 = vector.broadcast %cst_13 : f32 to vector<1x1xf32>
      %21 = arith.mulf %19, %20 : vector<1x1xf32>
      %c0_14 = arith.constant 0 : index
      %c0_15 = arith.constant 0 : index
      %22 = vector.load %arg4[%c0_14, %c0_15] : memref<1x1xf32, #tpu.memory_space<vmem>>, vector<1x1xf32>
      %23 = arith.addf %21, %22 : vector<1x1xf32>
      %c0_16 = arith.constant 0 : index
      %c0_17 = arith.constant 0 : index
      %c0_18 = arith.constant 0 : index
      %24 = vector.load %arg5[%c0_16, %c0_17, %c0_18] : memref<1x1x1xf32, #tpu.memory_space<vmem>>, vector<1x1x1xf32>
      %25 = vector.shape_cast %24 : vector<1x1x1xf32> to vector<1x1xf32>
      %26 = vector.shape_cast %23 : vector<1x1xf32> to vector<1x1x1xf32>
      tpu.vector_store %arg5[%c0_16, %c0_17, %c0_18], %26 {strides = array<i32>} : memref<1x1x1xf32, #tpu.memory_space<vmem>>, vector<1x1x1xf32>,
    } else {
    }
    return
  }
  func.func @transform_0(%arg0: i32, %arg1: i32) -> (i32, i32, i32) {
    %c0_i32 = arith.constant 0 : i32
    %c0_i32_0 = arith.constant 0 : i32
    return %arg0, %c0_i32, %arg1 : i32, i32, i32
  }
  func.func @transform_1(%arg0: i32, %arg1: i32) -> (i32, i32) {
    %c0_i32 = arith.constant 0 : i32
    %c0_i32_0 = arith.constant 0 : i32
    return %c0_i32, %arg1 : i32, i32
  }
  func.func @transform_2(%arg0: i32, %arg1: i32) -> (i32, i32) {
    %c0_i32 = arith.constant 0 : i32
    %c0_i32_0 = arith.constant 0 : i32
    %c0_i32_1 = arith.constant 0 : i32
    return %c0_i32, %c0_i32_0 : i32, i32
  }
  func.func @transform_3(%arg0: i32, %arg1: i32) -> (i32, i32, i32) {
    %c0_i32 = arith.constant 0 : i32
    %c0_i32_0 = arith.constant 0 : i32
    %c0_i32_1 = arith.constant 0 : i32
    return %arg0, %c0_i32, %c0_i32_0 : i32, i32, i32
  }
}

</mosaic_0001>

<bundles_post_ra>
// kernel: discriminator_forward.5
= control target key start
LH: loop header
LB: loop body
LE: loop exit
PB: predicated region body
PF: predicated region fallthrough
CT: control target
= control target key end

     0   :  { %vm395_vm0 = vcmask 392192   ;;  %s2427_s1 = inlined_call_operand.vmem [shape: bf16[48,128], index: 1, kind: input, shape index: {}]   ;;  %s2428_s0 = inlined_call_operand.vmem [shape: bf16[512,48], index: 0, kind: input, shape index: {}]   ;;  %s2429_s2 = inlined_call_operand.vmem [shape: f32[1,128], index: 2, kind: input, shape index: {}]   ;;  %s2430_s3 = inlined_call_operand.vmem [shape: bf16[512,128], index: 3, kind: output, shape index: {}]  }
   0x1   :  { %v2061_v0 = vld [vmem:[%s2427_s1] sm:$0xff]   ;;  %v2062_v1 = vld [vmem:[%s2427_s1 + $0x8] sm:$0xff]   ;;  %v2063_v2 = vld [vmem:[%s2427_s1 + $0x10] sm:$0xff]  }
   0x2   :  { %1985 = vmatprep.subr.bf16.mxu0 %v2061_v0  ;;  %2055 = vmatprep.subr.bf16.mxu1 %v2061_v0  ;;  %v2064_v3 = vld [vmem:[%s2428_s0] sm:$0xff]   ;;  %v2066_v5 = vld [vmem:[%s2428_s0 + $0x8] sm:$0xff]   ;;  %v2068_v7 = vld [vmem:[%s2428_s0 + $0x10] sm:$0xff]  }
   0x3   :  { %1986 = vmatpush3.bf16.msra.mxu0 %v2061_v0  ;;  %2058 = vmatpush3.bf16.msra.mxu1 %v2061_v0  ;;  %v2065_v4 = vld [vmem:[%s2428_s0 + $0x80] sm:$0xff]   ;;  %v2067_v6 = vld [vmem:[%s2428_s0 + $0x88] sm:$0xff]   ;;  %v2069_v8 = vld [vmem:[%s2428_s0 + $0x90] sm:$0xff]  }
   0x4   :  { %1987 = vmatprep.subr.bf16.mxu0 %v2062_v1  ;;  %2056 = vmatprep.subr.bf16.mxu1 %v2062_v1  ;;  %v2070_v9 = vld [vmem:[%s2428_s0 + $0x18] sm:$0xff]   ;;  %v2072_v11 = vld [vmem:[%s2428_s0 + $0x20] sm:$0xff]   ;;  %v2074_v13 = vld [vmem:[%s2428_s0 + $0x28] sm:$0xff]  }
   0x5   :  { %1991 = vmatprep.mubr.msk.bf16.mxu0 %vm395_vm0, %v2064_v3  ;;  %2023 = vmatprep.mubr.msk.bf16.mxu1 %vm395_vm0, %v2065_v4  ;;  %v2071_v10 = vld [vmem:[%s2428_s0 + $0x98] sm:$0xff]   ;;  %v2073_v12 = vld [vmem:[%s2428_s0 + $0xa0] sm:$0xff]   ;;  %v2075_v14 = vld [vmem:[%s2428_s0 + $0xa8] sm:$0xff]  }
   0x6   :  { %v2076_v15 = vld [vmem:[%s2428_s0 + $0x30] sm:$0xff]   ;;  %v2078_v17 = vld [vmem:[%s2428_s0 + $0x38] sm:$0xff]   ;;  %v2080_v19 = vld [vmem:[%s2428_s0 + $0x40] sm:$0xff]  }
   0x7   :  { %1988 = vmatpush3.bf16.msra.mxu0 %v2062_v1  ;;  %2059 = vmatpush3.bf16.msra.mxu1 %v2062_v1  ;;  %v2077_v16 = vld [vmem:[%s2428_s0 + $0xb0] sm:$0xff]   ;;  %v2079_v18 = vld [vmem:[%s2428_s0 + $0xb8] sm:$0xff]   ;;  %v2081_v20 = vld [vmem:[%s2428_s0 + $0xc0] sm:$0xff]  }
   0x8   :  { %1989 = vmatprep.subr.bf16.mxu0 %v2063_v2  ;;  %2057 = vmatprep.subr.bf16.mxu1 %v2063_v2  ;;  %v2082_v21 = vld [vmem:[%s2428_s0 + $0x48] sm:$0xff]   ;;  %v2084_v23 = vld [vmem:[%s2428_s0 + $0x50] sm:$0xff]   ;;  %v2086_v25 = vld [vmem:[%s2428_s0 + $0x58] sm:$0xff]  }
   0x9   :  { %v2083_v22 = vld [vmem:[%s2428_s0 + $0xc8] sm:$0xff]   ;;  %v2085_v24 = vld [vmem:[%s2428_s0 + $0xd0] sm:$0xff]   ;;  %v2087_v26 = vld [vmem:[%s2428_s0 + $0xd8] sm:$0xff]  }
   0xa   :  { %v2088_v27 = vld [vmem:[%s2428_s0 + $0x60] sm:$0xff]   ;;  %v2090_v29 = vld [vmem:[%s2428_s0 + $0x68] sm:$0xff]   ;;  %v2092_v31 = vld [vmem:[%s2428_s0 + $0x70] sm:$0xff]  }
   0xb   :  { %1990 = vmatpush3.bf16.msra.mxu0 %v2063_v2  ;;  %2060 = vmatpush3.bf16.msra.mxu1 %v2063_v2  ;;  %v2089_v28 = vld [vmem:[%s2428_s0 + $0xe0] sm:$0xff]   ;;  %v2091_v30 = vld [vmem:[%s2428_s0 + $0xe8] sm:$0xff]   ;;  %v2093_v32 = vld [vmem:[%s2428_s0 + $0xf0] sm:$0xff]  }
   0xc   :  { %v2094_v33 = vld [vmem:[%s2428_s0 + $0x78] sm:$0xff]   ;;  %v2256_v35 = vld [vmem:[%s2429_s2] ss:$0 sm:$0xff] }
   0xd   :  { %v2095_v34 = vld [vmem:[%s2428_s0 + $0xf8] sm:$0xff]  }
   0xe   :  { %1992 = vmatmul.mubr.msk.bf16.vlgmr.msra.gmra.mrb[0].mxu0 %vm395_vm0, %v2066_v5  ;;  %2024 = vmatmul.mubr.msk.bf16.vlgmr.msra.gmra.mrb[0].mxu1 %vm395_vm0, %v2067_v6 }
   0xf   :  { %1995 = vmatprep.mubr.msk.bf16.mxu0 %vm395_vm0, %v2068_v7  ;;  %2027 = vmatprep.mubr.msk.bf16.mxu1 %vm395_vm0, %v2069_v8 }
  0x16   :  { %1996 = vmatmul.mubr.msk.bf16.gmra.mrb[4].mxu0 %vm395_vm0, %v2070_v9  ;;  %2028 = vmatmul.mubr.msk.bf16.gmra.mrb[4].mxu1 %vm395_vm0, %v2071_v10 }
  0x17   :  { %1999 = vmatprep.mubr.msk.bf16.mxu0 %vm395_vm0, %v2072_v11  ;;  %2031 = vmatprep.mubr.msk.bf16.mxu1 %vm395_vm0, %v2073_v12 }
  0x1e   :  { %2000 = vmatmul.mubr.msk.bf16.gmra.mrb[8].mxu0 %vm395_vm0, %v2074_v13  ;;  %2032 = vmatmul.mubr.msk.bf16.gmra.mrb[8].mxu1 %vm395_vm0, %v2075_v14 }
  0x1f   :  { %2003 = vmatprep.mubr.msk.bf16.mxu0 %vm395_vm0, %v2076_v15  ;;  %2035 = vmatprep.mubr.msk.bf16.mxu1 %vm395_vm0, %v2077_v16 }
  0x26   :  { %2004 = vmatmul.mubr.msk.bf16.gmra.mrb[12].mxu0 %vm395_vm0, %v2078_v17  ;;  %2036 = vmatmul.mubr.msk.bf16.gmra.mrb[12].mxu1 %vm395_vm0, %v2079_v18 }
  0x27   :  { %2007 = vmatprep.mubr.msk.bf16.mxu0 %vm395_vm0, %v2080_v19  ;;  %2039 = vmatprep.mubr.msk.bf16.mxu1 %vm395_vm0, %v2081_v20 }
  0x2e   :  { %2008 = vmatmul.mubr.msk.bf16.gmra.mrb[16].mxu0 %vm395_vm0, %v2082_v21  ;;  %2040 = vmatmul.mubr.msk.bf16.gmra.mrb[16].mxu1 %vm395_vm0, %v2083_v22 }
  0x2f   :  { %2011 = vmatprep.mubr.msk.bf16.mxu0 %vm395_vm0, %v2084_v23  ;;  %2043 = vmatprep.mubr.msk.bf16.mxu1 %vm395_vm0, %v2085_v24 }
  0x36   :  { %2012 = vmatmul.mubr.msk.bf16.gmra.mrb[20].mxu0 %vm395_vm0, %v2086_v25  ;;  %2044 = vmatmul.mubr.msk.bf16.gmra.mrb[20].mxu1 %vm395_vm0, %v2087_v26 }
  0x37   :  { %2015 = vmatprep.mubr.msk.bf16.mxu0 %vm395_vm0, %v2088_v27  ;;  %2047 = vmatprep.mubr.msk.bf16.mxu1 %vm395_vm0, %v2089_v28 }
  0x3e   :  { %2016 = vmatmul.mubr.msk.bf16.gmra.mrb[24].mxu0 %vm395_vm0, %v2090_v29  ;;  %2048 = vmatmul.mubr.msk.bf16.gmra.mrb[24].mxu1 %vm395_vm0, %v2091_v30 }
  0x3f   :  { %2019 = vmatprep.mubr.msk.bf16.mxu0 %vm395_vm0, %v2092_v31  ;;  %2051 = vmatprep.mubr.msk.bf16.mxu1 %vm395_vm0, %v2093_v32 }
  0x46   :  { %2020 = vmatmul.mubr.msk.bf16.gmra.mrb[28].mxu0 %vm395_vm0, %v2094_v33  ;;  %2052 = vmatmul.mubr.msk.bf16.gmra.mrb[28].mxu1 %vm395_vm0, %v2095_v34 }
  0xe1   :  { %v1993_v36 = vpop.f32.mrb[0].mxu0  ;;  %v2025_v37 = vpop.f32.mrb[0].mxu1 }
  0xe2   :  { %v985_v38 = vadd.f32 %v1993_v36, %v2256_v35  ;;  %v1017_v39 = vadd.f32 %v2025_v37, %v2256_v35  ;;  %v526_v40 = vpop.f32.mrb[1].mxu0  ;;  %v654_v41 = vpop.f32.mrb[1].mxu1 }
  0xe3   :  { %v983_v42 = vadd.f32 %v2256_v35, %v526_v40  ;;  %v1015_v43 = vadd.f32 %v2256_v35, %v654_v41  ;;  %v1994_v44 = vpop.f32.mrb[2].mxu0  ;;  %v2026_v45 = vpop.f32.mrb[2].mxu1 }
  0xe4   :  { %vm1049_vm1 = vcmp.ge.f32.partialorder %v985_v38, 0.0  ;;  %v1113_v46 = vmul.f32 0.2, %v985_v38  ;;  %vm1081_vm2 = vcmp.ge.f32.partialorder %v1017_v39, 0.0  ;;  %v1145_v47 = vmul.f32 0.2, %v1017_v39 }
  0xe5   :  { %vm1047_vm3 = vcmp.ge.f32.partialorder %v983_v42, 0.0  ;;  %v1111_v48 = vmul.f32 0.2, %v983_v42  ;;  %vm1079_vm4 = vcmp.ge.f32.partialorder %v1015_v43, 0.0  ;;  %v1143_v49 = vmul.f32 0.2, %v1015_v43 }
  0xe6   :  { %v986_v50 = vadd.f32 %v1994_v44, %v2256_v35  ;;  %v1018_v51 = vadd.f32 %v2026_v45, %v2256_v35  ;;  %v529_v52 = vpop.f32.mrb[3].mxu0  ;;  %v657_v53 = vpop.f32.mrb[3].mxu1  ;;  %v1177_v54 = vsel %vm1049_vm1, %v985_v38, %v1113_v46  ;;  %v1209_v55 = vsel %vm1081_vm2, %v1017_v39, %v1145_v47 }
  0xe7   :  { %v984_v56 = vadd.f32 %v2256_v35, %v529_v52  ;;  %v1016_v57 = vadd.f32 %v2256_v35, %v657_v53  ;;  %v1175_v62 = vsel %vm1047_vm3, %v983_v42, %v1111_v48  ;;  %v1207_v63 = vsel %vm1079_vm4, %v1015_v43, %v1143_v49 }
  0xe8   :  { %vm1050_vm5 = vcmp.ge.f32.partialorder %v986_v50, 0.0  ;;  %v1114_v58 = vmul.f32 0.2, %v986_v50  ;;  %vm1082_vm6 = vcmp.ge.f32.partialorder %v1018_v51, 0.0  ;;  %v1146_v59 = vmul.f32 0.2, %v1018_v51 }
  0xe9   :  { %vm1048_vm7 = vcmp.ge.f32.partialorder %v984_v56, 0.0  ;;  %v1112_v60 = vmul.f32 0.2, %v984_v56  ;;  %vm1080_vm8 = vcmp.ge.f32.partialorder %v1016_v57, 0.0  ;;  %v1144_v61 = vmul.f32 0.2, %v1016_v57 }
  0xea   :  { %v1178_v0 = vsel %vm1050_vm5, %v986_v50, %v1114_v58  ;;  %v1210_v1 = vsel %vm1082_vm6, %v1018_v51, %v1146_v59  ;;  %v1997_v2 = vpop.f32.mrb[4].mxu0  ;;  %v2029_v3 = vpop.f32.mrb[4].mxu1 }
  0xeb   :  { %v1767_v4 = vpack.c.bf16 %v1178_v0, %v1177_v54  ;;  %v1847_v5 = vpack.c.bf16 %v1210_v1, %v1209_v55  ;;  %v1176_v6 = vsel %vm1048_vm7, %v984_v56, %v1112_v60  ;;  %v1208_v7 = vsel %vm1080_vm8, %v1016_v57, %v1144_v61  ;;  %v542_v8 = vpop.f32.mrb[5].mxu0  ;;  %v670_v9 = vpop.f32.mrb[5].mxu1 }
  0xec   :  { %v1762_v10 = vpack.c.bf16 %v1176_v6, %v1175_v62  ;;  %v1842_v11 = vpack.c.bf16 %v1208_v7, %v1207_v63  ;;  %v989_v12 = vadd.f32 %v1997_v2, %v2256_v35  ;;  %v1021_v13 = vadd.f32 %v2029_v3, %v2256_v35  ;;  %v1998_v14 = vpop.f32.mrb[6].mxu0  ;;  %v2030_v15 = vpop.f32.mrb[6].mxu1 }
  0xed   :  { %1919 = vst [vmem:[%s2430_s3 + $0x8] sm:$0xff] %v1767_v4   ;;  %1935 = vst [vmem:[%s2430_s3 + $0x88] sm:$0xff] %v1847_v5   ;;  %v987_v16 = vadd.f32 %v2256_v35, %v542_v8  ;;  %v1019_v17 = vadd.f32 %v2256_v35, %v670_v9  ;;  %v990_v18 = vadd.f32 %v1998_v14, %v2256_v35  ;;  %v545_v20 = vpop.f32.mrb[7].mxu0  ;;  %v673_v21 = vpop.f32.mrb[7].mxu1 }
  0xee   :  { %v1022_v19 = vadd.f32 %v2030_v15, %v2256_v35  ;;  %1763 = vst [vmem:[%s2430_s3] sm:$0xff] %v1762_v10   ;;  %1934 = vst [vmem:[%s2430_s3 + $0x80] sm:$0xff] %v1842_v11   ;;  %vm1053_vm9 = vcmp.ge.f32.partialorder %v989_v12, 0.0  ;;  %v1117_v22 = vmul.f32 0.2, %v989_v12  ;;  %vm1085_vm10 = vcmp.ge.f32.partialorder %v1021_v13, 0.0 }
  0xef   :  { %v1149_v23 = vmul.f32 0.2, %v1021_v13  ;;  %vm1051_vm11 = vcmp.ge.f32.partialorder %v987_v16, 0.0  ;;  %v1115_v24 = vmul.f32 0.2, %v987_v16  ;;  %vm1083_vm12 = vcmp.ge.f32.partialorder %v1019_v17, 0.0 }
  0xf0   :  { %v1147_v25 = vmul.f32 0.2, %v1019_v17  ;;  %v1181_v26 = vsel %vm1053_vm9, %v989_v12, %v1117_v22  ;;  %vm1054_vm13 = vcmp.ge.f32.partialorder %v990_v18, 0.0  ;;  %v1118_v28 = vmul.f32 0.2, %v990_v18 }
  0xf1   :  { %v1213_v27 = vsel %vm1085_vm10, %v1021_v13, %v1149_v23  ;;  %v1179_v29 = vsel %vm1051_vm11, %v987_v16, %v1115_v24  ;;  %vm1086_vm14 = vcmp.ge.f32.partialorder %v1022_v19, 0.0  ;;  %v1150_v31 = vmul.f32 0.2, %v1022_v19  ;;  %v2001_v32 = vpop.f32.mrb[8].mxu0  ;;  %v2033_v33 = vpop.f32.mrb[8].mxu1 }
  0xf2   :  { %v1211_v30 = vsel %vm1083_vm12, %v1019_v17, %v1147_v25  ;;  %v1182_v34 = vsel %vm1054_vm13, %v990_v18, %v1118_v28  ;;  %v988_v36 = vadd.f32 %v2256_v35, %v545_v20  ;;  %v1020_v37 = vadd.f32 %v2256_v35, %v673_v21  ;;  %v558_v39 = vpop.f32.mrb[9].mxu0  ;;  %v686_v40 = vpop.f32.mrb[9].mxu1 }
  0xf3   :  { %v993_v38 = vadd.f32 %v2001_v32, %v2256_v35  ;;  %v1777_v41 = vpack.c.bf16 %v1182_v34, %v1181_v26  ;;  %v1214_v42 = vsel %vm1086_vm14, %v1022_v19, %v1150_v31  ;;  %v1025_v43 = vadd.f32 %v2033_v33, %v2256_v35  ;;  %v2002_v45 = vpop.f32.mrb[10].mxu0  ;;  %v2034_v46 = vpop.f32.mrb[10].mxu1 }
  0xf4   :  { %v991_v44 = vadd.f32 %v2256_v35, %v558_v39  ;;  %v1857_v47 = vpack.c.bf16 %v1214_v42, %v1213_v27  ;;  %vm1052_vm15 = vcmp.ge.f32.partialorder %v988_v36, 0.0  ;;  %v1116_v48 = vmul.f32 0.2, %v988_v36  ;;  %v561_v49 = vpop.f32.mrb[11].mxu0  ;;  %v689_v50 = vpop.f32.mrb[11].mxu1 }
  0xf5   :  { %vm1084_vm0 = vcmp.ge.f32.partialorder %v1020_v37, 0.0  ;;  %1921 = vst [vmem:[%s2430_s3 + $0x18] sm:$0xff] %v1777_v41   ;;  %v1148_v51 = vmul.f32 0.2, %v1020_v37  ;;  %vm1057_vm1 = vcmp.ge.f32.partialorder %v993_v38, 0.0  ;;  %vm1089_vm2 = vcmp.ge.f32.partialorder %v1025_v43, 0.0 }
  0xf6   :  { %v1121_v52 = vmul.f32 0.2, %v993_v38  ;;  %1937 = vst [vmem:[%s2430_s3 + $0x98] sm:$0xff] %v1857_v47   ;;  %v1180_v53 = vsel %vm1052_vm15, %v988_v36, %v1116_v48  ;;  %v1153_v54 = vmul.f32 0.2, %v1025_v43  ;;  %vm1055_vm3 = vcmp.ge.f32.partialorder %v991_v44, 0.0 }
  0xf7   :  { %v1119_v55 = vmul.f32 0.2, %v991_v44  ;;  %v1772_v56 = vpack.c.bf16 %v1180_v53, %v1179_v29  ;;  %v1212_v57 = vsel %vm1084_vm0, %v1020_v37, %v1148_v51  ;;  %v1023_v59 = vadd.f32 %v2256_v35, %v686_v40 }
  0xf8   :  { %v1185_v58 = vsel %vm1057_vm1, %v993_v38, %v1121_v52  ;;  %v1852_v60 = vpack.c.bf16 %v1212_v57, %v1211_v30  ;;  %v1217_v61 = vsel %vm1089_vm2, %v1025_v43, %v1153_v54  ;;  %v994_v63 = vadd.f32 %v2002_v45, %v2256_v35 }
  0xf9   :  { %v1183_v62 = vsel %vm1055_vm3, %v991_v44, %v1119_v55  ;;  %1920 = vst [vmem:[%s2430_s3 + $0x10] sm:$0xff] %v1772_v56   ;;  %vm1087_vm4 = vcmp.ge.f32.partialorder %v1023_v59, 0.0  ;;  %v1151_v0 = vmul.f32 0.2, %v1023_v59  ;;  %v1026_v1 = vadd.f32 %v2034_v46, %v2256_v35  ;;  %v2005_v3 = vpop.f32.mrb[12].mxu0  ;;  %v2037_v4 = vpop.f32.mrb[12].mxu1 }
  0xfa   :  { %v992_v2 = vadd.f32 %v2256_v35, %v561_v49  ;;  %1936 = vst [vmem:[%s2430_s3 + $0x90] sm:$0xff] %v1852_v60   ;;  %vm1058_vm5 = vcmp.ge.f32.partialorder %v994_v63, 0.0  ;;  %v1122_v5 = vmul.f32 0.2, %v994_v63  ;;  %v1024_v6 = vadd.f32 %v2256_v35, %v689_v50  ;;  %v574_v8 = vpop.f32.mrb[13].mxu0  ;;  %v702_v9 = vpop.f32.mrb[13].mxu1 }
  0xfb   :  { %v997_v7 = vadd.f32 %v2005_v3, %v2256_v35  ;;  %v1215_v10 = vsel %vm1087_vm4, %v1023_v59, %v1151_v0  ;;  %vm1090_vm6 = vcmp.ge.f32.partialorder %v1026_v1, 0.0  ;;  %v1154_v11 = vmul.f32 0.2, %v1026_v1  ;;  %v2006_v12 = vpop.f32.mrb[14].mxu0  ;;  %v2038_v13 = vpop.f32.mrb[14].mxu1 }
  0xfc   :  { %vm1056_vm7 = vcmp.ge.f32.partialorder %v992_v2, 0.0  ;;  %v1186_v14 = vsel %vm1058_vm5, %v994_v63, %v1122_v5  ;;  %v1120_v15 = vmul.f32 0.2, %v992_v2  ;;  %vm1088_vm8 = vcmp.ge.f32.partialorder %v1024_v6, 0.0  ;;  %v577_v17 = vpop.f32.mrb[15].mxu0  ;;  %v705_v21 = vpop.f32.mrb[15].mxu1 }
  0xfd   :  { %v1152_v16 = vmul.f32 0.2, %v1024_v6  ;;  %v1787_v18 = vpack.c.bf16 %v1186_v14, %v1185_v58  ;;  %v1218_v19 = vsel %vm1090_vm6, %v1026_v1, %v1154_v11  ;;  %vm1061_vm9 = vcmp.ge.f32.partialorder %v997_v7, 0.0 }
  0xfe   :  { %v1125_v20 = vmul.f32 0.2, %v997_v7  ;;  %v1867_v22 = vpack.c.bf16 %v1218_v19, %v1217_v61  ;;  %v1184_v23 = vsel %vm1056_vm7, %v992_v2, %v1120_v15  ;;  %v1029_v25 = vadd.f32 %v2037_v4, %v2256_v35 }
  0xff   :  { %v1216_v24 = vsel %vm1088_vm8, %v1024_v6, %v1152_v16  ;;  %1923 = vst [vmem:[%s2430_s3 + $0x28] sm:$0xff] %v1787_v18   ;;  %v1782_v26 = vpack.c.bf16 %v1184_v23, %v1183_v62  ;;  %v995_v29 = vadd.f32 %v2256_v35, %v574_v8  ;;  %v1027_v31 = vadd.f32 %v2256_v35, %v702_v9 }
 0x100   :  { %v1862_v27 = vpack.c.bf16 %v1216_v24, %v1215_v10  ;;  %v1189_v28 = vsel %vm1061_vm9, %v997_v7, %v1125_v20  ;;  %1939 = vst [vmem:[%s2430_s3 + $0xa8] sm:$0xff] %v1867_v22   ;;  %vm1093_vm10 = vcmp.ge.f32.partialorder %v1029_v25, 0.0  ;;  %v1157_v30 = vmul.f32 0.2, %v1029_v25 }
 0x101   :  { %v998_v32 = vadd.f32 %v2006_v12, %v2256_v35  ;;  %1922 = vst [vmem:[%s2430_s3 + $0x20] sm:$0xff] %v1782_v26   ;;  %vm1059_vm11 = vcmp.ge.f32.partialorder %v995_v29, 0.0  ;;  %v1123_v33 = vmul.f32 0.2, %v995_v29  ;;  %v1030_v34 = vadd.f32 %v2038_v13, %v2256_v35  ;;  %v2009_v37 = vpop.f32.mrb[16].mxu0  ;;  %v2041_v38 = vpop.f32.mrb[16].mxu1 }
 0x102   :  { %1938 = vst [vmem:[%s2430_s3 + $0xa0] sm:$0xff] %v1862_v27   ;;  %v996_v36 = vadd.f32 %v2256_v35, %v577_v17  ;;  %v1221_v39 = vsel %vm1093_vm10, %v1029_v25, %v1157_v30  ;;  %vm1091_vm12 = vcmp.ge.f32.partialorder %v1027_v31, 0.0  ;;  %v1155_v40 = vmul.f32 0.2, %v1027_v31  ;;  %v590_v41 = vpop.f32.mrb[17].mxu0  ;;  %v718_v42 = vpop.f32.mrb[17].mxu1 }
 0x103   :  { %vm1062_vm13 = vcmp.ge.f32.partialorder %v998_v32, 0.0  ;;  %v1187_v43 = vsel %vm1059_vm11, %v995_v29, %v1123_v33  ;;  %v1126_v44 = vmul.f32 0.2, %v998_v32  ;;  %vm1094_vm14 = vcmp.ge.f32.partialorder %v1030_v34, 0.0  ;;  %v2010_v46 = vpop.f32.mrb[18].mxu0  ;;  %v2042_v50 = vpop.f32.mrb[18].mxu1 }
 0x104   :  { %v1158_v45 = vmul.f32 0.2, %v1030_v34  ;;  %v1219_v47 = vsel %vm1091_vm12, %v1027_v31, %v1155_v40  ;;  %vm1060_vm15 = vcmp.ge.f32.partialorder %v996_v36, 0.0  ;;  %v1124_v48 = vmul.f32 0.2, %v996_v36  ;;  %v593_v51 = vpop.f32.mrb[19].mxu0 }
 0x105   :  { %v1028_v49 = vadd.f32 %v2256_v35, %v705_v21  ;;  %v1190_v52 = vsel %vm1062_vm13, %v998_v32, %v1126_v44  ;;  %v1001_v54 = vadd.f32 %v2009_v37, %v2256_v35  ;;  %v1033_v55 = vadd.f32 %v2041_v38, %v2256_v35  ;;  %v721_v56 = vpop.f32.mrb[19].mxu1 }
 0x106   :  { %v1222_v53 = vsel %vm1094_vm14, %v1030_v34, %v1158_v45  ;;  %v1797_v57 = vpack.c.bf16 %v1190_v52, %v1189_v28  ;;  %v1188_v59 = vsel %vm1060_vm15, %v996_v36, %v1124_v48  ;;  %v999_v0 = vadd.f32 %v2256_v35, %v590_v41 }
 0x107   :  { %v1877_v58 = vpack.c.bf16 %v1222_v53, %v1221_v39  ;;  %vm1092_vm0 = vcmp.ge.f32.partialorder %v1028_v49, 0.0  ;;  %v1792_v60 = vpack.c.bf16 %v1188_v59, %v1187_v43  ;;  %v1156_v61 = vmul.f32 0.2, %v1028_v49 }
 0x108   :  { %vm1065_vm1 = vcmp.ge.f32.partialorder %v1001_v54, 0.0  ;;  %v1129_v62 = vmul.f32 0.2, %v1001_v54  ;;  %1925 = vst [vmem:[%s2430_s3 + $0x38] sm:$0xff] %v1797_v57   ;;  %vm1097_vm2 = vcmp.ge.f32.partialorder %v1033_v55, 0.0  ;;  %v1031_v1 = vadd.f32 %v2256_v35, %v718_v42 }
 0x109   :  { %1941 = vst [vmem:[%s2430_s3 + $0xb8] sm:$0xff] %v1877_v58   ;;  %v1161_v63 = vmul.f32 0.2, %v1033_v55  ;;  %1924 = vst [vmem:[%s2430_s3 + $0x30] sm:$0xff] %v1792_v60   ;;  %v1220_v2 = vsel %vm1092_vm0, %v1028_v49, %v1156_v61  ;;  %v1002_v4 = vadd.f32 %v2010_v46, %v2256_v35  ;;  %v1034_v5 = vadd.f32 %v2042_v50, %v2256_v35  ;;  %v2013_v6 = vpop.f32.mrb[20].mxu0  ;;  %v2045_v7 = vpop.f32.mrb[20].mxu1 }
 0x10a   :  { %v1193_v3 = vsel %vm1065_vm1, %v1001_v54, %v1129_v62  ;;  %v1872_v8 = vpack.c.bf16 %v1220_v2, %v1219_v47  ;;  %vm1063_vm3 = vcmp.ge.f32.partialorder %v999_v0, 0.0  ;;  %v1127_v10 = vmul.f32 0.2, %v999_v0  ;;  %v606_v11 = vpop.f32.mrb[21].mxu0  ;;  %v734_v12 = vpop.f32.mrb[21].mxu1 }
 0x10b   :  { %v1225_v9 = vsel %vm1097_vm2, %v1033_v55, %v1161_v63  ;;  %vm1095_vm4 = vcmp.ge.f32.partialorder %v1031_v1, 0.0  ;;  %v1159_v13 = vmul.f32 0.2, %v1031_v1  ;;  %vm1066_vm5 = vcmp.ge.f32.partialorder %v1002_v4, 0.0  ;;  %v2014_v18 = vpop.f32.mrb[22].mxu0  ;;  %v2046_v19 = vpop.f32.mrb[22].mxu1 }
 0x10c   :  { %v1130_v14 = vmul.f32 0.2, %v1002_v4  ;;  %1940 = vst [vmem:[%s2430_s3 + $0xb0] sm:$0xff] %v1872_v8   ;;  %v1191_v15 = vsel %vm1063_vm3, %v999_v0, %v1127_v10  ;;  %vm1098_vm6 = vcmp.ge.f32.partialorder %v1034_v5, 0.0  ;;  %v1162_v16 = vmul.f32 0.2, %v1034_v5 }
 0x10d   :  { %v1000_v17 = vadd.f32 %v2256_v35, %v593_v51  ;;  %v1223_v20 = vsel %vm1095_vm4, %v1031_v1, %v1159_v13  ;;  %v1032_v22 = vadd.f32 %v2256_v35, %v721_v56  ;;  %v1005_v23 = vadd.f32 %v2013_v6, %v2256_v35  ;;  %v609_v24 = vpop.f32.mrb[23].mxu0  ;;  %v737_v25 = vpop.f32.mrb[23].mxu1 }
 0x10e   :  { %v1194_v21 = vsel %vm1066_vm5, %v1002_v4, %v1130_v14  ;;  %v1226_v27 = vsel %vm1098_vm6, %v1034_v5, %v1162_v16  ;;  %v1037_v33 = vadd.f32 %v2045_v7, %v2256_v35  ;;  %v1003_v34 = vadd.f32 %v2256_v35, %v606_v11 }
 0x10f   :  { %v1807_v26 = vpack.c.bf16 %v1194_v21, %v1193_v3  ;;  %vm1064_vm7 = vcmp.ge.f32.partialorder %v1000_v17, 0.0  ;;  %v1128_v28 = vmul.f32 0.2, %v1000_v17  ;;  %v1887_v29 = vpack.c.bf16 %v1226_v27, %v1225_v9 }
 0x110   :  { %vm1096_vm8 = vcmp.ge.f32.partialorder %v1032_v22, 0.0  ;;  %v1160_v30 = vmul.f32 0.2, %v1032_v22  ;;  %vm1069_vm9 = vcmp.ge.f32.partialorder %v1005_v23, 0.0  ;;  %v1133_v32 = vmul.f32 0.2, %v1005_v23 }
 0x111   :  { %1927 = vst [vmem:[%s2430_s3 + $0x48] sm:$0xff] %v1807_v26   ;;  %v1192_v31 = vsel %vm1064_vm7, %v1000_v17, %v1128_v28  ;;  %1943 = vst [vmem:[%s2430_s3 + $0xc8] sm:$0xff] %v1887_v29   ;;  %v1035_v38 = vadd.f32 %v2256_v35, %v734_v12  ;;  %v1006_v39 = vadd.f32 %v2014_v18, %v2256_v35  ;;  %v2017_v40 = vpop.f32.mrb[24].mxu0  ;;  %v2049_v41 = vpop.f32.mrb[24].mxu1  ;;  %vm1101_vm10 = vcmp.ge.f32.partialorder %v1037_v33, 0.0 }
 0x112   :  { %v1802_v36 = vpack.c.bf16 %v1192_v31, %v1191_v15  ;;  %v1224_v37 = vsel %vm1096_vm8, %v1032_v22, %v1160_v30  ;;  %v1165_v43 = vmul.f32 0.2, %v1037_v33  ;;  %v622_v44 = vpop.f32.mrb[25].mxu0  ;;  %v750_v45 = vpop.f32.mrb[25].mxu1  ;;  %v1197_v46 = vsel %vm1069_vm9, %v1005_v23, %v1133_v32 }
 0x113   :  { %v1882_v42 = vpack.c.bf16 %v1224_v37, %v1223_v20  ;;  %vm1067_vm11 = vcmp.ge.f32.partialorder %v1003_v34, 0.0  ;;  %v1131_v47 = vmul.f32 0.2, %v1003_v34  ;;  %v1163_v48 = vmul.f32 0.2, %v1035_v38  ;;  %v2018_v51 = vpop.f32.mrb[26].mxu0 }
 0x114   :  { %1926 = vst [vmem:[%s2430_s3 + $0x40] sm:$0xff] %v1802_v36   ;;  %vm1099_vm12 = vcmp.ge.f32.partialorder %v1035_v38, 0.0  ;;  %vm1070_vm13 = vcmp.ge.f32.partialorder %v1006_v39, 0.0  ;;  %v1134_v49 = vmul.f32 0.2, %v1006_v39  ;;  %v1038_v50 = vadd.f32 %v2046_v19, %v2256_v35  ;;  %v2050_v52 = vpop.f32.mrb[26].mxu1 }
 0x115   :  { %1942 = vst [vmem:[%s2430_s3 + $0xc0] sm:$0xff] %v1882_v42   ;;  %v1229_v53 = vsel %vm1101_vm10, %v1037_v33, %v1165_v43  ;;  %v1195_v54 = vsel %vm1067_vm11, %v1003_v34, %v1131_v47  ;;  %v1004_v55 = vadd.f32 %v2256_v35, %v609_v24  ;;  %v1036_v56 = vadd.f32 %v2256_v35, %v737_v25  ;;  %v625_v57 = vpop.f32.mrb[27].mxu0  ;;  %v753_v58 = vpop.f32.mrb[27].mxu1 }
 0x116   :  { %v1198_v59 = vsel %vm1070_vm13, %v1006_v39, %v1134_v49  ;;  %vm1102_vm14 = vcmp.ge.f32.partialorder %v1038_v50, 0.0  ;;  %v1166_v60 = vmul.f32 0.2, %v1038_v50  ;;  %v1009_v61 = vadd.f32 %v2017_v40, %v2256_v35 }
 0x117   :  { %v1817_v62 = vpack.c.bf16 %v1198_v59, %v1197_v46  ;;  %vm1068_vm15 = vcmp.ge.f32.partialorder %v1004_v55, 0.0  ;;  %v1132_v63 = vmul.f32 0.2, %v1004_v55  ;;  %vm1100_vm0 = vcmp.ge.f32.partialorder %v1036_v56, 0.0 }
 0x118   :  { %v1230_v0 = vsel %vm1102_vm14, %v1038_v50, %v1166_v60  ;;  %v1164_v1 = vmul.f32 0.2, %v1036_v56  ;;  %vm1073_vm1 = vcmp.ge.f32.partialorder %v1009_v61, 0.0  ;;  %v1137_v2 = vmul.f32 0.2, %v1009_v61 }
 0x119   :  { %1929 = vst [vmem:[%s2430_s3 + $0x58] sm:$0xff] %v1817_v62   ;;  %v1897_v3 = vpack.c.bf16 %v1230_v0, %v1229_v53  ;;  %v1196_v4 = vsel %vm1068_vm15, %v1004_v55, %v1132_v63  ;;  %v1041_v5 = vadd.f32 %v2049_v41, %v2256_v35  ;;  %v1007_v6 = vadd.f32 %v2256_v35, %v622_v44  ;;  %v2021_v7 = vpop.f32.mrb[28].mxu0  ;;  %v2053_v8 = vpop.f32.mrb[28].mxu1 }
 0x11a   :  { %v1227_v9 = vsel %vm1099_vm12, %v1035_v38, %v1163_v48  ;;  %v1812_v10 = vpack.c.bf16 %v1196_v4, %v1195_v54  ;;  %v1228_v11 = vsel %vm1100_vm0, %v1036_v56, %v1164_v1  ;;  %v1039_v12 = vadd.f32 %v2256_v35, %v750_v45  ;;  %v638_v13 = vpop.f32.mrb[29].mxu0  ;;  %v766_v14 = vpop.f32.mrb[29].mxu1 }
 0x11b   :  { %1945 = vst [vmem:[%s2430_s3 + $0xd8] sm:$0xff] %v1897_v3   ;;  %v1892_v15 = vpack.c.bf16 %v1228_v11, %v1227_v9  ;;  %vm1105_vm2 = vcmp.ge.f32.partialorder %v1041_v5, 0.0  ;;  %v1169_v16 = vmul.f32 0.2, %v1041_v5  ;;  %vm1071_vm3 = vcmp.ge.f32.partialorder %v1007_v6, 0.0  ;;  %v2022_v17 = vpop.f32.mrb[30].mxu0 }
 0x11c   :  { %v2054_v18 = vpop.f32.mrb[30].mxu1  ;;  %1928 = vst [vmem:[%s2430_s3 + $0x50] sm:$0xff] %v1812_v10   ;;  %v1201_v19 = vsel %vm1073_vm1, %v1009_v61, %v1137_v2  ;;  %v1135_v20 = vmul.f32 0.2, %v1007_v6  ;;  %vm1103_vm4 = vcmp.ge.f32.partialorder %v1039_v12, 0.0  ;;  %v1010_v21 = vadd.f32 %v2018_v51, %v2256_v35  ;;  %v641_v22 = vpop.f32.mrb[31].mxu0 }
 0x11d   :  { %1944 = vst [vmem:[%s2430_s3 + $0xd0] sm:$0xff] %v1892_v15   ;;  %v1167_v23 = vmul.f32 0.2, %v1039_v12  ;;  %v1042_v24 = vadd.f32 %v2050_v52, %v2256_v35  ;;  %v1008_v25 = vadd.f32 %v2256_v35, %v625_v57  ;;  %v1040_v26 = vadd.f32 %v2256_v35, %v753_v58  ;;  %v769_v27 = vpop.f32.mrb[31].mxu1 }
 0x11e   :  { %v1233_v28 = vsel %vm1105_vm2, %v1041_v5, %v1169_v16  ;;  %v1199_v29 = vsel %vm1071_vm3, %v1007_v6, %v1135_v20  ;;  %vm1074_vm5 = vcmp.ge.f32.partialorder %v1010_v21, 0.0  ;;  %v1138_v30 = vmul.f32 0.2, %v1010_v21 }
 0x11f   :  { %vm1106_vm6 = vcmp.ge.f32.partialorder %v1042_v24, 0.0  ;;  %v1170_v31 = vmul.f32 0.2, %v1042_v24  ;;  %vm1072_vm7 = vcmp.ge.f32.partialorder %v1008_v25, 0.0  ;;  %v1136_v32 = vmul.f32 0.2, %v1008_v25 }
 0x120   :  { %v1202_v33 = vsel %vm1074_vm5, %v1010_v21, %v1138_v30  ;;  %vm1104_vm8 = vcmp.ge.f32.partialorder %v1040_v26, 0.0  ;;  %v1168_v34 = vmul.f32 0.2, %v1040_v26  ;;  %v1013_v36 = vadd.f32 %v2021_v7, %v2256_v35 }
 0x121   :  { %v1827_v37 = vpack.c.bf16 %v1202_v33, %v1201_v19  ;;  %v1234_v38 = vsel %vm1106_vm6, %v1042_v24, %v1170_v31  ;;  %v1200_v39 = vsel %vm1072_vm7, %v1008_v25, %v1136_v32  ;;  %v1045_v40 = vadd.f32 %v2053_v8, %v2256_v35 }
 0x122   :  { %v1231_v41 = vsel %vm1103_vm4, %v1039_v12, %v1167_v23  ;;  %v1907_v42 = vpack.c.bf16 %v1234_v38, %v1233_v28  ;;  %v1822_v43 = vpack.c.bf16 %v1200_v39, %v1199_v29  ;;  %v1232_v44 = vsel %vm1104_vm8, %v1040_v26, %v1168_v34 }
 0x123   :  { %1931 = vst [vmem:[%s2430_s3 + $0x68] sm:$0xff] %v1827_v37   ;;  %v1902_v45 = vpack.c.bf16 %v1232_v44, %v1231_v41  ;;  %vm1077_vm9 = vcmp.ge.f32.partialorder %v1013_v36, 0.0  ;;  %v1141_v46 = vmul.f32 0.2, %v1013_v36  ;;  %v1173_v47 = vmul.f32 0.2, %v1045_v40 }
 0x124   :  { %1947 = vst [vmem:[%s2430_s3 + $0xe8] sm:$0xff] %v1907_v42   ;;  %1930 = vst [vmem:[%s2430_s3 + $0x60] sm:$0xff] %v1822_v43   ;;  %v1011_v48 = vadd.f32 %v2256_v35, %v638_v13  ;;  %v1043_v49 = vadd.f32 %v2256_v35, %v766_v14  ;;  %v1014_v50 = vadd.f32 %v2022_v17, %v2256_v35  ;;  %vm1109_vm10 = vcmp.ge.f32.partialorder %v1045_v40, 0.0 }
 0x125   :  { %v1046_v51 = vadd.f32 %v2054_v18, %v2256_v35  ;;  %1946 = vst [vmem:[%s2430_s3 + $0xe0] sm:$0xff] %v1902_v45   ;;  %v1012_v52 = vadd.f32 %v2256_v35, %v641_v22  ;;  %v1044_v53 = vadd.f32 %v2256_v35, %v769_v27  ;;  %v1205_v54 = vsel %vm1077_vm9, %v1013_v36, %v1141_v46 }
 0x126   :  { %vm1075_vm11 = vcmp.ge.f32.partialorder %v1011_v48, 0.0  ;;  %v1139_v55 = vmul.f32 0.2, %v1011_v48  ;;  %v1171_v56 = vmul.f32 0.2, %v1043_v49  ;;  %vm1078_vm12 = vcmp.ge.f32.partialorder %v1014_v50, 0.0 }
 0x127   :  { %v1142_v57 = vmul.f32 0.2, %v1014_v50  ;;  %vm1110_vm13 = vcmp.ge.f32.partialorder %v1046_v51, 0.0  ;;  %v1174_v58 = vmul.f32 0.2, %v1046_v51  ;;  %v1237_v59 = vsel %vm1109_vm10, %v1045_v40, %v1173_v47 }
 0x128   :  { %vm1107_vm14 = vcmp.ge.f32.partialorder %v1043_v49, 0.0  ;;  %vm1076_vm15 = vcmp.ge.f32.partialorder %v1012_v52, 0.0  ;;  %v1140_v60 = vmul.f32 0.2, %v1012_v52  ;;  %vm1108_vm0 = vcmp.ge.f32.partialorder %v1044_v53, 0.0 }
 0x129   :  { %v1206_v61 = vsel %vm1078_vm12, %v1014_v50, %v1142_v57  ;;  %v1238_v62 = vsel %vm1110_vm13, %v1046_v51, %v1174_v58  ;;  %v1172_v63 = vmul.f32 0.2, %v1044_v53  ;;  %v1203_v0 = vsel %vm1075_vm11, %v1011_v48, %v1139_v55 }
 0x12a   :  { %v1837_v1 = vpack.c.bf16 %v1206_v61, %v1205_v54  ;;  %v1917_v2 = vpack.c.bf16 %v1238_v62, %v1237_v59  ;;  %v1204_v35 = vsel %vm1076_vm15, %v1012_v52, %v1140_v60  ;;  %v1235_v3 = vsel %vm1107_vm14, %v1043_v49, %v1171_v56 }
 0x12b   :  { %v1832_v4 = vpack.c.bf16 %v1204_v35, %v1203_v0  ;;  %v1236_v5 = vsel %vm1108_vm0, %v1044_v53, %v1172_v63 }
 0x12c   :  { %1933 = vst [vmem:[%s2430_s3 + $0x78] sm:$0xff] %v1837_v1   ;;  %1949 = vst [vmem:[%s2430_s3 + $0xf8] sm:$0xff] %v1917_v2   ;;  %v1912_v6 = vpack.c.bf16 %v1236_v5, %v1235_v3 }
 0x12d   :  { %1932 = vst [vmem:[%s2430_s3 + $0x70] sm:$0xff] %v1832_v4  }
 0x12e   :  { %1948 = vst [vmem:[%s2430_s3 + $0xf0] sm:$0xff] %v1912_v6  }

// kernel: discriminator_forward.6
= control target key start
LH: loop header
LB: loop body
LE: loop exit
PB: predicated region body
PF: predicated region fallthrough
CT: control target
= control target key end

     0   :  { %s1971_s12 = smov 0   ;;  %s1973_s13 = smov 0   ;;  %s2304_s0 = inlined_call_operand.vmem [shape: bf16[2,64,1024], index: 0, kind: input, shape index: {}]   ;;  %s2305_s1 = inlined_call_operand.vmem [shape: bf16[1024,128], index: 1, kind: input, shape index: {}]   ;;  %s2306_s2 = inlined_call_operand.vmem [shape: f32[1,128], index: 2, kind: input, shape index: {}]   ;;  %s2307_s3 = inlined_call_operand.vmem [shape: bf16[2,64,128], index: 3, kind: output, shape index: {}]  }
   0x1   :  { %s1975_s14 = smov 0  }
   0x2 LB: > { %s32_s15 = sadd.s32 1, %s1945_s13  ;;  %p1532_p0 = scmp.ge.s32.totalorder %s1949_s14, 1  ;;  %s1949_s14 = sphi %s1975_s14, %s13_s14   ;;  %s1945_s13 = sphi %s1973_s13, %s2309_s13   ;;  %s1941_s12 = sphi %s1971_s12, %s2308_s12  }
   0x3   : > { %p34_p1 = scmp.ge.s32.totalorder %s32_s15, 2  ;;  %p189_p2 = scmp.lt.s32.totalorder %s1949_s14, 3 }
   0x5   : > { %s2311_s15 = smov (%p34_p1, %s32_s15), 0  ;;  %p190_p3 = pnand %p1532_p0, %p189_p2 }
   0x6   : > { %v1861_v0 = vld [vmem:[%s2305_s1 + $0x40] sm:$0xff] (!%p190_p3)   ;;  %v1865_v4 = vld [vmem:[%s2305_s1 + $0x48] sm:$0xff] (!%p190_p3)   ;;  %v1869_v8 = vld [vmem:[%s2305_s1 + $0x50] sm:$0xff] (!%p190_p3)   ;;  %p232_p4 = scmp.lt.s32.totalorder (!%p190_p3), %s1941_s12, 1 }
   0x7   : > { %193 = sbr.rel (%p190_p3) target bundleno = 366 (0x16e), region = 32  ;;  %v1862_v1 = vld [vmem:[%s2305_s1 + $0xc0] sm:$0xff] (!%p190_p3)   ;;  %1677 = vmatprep.subr.bf16.mxu0 (!%p190_p3), %v1861_v0  ;;  %v1866_v5 = vld [vmem:[%s2305_s1 + $0xc8] sm:$0xff] (!%p190_p3)   ;;  %v1870_v9 = vld [vmem:[%s2305_s1 + $0xd0] sm:$0xff] (!%p190_p3)  }
   0x8   : > { %v1863_v2 = vld [vmem:[%s2305_s1] sm:$0xff] (!%p190_p3)   ;;  %1717 = vmatprep.subr.bf16.mxu1 (!%p190_p3), %v1862_v1  ;;  %v1867_v6 = vld [vmem:[%s2305_s1 + $0x8] sm:$0xff] (!%p190_p3)   ;;  %v1871_v10 = vld [vmem:[%s2305_s1 + $0x10] sm:$0xff] (!%p190_p3)  }
   0x9   : > { %v1864_v3 = vld [vmem:[%s2305_s1 + $0x80] sm:$0xff] (!%p190_p3)   ;;  %1678 = vmatpush3.bf16.msra.mxu0 (!%p190_p3), %v1863_v2  ;;  %v1868_v7 = vld [vmem:[%s2305_s1 + $0x88] sm:$0xff] (!%p190_p3)   ;;  %v1872_v11 = vld [vmem:[%s2305_s1 + $0x90] sm:$0xff] (!%p190_p3)  }
   0xa   : > { %1718 = vmatpush3.bf16.msra.mxu1 (!%p190_p3), %v1864_v3  ;;  %1679 = vmatprep.subr.bf16.mxu0 (!%p190_p3), %v1865_v4  ;;  %v1873_v12 = vld [vmem:[%s2305_s1 + $0x58] sm:$0xff] (!%p190_p3)   ;;  %v1877_v16 = vld [vmem:[%s2305_s1 + $0x60] sm:$0xff] (!%p190_p3)   ;;  %v1881_v20 = vld [vmem:[%s2305_s1 + $0x68] sm:$0xff] (!%p190_p3)  }
   0xb   : > { %1719 = vmatprep.subr.bf16.mxu1 (!%p190_p3), %v1866_v5  ;;  %v1874_v13 = vld [vmem:[%s2305_s1 + $0xd8] sm:$0xff] (!%p190_p3)   ;;  %v1878_v17 = vld [vmem:[%s2305_s1 + $0xe0] sm:$0xff] (!%p190_p3)   ;;  %v1882_v21 = vld [vmem:[%s2305_s1 + $0xe8] sm:$0xff] (!%p190_p3)  }
   0xc   : > { %v1875_v14 = vld [vmem:[%s2305_s1 + $0x18] sm:$0xff] (!%p190_p3)   ;;  %v1879_v18 = vld [vmem:[%s2305_s1 + $0x20] sm:$0xff] (!%p190_p3)   ;;  %v1883_v22 = vld [vmem:[%s2305_s1 + $0x28] sm:$0xff] (!%p190_p3)  }
   0xd   : > { %1680 = vmatpush3.bf16.msra.mxu0 (!%p190_p3), %v1867_v6  ;;  %v1876_v15 = vld [vmem:[%s2305_s1 + $0x98] sm:$0xff] (!%p190_p3)   ;;  %v1880_v19 = vld [vmem:[%s2305_s1 + $0xa0] sm:$0xff] (!%p190_p3)   ;;  %v1884_v23 = vld [vmem:[%s2305_s1 + $0xa8] sm:$0xff] (!%p190_p3)  }
   0xe   : > { %1720 = vmatpush3.bf16.msra.mxu1 %v1868_v7  ;;  %1681 = vmatprep.subr.bf16.mxu0 %v1869_v8  ;;  %s2313_s12 = smov (!%p232_p4, %s1941_s12), 1  ;;  %v1885_v24 = vld [vmem:[%s2305_s1 + $0x70] sm:$0xff]   ;;  %v1889_v28 = vld [vmem:[%s2305_s1 + $0x78] sm:$0xff]   ;;  %v1893_v40 = vld [vmem:[%s2305_s1 + $0x140] sm:$0xff]  }
   0xf   : > { %1721 = vmatprep.subr.bf16.mxu1 %v1870_v9  ;;  %v1886_v25 = vld [vmem:[%s2305_s1 + $0xf0] sm:$0xff]   ;;  %s1644_s24 = sshll.u32 %s2313_s12, 8  ;;  %v1890_v29 = vld [vmem:[%s2305_s1 + $0xf8] sm:$0xff]   ;;  %v1894_v41 = vld [vmem:[%s2305_s1 + $0x1c0] sm:$0xff]   ;;  %s1645_s10 = sshll.u32 %s2313_s12, 5 }
  0x10   : > { %v1887_v26 = vld [vmem:[%s2305_s1 + $0x30] sm:$0xff]   ;;  %s2089_s6 = scalar_lea.vmem %s2304_s0, %s1644_s24  ;;  %v1891_v30 = vld [vmem:[%s2305_s1 + $0x38] sm:$0xff]   ;;  %v1895_v42 = vld [vmem:[%s2305_s1 + $0x100] sm:$0xff]   ;;  %s260_s12 = scalar_lea.vmem %s2307_s3, %s1645_s10 }
  0x11   : > { %1682 = vmatpush3.bf16.msra.mxu0 %v1871_v10  ;;  %v1888_v27 = vld [vmem:[%s2305_s1 + $0xb0] sm:$0xff]   ;;  %v1892_v31 = vld [vmem:[%s2305_s1 + $0xb8] sm:$0xff]   ;;  %v282_v32 = vld [vmem:[%s2089_s6] sm:$0xff] }
  0x12   : > { %1722 = vmatpush3.bf16.msra.mxu1 %v1872_v11  ;;  %1683 = vmatprep.subr.bf16.mxu0 %v1873_v12  ;;  %v286_v33 = vld [vmem:[%s2089_s6 + $0x20] sm:$0xff]  ;;  %v283_v34 = vld [vmem:[%s2089_s6 + $0x8] sm:$0xff]  ;;  %v1901_v56 = vld [vmem:[%s2305_s1 + $0x150] sm:$0xff]  }
  0x13   : > { %1723 = vmatprep.subr.bf16.mxu1 %v1874_v13  ;;  %v1537_v35 = vcombine.low %v282_v32, %v286_v33  ;;  %v1538_v36 = vcombine.high %v282_v32, %v286_v33  ;;  %v287_v37 = vld [vmem:[%s2089_s6 + $0x28] sm:$0xff]  ;;  %v1896_v43 = vld [vmem:[%s2305_s1 + $0x180] sm:$0xff]   ;;  %v1902_v57 = vld [vmem:[%s2305_s1 + $0x1d0] sm:$0xff]  }
  0x14   : > { %v1539_v38 = vcombine.low %v283_v34, %v287_v37  ;;  %v1540_v39 = vcombine.high %v283_v34, %v287_v37  ;;  %v1897_v44 = vld [vmem:[%s2305_s1 + $0x148] sm:$0xff]   ;;  %v290_v48 = vld [vmem:[%s2089_s6 + $0x40] sm:$0xff]  ;;  %v1903_v58 = vld [vmem:[%s2305_s1 + $0x110] sm:$0xff]  }
  0x15   : > { %1684 = vmatpush3.bf16.msra.mxu0 %v1875_v14  ;;  %1018 = vmatprep.mubr.bf16.mxu0 %v1538_v36  ;;  %v1898_v45 = vld [vmem:[%s2305_s1 + $0x1c8] sm:$0xff]   ;;  %v294_v49 = vld [vmem:[%s2089_s6 + $0x60] sm:$0xff]  ;;  %v1904_v59 = vld [vmem:[%s2305_s1 + $0x190] sm:$0xff]  }
  0x16   : > { %1724 = vmatpush3.bf16.msra.mxu1 %v1876_v15  ;;  %1685 = vmatprep.subr.bf16.mxu0 %v1877_v16  ;;  %v1899_v46 = vld [vmem:[%s2305_s1 + $0x108] sm:$0xff]   ;;  %v1546_v50 = vcombine.high %v290_v48, %v294_v49  ;;  %v1545_v53 = vcombine.low %v290_v48, %v294_v49  ;;  %v1905_v60 = vld [vmem:[%s2305_s1 + $0x158] sm:$0xff]   ;;  %v298_v0 = vld [vmem:[%s2089_s6 + $0x80] sm:$0xff] }
  0x17   : > { %1725 = vmatprep.subr.bf16.mxu1 %v1878_v17  ;;  %1083 = vmatprep.mubr.bf16.mxu1 %v1540_v39  ;;  %v1900_v47 = vld [vmem:[%s2305_s1 + $0x188] sm:$0xff]   ;;  %v1906_v61 = vld [vmem:[%s2305_s1 + $0x1d8] sm:$0xff]   ;;  %v302_v1 = vld [vmem:[%s2089_s6 + $0xa0] sm:$0xff] }
  0x18   : > { %v291_v51 = vld [vmem:[%s2089_s6 + $0x48] sm:$0xff]  ;;  %v1907_v62 = vld [vmem:[%s2305_s1 + $0x118] sm:$0xff]   ;;  %v1554_v4 = vcombine.high %v298_v0, %v302_v1  ;;  %v1553_v6 = vcombine.low %v298_v0, %v302_v1  ;;  %v1909_v8 = vld [vmem:[%s2305_s1 + $0x160] sm:$0xff]  }
  0x19   : > { %1686 = vmatpush3.bf16.msra.mxu0 %v1879_v18  ;;  %v295_v52 = vld [vmem:[%s2089_s6 + $0x68] sm:$0xff]  ;;  %v1908_v63 = vld [vmem:[%s2305_s1 + $0x198] sm:$0xff]   ;;  %v1910_v9 = vld [vmem:[%s2305_s1 + $0x1e0] sm:$0xff]  }
  0x1a   : > { %1726 = vmatpush3.bf16.msra.mxu1 %v1880_v19  ;;  %1687 = vmatprep.subr.bf16.mxu0 %v1881_v20  ;;  %v1548_v54 = vcombine.high %v291_v51, %v295_v52  ;;  %v1547_v55 = vcombine.low %v291_v51, %v295_v52  ;;  %v299_v2 = vld [vmem:[%s2089_s6 + $0x88] sm:$0xff]  ;;  %v1911_v10 = vld [vmem:[%s2305_s1 + $0x120] sm:$0xff]   ;;  %v284_v32 = vld [vmem:[%s2089_s6 + $0x10] sm:$0xff] }
  0x1b   : > { %1727 = vmatprep.subr.bf16.mxu1 %v1882_v21  ;;  %v303_v3 = vld [vmem:[%s2089_s6 + $0xa8] sm:$0xff]  ;;  %v1912_v11 = vld [vmem:[%s2305_s1 + $0x1a0] sm:$0xff]   ;;  %v288_v33 = vld [vmem:[%s2089_s6 + $0x30] sm:$0xff] }
  0x1c   : > { %v1556_v5 = vcombine.high %v299_v2, %v303_v3  ;;  %v1555_v7 = vcombine.low %v299_v2, %v303_v3  ;;  %v1913_v12 = vld [vmem:[%s2305_s1 + $0x168] sm:$0xff]   ;;  %v306_v16 = vld [vmem:[%s2089_s6 + $0xc0] sm:$0xff]  ;;  %v1541_v34 = vcombine.low %v284_v32, %v288_v33  ;;  %v285_v36 = vld [vmem:[%s2089_s6 + $0x18] sm:$0xff] }
  0x1d   : > { %1688 = vmatpush3.bf16.msra.mxu0 %v1883_v22  ;;  %v1914_v13 = vld [vmem:[%s2305_s1 + $0x1e8] sm:$0xff]   ;;  %v310_v17 = vld [vmem:[%s2089_s6 + $0xe0] sm:$0xff]  ;;  %v289_v37 = vld [vmem:[%s2089_s6 + $0x38] sm:$0xff] }
  0x1e   : > { %1728 = vmatpush3.bf16.msra.mxu1 %v1884_v23  ;;  %1689 = vmatprep.subr.bf16.mxu0 %v1885_v24  ;;  %v1915_v14 = vld [vmem:[%s2305_s1 + $0x128] sm:$0xff]   ;;  %v1562_v19 = vcombine.high %v306_v16, %v310_v17  ;;  %v1561_v21 = vcombine.low %v306_v16, %v310_v17  ;;  %v1917_v24 = vld [vmem:[%s2305_s1 + $0x170] sm:$0xff]   ;;  %v1543_v39 = vcombine.low %v285_v36, %v289_v37  ;;  %v301_v48 = vld [vmem:[%s2089_s6 + $0x98] sm:$0xff] }
  0x1f   : > { %1729 = vmatprep.subr.bf16.mxu1 %v1886_v25  ;;  %v1916_v15 = vld [vmem:[%s2305_s1 + $0x1a8] sm:$0xff]   ;;  %v1918_v25 = vld [vmem:[%s2305_s1 + $0x1f0] sm:$0xff]   ;;  %v305_v49 = vld [vmem:[%s2089_s6 + $0xb8] sm:$0xff] }
  0x20   : > { %v307_v18 = vld [vmem:[%s2089_s6 + $0xc8] sm:$0xff] }
  0x21   : > { %1690 = vmatpush3.bf16.msra.mxu0 %v1887_v26  ;;  %v311_v20 = vld [vmem:[%s2089_s6 + $0xe8] sm:$0xff]  ;;  %v1919_v26 = vld [vmem:[%s2305_s1 + $0x130] sm:$0xff]  }
  0x22   : > { %1730 = vmatpush3.bf16.msra.mxu1 %v1888_v27  ;;  %1691 = vmatprep.subr.bf16.mxu0 %v1889_v28  ;;  %v1564_v22 = vcombine.high %v307_v18, %v311_v20  ;;  %v1563_v23 = vcombine.low %v307_v18, %v311_v20  ;;  %v1920_v27 = vld [vmem:[%s2305_s1 + $0x1b0] sm:$0xff]   ;;  %v1921_v28 = vld [vmem:[%s2305_s1 + $0x178] sm:$0xff]  }
  0x23   : > { %1731 = vmatprep.subr.bf16.mxu1 %v1890_v29  ;;  %v1922_v29 = vld [vmem:[%s2305_s1 + $0x1f8] sm:$0xff]  }
  0x25   : > { %1692 = vmatpush3.bf16.msra.mxu0 %v1891_v30  ;;  %v1923_v30 = vld [vmem:[%s2305_s1 + $0x138] sm:$0xff]  }
  0x26   : > { %1732 = vmatpush3.bf16.msra.mxu1 %v1892_v31  ;;  %1757 = vmatprep.subr.bf16.mxu0 %v1893_v40  ;;  %v1924_v31 = vld [vmem:[%s2305_s1 + $0x1b8] sm:$0xff]   ;;  %v1544_v40 = vcombine.high %v285_v36, %v289_v37 }
  0x27   : > { %1797 = vmatprep.subr.bf16.mxu1 %v1894_v41  ;;  %v296_v41 = vld [vmem:[%s2089_s6 + $0x70] sm:$0xff] }
  0x28   : > { %1019 = vmatmul.mubr.bf16.vlgmr.msra.gmra.mrb[0].mxu0 %v1537_v35  ;;  %v1542_v35 = vcombine.high %v284_v32, %v288_v33 }
  0x29   : > { %1084 = vmatmul.mubr.bf16.vlgmr.msra.gmra.mrb[0].mxu1 %v1539_v38  ;;  %1758 = vmatpush3.bf16.msra.mxu0 %v1895_v42  ;;  %v292_v38 = vld [vmem:[%s2089_s6 + $0x50] sm:$0xff]  ;;  %v293_v42 = vld [vmem:[%s2089_s6 + $0x58] sm:$0xff] }
  0x2a   : > { %1798 = vmatpush3.bf16.msra.mxu1 %v1896_v43  ;;  %1759 = vmatprep.subr.bf16.mxu0 %v1897_v44  ;;  %v297_v43 = vld [vmem:[%s2089_s6 + $0x78] sm:$0xff]  ;;  %v1550_v44 = vcombine.high %v292_v38, %v296_v41 }
  0x2b   : > { %1799 = vmatprep.subr.bf16.mxu1 %v1898_v45  ;;  %1026 = vmatprep.mubr.bf16.mxu0 %v1546_v50  ;;  %v1552_v45 = vcombine.high %v293_v42, %v297_v43  ;;  %v1549_v50 = vcombine.low %v292_v38, %v296_v41  ;;  %v1551_v51 = vcombine.low %v293_v42, %v297_v43 }
  0x2c   : > { %1091 = vmatprep.mubr.bf16.mxu1 %v1548_v54  ;;  %v308_v54 = vld [vmem:[%s2089_s6 + $0xd0] sm:$0xff] }
  0x2d   : > { %1760 = vmatpush3.bf16.msra.mxu0 %v1899_v46  ;;  %v300_v46 = vld [vmem:[%s2089_s6 + $0x90] sm:$0xff] }
  0x2e   : > { %1800 = vmatpush3.bf16.msra.mxu1 %v1900_v47  ;;  %1761 = vmatprep.subr.bf16.mxu0 %v1901_v56  ;;  %v304_v47 = vld [vmem:[%s2089_s6 + $0xb0] sm:$0xff]  ;;  %v309_v56 = vld [vmem:[%s2089_s6 + $0xd8] sm:$0xff] }
  0x2f   : > { %1801 = vmatprep.subr.bf16.mxu1 %v1902_v57  ;;  %v1558_v52 = vcombine.high %v300_v46, %v304_v47  ;;  %v313_v57 = vld [vmem:[%s2089_s6 + $0xf8] sm:$0xff] }
  0x30   : > { %1027 = vmatmul.mubr.bf16.gmra.mrb[4].mxu0 %v1545_v53  ;;  %v1560_v53 = vcombine.high %v301_v48, %v305_v49 }
  0x31   : > { %1092 = vmatmul.mubr.bf16.gmra.mrb[4].mxu1 %v1547_v55  ;;  %1762 = vmatpush3.bf16.msra.mxu0 %v1903_v58  ;;  %v312_v55 = vld [vmem:[%s2089_s6 + $0xf0] sm:$0xff]  ;;  %v1557_v58 = vcombine.low %v300_v46, %v304_v47 }
  0x32   : > { %1802 = vmatpush3.bf16.msra.mxu1 %v1904_v59  ;;  %1763 = vmatprep.subr.bf16.mxu0 %v1905_v60  ;;  %v1559_v59 = vcombine.low %v301_v48, %v305_v49  ;;  %v1566_v60 = vcombine.high %v308_v54, %v312_v55 }
  0x33   : > { %1803 = vmatprep.subr.bf16.mxu1 %v1906_v61  ;;  %1034 = vmatprep.mubr.bf16.mxu0 %v1554_v4  ;;  %v1568_v61 = vcombine.high %v309_v56, %v313_v57 }
  0x34   : > { %1099 = vmatprep.mubr.bf16.mxu1 %v1556_v5 }
  0x35   : > { %1764 = vmatpush3.bf16.msra.mxu0 %v1907_v62  ;;  %v1565_v62 = vcombine.low %v308_v54, %v312_v55 }
  0x36   : > { %1804 = vmatpush3.bf16.msra.mxu1 %v1908_v63  ;;  %1765 = vmatprep.subr.bf16.mxu0 %v1909_v8  ;;  %v1567_v63 = vcombine.low %v309_v56, %v313_v57 }
  0x37   : > { %1805 = vmatprep.subr.bf16.mxu1 %v1910_v9 }
  0x38   : > { %1035 = vmatmul.mubr.bf16.gmra.mrb[8].mxu0 %v1553_v6 }
  0x39   : > { %1100 = vmatmul.mubr.bf16.gmra.mrb[8].mxu1 %v1555_v7  ;;  %1766 = vmatpush3.bf16.msra.mxu0 %v1911_v10 }
  0x3a   : > { %1806 = vmatpush3.bf16.msra.mxu1 %v1912_v11  ;;  %1767 = vmatprep.subr.bf16.mxu0 %v1913_v12 }
  0x3b   : > { %1807 = vmatprep.subr.bf16.mxu1 %v1914_v13  ;;  %1042 = vmatprep.mubr.bf16.mxu0 %v1562_v19 }
  0x3c   : > { %1107 = vmatprep.mubr.bf16.mxu1 %v1564_v22 }
  0x3d   : > { %1768 = vmatpush3.bf16.msra.mxu0 %v1915_v14 }
  0x3e   : > { %1808 = vmatpush3.bf16.msra.mxu1 %v1916_v15  ;;  %1769 = vmatprep.subr.bf16.mxu0 %v1917_v24 }
  0x3f   : > { %1809 = vmatprep.subr.bf16.mxu1 %v1918_v25 }
  0x40   : > { %1043 = vmatmul.mubr.bf16.gmra.mrb[12].mxu0 %v1561_v21 }
  0x41   : > { %1108 = vmatmul.mubr.bf16.gmra.mrb[12].mxu1 %v1563_v23  ;;  %1770 = vmatpush3.bf16.msra.mxu0 %v1919_v26 }
  0x42   : > { %1810 = vmatpush3.bf16.msra.mxu1 %v1920_v27  ;;  %1771 = vmatprep.subr.bf16.mxu0 %v1921_v28 }
  0x43   : > { %1811 = vmatprep.subr.bf16.mxu1 %v1922_v29  ;;  %1148 = vmatprep.mubr.bf16.mxu0 %v1542_v35 }
  0x44   : > { %1213 = vmatprep.mubr.bf16.mxu1 %v1544_v40 }
  0x45   : > { %1772 = vmatpush3.bf16.msra.mxu0 %v1923_v30 }
  0x46   : > { %1812 = vmatpush3.bf16.msra.mxu1 %v1924_v31 }
  0x48   : > { %1149 = vmatmul.mubr.bf16.vlgmr.msra.gmra.mrb[16].mxu0 %v1541_v34 }
  0x49   : > { %1214 = vmatmul.mubr.bf16.vlgmr.msra.gmra.mrb[16].mxu1 %v1543_v39  ;;  %1156 = vmatprep.mubr.bf16.mxu0 %v1550_v44 }
  0x4a   : > { %1221 = vmatprep.mubr.bf16.mxu1 %v1552_v45 }
  0x50   : > { %1157 = vmatmul.mubr.bf16.gmra.mrb[20].mxu0 %v1549_v50 }
  0x51   : > { %1222 = vmatmul.mubr.bf16.gmra.mrb[20].mxu1 %v1551_v51  ;;  %1164 = vmatprep.mubr.bf16.mxu0 %v1558_v52 }
  0x52   : > { %1229 = vmatprep.mubr.bf16.mxu1 %v1560_v53 }
  0x58   : > { %1165 = vmatmul.mubr.bf16.gmra.mrb[24].mxu0 %v1557_v58 }
  0x59   : > { %1230 = vmatmul.mubr.bf16.gmra.mrb[24].mxu1 %v1559_v59  ;;  %1172 = vmatprep.mubr.bf16.mxu0 %v1566_v60 }
  0x5a   : > { %1237 = vmatprep.mubr.bf16.mxu1 %v1568_v61 }
  0x60   : > { %1173 = vmatmul.mubr.bf16.gmra.mrb[28].mxu0 %v1565_v62 }
  0x61   : > { %1238 = vmatmul.mubr.bf16.gmra.mrb[28].mxu1 %v1567_v63 }
  0xfb   : > { %v1693_v0 = vpop.f32.mrb[0].mxu0 }
  0xfc   : > { %v1733_v1 = vpop.f32.mrb[0].mxu1  ;;  %v1694_v2 = vpop.f32.mrb[1].mxu0 }
  0xfd   : > { %v1695_v3 = vadd.f32 %v1694_v2, %v1693_v0  ;;  %v1734_v4 = vpop.f32.mrb[1].mxu1  ;;  %v1696_v5 = vpop.f32.mrb[2].mxu0 }
  0xfe   : > { %v1735_v6 = vadd.f32 %v1734_v4, %v1733_v1  ;;  %v1736_v7 = vpop.f32.mrb[2].mxu1  ;;  %v1697_v8 = vpop.f32.mrb[3].mxu0  ;;  %v2238_v4 = vld [vmem:[%s2306_s2] ss:$0 sm:$0xff] }
  0xff   : > { %v1698_v9 = vadd.f32 %v1697_v8, %v1696_v5  ;;  %v1737_v10 = vpop.f32.mrb[3].mxu1 }
 0x100   : > { %v1086_v11 = vadd.f32 %v1735_v6, %v1695_v3  ;;  %v1738_v12 = vadd.f32 %v1737_v10, %v1736_v7 }
 0x102   : > { %v1089_v13 = vadd.f32 %v1738_v12, %v1698_v9 }
 0x103   : > { %v1699_v14 = vpop.f32.mrb[4].mxu0 }
 0x104   : > { %v1739_v15 = vpop.f32.mrb[4].mxu1  ;;  %v1700_v16 = vpop.f32.mrb[5].mxu0 }
 0x105   : > { %v1701_v17 = vadd.f32 %v1700_v16, %v1699_v14  ;;  %v1740_v18 = vpop.f32.mrb[5].mxu1  ;;  %v1702_v19 = vpop.f32.mrb[6].mxu0 }
 0x106   : > { %v1741_v20 = vadd.f32 %v1740_v18, %v1739_v15  ;;  %v1742_v21 = vpop.f32.mrb[6].mxu1  ;;  %v1703_v22 = vpop.f32.mrb[7].mxu0 }
 0x107   : > { %v1704_v23 = vadd.f32 %v1703_v22, %v1702_v19  ;;  %v1743_v24 = vpop.f32.mrb[7].mxu1 }
 0x108   : > { %v1094_v25 = vadd.f32 %v1741_v20, %v1701_v17  ;;  %v1744_v26 = vadd.f32 %v1743_v24, %v1742_v21 }
 0x10a   : > { %v2225_v27 = vadd.f32 %v1744_v26, %v1704_v23 }
 0x10b   : > { %v1705_v28 = vpop.f32.mrb[8].mxu0 }
 0x10c   : > { %v1745_v29 = vpop.f32.mrb[8].mxu1  ;;  %v1706_v30 = vpop.f32.mrb[9].mxu0 }
 0x10d   : > { %v1746_v31 = vpop.f32.mrb[9].mxu1  ;;  %v1707_v32 = vadd.f32 %v1706_v30, %v1705_v28  ;;  %v1708_v34 = vpop.f32.mrb[10].mxu0 }
 0x10e   : > { %v1747_v33 = vadd.f32 %v1746_v31, %v1745_v29  ;;  %v1748_v35 = vpop.f32.mrb[10].mxu1  ;;  %v1709_v36 = vpop.f32.mrb[11].mxu0 }
 0x10f   : > { %v1749_v37 = vpop.f32.mrb[11].mxu1  ;;  %v1710_v39 = vadd.f32 %v1709_v36, %v1708_v34 }
 0x110   : > { %v2227_v38 = vadd.f32 %v1747_v33, %v1707_v32  ;;  %v1750_v40 = vadd.f32 %v1749_v37, %v1748_v35 }
 0x112   : > { %v2229_v41 = vadd.f32 %v1750_v40, %v1710_v39 }
 0x113   : > { %v1711_v42 = vpop.f32.mrb[12].mxu0 }
 0x114   : > { %v1751_v43 = vpop.f32.mrb[12].mxu1  ;;  %v1712_v44 = vpop.f32.mrb[13].mxu0 }
 0x115   : > { %v1713_v45 = vadd.f32 %v1712_v44, %v1711_v42  ;;  %v1752_v46 = vpop.f32.mrb[13].mxu1  ;;  %v1714_v47 = vpop.f32.mrb[14].mxu0 }
 0x116   : > { %v1753_v48 = vadd.f32 %v1752_v46, %v1751_v43  ;;  %v1754_v49 = vpop.f32.mrb[14].mxu1  ;;  %v1715_v50 = vpop.f32.mrb[15].mxu0 }
 0x117   : > { %v1716_v51 = vadd.f32 %v1715_v50, %v1714_v47  ;;  %v1755_v52 = vpop.f32.mrb[15].mxu1 }
 0x118   : > { %v2231_v53 = vadd.f32 %v1753_v48, %v1713_v45  ;;  %v1756_v54 = vadd.f32 %v1755_v52, %v1754_v49 }
 0x11a   : > { %v2233_v55 = vadd.f32 %v1756_v54, %v1716_v51 }
 0x11b   : > { %v1773_v56 = vpop.f32.mrb[16].mxu0 }
 0x11c   : > { %v1813_v57 = vpop.f32.mrb[16].mxu1  ;;  %v1774_v58 = vpop.f32.mrb[17].mxu0 }
 0x11d   : > { %v1775_v59 = vadd.f32 %v1774_v58, %v1773_v56  ;;  %v1814_v60 = vpop.f32.mrb[17].mxu1  ;;  %v1776_v61 = vpop.f32.mrb[18].mxu0 }
 0x11e   : > { %v1815_v62 = vadd.f32 %v1814_v60, %v1813_v57  ;;  %v1816_v63 = vpop.f32.mrb[18].mxu1  ;;  %v1777_v0 = vpop.f32.mrb[19].mxu0 }
 0x11f   : > { %v1151_v1 = vadd.f32 %v1775_v59, %v1086_v11  ;;  %v1778_v2 = vadd.f32 %v1777_v0, %v1776_v61  ;;  %v1817_v3 = vpop.f32.mrb[19].mxu1 }
 0x120   : > { %v1818_v5 = vadd.f32 %v1817_v3, %v1816_v63 }
 0x121   : > { %v1216_v6 = vadd.f32 %v1815_v62, %v1151_v1  ;;  %v1154_v7 = vadd.f32 %v1778_v2, %v1089_v13 }
 0x123   : > { %v2241_v8 = vadd.f32 %v2238_v4, %v1216_v6  ;;  %v1219_v9 = vadd.f32 %v1818_v5, %v1154_v7  ;;  %v1779_v10 = vpop.f32.mrb[20].mxu0 }
 0x124   : > { %v1819_v12 = vpop.f32.mrb[20].mxu1  ;;  %v1780_v14 = vpop.f32.mrb[21].mxu0 }
 0x125   : > { %v2244_v15 = vadd.f32 %v2238_v4, %v1219_v9  ;;  %v1781_v11 = vadd.f32 %v1780_v14, %v1779_v10  ;;  %v1820_v16 = vpop.f32.mrb[21].mxu1  ;;  %v1782_v17 = vpop.f32.mrb[22].mxu0  ;;  %v1301_v18 = vmul.f32 %v2241_v8, %v2241_v8 }
 0x126   : > { %v1821_v19 = vadd.f32 %v1820_v16, %v1819_v12  ;;  %v1822_v20 = vpop.f32.mrb[22].mxu1  ;;  %v1783_v21 = vpop.f32.mrb[23].mxu0 }
 0x127   : > { %v1288_v13 = vadd.f32 %v2244_v15, %v2241_v8  ;;  %v1302_v22 = vmul.f32 %v2244_v15, %v2244_v15  ;;  %v1159_v23 = vadd.f32 %v1781_v11, %v1094_v25  ;;  %v1784_v24 = vadd.f32 %v1783_v21, %v1782_v17  ;;  %v1823_v26 = vpop.f32.mrb[23].mxu1 }
 0x128   : > { %v1824_v28 = vadd.f32 %v1823_v26, %v1822_v20 }
 0x129   : > { %v1309_v29 = vadd.f32 %v1302_v22, %v1301_v18  ;;  %v1224_v30 = vadd.f32 %v1821_v19, %v1159_v23  ;;  %v1162_v31 = vadd.f32 %v1784_v24, %v2225_v27 }
 0x12b   : > { %v2254_v32 = vadd.f32 %v2238_v4, %v1224_v30  ;;  %v1227_v33 = vadd.f32 %v1824_v28, %v1162_v31  ;;  %v1785_v34 = vpop.f32.mrb[24].mxu0 }
 0x12c   : > { %v1825_v35 = vpop.f32.mrb[24].mxu1  ;;  %v1786_v36 = vpop.f32.mrb[25].mxu0 }
 0x12d   : > { %v1289_v37 = vadd.f32 %v1288_v13, %v2254_v32  ;;  %v1303_v39 = vmul.f32 %v2254_v32, %v2254_v32  ;;  %v2260_v25 = vadd.f32 %v2238_v4, %v1227_v33  ;;  %v1787_v40 = vadd.f32 %v1786_v36, %v1785_v34  ;;  %v1826_v42 = vpop.f32.mrb[25].mxu1  ;;  %v1788_v43 = vpop.f32.mrb[26].mxu0 }
 0x12e   : > { %v1827_v44 = vadd.f32 %v1826_v42, %v1825_v35  ;;  %v1828_v27 = vpop.f32.mrb[26].mxu1  ;;  %v1789_v45 = vpop.f32.mrb[27].mxu0 }
 0x12f   : > { %v1310_v46 = vadd.f32 %v1309_v29, %v1303_v39  ;;  %v1290_v47 = vadd.f32 %v1289_v37, %v2260_v25  ;;  %v1304_v48 = vmul.f32 %v2260_v25, %v2260_v25  ;;  %v1167_v49 = vadd.f32 %v1787_v40, %v2227_v38  ;;  %v1829_v50 = vpop.f32.mrb[27].mxu1 }
 0x130   : > { %v1790_v51 = vadd.f32 %v1789_v45, %v1788_v43  ;;  %v1830_v52 = vadd.f32 %v1829_v50, %v1828_v27 }
 0x131   : > { %v1311_v54 = vadd.f32 %v1310_v46, %v1304_v48  ;;  %v1232_v56 = vadd.f32 %v1827_v44, %v1167_v49 }
 0x132   : > { %v1170_v57 = vadd.f32 %v1790_v51, %v2229_v41 }
 0x133   : > { %v2268_v58 = vadd.f32 %v2238_v4, %v1232_v56  ;;  %v1791_v59 = vpop.f32.mrb[28].mxu0 }
 0x134   : > { %v1235_v60 = vadd.f32 %v1830_v52, %v1170_v57  ;;  %v1831_v61 = vpop.f32.mrb[28].mxu1  ;;  %v1792_v62 = vpop.f32.mrb[29].mxu0 }
 0x135   : > { %v1291_v63 = vadd.f32 %v1290_v47, %v2268_v58  ;;  %v1305_v0 = vmul.f32 %v2268_v58, %v2268_v58  ;;  %v1793_v38 = vadd.f32 %v1792_v62, %v1791_v59  ;;  %v1832_v1 = vpop.f32.mrb[29].mxu1  ;;  %v1794_v2 = vpop.f32.mrb[30].mxu0 }
 0x136   : > { %v1285_v3 = vadd.f32 %v2238_v4, %v1235_v60  ;;  %v1833_v5 = vadd.f32 %v1832_v1, %v1831_v61  ;;  %v1834_v6 = vpop.f32.mrb[30].mxu1  ;;  %v1795_v41 = vpop.f32.mrb[31].mxu0 }
 0x137   : > { %v1312_v7 = vadd.f32 %v1311_v54, %v1305_v0  ;;  %v1175_v9 = vadd.f32 %v1793_v38, %v2231_v53  ;;  %v1796_v10 = vadd.f32 %v1795_v41, %v1794_v2  ;;  %v1835_v12 = vpop.f32.mrb[31].mxu1 }
 0x138   : > { %v1292_v14 = vadd.f32 %v1291_v63, %v1285_v3  ;;  %v1306_v11 = vmul.f32 %v1285_v3, %v1285_v3  ;;  %v1836_v16 = vadd.f32 %v1835_v12, %v1834_v6 }
 0x139   : > { %v1240_v17 = vadd.f32 %v1833_v5, %v1175_v9  ;;  %v1178_v18 = vadd.f32 %v1796_v10, %v2233_v55 }
 0x13a   : > { %v1313_v19 = vadd.f32 %v1312_v7, %v1306_v11 }
 0x13b   : > { %v1286_v20 = vadd.f32 %v2238_v4, %v1240_v17  ;;  %v1243_v21 = vadd.f32 %v1836_v16, %v1178_v18 }
 0x13d   : > { %v1293_v13 = vadd.f32 %v1292_v14, %v1286_v20  ;;  %v1307_v22 = vmul.f32 %v1286_v20, %v1286_v20  ;;  %v1287_v23 = vadd.f32 %v2238_v4, %v1243_v21 }
 0x13f   : > { %v1314_v24 = vadd.f32 %v1313_v19, %v1307_v22  ;;  %v1294_v26 = vadd.f32 %v1293_v13, %v1287_v23  ;;  %v1308_v28 = vmul.f32 %v1287_v23, %v1287_v23 }
 0x141   : > { %v1295_v53 = vrot.slane %v1294_v26, 4  ;;  %v1315_v29 = vadd.f32 %v1314_v24, %v1308_v28 }
 0x143   : > { %v1296_v30 = vadd.f32 %v1295_v53, %v1294_v26  ;;  %v1316_v31 = vrot.slane %v1315_v29, 4 }
 0x145   : > { %v1297_v33 = vrot.slane %v1296_v30, 2  ;;  %v1317_v34 = vadd.f32 %v1316_v31, %v1315_v29 }
 0x147   : > { %v1298_v35 = vadd.f32 %v1297_v33, %v1296_v30  ;;  %v1318_v36 = vrot.slane %v1317_v34, 2 }
 0x149   : > { %v1299_v55 = vrot.slane %v1298_v35, 1  ;;  %v1319_v37 = vadd.f32 %v1318_v36, %v1317_v34 }
 0x14b   : > { %v1300_v39 = vadd.f32 %v1299_v55, %v1298_v35  ;;  %v1320_v40 = vrot.slane %v1319_v37, 1 }
 0x14d   : > { %v1321_v42 = vadd.f32 %v1320_v40, %v1319_v37  ;;  %v1322_v43 = vmul.f32 0.015625, %v1300_v39 }
 0x14f   : > { %v1323_v44 = vmul.f32 0.015625, %v1321_v42  ;;  %v1324_v27 = vmul.f32 %v1322_v43, %v1322_v43  ;;  %v1327_v4 = vsub.f32 %v2241_v8, %v1322_v43  ;;  %v1328_v45 = vsub.f32 %v2244_v15, %v1322_v43 }
 0x150   : > { %v1329_v46 = vsub.f32 %v2254_v32, %v1322_v43  ;;  %v1330_v47 = vsub.f32 %v2260_v25, %v1322_v43  ;;  %v1331_v48 = vsub.f32 %v2268_v58, %v1322_v43  ;;  %v1332_v49 = vsub.f32 %v1285_v3, %v1322_v43 }
 0x151   : > { %v1325_v50 = vsub.f32 %v1323_v44, %v1324_v27  ;;  %v1333_v51 = vsub.f32 %v1286_v20, %v1322_v43  ;;  %v1334_v52 = vsub.f32 %v1287_v23, %v1322_v43 }
 0x153   : > { %v1326_v54 = vmax.f32 %v1325_v50, 0.0 }
 0x155   : > { %v1335_v56 = vadd.f32 1e-05, %v1326_v54 }
 0x157   : > { %1925 = vrsqrt.f32 %v1335_v56 }
 0x161   : > { %v1926_v57 = vpop.eup %1925 }
 0x162   : > { %v1337_v59 = vmul.f32 %v1926_v57, %v1327_v4  ;;  %v1338_v60 = vmul.f32 %v1926_v57, %v1328_v45  ;;  %v1339_v8 = vmul.f32 %v1926_v57, %v1329_v46  ;;  %v1340_v61 = vmul.f32 %v1926_v57, %v1330_v47 }
 0x163   : > { %v1341_v15 = vmul.f32 %v1926_v57, %v1331_v48  ;;  %v1342_v62 = vmul.f32 %v1926_v57, %v1332_v49  ;;  %v1343_v32 = vmul.f32 %v1926_v57, %v1333_v51  ;;  %v1344_v63 = vmul.f32 %v1926_v57, %v1334_v52 }
 0x164   : > { %vm1345_vm0 = vcmp.ge.f32.partialorder %v1337_v59, 0.0  ;;  %vm1346_vm1 = vcmp.ge.f32.partialorder %v1338_v60, 0.0  ;;  %vm1347_vm2 = vcmp.ge.f32.partialorder %v1339_v8, 0.0  ;;  %vm1348_vm3 = vcmp.ge.f32.partialorder %v1340_v61, 0.0 }
 0x165   : > { %vm1349_vm4 = vcmp.ge.f32.partialorder %v1341_v15, 0.0  ;;  %vm1350_vm5 = vcmp.ge.f32.partialorder %v1342_v62, 0.0  ;;  %vm1351_vm6 = vcmp.ge.f32.partialorder %v1343_v32, 0.0  ;;  %vm1352_vm7 = vcmp.ge.f32.partialorder %v1344_v63, 0.0 }
 0x166   : > { %v1353_v25 = vmul.f32 0.2, %v1337_v59  ;;  %v1354_v58 = vmul.f32 0.2, %v1338_v60  ;;  %v1355_v0 = vmul.f32 0.2, %v1339_v8 }
 0x167   : > { %v1356_v38 = vmul.f32 0.2, %v1340_v61  ;;  %v1357_v1 = vmul.f32 0.2, %v1341_v15  ;;  %v1358_v2 = vmul.f32 0.2, %v1342_v62 }
 0x168   : > { %v1359_v3 = vmul.f32 0.2, %v1343_v32  ;;  %v1360_v5 = vmul.f32 0.2, %v1344_v63  ;;  %v1361_v6 = vsel %vm1345_vm0, %v1337_v59, %v1353_v25  ;;  %v1362_v41 = vsel %vm1346_vm1, %v1338_v60, %v1354_v58 }
 0x169   : > { %v1363_v7 = vsel %vm1347_vm2, %v1339_v8, %v1355_v0  ;;  %v1364_v9 = vsel %vm1348_vm3, %v1340_v61, %v1356_v38  ;;  %v1365_v10 = vsel %vm1349_vm4, %v1341_v15, %v1357_v1  ;;  %v1366_v12 = vsel %vm1350_vm5, %v1342_v62, %v1358_v2 }
 0x16a   : > { %v1367_v14 = vsel %vm1351_vm6, %v1343_v32, %v1359_v3  ;;  %v1368_v11 = vsel %vm1352_vm7, %v1344_v63, %v1360_v5  ;;  %v1657_v16 = vpack.c.bf16 %v1362_v41, %v1361_v6  ;;  %v1662_v17 = vpack.c.bf16 %v1364_v9, %v1363_v7 }
 0x16b   : > { %v1667_v18 = vpack.c.bf16 %v1366_v12, %v1365_v10  ;;  %v1672_v19 = vpack.c.bf16 %v1368_v11, %v1367_v14 }
 0x16c   : > { %1658 = vst [vmem:[%s260_s12] sm:$0xff] %v1657_v16   ;;  %1674 = vst [vmem:[%s260_s12 + $0x8] sm:$0xff] %v1662_v17  }
 0x16d   : > { %1675 = vst [vmem:[%s260_s12 + $0x10] sm:$0xff] %v1667_v18   ;;  %1676 = vst [vmem:[%s260_s12 + $0x18] sm:$0xff] %v1672_v19  }
 0x16e PF: > { %s13_s14 = sadd.s32 1, %s1949_s14   ;;  %s2308_s12 = smov %s1945_s13 }
 0x16f   : > { %p10_p5 = scmp.ge.s32.totalorder %s13_s14, 4   ;;  %s2309_s13 = smov %s2311_s15 }
 0x171   :  { %12 = sbr.rel (!%p10_p5) target bundleno = 2 (0x2), region = 76 }

// kernel: discriminator_forward.7
= control target key start
LH: loop header
LB: loop body
LE: loop exit
PB: predicated region body
PF: predicated region fallthrough
CT: control target
= control target key end

     0   :  { %s3274_s12 = smov 0   ;;  %s3276_s13 = smov 0   ;;  %s4152_s0 = inlined_call_operand.vmem [shape: bf16[2,16,2048], index: 0, kind: input, shape index: {}]   ;;  %s4153_s1 = inlined_call_operand.vmem [shape: bf16[2048,256], index: 1, kind: input, shape index: {}]   ;;  %s4154_s2 = inlined_call_operand.vmem [shape: f32[1,256], index: 2, kind: input, shape index: {}]   ;;  %s4155_s3 = inlined_call_operand.vmem [shape: bf16[2,16,256], index: 3, kind: output, shape index: {}]  }
   0x1   :  { %s3278_s14 = smov 0  }
   0x2 LB: > { %s32_s15 = sadd.s32 1, %s3248_s13  ;;  %p2505_p0 = scmp.ge.s32.totalorder %s3252_s14, 1  ;;  %s3252_s14 = sphi %s3278_s14, %s13_s14   ;;  %s3248_s13 = sphi %s3276_s13, %s4157_s13   ;;  %s3244_s12 = sphi %s3274_s12, %s4156_s12  }
   0x3   : > { %p34_p1 = scmp.ge.s32.totalorder %s32_s15, 2  ;;  %p194_p2 = scmp.lt.s32.totalorder %s3252_s14, 3 }
   0x5   : > { %s4159_s15 = smov (%p34_p1, %s32_s15), 0  ;;  %p195_p3 = pnand %p2505_p0, %p194_p2 }
   0x6   : > { %v2842_v0 = vld [vmem:[%s4153_s1 + $0x4] ss:$8 sps:$4 sm:$0xff] (!%p195_p3)   ;;  %v2846_v2 = vld [vmem:[%s4153_s1] ss:$8 sps:$4 sm:$0xff] (!%p195_p3)   ;;  %v2848_v4 = vld [vmem:[%s4153_s1 + $0x14] ss:$8 sps:$4 sm:$0xff] (!%p195_p3)  }
   0x7   : > { %198 = sbr.rel (%p195_p3) target bundleno = 526 (0x20e), region = 32  ;;  %v2844_v1 = vld [vmem:[%s4153_s1 + $0x404] ss:$8 sps:$4 sm:$0xff] (!%p195_p3)   ;;  %1921 = vmatprep.subr.bf16.mxu1 (!%p195_p3), %v2842_v0  ;;  %v2847_v3 = vld [vmem:[%s4153_s1 + $0x400] ss:$8 sps:$4 sm:$0xff] (!%p195_p3)   ;;  %p241_p4 = scmp.lt.s32.totalorder (!%p195_p3), %s3244_s12, 1 }
   0x8   : > { %2093 = vmatprep.subr.bf16.mxu0 (!%p195_p3), %v2844_v1  ;;  %1922 = vmatpush1.bf16.msra.mxu1 (!%p195_p3), %v2846_v2  ;;  %v2850_v5 = vld [vmem:[%s4153_s1 + $0x414] ss:$8 sps:$4 sm:$0xff] (!%p195_p3)   ;;  %v2852_v6 = vld [vmem:[%s4153_s1 + $0x10] ss:$8 sps:$4 sm:$0xff] (!%p195_p3)   ;;  %v2854_v8 = vld [vmem:[%s4153_s1 + $0x24] ss:$8 sps:$4 sm:$0xff] (!%p195_p3)  }
   0x9   : > { %2094 = vmatpush1.bf16.msra.mxu0 (!%p195_p3), %v2847_v3  ;;  %1923 = vmatprep.subr.bf16.mxu1 (!%p195_p3), %v2848_v4  ;;  %v2853_v7 = vld [vmem:[%s4153_s1 + $0x410] ss:$8 sps:$4 sm:$0xff] (!%p195_p3)   ;;  %v2856_v9 = vld [vmem:[%s4153_s1 + $0x424] ss:$8 sps:$4 sm:$0xff] (!%p195_p3)   ;;  %v2858_v10 = vld [vmem:[%s4153_s1 + $0x20] ss:$8 sps:$4 sm:$0xff] (!%p195_p3)  }
   0xa   : > { %2095 = vmatprep.subr.bf16.mxu0 (!%p195_p3), %v2850_v5  ;;  %v2859_v11 = vld [vmem:[%s4153_s1 + $0x420] ss:$8 sps:$4 sm:$0xff] (!%p195_p3)   ;;  %v2860_v12 = vld [vmem:[%s4153_s1 + $0x34] ss:$8 sps:$4 sm:$0xff] (!%p195_p3)   ;;  %v2864_v14 = vld [vmem:[%s4153_s1 + $0x30] ss:$8 sps:$4 sm:$0xff] (!%p195_p3)  }
   0xb   : > { %v2862_v13 = vld [vmem:[%s4153_s1 + $0x434] ss:$8 sps:$4 sm:$0xff] (!%p195_p3)   ;;  %v2865_v15 = vld [vmem:[%s4153_s1 + $0x430] ss:$8 sps:$4 sm:$0xff] (!%p195_p3)   ;;  %v2866_v16 = vld [vmem:[%s4153_s1 + $0x44] ss:$8 sps:$4 sm:$0xff] (!%p195_p3)  }
   0xc   : > { %1924 = vmatpush1.bf16.msra.mxu1 (!%p195_p3), %v2852_v6  ;;  %v2868_v17 = vld [vmem:[%s4153_s1 + $0x444] ss:$8 sps:$4 sm:$0xff] (!%p195_p3)   ;;  %v2870_v18 = vld [vmem:[%s4153_s1 + $0x40] ss:$8 sps:$4 sm:$0xff] (!%p195_p3)   ;;  %v2872_v20 = vld [vmem:[%s4153_s1 + $0x54] ss:$8 sps:$4 sm:$0xff] (!%p195_p3)  }
   0xd   : > { %2096 = vmatpush1.bf16.msra.mxu0 (!%p195_p3), %v2853_v7  ;;  %1925 = vmatprep.subr.bf16.mxu1 (!%p195_p3), %v2854_v8  ;;  %v2871_v19 = vld [vmem:[%s4153_s1 + $0x440] ss:$8 sps:$4 sm:$0xff] (!%p195_p3)   ;;  %v2874_v21 = vld [vmem:[%s4153_s1 + $0x454] ss:$8 sps:$4 sm:$0xff] (!%p195_p3)   ;;  %v2876_v22 = vld [vmem:[%s4153_s1 + $0x50] ss:$8 sps:$4 sm:$0xff] (!%p195_p3)  }
   0xe   : > { %2097 = vmatprep.subr.bf16.mxu0 %v2856_v9  ;;  %v2877_v23 = vld [vmem:[%s4153_s1 + $0x450] ss:$8 sps:$4 sm:$0xff]   ;;  %v2878_v24 = vld [vmem:[%s4153_s1 + $0x64] ss:$8 sps:$4 sm:$0xff]   ;;  %v2882_v26 = vld [vmem:[%s4153_s1 + $0x60] ss:$8 sps:$4 sm:$0xff]  }
   0xf   : > { %v2880_v25 = vld [vmem:[%s4153_s1 + $0x464] ss:$8 sps:$4 sm:$0xff]   ;;  %v2883_v27 = vld [vmem:[%s4153_s1 + $0x460] ss:$8 sps:$4 sm:$0xff]   ;;  %v2884_v28 = vld [vmem:[%s4153_s1 + $0x74] ss:$8 sps:$4 sm:$0xff]  }
  0x10   : > { %1926 = vmatpush1.bf16.msra.mxu1 %v2858_v10  ;;  %v2886_v29 = vld [vmem:[%s4153_s1 + $0x474] ss:$8 sps:$4 sm:$0xff]   ;;  %v2888_v30 = vld [vmem:[%s4153_s1 + $0x70] ss:$8 sps:$4 sm:$0xff]   ;;  %v2890_v32 = vld [vmem:[%s4153_s1 + $0x84] ss:$8 sps:$4 sm:$0xff]  }
  0x11   : > { %2098 = vmatpush1.bf16.msra.mxu0 %v2859_v11  ;;  %1927 = vmatprep.subr.bf16.mxu1 %v2860_v12  ;;  %v2889_v31 = vld [vmem:[%s4153_s1 + $0x470] ss:$8 sps:$4 sm:$0xff]   ;;  %v2892_v33 = vld [vmem:[%s4153_s1 + $0x484] ss:$8 sps:$4 sm:$0xff]   ;;  %v2894_v34 = vld [vmem:[%s4153_s1 + $0x80] ss:$8 sps:$4 sm:$0xff]  }
  0x12   : > { %2099 = vmatprep.subr.bf16.mxu0 %v2862_v13  ;;  %v2895_v35 = vld [vmem:[%s4153_s1 + $0x480] ss:$8 sps:$4 sm:$0xff]   ;;  %v2896_v36 = vld [vmem:[%s4153_s1 + $0x94] ss:$8 sps:$4 sm:$0xff]   ;;  %s4161_s12 = smov (!%p241_p4, %s3244_s12), 1 }
  0x13   : > { %v2898_v37 = vld [vmem:[%s4153_s1 + $0x494] ss:$8 sps:$4 sm:$0xff]   ;;  %v2900_v38 = vld [vmem:[%s4153_s1 + $0x90] ss:$8 sps:$4 sm:$0xff]   ;;  %v2902_v40 = vld [vmem:[%s4153_s1 + $0xa4] ss:$8 sps:$4 sm:$0xff]  }
  0x14   : > { %1928 = vmatpush1.bf16.msra.mxu1 %v2864_v14  ;;  %v2901_v39 = vld [vmem:[%s4153_s1 + $0x490] ss:$8 sps:$4 sm:$0xff]   ;;  %s2786_s29 = sshll.u32 %s4161_s12, 7  ;;  %v2904_v41 = vld [vmem:[%s4153_s1 + $0x4a4] ss:$8 sps:$4 sm:$0xff]   ;;  %s2787_s18 = sshll.u32 %s4161_s12, 4 }
  0x15   : > { %2100 = vmatpush1.bf16.msra.mxu0 %v2865_v15  ;;  %1929 = vmatprep.subr.bf16.mxu1 %v2866_v16  ;;  %v2906_v42 = vld [vmem:[%s4153_s1 + $0xa0] ss:$8 sps:$4 sm:$0xff]   ;;  %s3434_s11 = scalar_lea.vmem %s4152_s0, %s2786_s29  ;;  %v2908_v44 = vld [vmem:[%s4153_s1 + $0xb4] ss:$8 sps:$4 sm:$0xff]   ;;  %v2912_v46 = vld [vmem:[%s4153_s1 + $0xb0] ss:$8 sps:$4 sm:$0xff]   ;;  %s275_s21 = scalar_lea.vmem %s4155_s3, %s2787_s18 }
  0x16   : > { %2101 = vmatprep.subr.bf16.mxu0 %v2868_v17  ;;  %v2907_v43 = vld [vmem:[%s4153_s1 + $0x4a0] ss:$8 sps:$4 sm:$0xff]   ;;  %v2910_v45 = vld [vmem:[%s4153_s1 + $0x4b4] ss:$8 sps:$4 sm:$0xff]   ;;  %v2913_v47 = vld [vmem:[%s4153_s1 + $0x4b0] ss:$8 sps:$4 sm:$0xff]  }
  0x17   : > { %v289_v48 = vld [vmem:[%s3434_s11] sm:$0xff]  ;;  %v2920_v58 = vld [vmem:[%s4153_s1 + $0xd4] ss:$8 sps:$4 sm:$0xff]   ;;  %v2924_v60 = vld [vmem:[%s4153_s1 + $0xd0] ss:$8 sps:$4 sm:$0xff]  }
  0x18   : > { %1930 = vmatpush1.bf16.msra.mxu1 %v2870_v18  ;;  %v297_v49 = vld [vmem:[%s3434_s11 + $0x40] sm:$0xff]  ;;  %v2922_v59 = vld [vmem:[%s4153_s1 + $0x4d4] ss:$8 sps:$4 sm:$0xff]   ;;  %v2925_v61 = vld [vmem:[%s4153_s1 + $0x4d0] ss:$8 sps:$4 sm:$0xff]  }
  0x19   : > { %2102 = vmatpush1.bf16.msra.mxu0 %v2871_v19  ;;  %1931 = vmatprep.subr.bf16.mxu1 %v2872_v20  ;;  %v2914_v50 = vld [vmem:[%s4153_s1 + $0xc4] ss:$8 sps:$4 sm:$0xff]   ;;  %v2511_v52 = vcombine.high %v289_v48, %v297_v49  ;;  %v2918_v56 = vld [vmem:[%s4153_s1 + $0xc0] ss:$8 sps:$4 sm:$0xff]   ;;  %v2932_v2 = vld [vmem:[%s4153_s1 + $0xf4] ss:$8 sps:$4 sm:$0xff]   ;;  %v2510_v8 = vcombine.low %v289_v48, %v297_v49 }
  0x1a   : > { %2103 = vmatprep.subr.bf16.mxu0 %v2874_v21  ;;  %v2916_v51 = vld [vmem:[%s4153_s1 + $0x4c4] ss:$8 sps:$4 sm:$0xff]   ;;  %v2919_v57 = vld [vmem:[%s4153_s1 + $0x4c0] ss:$8 sps:$4 sm:$0xff]   ;;  %v2934_v3 = vld [vmem:[%s4153_s1 + $0x4f4] ss:$8 sps:$4 sm:$0xff]  }
  0x1b   : > { %v293_v53 = vld [vmem:[%s3434_s11 + $0x20] sm:$0xff]  ;;  %1953 = vmatprep.mubr.bf16.mxu1 %v2511_v52  ;;  %v2936_v4 = vld [vmem:[%s4153_s1 + $0xf0] ss:$8 sps:$4 sm:$0xff]   ;;  %v2946_v12 = vld [vmem:[%s4153_s1 + $0x114] ss:$8 sps:$4 sm:$0xff]  }
  0x1c   : > { %1932 = vmatpush1.bf16.msra.mxu1 %v2876_v22  ;;  %v301_v54 = vld [vmem:[%s3434_s11 + $0x60] sm:$0xff]  ;;  %v2937_v5 = vld [vmem:[%s4153_s1 + $0x4f0] ss:$8 sps:$4 sm:$0xff]   ;;  %v2949_v13 = vld [vmem:[%s4153_s1 + $0x514] ss:$8 sps:$4 sm:$0xff]  }
  0x1d   : > { %2104 = vmatpush1.bf16.msra.mxu0 %v2877_v23  ;;  %1933 = vmatprep.subr.bf16.mxu1 %v2878_v24  ;;  %v2519_v55 = vcombine.high %v293_v53, %v301_v54  ;;  %v2926_v62 = vld [vmem:[%s4153_s1 + $0xe4] ss:$8 sps:$4 sm:$0xff]   ;;  %v2930_v0 = vld [vmem:[%s4153_s1 + $0xe0] ss:$8 sps:$4 sm:$0xff]   ;;  %v2518_v10 = vcombine.low %v293_v53, %v301_v54  ;;  %v2944_v14 = vld [vmem:[%s4153_s1 + $0x110] ss:$8 sps:$4 sm:$0xff]  }
  0x1e   : > { %2105 = vmatprep.subr.bf16.mxu0 %v2880_v25  ;;  %v2928_v63 = vld [vmem:[%s4153_s1 + $0x4e4] ss:$8 sps:$4 sm:$0xff]   ;;  %v2931_v1 = vld [vmem:[%s4153_s1 + $0x4e0] ss:$8 sps:$4 sm:$0xff]   ;;  %v2947_v15 = vld [vmem:[%s4153_s1 + $0x510] ss:$8 sps:$4 sm:$0xff]  }
  0x1f   : > { %2125 = vmatprep.mubr.bf16.mxu0 %v2519_v55  ;;  %v2940_v6 = vld [vmem:[%s4153_s1 + $0x104] ss:$8 sps:$4 sm:$0xff]   ;;  %v2938_v9 = vld [vmem:[%s4153_s1 + $0x100] ss:$8 sps:$4 sm:$0xff]   ;;  %v2958_v20 = vld [vmem:[%s4153_s1 + $0x134] ss:$8 sps:$4 sm:$0xff]  }
  0x20   : > { %1934 = vmatpush1.bf16.msra.mxu1 %v2882_v26  ;;  %v2943_v7 = vld [vmem:[%s4153_s1 + $0x504] ss:$8 sps:$4 sm:$0xff]   ;;  %v2941_v11 = vld [vmem:[%s4153_s1 + $0x500] ss:$8 sps:$4 sm:$0xff]   ;;  %v2961_v21 = vld [vmem:[%s4153_s1 + $0x534] ss:$8 sps:$4 sm:$0xff]  }
  0x21   : > { %2106 = vmatpush1.bf16.msra.mxu0 %v2883_v27  ;;  %1935 = vmatprep.subr.bf16.mxu1 %v2884_v28  ;;  %v2952_v16 = vld [vmem:[%s4153_s1 + $0x124] ss:$8 sps:$4 sm:$0xff]   ;;  %v2950_v18 = vld [vmem:[%s4153_s1 + $0x120] ss:$8 sps:$4 sm:$0xff]   ;;  %v2956_v22 = vld [vmem:[%s4153_s1 + $0x130] ss:$8 sps:$4 sm:$0xff]  }
  0x22   : > { %2107 = vmatprep.subr.bf16.mxu0 %v2886_v29  ;;  %v2955_v17 = vld [vmem:[%s4153_s1 + $0x524] ss:$8 sps:$4 sm:$0xff]   ;;  %v2953_v19 = vld [vmem:[%s4153_s1 + $0x520] ss:$8 sps:$4 sm:$0xff]   ;;  %v2959_v23 = vld [vmem:[%s4153_s1 + $0x530] ss:$8 sps:$4 sm:$0xff]  }
  0x23   : > { %v2964_v24 = vld [vmem:[%s4153_s1 + $0x144] ss:$8 sps:$4 sm:$0xff]   ;;  %v2962_v26 = vld [vmem:[%s4153_s1 + $0x140] ss:$8 sps:$4 sm:$0xff]   ;;  %v2970_v28 = vld [vmem:[%s4153_s1 + $0x154] ss:$8 sps:$4 sm:$0xff]  }
  0x24   : > { %1936 = vmatpush1.bf16.msra.mxu1 %v2888_v30  ;;  %v2967_v25 = vld [vmem:[%s4153_s1 + $0x544] ss:$8 sps:$4 sm:$0xff]   ;;  %v2965_v27 = vld [vmem:[%s4153_s1 + $0x540] ss:$8 sps:$4 sm:$0xff]   ;;  %v2973_v29 = vld [vmem:[%s4153_s1 + $0x554] ss:$8 sps:$4 sm:$0xff]  }
  0x25   : > { %2108 = vmatpush1.bf16.msra.mxu0 %v2889_v31  ;;  %1937 = vmatprep.subr.bf16.mxu1 %v2890_v32  ;;  %v2968_v30 = vld [vmem:[%s4153_s1 + $0x150] ss:$8 sps:$4 sm:$0xff]   ;;  %v2976_v32 = vld [vmem:[%s4153_s1 + $0x164] ss:$8 sps:$4 sm:$0xff]   ;;  %v2986_v48 = vld [vmem:[%s4153_s1 + $0x180] ss:$8 sps:$4 sm:$0xff]  }
  0x26   : > { %2109 = vmatprep.subr.bf16.mxu0 %v2892_v33  ;;  %v2971_v31 = vld [vmem:[%s4153_s1 + $0x550] ss:$8 sps:$4 sm:$0xff]   ;;  %v2979_v33 = vld [vmem:[%s4153_s1 + $0x564] ss:$8 sps:$4 sm:$0xff]   ;;  %v2989_v49 = vld [vmem:[%s4153_s1 + $0x580] ss:$8 sps:$4 sm:$0xff]  }
  0x27   : > { %v2992_v52 = vld [vmem:[%s4153_s1 + $0x190] ss:$8 sps:$4 sm:$0xff]   ;;  %v3000_v54 = vld [vmem:[%s4153_s1 + $0x1a4] ss:$8 sps:$4 sm:$0xff]  }
  0x28   : > { %1938 = vmatpush1.bf16.msra.mxu1 %v2894_v34  ;;  %v2974_v34 = vld [vmem:[%s4153_s1 + $0x160] ss:$8 sps:$4 sm:$0xff]   ;;  %v2995_v53 = vld [vmem:[%s4153_s1 + $0x590] ss:$8 sps:$4 sm:$0xff]   ;;  %v3003_v55 = vld [vmem:[%s4153_s1 + $0x5a4] ss:$8 sps:$4 sm:$0xff]  }
  0x29   : > { %2110 = vmatpush1.bf16.msra.mxu0 %v2895_v35  ;;  %1939 = vmatprep.subr.bf16.mxu1 %v2896_v36  ;;  %v2977_v35 = vld [vmem:[%s4153_s1 + $0x560] ss:$8 sps:$4 sm:$0xff]  }
  0x2a   : > { %2111 = vmatprep.subr.bf16.mxu0 %v2898_v37  ;;  %v3585_v36 = vld [vmem:[%s3434_s11 + $0x8] sm:$0xff] }
  0x2b   : > { %v3588_v37 = vld [vmem:[%s3434_s11 + $0x48] sm:$0xff] }
  0x2c   : > { %1940 = vmatpush1.bf16.msra.mxu1 %v2900_v38  ;;  %v2982_v38 = vld [vmem:[%s4153_s1 + $0x174] ss:$8 sps:$4 sm:$0xff]  }
  0x2d   : > { %2112 = vmatpush1.bf16.msra.mxu0 %v2901_v39  ;;  %1941 = vmatprep.subr.bf16.mxu1 %v2902_v40  ;;  %v2985_v39 = vld [vmem:[%s4153_s1 + $0x574] ss:$8 sps:$4 sm:$0xff]   ;;  %v2513_v40 = vcombine.high %v3585_v36, %v3588_v37 }
  0x2e   : > { %2113 = vmatprep.subr.bf16.mxu0 %v2904_v41  ;;  %v3599_v41 = vld [vmem:[%s3434_s11 + $0x28] sm:$0xff] }
  0x30   : > { %1942 = vmatpush1.bf16.msra.mxu1 %v2906_v42  ;;  %v3602_v42 = vld [vmem:[%s3434_s11 + $0x68] sm:$0xff] }
  0x31   : > { %2114 = vmatpush1.bf16.msra.mxu0 %v2907_v43  ;;  %1943 = vmatprep.subr.bf16.mxu1 %v2908_v44  ;;  %v2521_v43 = vcombine.high %v3599_v41, %v3602_v42  ;;  %v2980_v44 = vld [vmem:[%s4153_s1 + $0x170] ss:$8 sps:$4 sm:$0xff]  }
  0x32   : > { %2115 = vmatprep.subr.bf16.mxu0 %v2910_v45  ;;  %v2983_v45 = vld [vmem:[%s4153_s1 + $0x570] ss:$8 sps:$4 sm:$0xff]  }
  0x34   : > { %1944 = vmatpush1.bf16.msra.mxu1 %v2912_v46  ;;  %v2988_v46 = vld [vmem:[%s4153_s1 + $0x184] ss:$8 sps:$4 sm:$0xff]  }
  0x35   : > { %2116 = vmatpush1.bf16.msra.mxu0 %v2913_v47  ;;  %1945 = vmatprep.subr.bf16.mxu1 %v2914_v50  ;;  %v2991_v47 = vld [vmem:[%s4153_s1 + $0x584] ss:$8 sps:$4 sm:$0xff]   ;;  %v2994_v50 = vld [vmem:[%s4153_s1 + $0x194] ss:$8 sps:$4 sm:$0xff]  }
  0x36   : > { %2117 = vmatprep.subr.bf16.mxu0 %v2916_v51  ;;  %v2997_v51 = vld [vmem:[%s4153_s1 + $0x594] ss:$8 sps:$4 sm:$0xff]  }
  0x38   : > { %1946 = vmatpush1.bf16.msra.mxu1 %v2918_v56  ;;  %v2998_v56 = vld [vmem:[%s4153_s1 + $0x1a0] ss:$8 sps:$4 sm:$0xff]  }
  0x39   : > { %2118 = vmatpush1.bf16.msra.mxu0 %v2919_v57  ;;  %1947 = vmatprep.subr.bf16.mxu1 %v2920_v58  ;;  %v3001_v57 = vld [vmem:[%s4153_s1 + $0x5a0] ss:$8 sps:$4 sm:$0xff]   ;;  %v3006_v58 = vld [vmem:[%s4153_s1 + $0x1b4] ss:$8 sps:$4 sm:$0xff]  }
  0x3a   : > { %2119 = vmatprep.subr.bf16.mxu0 %v2922_v59  ;;  %v3009_v59 = vld [vmem:[%s4153_s1 + $0x5b4] ss:$8 sps:$4 sm:$0xff]  }
  0x3c   : > { %1948 = vmatpush1.bf16.msra.mxu1 %v2924_v60  ;;  %v3004_v60 = vld [vmem:[%s4153_s1 + $0x1b0] ss:$8 sps:$4 sm:$0xff]  }
  0x3d   : > { %2120 = vmatpush1.bf16.msra.mxu0 %v2925_v61  ;;  %1949 = vmatprep.subr.bf16.mxu1 %v2926_v62  ;;  %v3007_v61 = vld [vmem:[%s4153_s1 + $0x5b0] ss:$8 sps:$4 sm:$0xff]   ;;  %v3012_v62 = vld [vmem:[%s4153_s1 + $0x1c4] ss:$8 sps:$4 sm:$0xff]  }
  0x3e   : > { %2121 = vmatprep.subr.bf16.mxu0 %v2928_v63  ;;  %v3015_v63 = vld [vmem:[%s4153_s1 + $0x5c4] ss:$8 sps:$4 sm:$0xff]  }
  0x40   : > { %1950 = vmatpush1.bf16.msra.mxu1 %v2930_v0  ;;  %v3010_v0 = vld [vmem:[%s4153_s1 + $0x1c0] ss:$8 sps:$4 sm:$0xff]  }
  0x41   : > { %2122 = vmatpush1.bf16.msra.mxu0 %v2931_v1  ;;  %1951 = vmatprep.subr.bf16.mxu1 %v2932_v2  ;;  %v3013_v1 = vld [vmem:[%s4153_s1 + $0x5c0] ss:$8 sps:$4 sm:$0xff]   ;;  %v3018_v2 = vld [vmem:[%s4153_s1 + $0x1d4] ss:$8 sps:$4 sm:$0xff]  }
  0x42   : > { %2123 = vmatprep.subr.bf16.mxu0 %v2934_v3  ;;  %v3021_v3 = vld [vmem:[%s4153_s1 + $0x5d4] ss:$8 sps:$4 sm:$0xff]  }
  0x44   : > { %1952 = vmatpush1.bf16.msra.mxu1 %v2936_v4  ;;  %v3016_v4 = vld [vmem:[%s4153_s1 + $0x1d0] ss:$8 sps:$4 sm:$0xff]  }
  0x45   : > { %2124 = vmatpush1.bf16.msra.mxu0 %v2937_v5  ;;  %1964 = vmatprep.subr.bf16.mxu1 %v2940_v6  ;;  %v3019_v5 = vld [vmem:[%s4153_s1 + $0x5d0] ss:$8 sps:$4 sm:$0xff]   ;;  %v3024_v6 = vld [vmem:[%s4153_s1 + $0x1e4] ss:$8 sps:$4 sm:$0xff]  }
  0x46   : > { %2136 = vmatprep.subr.bf16.mxu0 %v2943_v7  ;;  %v3027_v7 = vld [vmem:[%s4153_s1 + $0x5e4] ss:$8 sps:$4 sm:$0xff]  }
  0x47   : > { %1954 = vmatmul.mubr.bf16.vlgmr.msra.gmra.mrb[0].mxu1 %v2510_v8  ;;  %v3022_v8 = vld [vmem:[%s4153_s1 + $0x1e0] ss:$8 sps:$4 sm:$0xff]  }
  0x48   : > { %2126 = vmatmul.mubr.bf16.vlgmr.msra.gmra.mrb[0].mxu0 %v2518_v10  ;;  %1965 = vmatpush1.bf16.msra.mxu1 %v2938_v9  ;;  %v3025_v9 = vld [vmem:[%s4153_s1 + $0x5e0] ss:$8 sps:$4 sm:$0xff]   ;;  %v3030_v10 = vld [vmem:[%s4153_s1 + $0x1f4] ss:$8 sps:$4 sm:$0xff]  }
  0x49   : > { %2137 = vmatpush1.bf16.msra.mxu0 %v2941_v11  ;;  %1966 = vmatprep.subr.bf16.mxu1 %v2946_v12  ;;  %v3033_v11 = vld [vmem:[%s4153_s1 + $0x5f4] ss:$8 sps:$4 sm:$0xff]   ;;  %v3028_v12 = vld [vmem:[%s4153_s1 + $0x1f0] ss:$8 sps:$4 sm:$0xff]  }
  0x4a   : > { %2138 = vmatprep.subr.bf16.mxu0 %v2949_v13  ;;  %1996 = vmatprep.mubr.bf16.mxu1 %v2513_v40  ;;  %v3031_v13 = vld [vmem:[%s4153_s1 + $0x5f0] ss:$8 sps:$4 sm:$0xff]   ;;  %v3058_v40 = vld [vmem:[%s4153_s1 + $0x240] ss:$8 sps:$4 sm:$0xff]  }
  0x4b   : > { %2168 = vmatprep.mubr.bf16.mxu0 %v2521_v43  ;;  %v3069_v43 = vld [vmem:[%s4153_s1 + $0x654] ss:$8 sps:$4 sm:$0xff]  }
  0x4c   : > { %1967 = vmatpush1.bf16.msra.mxu1 %v2944_v14  ;;  %v3036_v14 = vld [vmem:[%s4153_s1 + $0x204] ss:$8 sps:$4 sm:$0xff]  }
  0x4d   : > { %2139 = vmatpush1.bf16.msra.mxu0 %v2947_v15  ;;  %1968 = vmatprep.subr.bf16.mxu1 %v2952_v16  ;;  %v3039_v15 = vld [vmem:[%s4153_s1 + $0x604] ss:$8 sps:$4 sm:$0xff]   ;;  %v2512_v16 = vcombine.low %v3585_v36, %v3588_v37  ;;  %v3052_v36 = vld [vmem:[%s4153_s1 + $0x230] ss:$8 sps:$4 sm:$0xff]  }
  0x4e   : > { %2140 = vmatprep.subr.bf16.mxu0 %v2955_v17  ;;  %v3034_v17 = vld [vmem:[%s4153_s1 + $0x200] ss:$8 sps:$4 sm:$0xff]   ;;  %v3055_v37 = vld [vmem:[%s4153_s1 + $0x630] ss:$8 sps:$4 sm:$0xff]  }
  0x50   : > { %1969 = vmatpush1.bf16.msra.mxu1 %v2950_v18  ;;  %v2520_v18 = vcombine.low %v3599_v41, %v3602_v42  ;;  %v3061_v41 = vld [vmem:[%s4153_s1 + $0x640] ss:$8 sps:$4 sm:$0xff]   ;;  %v3066_v42 = vld [vmem:[%s4153_s1 + $0x254] ss:$8 sps:$4 sm:$0xff]  }
  0x51   : > { %2141 = vmatpush1.bf16.msra.mxu0 %v2953_v19  ;;  %1970 = vmatprep.subr.bf16.mxu1 %v2958_v20  ;;  %v3037_v19 = vld [vmem:[%s4153_s1 + $0x600] ss:$8 sps:$4 sm:$0xff]   ;;  %v3042_v20 = vld [vmem:[%s4153_s1 + $0x214] ss:$8 sps:$4 sm:$0xff]  }
  0x52   : > { %2142 = vmatprep.subr.bf16.mxu0 %v2961_v21  ;;  %v3045_v21 = vld [vmem:[%s4153_s1 + $0x614] ss:$8 sps:$4 sm:$0xff]  }
  0x54   : > { %1971 = vmatpush1.bf16.msra.mxu1 %v2956_v22  ;;  %v3040_v22 = vld [vmem:[%s4153_s1 + $0x210] ss:$8 sps:$4 sm:$0xff]  }
  0x55   : > { %2143 = vmatpush1.bf16.msra.mxu0 %v2959_v23  ;;  %1972 = vmatprep.subr.bf16.mxu1 %v2964_v24  ;;  %v3043_v23 = vld [vmem:[%s4153_s1 + $0x610] ss:$8 sps:$4 sm:$0xff]  }
  0x56   : > { %2144 = vmatprep.subr.bf16.mxu0 %v2967_v25  ;;  %v3737_v24 = vld [vmem:[%s3434_s11 + $0x10] sm:$0xff] }
  0x57   : > { %v3740_v25 = vld [vmem:[%s3434_s11 + $0x50] sm:$0xff] }
  0x58   : > { %1973 = vmatpush1.bf16.msra.mxu1 %v2962_v26  ;;  %v3048_v26 = vld [vmem:[%s4153_s1 + $0x224] ss:$8 sps:$4 sm:$0xff]  }
  0x59   : > { %2145 = vmatpush1.bf16.msra.mxu0 %v2965_v27  ;;  %1974 = vmatprep.subr.bf16.mxu1 %v2970_v28  ;;  %v3051_v27 = vld [vmem:[%s4153_s1 + $0x624] ss:$8 sps:$4 sm:$0xff]   ;;  %v2515_v28 = vcombine.high %v3737_v24, %v3740_v25 }
  0x5a   : > { %2146 = vmatprep.subr.bf16.mxu0 %v2973_v29  ;;  %v3751_v29 = vld [vmem:[%s3434_s11 + $0x30] sm:$0xff] }
  0x5c   : > { %1975 = vmatpush1.bf16.msra.mxu1 %v2968_v30  ;;  %v3754_v30 = vld [vmem:[%s3434_s11 + $0x70] sm:$0xff] }
  0x5d   : > { %2147 = vmatpush1.bf16.msra.mxu0 %v2971_v31  ;;  %1976 = vmatprep.subr.bf16.mxu1 %v2976_v32  ;;  %v2523_v31 = vcombine.high %v3751_v29, %v3754_v30  ;;  %v3046_v32 = vld [vmem:[%s4153_s1 + $0x220] ss:$8 sps:$4 sm:$0xff]  }
  0x5e   : > { %2148 = vmatprep.subr.bf16.mxu0 %v2979_v33  ;;  %v3049_v33 = vld [vmem:[%s4153_s1 + $0x620] ss:$8 sps:$4 sm:$0xff]  }
  0x60   : > { %1977 = vmatpush1.bf16.msra.mxu1 %v2974_v34  ;;  %v3054_v34 = vld [vmem:[%s4153_s1 + $0x234] ss:$8 sps:$4 sm:$0xff]  }
  0x61   : > { %2149 = vmatpush1.bf16.msra.mxu0 %v2977_v35  ;;  %1978 = vmatprep.subr.bf16.mxu1 %v2982_v38  ;;  %v3057_v35 = vld [vmem:[%s4153_s1 + $0x634] ss:$8 sps:$4 sm:$0xff]   ;;  %v3060_v38 = vld [vmem:[%s4153_s1 + $0x244] ss:$8 sps:$4 sm:$0xff]  }
  0x62   : > { %2150 = vmatprep.subr.bf16.mxu0 %v2985_v39  ;;  %v3063_v39 = vld [vmem:[%s4153_s1 + $0x644] ss:$8 sps:$4 sm:$0xff]  }
  0x64   : > { %1979 = vmatpush1.bf16.msra.mxu1 %v2980_v44  ;;  %v3064_v44 = vld [vmem:[%s4153_s1 + $0x250] ss:$8 sps:$4 sm:$0xff]  }
  0x65   : > { %2151 = vmatpush1.bf16.msra.mxu0 %v2983_v45  ;;  %1980 = vmatprep.subr.bf16.mxu1 %v2988_v46  ;;  %v3067_v45 = vld [vmem:[%s4153_s1 + $0x650] ss:$8 sps:$4 sm:$0xff]   ;;  %v3072_v46 = vld [vmem:[%s4153_s1 + $0x264] ss:$8 sps:$4 sm:$0xff]  }
  0x66   : > { %2152 = vmatprep.subr.bf16.mxu0 %v2991_v47  ;;  %v3075_v47 = vld [vmem:[%s4153_s1 + $0x664] ss:$8 sps:$4 sm:$0xff]  }
  0x68   : > { %1981 = vmatpush1.bf16.msra.mxu1 %v2986_v48  ;;  %v3070_v48 = vld [vmem:[%s4153_s1 + $0x260] ss:$8 sps:$4 sm:$0xff]  }
  0x69   : > { %2153 = vmatpush1.bf16.msra.mxu0 %v2989_v49  ;;  %1982 = vmatprep.subr.bf16.mxu1 %v2994_v50  ;;  %v3073_v49 = vld [vmem:[%s4153_s1 + $0x660] ss:$8 sps:$4 sm:$0xff]   ;;  %v3078_v50 = vld [vmem:[%s4153_s1 + $0x274] ss:$8 sps:$4 sm:$0xff]  }
  0x6a   : > { %2154 = vmatprep.subr.bf16.mxu0 %v2997_v51  ;;  %v3081_v51 = vld [vmem:[%s4153_s1 + $0x674] ss:$8 sps:$4 sm:$0xff]  }
  0x6c   : > { %1983 = vmatpush1.bf16.msra.mxu1 %v2992_v52  ;;  %v3076_v52 = vld [vmem:[%s4153_s1 + $0x270] ss:$8 sps:$4 sm:$0xff]  }
  0x6d   : > { %2155 = vmatpush1.bf16.msra.mxu0 %v2995_v53  ;;  %1984 = vmatprep.subr.bf16.mxu1 %v3000_v54  ;;  %v3079_v53 = vld [vmem:[%s4153_s1 + $0x670] ss:$8 sps:$4 sm:$0xff]   ;;  %v3084_v54 = vld [vmem:[%s4153_s1 + $0x284] ss:$8 sps:$4 sm:$0xff]  }
  0x6e   : > { %2156 = vmatprep.subr.bf16.mxu0 %v3003_v55  ;;  %v3087_v55 = vld [vmem:[%s4153_s1 + $0x684] ss:$8 sps:$4 sm:$0xff]  }
  0x70   : > { %1985 = vmatpush1.bf16.msra.mxu1 %v2998_v56  ;;  %v3082_v56 = vld [vmem:[%s4153_s1 + $0x280] ss:$8 sps:$4 sm:$0xff]  }
  0x71   : > { %2157 = vmatpush1.bf16.msra.mxu0 %v3001_v57  ;;  %1986 = vmatprep.subr.bf16.mxu1 %v3006_v58  ;;  %v3085_v57 = vld [vmem:[%s4153_s1 + $0x680] ss:$8 sps:$4 sm:$0xff]   ;;  %v3090_v58 = vld [vmem:[%s4153_s1 + $0x294] ss:$8 sps:$4 sm:$0xff]  }
  0x72   : > { %2158 = vmatprep.subr.bf16.mxu0 %v3009_v59  ;;  %v3093_v59 = vld [vmem:[%s4153_s1 + $0x694] ss:$8 sps:$4 sm:$0xff]  }
  0x74   : > { %1987 = vmatpush1.bf16.msra.mxu1 %v3004_v60  ;;  %v3088_v60 = vld [vmem:[%s4153_s1 + $0x290] ss:$8 sps:$4 sm:$0xff]  }
  0x75   : > { %2159 = vmatpush1.bf16.msra.mxu0 %v3007_v61  ;;  %1988 = vmatprep.subr.bf16.mxu1 %v3012_v62  ;;  %v3091_v61 = vld [vmem:[%s4153_s1 + $0x690] ss:$8 sps:$4 sm:$0xff]   ;;  %v3096_v62 = vld [vmem:[%s4153_s1 + $0x2a4] ss:$8 sps:$4 sm:$0xff]  }
  0x76   : > { %2160 = vmatprep.subr.bf16.mxu0 %v3015_v63  ;;  %v3099_v63 = vld [vmem:[%s4153_s1 + $0x6a4] ss:$8 sps:$4 sm:$0xff]  }
  0x78   : > { %1989 = vmatpush1.bf16.msra.mxu1 %v3010_v0  ;;  %v3094_v0 = vld [vmem:[%s4153_s1 + $0x2a0] ss:$8 sps:$4 sm:$0xff]  }
  0x79   : > { %2161 = vmatpush1.bf16.msra.mxu0 %v3013_v1  ;;  %1990 = vmatprep.subr.bf16.mxu1 %v3018_v2  ;;  %v3097_v1 = vld [vmem:[%s4153_s1 + $0x6a0] ss:$8 sps:$4 sm:$0xff]   ;;  %v3102_v2 = vld [vmem:[%s4153_s1 + $0x2b4] ss:$8 sps:$4 sm:$0xff]  }
  0x7a   : > { %2162 = vmatprep.subr.bf16.mxu0 %v3021_v3  ;;  %v3105_v3 = vld [vmem:[%s4153_s1 + $0x6b4] ss:$8 sps:$4 sm:$0xff]  }
  0x7c   : > { %1991 = vmatpush1.bf16.msra.mxu1 %v3016_v4  ;;  %v3100_v4 = vld [vmem:[%s4153_s1 + $0x2b0] ss:$8 sps:$4 sm:$0xff]  }
  0x7d   : > { %2163 = vmatpush1.bf16.msra.mxu0 %v3019_v5  ;;  %1992 = vmatprep.subr.bf16.mxu1 %v3024_v6  ;;  %v3103_v5 = vld [vmem:[%s4153_s1 + $0x6b0] ss:$8 sps:$4 sm:$0xff]   ;;  %v3108_v6 = vld [vmem:[%s4153_s1 + $0x2c4] ss:$8 sps:$4 sm:$0xff]  }
  0x7e   : > { %2164 = vmatprep.subr.bf16.mxu0 %v3027_v7  ;;  %v3111_v7 = vld [vmem:[%s4153_s1 + $0x6c4] ss:$8 sps:$4 sm:$0xff]  }
  0x80   : > { %1993 = vmatpush1.bf16.msra.mxu1 %v3022_v8  ;;  %v3106_v8 = vld [vmem:[%s4153_s1 + $0x2c0] ss:$8 sps:$4 sm:$0xff]  }
  0x81   : > { %2165 = vmatpush1.bf16.msra.mxu0 %v3025_v9  ;;  %1994 = vmatprep.subr.bf16.mxu1 %v3030_v10  ;;  %v3109_v9 = vld [vmem:[%s4153_s1 + $0x6c0] ss:$8 sps:$4 sm:$0xff]   ;;  %v3114_v10 = vld [vmem:[%s4153_s1 + $0x2d4] ss:$8 sps:$4 sm:$0xff]  }
  0x82   : > { %2166 = vmatprep.subr.bf16.mxu0 %v3033_v11  ;;  %v3117_v11 = vld [vmem:[%s4153_s1 + $0x6d4] ss:$8 sps:$4 sm:$0xff]  }
  0x84   : > { %1995 = vmatpush1.bf16.msra.mxu1 %v3028_v12  ;;  %v3112_v12 = vld [vmem:[%s4153_s1 + $0x2d0] ss:$8 sps:$4 sm:$0xff]  }
  0x85   : > { %2167 = vmatpush1.bf16.msra.mxu0 %v3031_v13  ;;  %2007 = vmatprep.subr.bf16.mxu1 %v3036_v14  ;;  %v3115_v13 = vld [vmem:[%s4153_s1 + $0x6d0] ss:$8 sps:$4 sm:$0xff]   ;;  %v3120_v14 = vld [vmem:[%s4153_s1 + $0x2e4] ss:$8 sps:$4 sm:$0xff]  }
  0x86   : > { %2179 = vmatprep.subr.bf16.mxu0 %v3039_v15  ;;  %v3123_v15 = vld [vmem:[%s4153_s1 + $0x6e4] ss:$8 sps:$4 sm:$0xff]  }
  0x87   : > { %1997 = vmatmul.mubr.bf16.vlgmr.msra.gmra.mrb[0].mxu1 %v2512_v16  ;;  %v3118_v16 = vld [vmem:[%s4153_s1 + $0x2e0] ss:$8 sps:$4 sm:$0xff]  }
  0x88   : > { %2169 = vmatmul.mubr.bf16.vlgmr.msra.gmra.mrb[0].mxu0 %v2520_v18  ;;  %2008 = vmatpush1.bf16.msra.mxu1 %v3034_v17  ;;  %v3121_v17 = vld [vmem:[%s4153_s1 + $0x6e0] ss:$8 sps:$4 sm:$0xff]   ;;  %v3126_v18 = vld [vmem:[%s4153_s1 + $0x2f4] ss:$8 sps:$4 sm:$0xff]  }
  0x89   : > { %2180 = vmatpush1.bf16.msra.mxu0 %v3037_v19  ;;  %2009 = vmatprep.subr.bf16.mxu1 %v3042_v20  ;;  %v3129_v19 = vld [vmem:[%s4153_s1 + $0x6f4] ss:$8 sps:$4 sm:$0xff]   ;;  %v3124_v20 = vld [vmem:[%s4153_s1 + $0x2f0] ss:$8 sps:$4 sm:$0xff]  }
  0x8a   : > { %2181 = vmatprep.subr.bf16.mxu0 %v3045_v21  ;;  %2039 = vmatprep.mubr.bf16.mxu1 %v2515_v28  ;;  %v3127_v21 = vld [vmem:[%s4153_s1 + $0x6f0] ss:$8 sps:$4 sm:$0xff]   ;;  %v2522_v28 = vcombine.low %v3751_v29, %v3754_v30 }
  0x8b   : > { %2211 = vmatprep.mubr.bf16.mxu0 %v2523_v31  ;;  %v3934_v31 = vld [vmem:[%s3434_s11 + $0x58] sm:$0xff] }
  0x8c   : > { %2010 = vmatpush1.bf16.msra.mxu1 %v3040_v22  ;;  %v3132_v22 = vld [vmem:[%s4153_s1 + $0x304] ss:$8 sps:$4 sm:$0xff]  }
  0x8d   : > { %2182 = vmatpush1.bf16.msra.mxu0 %v3043_v23  ;;  %2011 = vmatprep.subr.bf16.mxu1 %v3048_v26  ;;  %v3135_v23 = vld [vmem:[%s4153_s1 + $0x704] ss:$8 sps:$4 sm:$0xff]   ;;  %v3927_v26 = vld [vmem:[%s3434_s11 + $0x18] sm:$0xff] }
  0x8e   : > { %2183 = vmatprep.subr.bf16.mxu0 %v3051_v27  ;;  %v2514_v27 = vcombine.low %v3737_v24, %v3740_v25  ;;  %v3138_v24 = vld [vmem:[%s4153_s1 + $0x314] ss:$8 sps:$4 sm:$0xff]   ;;  %v2517_v29 = vcombine.high %v3927_v26, %v3934_v31 }
  0x8f   : > { %v3141_v25 = vld [vmem:[%s4153_s1 + $0x714] ss:$8 sps:$4 sm:$0xff]  }
  0x90   : > { %2012 = vmatpush1.bf16.msra.mxu1 %v3046_v32  ;;  %v3937_v32 = vld [vmem:[%s3434_s11 + $0x38] sm:$0xff] }
  0x91   : > { %2184 = vmatpush1.bf16.msra.mxu0 %v3049_v33  ;;  %2013 = vmatprep.subr.bf16.mxu1 %v3054_v34  ;;  %v3940_v33 = vld [vmem:[%s3434_s11 + $0x78] sm:$0xff]  ;;  %v3130_v34 = vld [vmem:[%s4153_s1 + $0x300] ss:$8 sps:$4 sm:$0xff]  }
  0x92   : > { %2185 = vmatprep.subr.bf16.mxu0 %v3057_v35  ;;  %v3133_v35 = vld [vmem:[%s4153_s1 + $0x700] ss:$8 sps:$4 sm:$0xff]   ;;  %v2525_v30 = vcombine.high %v3937_v32, %v3940_v33 }
  0x94   : > { %2014 = vmatpush1.bf16.msra.mxu1 %v3052_v36  ;;  %v3136_v36 = vld [vmem:[%s4153_s1 + $0x310] ss:$8 sps:$4 sm:$0xff]  }
  0x95   : > { %2186 = vmatpush1.bf16.msra.mxu0 %v3055_v37  ;;  %2015 = vmatprep.subr.bf16.mxu1 %v3060_v38  ;;  %v3139_v37 = vld [vmem:[%s4153_s1 + $0x710] ss:$8 sps:$4 sm:$0xff]   ;;  %v3144_v38 = vld [vmem:[%s4153_s1 + $0x324] ss:$8 sps:$4 sm:$0xff]  }
  0x96   : > { %2187 = vmatprep.subr.bf16.mxu0 %v3063_v39  ;;  %v3147_v39 = vld [vmem:[%s4153_s1 + $0x724] ss:$8 sps:$4 sm:$0xff]  }
  0x98   : > { %2016 = vmatpush1.bf16.msra.mxu1 %v3058_v40  ;;  %v3142_v40 = vld [vmem:[%s4153_s1 + $0x320] ss:$8 sps:$4 sm:$0xff]  }
  0x99   : > { %2188 = vmatpush1.bf16.msra.mxu0 %v3061_v41  ;;  %2017 = vmatprep.subr.bf16.mxu1 %v3066_v42  ;;  %v3145_v41 = vld [vmem:[%s4153_s1 + $0x720] ss:$8 sps:$4 sm:$0xff]   ;;  %v3150_v42 = vld [vmem:[%s4153_s1 + $0x334] ss:$8 sps:$4 sm:$0xff]  }
  0x9a   : > { %2189 = vmatprep.subr.bf16.mxu0 %v3069_v43  ;;  %v3153_v43 = vld [vmem:[%s4153_s1 + $0x734] ss:$8 sps:$4 sm:$0xff]  }
  0x9c   : > { %2018 = vmatpush1.bf16.msra.mxu1 %v3064_v44  ;;  %v3148_v44 = vld [vmem:[%s4153_s1 + $0x330] ss:$8 sps:$4 sm:$0xff]  }
  0x9d   : > { %2190 = vmatpush1.bf16.msra.mxu0 %v3067_v45  ;;  %2019 = vmatprep.subr.bf16.mxu1 %v3072_v46  ;;  %v3151_v45 = vld [vmem:[%s4153_s1 + $0x730] ss:$8 sps:$4 sm:$0xff]   ;;  %v3156_v46 = vld [vmem:[%s4153_s1 + $0x344] ss:$8 sps:$4 sm:$0xff]  }
  0x9e   : > { %2191 = vmatprep.subr.bf16.mxu0 %v3075_v47  ;;  %v3159_v47 = vld [vmem:[%s4153_s1 + $0x744] ss:$8 sps:$4 sm:$0xff]  }
  0xa0   : > { %2020 = vmatpush1.bf16.msra.mxu1 %v3070_v48  ;;  %v3154_v48 = vld [vmem:[%s4153_s1 + $0x340] ss:$8 sps:$4 sm:$0xff]  }
  0xa1   : > { %2192 = vmatpush1.bf16.msra.mxu0 %v3073_v49  ;;  %2021 = vmatprep.subr.bf16.mxu1 %v3078_v50  ;;  %v3157_v49 = vld [vmem:[%s4153_s1 + $0x740] ss:$8 sps:$4 sm:$0xff]   ;;  %v3162_v50 = vld [vmem:[%s4153_s1 + $0x354] ss:$8 sps:$4 sm:$0xff]  }
  0xa2   : > { %2193 = vmatprep.subr.bf16.mxu0 %v3081_v51  ;;  %v3165_v51 = vld [vmem:[%s4153_s1 + $0x754] ss:$8 sps:$4 sm:$0xff]  }
  0xa4   : > { %2022 = vmatpush1.bf16.msra.mxu1 %v3076_v52  ;;  %v3160_v52 = vld [vmem:[%s4153_s1 + $0x350] ss:$8 sps:$4 sm:$0xff]  }
  0xa5   : > { %2194 = vmatpush1.bf16.msra.mxu0 %v3079_v53  ;;  %2023 = vmatprep.subr.bf16.mxu1 %v3084_v54  ;;  %v3163_v53 = vld [vmem:[%s4153_s1 + $0x750] ss:$8 sps:$4 sm:$0xff]   ;;  %v3168_v54 = vld [vmem:[%s4153_s1 + $0x364] ss:$8 sps:$4 sm:$0xff]  }
  0xa6   : > { %2195 = vmatprep.subr.bf16.mxu0 %v3087_v55  ;;  %v3171_v55 = vld [vmem:[%s4153_s1 + $0x764] ss:$8 sps:$4 sm:$0xff]  }
  0xa8   : > { %2024 = vmatpush1.bf16.msra.mxu1 %v3082_v56  ;;  %v3166_v56 = vld [vmem:[%s4153_s1 + $0x360] ss:$8 sps:$4 sm:$0xff]  }
  0xa9   : > { %2196 = vmatpush1.bf16.msra.mxu0 %v3085_v57  ;;  %2025 = vmatprep.subr.bf16.mxu1 %v3090_v58  ;;  %v3169_v57 = vld [vmem:[%s4153_s1 + $0x760] ss:$8 sps:$4 sm:$0xff]   ;;  %v3174_v58 = vld [vmem:[%s4153_s1 + $0x374] ss:$8 sps:$4 sm:$0xff]  }
  0xaa   : > { %2197 = vmatprep.subr.bf16.mxu0 %v3093_v59  ;;  %v3177_v59 = vld [vmem:[%s4153_s1 + $0x774] ss:$8 sps:$4 sm:$0xff]  }
  0xac   : > { %2026 = vmatpush1.bf16.msra.mxu1 %v3088_v60  ;;  %v3172_v60 = vld [vmem:[%s4153_s1 + $0x370] ss:$8 sps:$4 sm:$0xff]  }
  0xad   : > { %2198 = vmatpush1.bf16.msra.mxu0 %v3091_v61  ;;  %2027 = vmatprep.subr.bf16.mxu1 %v3096_v62  ;;  %v3175_v61 = vld [vmem:[%s4153_s1 + $0x770] ss:$8 sps:$4 sm:$0xff]   ;;  %v3180_v62 = vld [vmem:[%s4153_s1 + $0x384] ss:$8 sps:$4 sm:$0xff]  }
  0xae   : > { %2199 = vmatprep.subr.bf16.mxu0 %v3099_v63  ;;  %v3183_v63 = vld [vmem:[%s4153_s1 + $0x784] ss:$8 sps:$4 sm:$0xff]  }
  0xb0   : > { %2028 = vmatpush1.bf16.msra.mxu1 %v3094_v0  ;;  %v3178_v0 = vld [vmem:[%s4153_s1 + $0x380] ss:$8 sps:$4 sm:$0xff]  }
  0xb1   : > { %2200 = vmatpush1.bf16.msra.mxu0 %v3097_v1  ;;  %2029 = vmatprep.subr.bf16.mxu1 %v3102_v2  ;;  %v3181_v1 = vld [vmem:[%s4153_s1 + $0x780] ss:$8 sps:$4 sm:$0xff]   ;;  %v3186_v2 = vld [vmem:[%s4153_s1 + $0x394] ss:$8 sps:$4 sm:$0xff]  }
  0xb2   : > { %2201 = vmatprep.subr.bf16.mxu0 %v3105_v3  ;;  %v3189_v3 = vld [vmem:[%s4153_s1 + $0x794] ss:$8 sps:$4 sm:$0xff]  }
  0xb4   : > { %2030 = vmatpush1.bf16.msra.mxu1 %v3100_v4  ;;  %v3184_v4 = vld [vmem:[%s4153_s1 + $0x390] ss:$8 sps:$4 sm:$0xff]  }
  0xb5   : > { %2202 = vmatpush1.bf16.msra.mxu0 %v3103_v5  ;;  %2031 = vmatprep.subr.bf16.mxu1 %v3108_v6  ;;  %v3187_v5 = vld [vmem:[%s4153_s1 + $0x790] ss:$8 sps:$4 sm:$0xff]   ;;  %v3192_v6 = vld [vmem:[%s4153_s1 + $0x3a4] ss:$8 sps:$4 sm:$0xff]  }
  0xb6   : > { %2203 = vmatprep.subr.bf16.mxu0 %v3111_v7  ;;  %v3195_v7 = vld [vmem:[%s4153_s1 + $0x7a4] ss:$8 sps:$4 sm:$0xff]  }
  0xb8   : > { %2032 = vmatpush1.bf16.msra.mxu1 %v3106_v8  ;;  %v3190_v8 = vld [vmem:[%s4153_s1 + $0x3a0] ss:$8 sps:$4 sm:$0xff]  }
  0xb9   : > { %2204 = vmatpush1.bf16.msra.mxu0 %v3109_v9  ;;  %2033 = vmatprep.subr.bf16.mxu1 %v3114_v10  ;;  %v3193_v9 = vld [vmem:[%s4153_s1 + $0x7a0] ss:$8 sps:$4 sm:$0xff]   ;;  %v3198_v10 = vld [vmem:[%s4153_s1 + $0x3b4] ss:$8 sps:$4 sm:$0xff]  }
  0xba   : > { %2205 = vmatprep.subr.bf16.mxu0 %v3117_v11  ;;  %v3201_v11 = vld [vmem:[%s4153_s1 + $0x7b4] ss:$8 sps:$4 sm:$0xff]  }
  0xbc   : > { %2034 = vmatpush1.bf16.msra.mxu1 %v3112_v12  ;;  %v3196_v12 = vld [vmem:[%s4153_s1 + $0x3b0] ss:$8 sps:$4 sm:$0xff]  }
  0xbd   : > { %2206 = vmatpush1.bf16.msra.mxu0 %v3115_v13  ;;  %2035 = vmatprep.subr.bf16.mxu1 %v3120_v14  ;;  %v3199_v13 = vld [vmem:[%s4153_s1 + $0x7b0] ss:$8 sps:$4 sm:$0xff]   ;;  %v3204_v14 = vld [vmem:[%s4153_s1 + $0x3c4] ss:$8 sps:$4 sm:$0xff]  }
  0xbe   : > { %2207 = vmatprep.subr.bf16.mxu0 %v3123_v15  ;;  %v3207_v15 = vld [vmem:[%s4153_s1 + $0x7c4] ss:$8 sps:$4 sm:$0xff]  }
  0xc0   : > { %2036 = vmatpush1.bf16.msra.mxu1 %v3118_v16  ;;  %v3202_v16 = vld [vmem:[%s4153_s1 + $0x3c0] ss:$8 sps:$4 sm:$0xff]  }
  0xc1   : > { %2208 = vmatpush1.bf16.msra.mxu0 %v3121_v17  ;;  %2037 = vmatprep.subr.bf16.mxu1 %v3126_v18  ;;  %v3205_v17 = vld [vmem:[%s4153_s1 + $0x7c0] ss:$8 sps:$4 sm:$0xff]   ;;  %v3210_v18 = vld [vmem:[%s4153_s1 + $0x3d4] ss:$8 sps:$4 sm:$0xff]  }
  0xc2   : > { %2209 = vmatprep.subr.bf16.mxu0 %v3129_v19  ;;  %v3213_v19 = vld [vmem:[%s4153_s1 + $0x7d4] ss:$8 sps:$4 sm:$0xff]  }
  0xc4   : > { %2038 = vmatpush1.bf16.msra.mxu1 %v3124_v20  ;;  %v3208_v20 = vld [vmem:[%s4153_s1 + $0x3d0] ss:$8 sps:$4 sm:$0xff]  }
  0xc5   : > { %2210 = vmatpush1.bf16.msra.mxu0 %v3127_v21  ;;  %2050 = vmatprep.subr.bf16.mxu1 %v3132_v22  ;;  %v3211_v21 = vld [vmem:[%s4153_s1 + $0x7d0] ss:$8 sps:$4 sm:$0xff]   ;;  %v3216_v22 = vld [vmem:[%s4153_s1 + $0x3e4] ss:$8 sps:$4 sm:$0xff]  }
  0xc6   : > { %2222 = vmatprep.subr.bf16.mxu0 %v3135_v23  ;;  %v3219_v23 = vld [vmem:[%s4153_s1 + $0x7e4] ss:$8 sps:$4 sm:$0xff]  }
  0xc7   : > { %2040 = vmatmul.mubr.bf16.vlgmr.msra.gmra.mrb[0].mxu1 %v2514_v27  ;;  %v3214_v27 = vld [vmem:[%s4153_s1 + $0x3e0] ss:$8 sps:$4 sm:$0xff]  }
  0xc8   : > { %2212 = vmatmul.mubr.bf16.vlgmr.msra.gmra.mrb[0].mxu0 %v2522_v28  ;;  %2051 = vmatpush1.bf16.msra.mxu1 %v3130_v34  ;;  %v3217_v28 = vld [vmem:[%s4153_s1 + $0x7e0] ss:$8 sps:$4 sm:$0xff]   ;;  %v3222_v34 = vld [vmem:[%s4153_s1 + $0x3f4] ss:$8 sps:$4 sm:$0xff]  }
  0xc9   : > { %2223 = vmatpush1.bf16.msra.mxu0 %v3133_v35  ;;  %2052 = vmatprep.subr.bf16.mxu1 %v3138_v24  ;;  %v3225_v35 = vld [vmem:[%s4153_s1 + $0x7f4] ss:$8 sps:$4 sm:$0xff]   ;;  %v3220_v24 = vld [vmem:[%s4153_s1 + $0x3f0] ss:$8 sps:$4 sm:$0xff]  }
  0xca   : > { %2224 = vmatprep.subr.bf16.mxu0 %v3141_v25  ;;  %2082 = vmatprep.mubr.bf16.mxu1 %v2517_v29  ;;  %v3223_v25 = vld [vmem:[%s4153_s1 + $0x7f0] ss:$8 sps:$4 sm:$0xff]   ;;  %v2516_v29 = vcombine.low %v3927_v26, %v3934_v31 }
  0xcb   : > { %2254 = vmatprep.mubr.bf16.mxu0 %v2525_v30  ;;  %v2524_v30 = vcombine.low %v3937_v32, %v3940_v33 }
  0xcc   : > { %2053 = vmatpush1.bf16.msra.mxu1 %v3136_v36  ;;  %v2282_v36 = vlaneseq }
  0xcd   : > { %2225 = vmatpush1.bf16.msra.mxu0 %v3139_v37  ;;  %2054 = vmatprep.subr.bf16.mxu1 %v3144_v38 }
  0xce   : > { %2226 = vmatprep.subr.bf16.mxu0 %v3147_v39  ;;  %v2283_v37 = vshrl.u32 %v2282_v36, 7  ;;  %v2280_v39 = vld [vmem:[%s4154_s2] sm:$0x3] }
  0xd0   : > { %2055 = vmatpush1.bf16.msra.mxu1 %v3142_v40  ;;  %v2284_v38 = vsub.s32 0, %v2283_v37  ;;  %v2288_v40 = vsub.s32 1, %v2283_v37 }
  0xd1   : > { %2227 = vmatpush1.bf16.msra.mxu0 %v3145_v41  ;;  %2056 = vmatprep.subr.bf16.mxu1 %v3150_v42 }
  0xd2   : > { %2228 = vmatprep.subr.bf16.mxu0 %v3153_v43  ;;  %v2285_v41 = vrot.slane %v2280_v39, %v2284_v38 }
  0xd4   : > { %2057 = vmatpush1.bf16.msra.mxu1 %v3148_v44  ;;  %v2289_v44 = vrot.slane %v2280_v39, %v2288_v40 }
  0xd5   : > { %2229 = vmatpush1.bf16.msra.mxu0 %v3151_v45  ;;  %2058 = vmatprep.subr.bf16.mxu1 %v3156_v46 }
  0xd6   : > { %2230 = vmatprep.subr.bf16.mxu0 %v3159_v47 }
  0xd8   : > { %2059 = vmatpush1.bf16.msra.mxu1 %v3154_v48 }
  0xd9   : > { %2231 = vmatpush1.bf16.msra.mxu0 %v3157_v49  ;;  %2060 = vmatprep.subr.bf16.mxu1 %v3162_v50 }
  0xda   : > { %2232 = vmatprep.subr.bf16.mxu0 %v3165_v51 }
  0xdc   : > { %2061 = vmatpush1.bf16.msra.mxu1 %v3160_v52 }
  0xdd   : > { %2233 = vmatpush1.bf16.msra.mxu0 %v3163_v53  ;;  %2062 = vmatprep.subr.bf16.mxu1 %v3168_v54 }
  0xde   : > { %2234 = vmatprep.subr.bf16.mxu0 %v3171_v55 }
  0xe0   : > { %2063 = vmatpush1.bf16.msra.mxu1 %v3166_v56 }
  0xe1   : > { %2235 = vmatpush1.bf16.msra.mxu0 %v3169_v57  ;;  %2064 = vmatprep.subr.bf16.mxu1 %v3174_v58 }
  0xe2   : > { %2236 = vmatprep.subr.bf16.mxu0 %v3177_v59 }
  0xe4   : > { %2065 = vmatpush1.bf16.msra.mxu1 %v3172_v60 }
  0xe5   : > { %2237 = vmatpush1.bf16.msra.mxu0 %v3175_v61  ;;  %2066 = vmatprep.subr.bf16.mxu1 %v3180_v62 }
  0xe6   : > { %2238 = vmatprep.subr.bf16.mxu0 %v3183_v63 }
  0xe8   : > { %2067 = vmatpush1.bf16.msra.mxu1 %v3178_v0 }
  0xe9   : > { %2239 = vmatpush1.bf16.msra.mxu0 %v3181_v1  ;;  %2068 = vmatprep.subr.bf16.mxu1 %v3186_v2 }
  0xea   : > { %2240 = vmatprep.subr.bf16.mxu0 %v3189_v3 }
  0xec   : > { %2069 = vmatpush1.bf16.msra.mxu1 %v3184_v4 }
  0xed   : > { %2241 = vmatpush1.bf16.msra.mxu0 %v3187_v5  ;;  %2070 = vmatprep.subr.bf16.mxu1 %v3192_v6 }
  0xee   : > { %2242 = vmatprep.subr.bf16.mxu0 %v3195_v7 }
  0xf0   : > { %2071 = vmatpush1.bf16.msra.mxu1 %v3190_v8 }
  0xf1   : > { %2243 = vmatpush1.bf16.msra.mxu0 %v3193_v9  ;;  %2072 = vmatprep.subr.bf16.mxu1 %v3198_v10 }
  0xf2   : > { %2244 = vmatprep.subr.bf16.mxu0 %v3201_v11 }
  0xf4   : > { %2073 = vmatpush1.bf16.msra.mxu1 %v3196_v12 }
  0xf5   : > { %2245 = vmatpush1.bf16.msra.mxu0 %v3199_v13  ;;  %2074 = vmatprep.subr.bf16.mxu1 %v3204_v14 }
  0xf6   : > { %2246 = vmatprep.subr.bf16.mxu0 %v3207_v15 }
  0xf8   : > { %2075 = vmatpush1.bf16.msra.mxu1 %v3202_v16 }
  0xf9   : > { %2247 = vmatpush1.bf16.msra.mxu0 %v3205_v17  ;;  %2076 = vmatprep.subr.bf16.mxu1 %v3210_v18 }
  0xfa   : > { %2248 = vmatprep.subr.bf16.mxu0 %v3213_v19 }
  0xfc   : > { %2077 = vmatpush1.bf16.msra.mxu1 %v3208_v20 }
  0xfd   : > { %2249 = vmatpush1.bf16.msra.mxu0 %v3211_v21  ;;  %2078 = vmatprep.subr.bf16.mxu1 %v3216_v22 }
  0xfe   : > { %2250 = vmatprep.subr.bf16.mxu0 %v3219_v23 }
 0x100   : > { %2079 = vmatpush1.bf16.msra.mxu1 %v3214_v27 }
 0x101   : > { %2251 = vmatpush1.bf16.msra.mxu0 %v3217_v28  ;;  %2080 = vmatprep.subr.bf16.mxu1 %v3222_v34 }
 0x102   : > { %2252 = vmatprep.subr.bf16.mxu0 %v3225_v35 }
 0x104   : > { %2081 = vmatpush1.bf16.msra.mxu1 %v3220_v24 }
 0x105   : > { %2253 = vmatpush1.bf16.msra.mxu0 %v3223_v25 }
 0x107   : > { %2083 = vmatmul.mubr.bf16.vlgmr.msra.gmra.mrb[0].mxu1 %v2516_v29 }
 0x108   : > { %2255 = vmatmul.mubr.bf16.vlgmr.msra.gmra.mrb[0].mxu0 %v2524_v30 }
 0x1da   : > { %v2084_v42 = vpop.f32.mrb[0].mxu1 }
 0x1db   : > { %v2256_v43 = vpop.f32.mrb[0].mxu0  ;;  %v2086_v31 = vpop.f32.mrb[1].mxu1 }
 0x1dc   : > { %v2790_v26 = vadd.f32 %v2256_v43, %v2084_v42  ;;  %v2258_v45 = vpop.f32.mrb[1].mxu0  ;;  %v2088_v33 = vpop.f32.mrb[2].mxu1 }
 0x1dd   : > { %v2791_v32 = vadd.f32 %v2258_v45, %v2086_v31  ;;  %v2260_v46 = vpop.f32.mrb[2].mxu0  ;;  %v2090_v49 = vpop.f32.mrb[3].mxu1 }
 0x1de   : > { %v2292_v47 = vadd.f32 %v2790_v26, %v2285_v41  ;;  %v2792_v48 = vadd.f32 %v2260_v46, %v2088_v33  ;;  %v2262_v50 = vpop.f32.mrb[3].mxu0 }
 0x1df   : > { %v2293_v51 = vadd.f32 %v2791_v32, %v2289_v44  ;;  %v2793_v52 = vadd.f32 %v2262_v50, %v2090_v49 }
 0x1e0   : > { %v2294_v53 = vadd.f32 %v2792_v48, %v2285_v41  ;;  %v2310_v55 = vmul.f32 %v2292_v47, %v2292_v47 }
 0x1e1   : > { %v2295_v54 = vadd.f32 %v2793_v52, %v2289_v44  ;;  %v2311_v58 = vmul.f32 %v2293_v51, %v2293_v51 }
 0x1e2   : > { %v2296_v56 = vadd.f32 %v2294_v53, %v2292_v47  ;;  %v2312_v57 = vmul.f32 %v2294_v53, %v2294_v53 }
 0x1e3   : > { %v2303_v59 = vadd.f32 %v2295_v54, %v2293_v51  ;;  %v2313_v60 = vmul.f32 %v2295_v54, %v2295_v54 }
 0x1e4   : > { %v2297_v61 = vrot.slane %v2296_v56, 4  ;;  %v2314_v62 = vadd.f32 %v2312_v57, %v2310_v55 }
 0x1e5   : > { %v2304_v63 = vrot.slane %v2303_v59, 4  ;;  %v2321_v0 = vadd.f32 %v2313_v60, %v2311_v58 }
 0x1e6   : > { %v2298_v1 = vadd.f32 %v2297_v61, %v2296_v56  ;;  %v2315_v2 = vrot.slane %v2314_v62, 4 }
 0x1e7   : > { %v2305_v3 = vadd.f32 %v2304_v63, %v2303_v59  ;;  %v2322_v4 = vrot.slane %v2321_v0, 4 }
 0x1e8   : > { %v2299_v5 = vrot.slane %v2298_v1, 2  ;;  %v2316_v6 = vadd.f32 %v2315_v2, %v2314_v62 }
 0x1e9   : > { %v2306_v7 = vrot.slane %v2305_v3, 2  ;;  %v2323_v8 = vadd.f32 %v2322_v4, %v2321_v0 }
 0x1ea   : > { %v2300_v9 = vadd.f32 %v2299_v5, %v2298_v1  ;;  %v2317_v10 = vrot.slane %v2316_v6, 2 }
 0x1eb   : > { %v2307_v11 = vadd.f32 %v2306_v7, %v2305_v3  ;;  %v2324_v12 = vrot.slane %v2323_v8, 2 }
 0x1ec   : > { %v2301_v13 = vrot.slane %v2300_v9, 1  ;;  %v2318_v14 = vadd.f32 %v2317_v10, %v2316_v6 }
 0x1ed   : > { %v2308_v15 = vrot.slane %v2307_v11, 1  ;;  %v2325_v16 = vadd.f32 %v2324_v12, %v2323_v8 }
 0x1ee   : > { %v2302_v17 = vadd.f32 %v2301_v13, %v2300_v9  ;;  %v2319_v18 = vrot.slane %v2318_v14, 1 }
 0x1ef   : > { %v2309_v19 = vadd.f32 %v2308_v15, %v2307_v11  ;;  %v2326_v20 = vrot.slane %v2325_v16, 1 }
 0x1f0   : > { %v2320_v21 = vadd.f32 %v2319_v18, %v2318_v14  ;;  %v2328_v22 = vmul.f32 0.0625, %v2302_v17 }
 0x1f1   : > { %v2327_v23 = vadd.f32 %v2326_v20, %v2325_v16  ;;  %v2329_v27 = vmul.f32 0.0625, %v2309_v19 }
 0x1f2   : > { %v2330_v28 = vmul.f32 0.0625, %v2320_v21  ;;  %v2332_v34 = vmul.f32 %v2328_v22, %v2328_v22  ;;  %v2338_v35 = vsub.f32 %v2292_v47, %v2328_v22  ;;  %v2340_v24 = vsub.f32 %v2294_v53, %v2328_v22 }
 0x1f3   : > { %v2331_v25 = vmul.f32 0.0625, %v2327_v23  ;;  %v2333_v29 = vmul.f32 %v2329_v27, %v2329_v27  ;;  %v2339_v30 = vsub.f32 %v2293_v51, %v2329_v27  ;;  %v2341_v36 = vsub.f32 %v2295_v54, %v2329_v27 }
 0x1f4   : > { %v2334_v37 = vsub.f32 %v2330_v28, %v2332_v34 }
 0x1f5   : > { %v2335_v38 = vsub.f32 %v2331_v25, %v2333_v29 }
 0x1f6   : > { %v2336_v39 = vmax.f32 %v2334_v37, 0.0 }
 0x1f7   : > { %v2337_v40 = vmax.f32 %v2335_v38, 0.0 }
 0x1f8   : > { %v2342_v41 = vadd.f32 1e-05, %v2336_v39 }
 0x1f9   : > { %v2343_v42 = vadd.f32 1e-05, %v2337_v40 }
 0x1fa   : > { %3226 = vrsqrt.f32 %v2342_v41 }
 0x1fb   : > { %3228 = vrsqrt.f32 %v2343_v42 }
 0x204   : > { %v3227_v43 = vpop.eup %3226 }
 0x205   : > { %v3229_v44 = vpop.eup %3228  ;;  %v2346_v26 = vmul.f32 %v3227_v43, %v2338_v35  ;;  %v2348_v31 = vmul.f32 %v3227_v43, %v2340_v24 }
 0x206   : > { %v2347_v45 = vmul.f32 %v3229_v44, %v2339_v30  ;;  %v2349_v32 = vmul.f32 %v3229_v44, %v2341_v36 }
 0x207   : > { %vm2350_vm0 = vcmp.ge.f32.partialorder %v2346_v26, 0.0  ;;  %vm2352_vm1 = vcmp.ge.f32.partialorder %v2348_v31, 0.0  ;;  %v2354_v33 = vmul.f32 0.2, %v2346_v26  ;;  %v2356_v46 = vmul.f32 0.2, %v2348_v31 }
 0x208   : > { %vm2351_vm2 = vcmp.ge.f32.partialorder %v2347_v45, 0.0  ;;  %vm2353_vm3 = vcmp.ge.f32.partialorder %v2349_v32, 0.0  ;;  %v2355_v47 = vmul.f32 0.2, %v2347_v45  ;;  %v2357_v48 = vmul.f32 0.2, %v2349_v32 }
 0x209   : > { %v2360_v49 = vsel %vm2352_vm1, %v2348_v31, %v2356_v46  ;;  %v2358_v50 = vsel %vm2350_vm0, %v2346_v26, %v2354_v33 }
 0x20a   : > { %v2359_v51 = vsel %vm2351_vm2, %v2347_v45, %v2355_v47  ;;  %v2361_v52 = vsel %vm2353_vm3, %v2349_v32, %v2357_v48 }
 0x20b   : > { %v2788_v53 = vpack.c.bf16 %v2359_v51, %v2358_v50  ;;  %v2789_v54 = vpack.c.bf16 %v2361_v52, %v2360_v49 }
 0x20d   : > { %2374 = vst [vmem:[%s275_s21] sm:$0xff] %v2788_v53  ;;  %2375 = vst [vmem:[%s275_s21 + $0x8] sm:$0xff] %v2789_v54 }
 0x20e PF: > { %s13_s14 = sadd.s32 1, %s3252_s14   ;;  %s4156_s12 = smov %s3248_s13 }
 0x20f   : > { %p10_p5 = scmp.ge.s32.totalorder %s13_s14, 4   ;;  %s4157_s13 = smov %s4159_s15 }
 0x211   :  { %12 = sbr.rel (!%p10_p5) target bundleno = 2 (0x2), region = 76 }

// kernel: discriminator_forward.9
= control target key start
LH: loop header
LB: loop body
LE: loop exit
PB: predicated region body
PF: predicated region fallthrough
CT: control target
= control target key end

     0   :  { %s715_s14 = smov 0   ;;  %s717_s15 = smov 0   ;;  %s849_s0 = inlined_call_operand.vmem [shape: bf16[2,4,8192], index: 0, kind: input, shape index: {}]   ;;  %s850_s1 = inlined_call_operand.vmem [shape: bf16[1,8192], index: 1, kind: input, shape index: {}]   ;;  %s851_s2 = inlined_call_operand.<no memory space> [shape: f32[1,1], index: 2, kind: input, shape index: {}]   ;;  %s852_s3 = inlined_call_operand.vmem [shape: f32[2,1,1], index: 3, kind: output, shape index: {}]  }
   0x1   :  { %v8_v0 = vstv %s851_s2  ;;  %s719_s16 = smov 0   ;;  %s721_s17 = smov 0  }
   0x2   :  { %9 = vst [vmem:[#allocation3] sm:$0x1] %v8_v0  ;;  %s723_s18 = smov 0  }
   0x3 LB: > { %s24_s2 = sadd.s32 1, %s681_s16  ;;  %s27_s19 = sadd.s32 1, %s685_s17  ;;  %s689_s18 = sphi %s723_s18, %s15_s18   ;;  %s685_s17 = sphi %s721_s17, %s856_s17   ;;  %s681_s16 = sphi %s719_s16, %s855_s16   ;;  %s677_s15 = sphi %s717_s15, %s854_s15   ;;  %s673_s14 = sphi %s715_s14, %s853_s14  }
   0x4   : > { %p25_p0 = scmp.ge.s32.totalorder %s24_s2, 4  ;;  %p601_p1 = scmp.ge.s32.totalorder %s689_s18, 1 }
   0x5   : > { %p168_p2 = scmp.lt.s32.totalorder %s689_s18, 9 }
   0x6   : > { %s858_s2 = smov (%p25_p0, %s24_s2), 0  ;;  %s860_s19 = smov (!%p25_p0, %s27_s19), %s685_s17 }
   0x7   : > { %p169_p3 = pnand %p601_p1, %p168_p2  ;;  %p29_p4 = scmp.ge.s32.totalorder %s860_s19, 2 }
   0x8   : > { %s602_s20 = sshll.u32 (!%p169_p3), %s673_s14, 4  ;;  %p199_p5 = scmp.lt.s32.totalorder (!%p169_p3), %s677_s15, 1 }
   0x9   : > { %s862_s19 = smov (%p29_p4, %s860_s19), 0  ;;  %172 = sbr.rel (%p169_p3) target bundleno = 246 (0xf6), region = 32 }
   0xa   : > { %p201_p6 = scmp.lt.s32.totalorder (!%p169_p3), %s602_s20, 63  ;;  %p606_p7 = scmp.ne.s32.totalorder (!%p169_p3), %s673_s14, 0 }
  0x10   : > { %s864_s15 = smov (!%p199_p5, %s677_s15), 1  ;;  %s866_s20 = smov (!%p201_p6, %s602_s20), 63 }
  0x11   : > { %s603_s21 = sshll.u32 %s864_s15, 6  ;;  %s215_s24 = scalar_lea.vmem %s852_s3, %s864_s15  ;;  %vm220_vm0 = vcmask (!%p606_p7), 0   ;;  %v691_v1 = vmov (!%p606_p7), 0.0  }
  0x12   : > { %s204_s25 = sadd.s32 %s603_s21, %s866_s20  ;;  %s758_s28 = scalar_lea.vmem %s850_s1, %s866_s20  ;;  %221 = vst.msk [vmem:[#allocation2] sm:$0x1] (!%p606_p7), %vm220_vm0, %v691_v1 }
  0x13   : > { %s604_s29 = sshll.u32 %s204_s25, 1  ;;  %219 = sbr.rel (%p606_p7) target bundleno = 26 (0x1a), region = 36 }
  0x14   : > { %s763_s5 = scalar_lea.vmem %s849_s0, %s604_s29 }
  0x1a PF: > { %v222_v2 = vld [vmem:[%s763_s5] sm:$0xff]  ;;  %v223_v5 = vld [vmem:[%s763_s5 + $0x8] sm:$0xff]  ;;  %vm258_vm1 = vcmask 1043456   ;;  %v224_v28 = vld [vmem:[%s763_s5 + $0x10] sm:$0xff]  ;;  %vm478_vm2 = vcmask 1040384   ;;  %vm513_vm3 = vcmask 0  }
  0x1b   : > { %v226_v3 = vunpack.c.l.bf16 %v222_v2  ;;  %v227_v4 = vunpack.c.h.bf16 %v222_v2  ;;  %v228_v8 = vunpack.c.l.bf16 %v223_v5  ;;  %v229_v9 = vunpack.c.h.bf16 %v223_v5  ;;  %v225_v41 = vld [vmem:[%s763_s5 + $0x18] sm:$0xff]  ;;  %p607_p8 = scmp.ne.s32.totalorder %s673_s14, 3 }
  0x1c   : > { %v230_v35 = vunpack.c.l.bf16 %v224_v28  ;;  %v231_v42 = vunpack.c.h.bf16 %v224_v28  ;;  %v232_v52 = vunpack.c.l.bf16 %v225_v41  ;;  %v233_v53 = vunpack.c.h.bf16 %v225_v41 }
  0x1d   : > { %v242_v6 = vcombine.high %v226_v3, %v226_v3  ;;  %v243_v7 = vcombine.high %v227_v4, %v227_v4  ;;  %v259_v10 = vsel %vm258_vm1, %v226_v3, 0.0  ;;  %v273_v12 = vsel %vm258_vm1, %v227_v4, 0.0 }
  0x1e   : > { %v244_v14 = vcombine.high %v228_v8, %v228_v8  ;;  %v260_v15 = vrot.slane %v259_v10, 4  ;;  %v245_v17 = vcombine.high %v229_v9, %v229_v9  ;;  %v274_v18 = vrot.slane %v273_v12, 4 }
  0x1f   : > { %v266_v11 = vsel %vm258_vm1, %v242_v6, 0.0  ;;  %v280_v13 = vsel %vm258_vm1, %v243_v7, 0.0  ;;  %v287_v20 = vsel %vm258_vm1, %v228_v8, 0.0  ;;  %v301_v22 = vsel %vm258_vm1, %v229_v9, 0.0 }
  0x20   : > { %v267_v16 = vrot.slane %v266_v11, 4  ;;  %v281_v19 = vrot.slane %v280_v13, 4  ;;  %v294_v21 = vsel %vm258_vm1, %v244_v14, 0.0  ;;  %v261_v23 = vadd.f32 %v260_v15, %v259_v10  ;;  %v371_v10 = vld [vmem:[%s758_s28] sm:$0xff] }
  0x21   : > { %v275_v25 = vadd.f32 %v274_v18, %v273_v12  ;;  %v308_v27 = vsel %vm258_vm1, %v245_v17, 0.0  ;;  %v288_v29 = vrot.slane %v287_v20, 4  ;;  %v295_v30 = vrot.slane %v294_v21, 4 }
  0x22   : > { %v268_v24 = vadd.f32 %v267_v16, %v266_v11  ;;  %v282_v26 = vadd.f32 %v281_v19, %v280_v13  ;;  %v302_v31 = vrot.slane %v301_v22, 4  ;;  %v262_v32 = vrot.slane %v261_v23, 2 }
  0x23   : > { %v309_v34 = vrot.slane %v308_v27, 4  ;;  %v276_v36 = vrot.slane %v275_v25, 2  ;;  %v289_v38 = vadd.f32 %v288_v29, %v287_v20  ;;  %v296_v39 = vadd.f32 %v295_v30, %v294_v21 }
  0x24   : > { %v269_v33 = vrot.slane %v268_v24, 2  ;;  %v283_v37 = vrot.slane %v282_v26, 2  ;;  %v303_v40 = vadd.f32 %v302_v31, %v301_v22  ;;  %v263_v43 = vadd.f32 %v262_v32, %v261_v23 }
  0x25   : > { %v310_v45 = vadd.f32 %v309_v34, %v308_v27  ;;  %v246_v46 = vcombine.high %v230_v35, %v230_v35  ;;  %v277_v47 = vadd.f32 %v276_v36, %v275_v25  ;;  %v290_v49 = vrot.slane %v289_v38, 2 }
  0x26   : > { %v270_v44 = vadd.f32 %v269_v33, %v268_v24  ;;  %v284_v48 = vadd.f32 %v283_v37, %v282_v26  ;;  %v297_v50 = vrot.slane %v296_v39, 2  ;;  %v304_v51 = vrot.slane %v303_v40, 2 }
  0x27   : > { %v315_v54 = vsel %vm258_vm1, %v230_v35, 0.0  ;;  %v247_v55 = vcombine.high %v231_v42, %v231_v42  ;;  %v264_v56 = vrot.slane %v263_v43, 1  ;;  %v311_v58 = vrot.slane %v310_v45, 2 }
  0x28   : > { %v271_v57 = vrot.slane %v270_v44, 1  ;;  %v278_v59 = vrot.slane %v277_v47, 1  ;;  %v285_v60 = vrot.slane %v284_v48, 1  ;;  %v322_v61 = vsel %vm258_vm1, %v246_v46, 0.0 }
  0x29   : > { %v329_v62 = vsel %vm258_vm1, %v231_v42, 0.0  ;;  %v291_v63 = vadd.f32 %v290_v49, %v289_v38  ;;  %v298_v0 = vadd.f32 %v297_v50, %v296_v39  ;;  %v305_v1 = vadd.f32 %v304_v51, %v303_v40  ;;  %v372_v51 = vld [vmem:[%s758_s28 + $0x8] sm:$0xff] }
  0x2a   : > { %v316_v2 = vrot.slane %v315_v54, 4  ;;  %v248_v3 = vcombine.high %v232_v52, %v232_v52  ;;  %v249_v4 = vcombine.high %v233_v53, %v233_v53  ;;  %v382_v5 = vlaneseq }
  0x2b   : > { %v312_v6 = vadd.f32 %v311_v58, %v310_v45  ;;  %v323_v7 = vrot.slane %v322_v61, 4  ;;  %v330_v8 = vrot.slane %v329_v62, 4  ;;  %v336_v9 = vsel %vm258_vm1, %v247_v55, 0.0 }
  0x2c   : > { %v265_v11 = vadd.f32 %v264_v56, %v263_v43  ;;  %v272_v12 = vadd.f32 %v271_v57, %v270_v44  ;;  %v279_v13 = vadd.f32 %v278_v59, %v277_v47  ;;  %v286_v14 = vadd.f32 %v285_v60, %v284_v48 }
  0x2d   : > { %v292_v15 = vrot.slane %v291_v63, 1  ;;  %v299_v16 = vrot.slane %v298_v0, 1  ;;  %v306_v17 = vrot.slane %v305_v1, 1  ;;  %v317_v18 = vadd.f32 %v316_v2, %v315_v54 }
  0x2e   : > { %v337_v19 = vrot.slane %v336_v9, 4  ;;  %v343_v20 = vsel %vm258_vm1, %v232_v52, 0.0  ;;  %v373_v21 = vunpack.c.l.bf16 %v371_v10  ;;  %v383_v22 = vshrl.u32 %v382_v5, 7 }
  0x2f   : > { %v324_v23 = vadd.f32 %v323_v7, %v322_v61  ;;  %v331_v24 = vadd.f32 %v330_v8, %v329_v62  ;;  %v350_v25 = vsel %vm258_vm1, %v248_v3, 0.0  ;;  %v357_v26 = vsel %vm258_vm1, %v233_v53, 0.0 }
  0x30   : > { %v786_v27 = vsub.s32 0, %v383_v22  ;;  %v788_v28 = vsub.s32 2, %v383_v22  ;;  %v790_v29 = vsub.s32 4, %v383_v22  ;;  %v792_v30 = vsub.s32 6, %v383_v22 }
  0x31   : > { %v293_v31 = vadd.f32 %v292_v15, %v291_v63  ;;  %v313_v32 = vrot.slane %v312_v6, 1  ;;  %v318_v33 = vrot.slane %v317_v18, 2  ;;  %v344_v34 = vrot.slane %v343_v20, 4 }
  0x32   : > { %v374_v35 = vunpack.c.h.bf16 %v371_v10  ;;  %v385_v36 = vrot.slane %v373_v21, %v786_v27  ;;  %v389_v37 = vrot.slane %v373_v21, %v788_v28  ;;  %v393_v38 = vrot.slane %v373_v21, %v790_v29 }
  0x33   : > { %v300_v39 = vadd.f32 %v299_v16, %v298_v0  ;;  %v338_v40 = vadd.f32 %v337_v19, %v336_v9  ;;  %v351_v41 = vrot.slane %v350_v25, 4  ;;  %v358_v42 = vrot.slane %v357_v26, 4 }
  0x34   : > { %v325_v43 = vrot.slane %v324_v23, 2  ;;  %v332_v44 = vrot.slane %v331_v24, 2  ;;  %v364_v45 = vsel %vm258_vm1, %v249_v4, 0.0  ;;  %v397_v46 = vrot.slane %v373_v21, %v792_v30 }
  0x35   : > { %v307_v47 = vadd.f32 %v306_v17, %v305_v1  ;;  %v314_v48 = vadd.f32 %v313_v32, %v312_v6  ;;  %v319_v49 = vadd.f32 %v318_v33, %v317_v18  ;;  %v345_v50 = vadd.f32 %v344_v34, %v343_v20 }
  0x36   : > { %v401_v52 = vrot.slane %v374_v35, %v786_v27  ;;  %v462_v53 = vmul.f32 %v385_v36, %v265_v11  ;;  %v463_v54 = vmul.f32 %v389_v37, %v272_v12  ;;  %v464_v55 = vmul.f32 %v393_v38, %v279_v13 }
  0x37   : > { %v339_v56 = vrot.slane %v338_v40, 2  ;;  %v352_v57 = vadd.f32 %v351_v41, %v350_v25  ;;  %v359_v58 = vadd.f32 %v358_v42, %v357_v26  ;;  %v365_v59 = vrot.slane %v364_v45, 4 }
  0x38   : > { %v326_v60 = vadd.f32 %v325_v43, %v324_v23  ;;  %v333_v61 = vadd.f32 %v332_v44, %v331_v24  ;;  %v405_v62 = vrot.slane %v374_v35, %v788_v28  ;;  %v465_v63 = vmul.f32 %v397_v46, %v286_v14 }
  0x39   : > { %v320_v0 = vrot.slane %v319_v49, 1  ;;  %v346_v1 = vrot.slane %v345_v50, 2  ;;  %v375_v2 = vunpack.c.l.bf16 %v372_v51  ;;  %v409_v3 = vrot.slane %v374_v35, %v790_v29 }
  0x3a   : > { %v466_v4 = vmul.f32 %v401_v52, %v293_v31  ;;  %v479_v5 = vsel %vm478_vm2, %v462_v53, 0.0  ;;  %v480_v6 = vsel %vm478_vm2, %v463_v54, 0.0  ;;  %v482_v7 = vsel %vm478_vm2, %v464_v55, 0.0 }
  0x3b   : > { %v340_v8 = vadd.f32 %v339_v56, %v338_v40  ;;  %v353_v9 = vrot.slane %v352_v57, 2  ;;  %v366_v10 = vadd.f32 %v365_v59, %v364_v45  ;;  %v481_v11 = vadd.f32 %v480_v6, %v479_v5 }
  0x3c   : > { %v327_v12 = vrot.slane %v326_v60, 1  ;;  %v413_v13 = vrot.slane %v374_v35, %v792_v30  ;;  %v467_v14 = vmul.f32 %v405_v62, %v300_v39  ;;  %v484_v15 = vsel %vm478_vm2, %v465_v63, 0.0 }
  0x3d   : > { %v334_v16 = vrot.slane %v333_v61, 1  ;;  %v347_v17 = vadd.f32 %v346_v1, %v345_v50  ;;  %v360_v18 = vrot.slane %v359_v58, 2  ;;  %v483_v19 = vadd.f32 %v482_v7, %v481_v11 }
  0x3e   : > { %v321_v20 = vadd.f32 %v320_v0, %v319_v49  ;;  %v417_v21 = vrot.slane %v375_v2, %v786_v27  ;;  %v468_v22 = vmul.f32 %v409_v3, %v307_v47  ;;  %v486_v23 = vsel %vm478_vm2, %v466_v4, 0.0 }
  0x3f   : > { %v341_v24 = vrot.slane %v340_v8, 1  ;;  %v354_v25 = vadd.f32 %v353_v9, %v352_v57  ;;  %v367_v26 = vrot.slane %v366_v10, 2  ;;  %v485_v31 = vadd.f32 %v484_v15, %v483_v19 }
  0x40   : > { %v328_v32 = vadd.f32 %v327_v12, %v326_v60  ;;  %v421_v33 = vrot.slane %v375_v2, %v788_v28  ;;  %v469_v34 = vmul.f32 %v413_v13, %v314_v48  ;;  %v488_v35 = vsel %vm478_vm2, %v467_v14, 0.0 }
  0x41   : > { %v335_v36 = vadd.f32 %v334_v16, %v333_v61  ;;  %v348_v37 = vrot.slane %v347_v17, 1  ;;  %v361_v38 = vadd.f32 %v360_v18, %v359_v58  ;;  %v487_v39 = vadd.f32 %v486_v23, %v485_v31 }
  0x42   : > { %v376_v40 = vunpack.c.h.bf16 %v372_v51  ;;  %v425_v41 = vrot.slane %v375_v2, %v790_v29  ;;  %v470_v42 = vmul.f32 %v417_v21, %v321_v20  ;;  %v490_v43 = vsel %vm478_vm2, %v468_v22, 0.0  ;;  %v521_v21 = vld [vmem:[#allocation3] sm:$0x1] (!%p607_p8) }
  0x43   : > { %v342_v44 = vadd.f32 %v341_v24, %v340_v8  ;;  %v368_v45 = vadd.f32 %v367_v26, %v366_v10  ;;  %v489_v46 = vadd.f32 %v488_v35, %v487_v39  ;;  %v355_v47 = vrot.slane %v354_v25, 1 }
  0x44   : > { %v429_v49 = vrot.slane %v375_v2, %v792_v30  ;;  %v471_v50 = vmul.f32 %v421_v33, %v328_v32  ;;  %v492_v48 = vsel %vm478_vm2, %v469_v34, 0.0  ;;  %v362_v52 = vrot.slane %v361_v38, 1 }
  0x45   : > { %v491_v53 = vadd.f32 %v490_v43, %v489_v46  ;;  %v349_v54 = vadd.f32 %v348_v37, %v347_v17  ;;  %v433_v55 = vrot.slane %v376_v40, %v786_v27  ;;  %v472_v51 = vmul.f32 %v425_v41, %v335_v36 }
  0x46   : > { %v494_v56 = vsel %vm478_vm2, %v470_v42, 0.0  ;;  %v369_v57 = vrot.slane %v368_v45, 1  ;;  %v356_v59 = vadd.f32 %v355_v47, %v354_v25  ;;  %v437_v60 = vrot.slane %v376_v40, %v788_v28 }
  0x47   : > { %v493_v58 = vadd.f32 %v492_v48, %v491_v53  ;;  %v473_v61 = vmul.f32 %v429_v49, %v342_v44  ;;  %v496_v62 = vsel %vm478_vm2, %v471_v50, 0.0  ;;  %v363_v0 = vadd.f32 %v362_v52, %v361_v38 }
  0x48   : > { %v441_v1 = vrot.slane %v376_v40, %v790_v29  ;;  %v474_v2 = vmul.f32 %v433_v55, %v349_v54  ;;  %v498_v3 = vsel %vm478_vm2, %v472_v51, 0.0  ;;  %v370_v27 = vadd.f32 %v369_v57, %v368_v45 }
  0x49   : > { %v495_v63 = vadd.f32 %v494_v56, %v493_v58  ;;  %v445_v5 = vrot.slane %v376_v40, %v792_v30  ;;  %v475_v6 = vmul.f32 %v437_v60, %v356_v59  ;;  %v500_v7 = vsel %vm478_vm2, %v473_v61, 0.0  ;;  %v377_v30 = vld [vmem:[#allocation2] sm:$0x1] }
  0x4a   : > { %v476_v9 = vmul.f32 %v441_v1, %v363_v0  ;;  %v502_v28 = vsel %vm478_vm2, %v474_v2, 0.0 }
  0x4b   : > { %v497_v4 = vadd.f32 %v496_v62, %v495_v63  ;;  %v477_v11 = vmul.f32 %v445_v5, %v370_v27  ;;  %v504_v12 = vsel %vm478_vm2, %v475_v6, 0.0 }
  0x4c   : > { %v506_v29 = vsel %vm478_vm2, %v476_v9, 0.0 }
  0x4d   : > { %v499_v8 = vadd.f32 %v498_v3, %v497_v4  ;;  %v508_v15 = vsel %vm478_vm2, %v477_v11, 0.0 }
  0x4f   : > { %v501_v10 = vadd.f32 %v500_v7, %v499_v8 }
  0x51   : > { %v503_v13 = vadd.f32 %v502_v28, %v501_v10 }
  0x53   : > { %v505_v14 = vadd.f32 %v504_v12, %v503_v13 }
  0x55   : > { %v507_v16 = vadd.f32 %v506_v29, %v505_v14 }
  0x57   : > { %v509_v17 = vadd.f32 %v508_v15, %v507_v16 }
  0x59   : > { %510 = vadd.xlane.f32.xlu0 %v509_v17 }
  0xe3   : > { %518 = sbr.rel (%p607_p8) target bundleno = 246 (0xf6), region = 40 }
  0xe6   : > { %v511_v18 = vpop.xlane.xlu0 %510 }
  0xe7   : > { %v512_v19 = vadd.f32 %v511_v18, %v377_v30 }
  0xe9   : > { %514 = vst.msk [vmem:[#allocation2] sm:$0x1] %vm513_vm3, %v512_v19 }
  0xf0   : > { %v519_v20 = vld [vmem:[#allocation2] sm:$0x1] }
  0xf1   : > { %v520_v22 = vmul.f32 0.25, %v519_v20 }
  0xf3   : > { %v522_v23 = vadd.f32 %v521_v21, %v520_v22 }
  0xf5   : > { %523 = vst.msk [vmem:[%s215_s24] sm:$0x1] %vm513_vm3, %v522_v23 }
  0xf6 PF: > { %s15_s18 = sadd.s32 1, %s689_s18   ;;  %s853_s14 = smov %s681_s16 }
  0xf7   : > { %p12_p9 = scmp.ge.s32.totalorder %s15_s18, 10   ;;  %s854_s15 = smov %s685_s17 }
  0xf8   : > { %s855_s16 = smov %s858_s2  ;;  %s856_s17 = smov %s862_s19 }
  0xf9   :  { %14 = sbr.rel (!%p12_p9) target bundleno = 3 (0x3), region = 73 }

// kernel: discriminator_forward.8
= control target key start
LH: loop header
LB: loop body
LE: loop exit
PB: predicated region body
PF: predicated region fallthrough
CT: control target
= control target key end

     0   :  { %s6080_s12 = smov 0   ;;  %s6082_s13 = smov 0   ;;  %s6885_s0 = inlined_call_operand.vmem [shape: bf16[2,9,4096], index: 0, kind: input, shape index: {}]   ;;  %s6886_s1 = inlined_call_operand.vmem [shape: bf16[4096,512], index: 1, kind: input, shape index: {}]   ;;  %s6887_s2 = inlined_call_operand.vmem [shape: f32[1,512], index: 2, kind: input, shape index: {}]   ;;  %s6888_s3 = inlined_call_operand.vmem [shape: bf16[2,9,512], index: 3, kind: output, shape index: {}]  }
   0x1   :  { %s6084_s14 = smov 0   ;;  %s6086_s15 = smov 0  }
   0x2   :  { %s6088_s16 = smov 0   ;;  %s6090_s17 = smov 0  }
   0x3   :  { %s6092_s18 = smov 0  }
   0x4 LB: > { %s25_s19 = sadd.s32 1, %s6049_s16  ;;  %s32_s20 = sadd.s32 1, %s6053_s17  ;;  %s6057_s18 = sphi %s6092_s18, %s13_s18   ;;  %s6053_s17 = sphi %s6090_s17, %s6898_s17   ;;  %s6049_s16 = sphi %s6088_s16, %s6897_s16   ;;  %s6045_s15 = sphi %s6086_s15, %s6896_s15   ;;  %s6041_s14 = sphi %s6084_s14, %s6895_s14   ;;  %s6037_s13 = sphi %s6082_s13, %s6894_s13   ;;  %s6033_s12 = sphi %s6080_s12, %s6893_s12  }
   0x5   : > { %p26_p0 = scmp.ge.s32.totalorder %s25_s19, 2  ;;  %p48_p1 = scmp.ne.s32.totalorder %s6037_s13, %s6033_s12 }
   0x6   : > { %p49_p2 = scmp.eq.s32.totalorder %s6057_s18, 0  ;;  %s41_s24 = sadd.s32 1, %s6037_s13 }
   0x7   : > { %s6900_s19 = smov (%p26_p0, %s25_s19), 0  ;;  %s6902_s20 = smov (!%p26_p0, %s32_s20), %s6053_s17 }
   0x8   : > { %p50_p3 = por %p49_p2, %p48_p1  ;;  %p34_p4 = scmp.ge.s32.totalorder %s6902_s20, 2 }
   0x9   : > { %s37_s21 = ssub.s32 %s6049_s16, %s6900_s19  ;;  %p4560_p6 = scmp.ge.s32.totalorder %s6057_s18, 4 }
   0xa   : > { %s6904_s20 = smov (%p34_p4, %s6902_s20), 0 }
   0xb   : > { %s36_s22 = ssub.s32 %s6053_s17, %s6904_s20  ;;  %164 = sbr.rel (%p4560_p6) target bundleno = 33 (0x21), region = 20 }
   0xc   : > { %s38_s23 = sor.u32 %s37_s21, %s36_s22 }
   0xd   : > { %p39_p5 = scmp.eq.s32.totalorder %s38_s23, 0 }
   0xf   : > { %s6131_s25 = scalar_select %p39_p5, %s6037_s13, %s41_s24  }
  0x12   : > { %167 = sbr.rel (!%p50_p3) target bundleno = 33 (0x21), region = 24  ;;  %s169_s26 = sand.u32 (%p50_p3), 1, %s6037_s13  }
  0x13   : > { %s4562_s27 = sshll.u32 (%p50_p3), %s6049_s16, 4  ;;  %s4561_s28 = sshll.u32 (%p50_p3), %s169_s26, 7 }
  0x14   : > { %s4563_s29 = sshll.u32 (%p50_p3), %s6053_s17, 6  ;;  %s171_s8 = scalar_lea.vmem (%p50_p3), [#allocation3], %s4561_s28 }
  0x15   : > { %s174_s30 = sadd.s32 (%p50_p3), %s4563_s29, %s4562_s27 }
  0x16   : > { %s4564_s4 = sshll.u32 (%p50_p3), %s174_s30, 2 }
  0x17   : > { %s6140_s7 = scalar_lea.vmem (%p50_p3), %s6885_s0, %s4564_s4 }
  0x18   : > { %v189_v0 = vld [vmem:[%s6140_s7] sm:$0xff] (%p50_p3)  ;;  %v191_v1 = vld [vmem:[%s6140_s7 + $0x8] sm:$0xff] (%p50_p3)  ;;  %v193_v2 = vld [vmem:[%s6140_s7 + $0x10] sm:$0xff] (%p50_p3) }
  0x19   : > { %190 = vst [vmem:[%s171_s8] sm:$0xff] %v189_v0  ;;  %192 = vst [vmem:[%s171_s8 + $0x8] sm:$0xff] %v191_v1  ;;  %v195_v3 = vld [vmem:[%s6140_s7 + $0x18] sm:$0xff]  ;;  %v197_v4 = vld [vmem:[%s6140_s7 + $0x20] sm:$0xff] }
  0x1a   : > { %194 = vst [vmem:[%s171_s8 + $0x10] sm:$0xff] %v193_v2  ;;  %v199_v5 = vld [vmem:[%s6140_s7 + $0x28] sm:$0xff]  ;;  %196 = vst [vmem:[%s171_s8 + $0x18] sm:$0xff] %v195_v3  ;;  %v201_v6 = vld [vmem:[%s6140_s7 + $0x30] sm:$0xff] }
  0x1b   : > { %198 = vst [vmem:[%s171_s8 + $0x20] sm:$0xff] %v197_v4  ;;  %200 = vst [vmem:[%s171_s8 + $0x28] sm:$0xff] %v199_v5  ;;  %v203_v7 = vld [vmem:[%s6140_s7 + $0x38] sm:$0xff]  ;;  %v205_v8 = vld [vmem:[%s6140_s7 + $0x80] sm:$0xff] }
  0x1c   : > { %202 = vst [vmem:[%s171_s8 + $0x30] sm:$0xff] %v201_v6  ;;  %204 = vst [vmem:[%s171_s8 + $0x38] sm:$0xff] %v203_v7  ;;  %v207_v9 = vld [vmem:[%s6140_s7 + $0x88] sm:$0xff]  ;;  %v209_v10 = vld [vmem:[%s6140_s7 + $0x90] sm:$0xff] }
  0x1d   : > { %206 = vst [vmem:[%s171_s8 + $0x40] sm:$0xff] %v205_v8  ;;  %v211_v11 = vld [vmem:[%s6140_s7 + $0x98] sm:$0xff]  ;;  %208 = vst [vmem:[%s171_s8 + $0x48] sm:$0xff] %v207_v9  ;;  %v213_v12 = vld [vmem:[%s6140_s7 + $0xa0] sm:$0xff] }
  0x1e   : > { %210 = vst [vmem:[%s171_s8 + $0x50] sm:$0xff] %v209_v10  ;;  %212 = vst [vmem:[%s171_s8 + $0x58] sm:$0xff] %v211_v11  ;;  %v215_v13 = vld [vmem:[%s6140_s7 + $0xa8] sm:$0xff]  ;;  %v217_v14 = vld [vmem:[%s6140_s7 + $0xb0] sm:$0xff] }
  0x1f   : > { %214 = vst [vmem:[%s171_s8 + $0x60] sm:$0xff] %v213_v12  ;;  %216 = vst [vmem:[%s171_s8 + $0x68] sm:$0xff] %v215_v13  ;;  %v219_v15 = vld [vmem:[%s6140_s7 + $0xb8] sm:$0xff] }
  0x20   : > { %218 = vst [vmem:[%s171_s8 + $0x70] sm:$0xff] %v217_v14  ;;  %220 = vst [vmem:[%s171_s8 + $0x78] sm:$0xff] %v219_v15 }
  0x21 PF: > { %p4565_p7 = scmp.ge.s32.totalorder %s6057_s18, 1  ;;  %p240_p8 = scmp.lt.s32.totalorder %s6057_s18, 5 }
  0x23   : > { %p241_p9 = pnand %p4565_p7, %p240_p8 }
  0x24   : > { %s247_s9 = sand.u32 (!%p241_p9), 1, %s6033_s12   ;;  %s4567_s10 = sshll.u32 (!%p241_p9), %s6041_s14, 8 }
  0x25   : > { %244 = sbr.rel (%p241_p9) target bundleno = 844 (0x34c), region = 51  ;;  %s4566_s11 = sshll.u32 (!%p241_p9), %s247_s9, 7 }
  0x26   : > { %p291_p10 = scmp.lt.s32.totalorder (!%p241_p9), %s4567_s10, 511  ;;  %p307_p11 = scmp.lt.s32.totalorder (!%p241_p9), %s6045_s15, 1 }
  0x27   : > { %s6174_s30 = scalar_lea.vmem (!%p241_p9), [#allocation3], %s4566_s11  ;;  %p4572_p12 = scmp.ne.s32.totalorder (!%p241_p9), %s6041_s14, 0 }
  0x2c   : > { %s6906_s10 = smov (!%p291_p10, %s4567_s10), 511  ;;  %s6908_s15 = smov (!%p307_p11, %s6045_s15), 1 }
  0x2d   : > { %s5108_s21 = sshll.u32 %s6906_s10, 4  ;;  %s5109_s26 = sshll.u32 %s6908_s15, 5  ;;  %v6059_v16 = vmov (!%p4572_p12), 0.0  }
  0x2e   : > { %s6167_s24 = scalar_lea.vmem %s6886_s1, %s5108_s21  ;;  %s6172_s29 = scalar_lea.vmem %s6888_s3, %s5109_s26  ;;  %320 = vst [vmem:[#allocation2] sm:$0xff] (!%p4572_p12), %v6059_v16  ;;  %321 = vst [vmem:[#allocation2 + $0x8] sm:$0xff] (!%p4572_p12), %v6059_v16 }
  0x2f   : > { %319 = sbr.rel (%p4572_p12) target bundleno = 54 (0x36), region = 59  ;;  %322 = vst [vmem:[#allocation2 + $0x10] sm:$0xff] (!%p4572_p12), %v6059_v16  ;;  %323 = vst [vmem:[#allocation2 + $0x18] sm:$0xff] (!%p4572_p12), %v6059_v16 }
  0x30   : > { %324 = vst [vmem:[#allocation2 + $0x20] sm:$0x1] (!%p4572_p12), %v6059_v16  ;;  %325 = vst [vmem:[#allocation2 + $0x28] sm:$0x1] (!%p4572_p12), %v6059_v16 }
  0x31   : > { %326 = vst [vmem:[#allocation2 + $0x30] sm:$0x1] (!%p4572_p12), %v6059_v16  ;;  %327 = vst [vmem:[#allocation2 + $0x38] sm:$0x1] (!%p4572_p12), %v6059_v16 }
  0x36 PF: > { %v5227_v17 = vld [vmem:[%s6167_s24 + $0x4] ss:$16 sps:$4 sm:$0xff]   ;;  %v5229_v18 = vld [vmem:[%s6167_s24 + $0xc] ss:$16 sps:$4 sm:$0xff]   ;;  %v5231_v19 = vld [vmem:[%s6167_s24] ss:$16 sps:$4 sm:$0xff]  }
  0x37   : > { %3504 = vmatprep.subr.bf16.mxu0 %v5227_v17  ;;  %v5232_v20 = vld [vmem:[%s6167_s24 + $0x8] ss:$16 sps:$4 sm:$0xff]   ;;  %3848 = vmatprep.subr.bf16.mxu1 %v5229_v18  ;;  %v5233_v21 = vld [vmem:[%s6167_s24 + $0x24] ss:$16 sps:$4 sm:$0xff]   ;;  %v5235_v22 = vld [vmem:[%s6167_s24 + $0x2c] ss:$16 sps:$4 sm:$0xff]  }
  0x38   : > { %3505 = vmatpush1.bf16.msra.mxu0 %v5231_v19  ;;  %3849 = vmatpush1.bf16.msra.mxu1 %v5232_v20  ;;  %v5237_v23 = vld [vmem:[%s6167_s24 + $0x20] ss:$16 sps:$4 sm:$0xff]   ;;  %v5238_v24 = vld [vmem:[%s6167_s24 + $0x28] ss:$16 sps:$4 sm:$0xff]   ;;  %v5239_v25 = vld [vmem:[%s6167_s24 + $0x44] ss:$16 sps:$4 sm:$0xff]  }
  0x39   : > { %3506 = vmatprep.subr.bf16.mxu0 %v5233_v21  ;;  %3850 = vmatprep.subr.bf16.mxu1 %v5235_v22  ;;  %v5241_v26 = vld [vmem:[%s6167_s24 + $0x4c] ss:$16 sps:$4 sm:$0xff]   ;;  %v5243_v27 = vld [vmem:[%s6167_s24 + $0x40] ss:$16 sps:$4 sm:$0xff]   ;;  %v5244_v28 = vld [vmem:[%s6167_s24 + $0x48] ss:$16 sps:$4 sm:$0xff]  }
  0x3a   : > { %v5245_v29 = vld [vmem:[%s6167_s24 + $0x64] ss:$16 sps:$4 sm:$0xff]   ;;  %v5247_v30 = vld [vmem:[%s6167_s24 + $0x6c] ss:$16 sps:$4 sm:$0xff]   ;;  %v5249_v31 = vld [vmem:[%s6167_s24 + $0x60] ss:$16 sps:$4 sm:$0xff]  }
  0x3b   : > { %v5250_v32 = vld [vmem:[%s6167_s24 + $0x68] ss:$16 sps:$4 sm:$0xff]   ;;  %v5251_v33 = vld [vmem:[%s6167_s24 + $0x84] ss:$16 sps:$4 sm:$0xff]   ;;  %v5253_v34 = vld [vmem:[%s6167_s24 + $0x8c] ss:$16 sps:$4 sm:$0xff]  }
  0x3c   : > { %3507 = vmatpush1.bf16.msra.mxu0 %v5237_v23  ;;  %3851 = vmatpush1.bf16.msra.mxu1 %v5238_v24  ;;  %v5255_v35 = vld [vmem:[%s6167_s24 + $0x80] ss:$16 sps:$4 sm:$0xff]   ;;  %v5256_v36 = vld [vmem:[%s6167_s24 + $0x88] ss:$16 sps:$4 sm:$0xff]   ;;  %v5257_v37 = vld [vmem:[%s6167_s24 + $0xa4] ss:$16 sps:$4 sm:$0xff]  }
  0x3d   : > { %3508 = vmatprep.subr.bf16.mxu0 %v5239_v25  ;;  %3852 = vmatprep.subr.bf16.mxu1 %v5241_v26  ;;  %v5259_v38 = vld [vmem:[%s6167_s24 + $0xac] ss:$16 sps:$4 sm:$0xff]   ;;  %v5261_v39 = vld [vmem:[%s6167_s24 + $0xa0] ss:$16 sps:$4 sm:$0xff]   ;;  %v5262_v40 = vld [vmem:[%s6167_s24 + $0xa8] ss:$16 sps:$4 sm:$0xff]  }
  0x3e   : > { %v5263_v41 = vld [vmem:[%s6167_s24 + $0xc4] ss:$16 sps:$4 sm:$0xff]   ;;  %v5265_v42 = vld [vmem:[%s6167_s24 + $0xcc] ss:$16 sps:$4 sm:$0xff]   ;;  %v5267_v43 = vld [vmem:[%s6167_s24 + $0xc0] ss:$16 sps:$4 sm:$0xff]  }
  0x3f   : > { %v5268_v44 = vld [vmem:[%s6167_s24 + $0xc8] ss:$16 sps:$4 sm:$0xff]   ;;  %v5269_v45 = vld [vmem:[%s6167_s24 + $0xe4] ss:$16 sps:$4 sm:$0xff]   ;;  %v5271_v46 = vld [vmem:[%s6167_s24 + $0xec] ss:$16 sps:$4 sm:$0xff]  }
  0x40   : > { %3509 = vmatpush1.bf16.msra.mxu0 %v5243_v27  ;;  %3853 = vmatpush1.bf16.msra.mxu1 %v5244_v28  ;;  %v5273_v47 = vld [vmem:[%s6167_s24 + $0xe0] ss:$16 sps:$4 sm:$0xff]   ;;  %v5274_v48 = vld [vmem:[%s6167_s24 + $0xe8] ss:$16 sps:$4 sm:$0xff]   ;;  %v5275_v49 = vld [vmem:[%s6167_s24 + $0x104] ss:$16 sps:$4 sm:$0xff]  }
  0x41   : > { %3510 = vmatprep.subr.bf16.mxu0 %v5245_v29  ;;  %3854 = vmatprep.subr.bf16.mxu1 %v5247_v30  ;;  %v5277_v50 = vld [vmem:[%s6167_s24 + $0x10c] ss:$16 sps:$4 sm:$0xff]   ;;  %v5279_v51 = vld [vmem:[%s6167_s24 + $0x100] ss:$16 sps:$4 sm:$0xff]   ;;  %v5280_v52 = vld [vmem:[%s6167_s24 + $0x108] ss:$16 sps:$4 sm:$0xff]  }
  0x42   : > { %v5281_v53 = vld [vmem:[%s6167_s24 + $0x124] ss:$16 sps:$4 sm:$0xff]   ;;  %v5283_v54 = vld [vmem:[%s6167_s24 + $0x12c] ss:$16 sps:$4 sm:$0xff]   ;;  %v5285_v55 = vld [vmem:[%s6167_s24 + $0x120] ss:$16 sps:$4 sm:$0xff]  }
  0x43   : > { %v5286_v56 = vld [vmem:[%s6167_s24 + $0x128] ss:$16 sps:$4 sm:$0xff]   ;;  %v5287_v57 = vld [vmem:[%s6167_s24 + $0x144] ss:$16 sps:$4 sm:$0xff]   ;;  %v5289_v58 = vld [vmem:[%s6167_s24 + $0x14c] ss:$16 sps:$4 sm:$0xff]  }
  0x44   : > { %3511 = vmatpush1.bf16.msra.mxu0 %v5249_v31  ;;  %3855 = vmatpush1.bf16.msra.mxu1 %v5250_v32  ;;  %v5291_v59 = vld [vmem:[%s6167_s24 + $0x140] ss:$16 sps:$4 sm:$0xff]   ;;  %v5292_v60 = vld [vmem:[%s6167_s24 + $0x148] ss:$16 sps:$4 sm:$0xff]   ;;  %v5293_v61 = vld [vmem:[%s6167_s24 + $0x164] ss:$16 sps:$4 sm:$0xff]  }
  0x45   : > { %3512 = vmatprep.subr.bf16.mxu0 %v5251_v33  ;;  %3856 = vmatprep.subr.bf16.mxu1 %v5253_v34  ;;  %v5295_v62 = vld [vmem:[%s6167_s24 + $0x16c] ss:$16 sps:$4 sm:$0xff]   ;;  %v336_v63 = vld [vmem:[%s6174_s30] sm:$0xff]  ;;  %v5298_v2 = vld [vmem:[%s6167_s24 + $0x168] ss:$16 sps:$4 sm:$0xff]   ;;  %p5101_p13 = scmp.ne.s32.totalorder %s6041_s14, 1 }
  0x46   : > { %v344_v0 = vld [vmem:[%s6174_s30 + $0x40] sm:$0x11]  ;;  %v5301_v5 = vld [vmem:[%s6167_s24 + $0x18c] ss:$16 sps:$4 sm:$0xff]   ;;  %v5304_v7 = vld [vmem:[%s6167_s24 + $0x188] ss:$16 sps:$4 sm:$0xff]  }
  0x47   : > { %v5297_v1 = vld [vmem:[%s6167_s24 + $0x160] ss:$16 sps:$4 sm:$0xff]   ;;  %v4574_v3 = vcombine.high %v336_v63, %v344_v0  ;;  %v5299_v4 = vld [vmem:[%s6167_s24 + $0x184] ss:$16 sps:$4 sm:$0xff]   ;;  %v5307_v9 = vld [vmem:[%s6167_s24 + $0x1ac] ss:$16 sps:$4 sm:$0xff]   ;;  %v4573_v22 = vcombine.low %v336_v63, %v344_v0 }
  0x48   : > { %3513 = vmatpush1.bf16.msra.mxu0 %v5255_v35  ;;  %3857 = vmatpush1.bf16.msra.mxu1 %v5256_v36  ;;  %v5303_v6 = vld [vmem:[%s6167_s24 + $0x180] ss:$16 sps:$4 sm:$0xff]   ;;  %v5305_v8 = vld [vmem:[%s6167_s24 + $0x1a4] ss:$16 sps:$4 sm:$0xff]   ;;  %v5310_v11 = vld [vmem:[%s6167_s24 + $0x1a8] ss:$16 sps:$4 sm:$0xff]  }
  0x49   : > { %3514 = vmatprep.subr.bf16.mxu0 %v5257_v37  ;;  %3858 = vmatprep.subr.bf16.mxu1 %v5259_v38  ;;  %v5309_v10 = vld [vmem:[%s6167_s24 + $0x1a0] ss:$16 sps:$4 sm:$0xff]   ;;  %v5311_v12 = vld [vmem:[%s6167_s24 + $0x1c4] ss:$16 sps:$4 sm:$0xff]   ;;  %v5313_v13 = vld [vmem:[%s6167_s24 + $0x1cc] ss:$16 sps:$4 sm:$0xff]  }
  0x4a   : > { %3536 = vmatprep.mubr.bf16.mxu0 %v4574_v3  ;;  %3880 = vmatprep.mubr.bf16.mxu1 %v4574_v3  ;;  %v5315_v14 = vld [vmem:[%s6167_s24 + $0x1c0] ss:$16 sps:$4 sm:$0xff]   ;;  %v5316_v15 = vld [vmem:[%s6167_s24 + $0x1c8] ss:$16 sps:$4 sm:$0xff]   ;;  %v5317_v16 = vld [vmem:[%s6167_s24 + $0x1e4] ss:$16 sps:$4 sm:$0xff]  }
  0x4b   : > { %v5319_v17 = vld [vmem:[%s6167_s24 + $0x1ec] ss:$16 sps:$4 sm:$0xff]   ;;  %v5321_v18 = vld [vmem:[%s6167_s24 + $0x1e0] ss:$16 sps:$4 sm:$0xff]   ;;  %v5322_v19 = vld [vmem:[%s6167_s24 + $0x1e8] ss:$16 sps:$4 sm:$0xff]  }
  0x4c   : > { %3515 = vmatpush1.bf16.msra.mxu0 %v5261_v39  ;;  %3859 = vmatpush1.bf16.msra.mxu1 %v5262_v40  ;;  %v5325_v20 = vld [vmem:[%s6167_s24 + $0x204] ss:$16 sps:$4 sm:$0xff]   ;;  %v5328_v21 = vld [vmem:[%s6167_s24 + $0x20c] ss:$16 sps:$4 sm:$0xff]   ;;  %v5323_v23 = vld [vmem:[%s6167_s24 + $0x200] ss:$16 sps:$4 sm:$0xff]  }
  0x4d   : > { %3516 = vmatprep.subr.bf16.mxu0 %v5263_v41  ;;  %3860 = vmatprep.subr.bf16.mxu1 %v5265_v42  ;;  %v5326_v24 = vld [vmem:[%s6167_s24 + $0x208] ss:$16 sps:$4 sm:$0xff]   ;;  %v5331_v25 = vld [vmem:[%s6167_s24 + $0x224] ss:$16 sps:$4 sm:$0xff]   ;;  %v5334_v26 = vld [vmem:[%s6167_s24 + $0x22c] ss:$16 sps:$4 sm:$0xff]  }
  0x4e   : > { %v5329_v27 = vld [vmem:[%s6167_s24 + $0x220] ss:$16 sps:$4 sm:$0xff]   ;;  %v5332_v28 = vld [vmem:[%s6167_s24 + $0x228] ss:$16 sps:$4 sm:$0xff]   ;;  %v5337_v29 = vld [vmem:[%s6167_s24 + $0x244] ss:$16 sps:$4 sm:$0xff]  }
  0x4f   : > { %v5340_v30 = vld [vmem:[%s6167_s24 + $0x24c] ss:$16 sps:$4 sm:$0xff]   ;;  %v5335_v31 = vld [vmem:[%s6167_s24 + $0x240] ss:$16 sps:$4 sm:$0xff]   ;;  %v5338_v32 = vld [vmem:[%s6167_s24 + $0x248] ss:$16 sps:$4 sm:$0xff]  }
  0x50   : > { %3517 = vmatpush1.bf16.msra.mxu0 %v5267_v43  ;;  %3861 = vmatpush1.bf16.msra.mxu1 %v5268_v44  ;;  %v5343_v33 = vld [vmem:[%s6167_s24 + $0x264] ss:$16 sps:$4 sm:$0xff]   ;;  %v5346_v34 = vld [vmem:[%s6167_s24 + $0x26c] ss:$16 sps:$4 sm:$0xff]   ;;  %v5341_v35 = vld [vmem:[%s6167_s24 + $0x260] ss:$16 sps:$4 sm:$0xff]  }
  0x51   : > { %3518 = vmatprep.subr.bf16.mxu0 %v5269_v45  ;;  %3862 = vmatprep.subr.bf16.mxu1 %v5271_v46  ;;  %v5344_v36 = vld [vmem:[%s6167_s24 + $0x268] ss:$16 sps:$4 sm:$0xff]   ;;  %v5349_v37 = vld [vmem:[%s6167_s24 + $0x284] ss:$16 sps:$4 sm:$0xff]   ;;  %v5352_v38 = vld [vmem:[%s6167_s24 + $0x28c] ss:$16 sps:$4 sm:$0xff]  }
  0x52   : > { %v5347_v39 = vld [vmem:[%s6167_s24 + $0x280] ss:$16 sps:$4 sm:$0xff]   ;;  %v5350_v40 = vld [vmem:[%s6167_s24 + $0x288] ss:$16 sps:$4 sm:$0xff]   ;;  %v5355_v41 = vld [vmem:[%s6167_s24 + $0x2a4] ss:$16 sps:$4 sm:$0xff]  }
  0x53   : > { %v5358_v42 = vld [vmem:[%s6167_s24 + $0x2ac] ss:$16 sps:$4 sm:$0xff]   ;;  %v5353_v43 = vld [vmem:[%s6167_s24 + $0x2a0] ss:$16 sps:$4 sm:$0xff]   ;;  %v5356_v44 = vld [vmem:[%s6167_s24 + $0x2a8] ss:$16 sps:$4 sm:$0xff]  }
  0x54   : > { %3519 = vmatpush1.bf16.msra.mxu0 %v5273_v47  ;;  %3863 = vmatpush1.bf16.msra.mxu1 %v5274_v48  ;;  %v5361_v45 = vld [vmem:[%s6167_s24 + $0x2c4] ss:$16 sps:$4 sm:$0xff]   ;;  %v5364_v46 = vld [vmem:[%s6167_s24 + $0x2cc] ss:$16 sps:$4 sm:$0xff]   ;;  %v5380_v63 = vld [vmem:[%s6167_s24 + $0x328] ss:$16 sps:$4 sm:$0xff]  }
  0x55   : > { %3520 = vmatprep.subr.bf16.mxu0 %v5275_v49  ;;  %3864 = vmatprep.subr.bf16.mxu1 %v5277_v50  ;;  %v6270_v47 = vld [vmem:[%s6174_s30 + $0x8] sm:$0xff]  ;;  %v5359_v49 = vld [vmem:[%s6167_s24 + $0x2c0] ss:$16 sps:$4 sm:$0xff]   ;;  %v5385_v0 = vld [vmem:[%s6167_s24 + $0x344] ss:$16 sps:$4 sm:$0xff]   ;;  %vm4250_vm0 = vcmask (!%p5101_p13), 1040384  }
  0x56   : > { %v6273_v48 = vld [vmem:[%s6174_s30 + $0x48] sm:$0x11]  ;;  %vm4418_vm1 = vsmask.f32 (!%p5101_p13), 256  ;;  %vm4420_vm2 = vcmask (!%p5101_p13), 1044484  }
  0x57   : > { %v5362_v50 = vld [vmem:[%s6167_s24 + $0x2c8] ss:$16 sps:$4 sm:$0xff]   ;;  %vm4421_vm3 = vsmask.f32 (!%p5101_p13), 4352  ;;  %vm6830_vm4 = vmand (!%p5101_p13), %vm4250_vm0, %vm4418_vm1 }
  0x58   : > { %3521 = vmatpush1.bf16.msra.mxu0 %v5279_v51  ;;  %3865 = vmatpush1.bf16.msra.mxu1 %v5280_v52  ;;  %v4576_v51 = vcombine.high %v6270_v47, %v6273_v48  ;;  %v5367_v52 = vld [vmem:[%s6167_s24 + $0x2e4] ss:$16 sps:$4 sm:$0xff]   ;;  %v5386_v3 = vld [vmem:[%s6167_s24 + $0x348] ss:$16 sps:$4 sm:$0xff]   ;;  %vm6840_vm7 = vmand (!%p5101_p13), %vm4420_vm2, %vm4421_vm3 }
  0x59   : > { %3522 = vmatprep.subr.bf16.mxu0 %v5281_v53  ;;  %3866 = vmatprep.subr.bf16.mxu1 %v5283_v54  ;;  %v5370_v53 = vld [vmem:[%s6167_s24 + $0x2ec] ss:$16 sps:$4 sm:$0xff]   ;;  %v5365_v54 = vld [vmem:[%s6167_s24 + $0x2e0] ss:$16 sps:$4 sm:$0xff]   ;;  %vm4423_vm10 = vmor (!%p5101_p13), %vm6840_vm7, %vm6830_vm4 }
  0x5c   : > { %3523 = vmatpush1.bf16.msra.mxu0 %v5285_v55  ;;  %3867 = vmatpush1.bf16.msra.mxu1 %v5286_v56  ;;  %v5368_v55 = vld [vmem:[%s6167_s24 + $0x2e8] ss:$16 sps:$4 sm:$0xff]   ;;  %v5373_v56 = vld [vmem:[%s6167_s24 + $0x304] ss:$16 sps:$4 sm:$0xff]  }
  0x5d   : > { %3524 = vmatprep.subr.bf16.mxu0 %v5287_v57  ;;  %3868 = vmatprep.subr.bf16.mxu1 %v5289_v58  ;;  %v5376_v57 = vld [vmem:[%s6167_s24 + $0x30c] ss:$16 sps:$4 sm:$0xff]   ;;  %v5371_v58 = vld [vmem:[%s6167_s24 + $0x300] ss:$16 sps:$4 sm:$0xff]  }
  0x60   : > { %3525 = vmatpush1.bf16.msra.mxu0 %v5291_v59  ;;  %3869 = vmatpush1.bf16.msra.mxu1 %v5292_v60  ;;  %v5374_v59 = vld [vmem:[%s6167_s24 + $0x308] ss:$16 sps:$4 sm:$0xff]   ;;  %v5379_v60 = vld [vmem:[%s6167_s24 + $0x324] ss:$16 sps:$4 sm:$0xff]  }
  0x61   : > { %3526 = vmatprep.subr.bf16.mxu0 %v5293_v61  ;;  %3870 = vmatprep.subr.bf16.mxu1 %v5295_v62  ;;  %v5382_v61 = vld [vmem:[%s6167_s24 + $0x32c] ss:$16 sps:$4 sm:$0xff]   ;;  %v5377_v62 = vld [vmem:[%s6167_s24 + $0x320] ss:$16 sps:$4 sm:$0xff]  }
  0x64   : > { %3527 = vmatpush1.bf16.msra.mxu0 %v5297_v1  ;;  %3871 = vmatpush1.bf16.msra.mxu1 %v5298_v2  ;;  %v5388_v1 = vld [vmem:[%s6167_s24 + $0x34c] ss:$16 sps:$4 sm:$0xff]   ;;  %v5383_v2 = vld [vmem:[%s6167_s24 + $0x340] ss:$16 sps:$4 sm:$0xff]  }
  0x65   : > { %3528 = vmatprep.subr.bf16.mxu0 %v5299_v4  ;;  %3872 = vmatprep.subr.bf16.mxu1 %v5301_v5  ;;  %v5391_v4 = vld [vmem:[%s6167_s24 + $0x364] ss:$16 sps:$4 sm:$0xff]   ;;  %v5394_v5 = vld [vmem:[%s6167_s24 + $0x36c] ss:$16 sps:$4 sm:$0xff]  }
  0x68   : > { %3529 = vmatpush1.bf16.msra.mxu0 %v5303_v6  ;;  %3873 = vmatpush1.bf16.msra.mxu1 %v5304_v7  ;;  %v5389_v6 = vld [vmem:[%s6167_s24 + $0x360] ss:$16 sps:$4 sm:$0xff]   ;;  %v5392_v7 = vld [vmem:[%s6167_s24 + $0x368] ss:$16 sps:$4 sm:$0xff]  }
  0x69   : > { %3530 = vmatprep.subr.bf16.mxu0 %v5305_v8  ;;  %3874 = vmatprep.subr.bf16.mxu1 %v5307_v9  ;;  %v5397_v8 = vld [vmem:[%s6167_s24 + $0x384] ss:$16 sps:$4 sm:$0xff]   ;;  %v5400_v9 = vld [vmem:[%s6167_s24 + $0x38c] ss:$16 sps:$4 sm:$0xff]  }
  0x6c   : > { %3531 = vmatpush1.bf16.msra.mxu0 %v5309_v10  ;;  %3875 = vmatpush1.bf16.msra.mxu1 %v5310_v11  ;;  %v5395_v10 = vld [vmem:[%s6167_s24 + $0x380] ss:$16 sps:$4 sm:$0xff]   ;;  %v5398_v11 = vld [vmem:[%s6167_s24 + $0x388] ss:$16 sps:$4 sm:$0xff]  }
  0x6d   : > { %3532 = vmatprep.subr.bf16.mxu0 %v5311_v12  ;;  %3876 = vmatprep.subr.bf16.mxu1 %v5313_v13  ;;  %v5403_v12 = vld [vmem:[%s6167_s24 + $0x3a4] ss:$16 sps:$4 sm:$0xff]   ;;  %v5406_v13 = vld [vmem:[%s6167_s24 + $0x3ac] ss:$16 sps:$4 sm:$0xff]  }
  0x70   : > { %3533 = vmatpush1.bf16.msra.mxu0 %v5315_v14  ;;  %3877 = vmatpush1.bf16.msra.mxu1 %v5316_v15  ;;  %v5401_v14 = vld [vmem:[%s6167_s24 + $0x3a0] ss:$16 sps:$4 sm:$0xff]   ;;  %v5404_v15 = vld [vmem:[%s6167_s24 + $0x3a8] ss:$16 sps:$4 sm:$0xff]  }
  0x71   : > { %3534 = vmatprep.subr.bf16.mxu0 %v5317_v16  ;;  %3878 = vmatprep.subr.bf16.mxu1 %v5319_v17  ;;  %v5409_v16 = vld [vmem:[%s6167_s24 + $0x3c4] ss:$16 sps:$4 sm:$0xff]   ;;  %v5412_v17 = vld [vmem:[%s6167_s24 + $0x3cc] ss:$16 sps:$4 sm:$0xff]  }
  0x74   : > { %3535 = vmatpush1.bf16.msra.mxu0 %v5321_v18  ;;  %3879 = vmatpush1.bf16.msra.mxu1 %v5322_v19  ;;  %v5407_v18 = vld [vmem:[%s6167_s24 + $0x3c0] ss:$16 sps:$4 sm:$0xff]   ;;  %v5410_v19 = vld [vmem:[%s6167_s24 + $0x3c8] ss:$16 sps:$4 sm:$0xff]  }
  0x75   : > { %3547 = vmatprep.subr.bf16.mxu0 %v5325_v20  ;;  %3891 = vmatprep.subr.bf16.mxu1 %v5328_v21  ;;  %v5415_v20 = vld [vmem:[%s6167_s24 + $0x3e4] ss:$16 sps:$4 sm:$0xff]   ;;  %v5418_v21 = vld [vmem:[%s6167_s24 + $0x3ec] ss:$16 sps:$4 sm:$0xff]  }
  0x77   : > { %3537 = vmatmul.mubr.bf16.vlgmr.msra.gmra.mrb[0].mxu0 %v4573_v22  ;;  %3881 = vmatmul.mubr.bf16.vlgmr.msra.gmra.mrb[0].mxu1 %v4573_v22  ;;  %v5413_v22 = vld [vmem:[%s6167_s24 + $0x3e0] ss:$16 sps:$4 sm:$0xff]  }
  0x78   : > { %3548 = vmatpush1.bf16.msra.mxu0 %v5323_v23  ;;  %3892 = vmatpush1.bf16.msra.mxu1 %v5326_v24  ;;  %v5416_v23 = vld [vmem:[%s6167_s24 + $0x3e8] ss:$16 sps:$4 sm:$0xff]   ;;  %v5421_v24 = vld [vmem:[%s6167_s24 + $0x404] ss:$16 sps:$4 sm:$0xff]  }
  0x79   : > { %3549 = vmatprep.subr.bf16.mxu0 %v5331_v25  ;;  %3893 = vmatprep.subr.bf16.mxu1 %v5334_v26  ;;  %v5424_v25 = vld [vmem:[%s6167_s24 + $0x40c] ss:$16 sps:$4 sm:$0xff]   ;;  %v4575_v26 = vcombine.low %v6270_v47, %v6273_v48  ;;  %v5446_v47 = vld [vmem:[%s6167_s24 + $0x488] ss:$16 sps:$4 sm:$0xff]   ;;  %v5451_v48 = vld [vmem:[%s6167_s24 + $0x4a4] ss:$16 sps:$4 sm:$0xff]  }
  0x7a   : > { %3579 = vmatprep.mubr.bf16.mxu0 %v4576_v51  ;;  %3923 = vmatprep.mubr.bf16.mxu1 %v4576_v51  ;;  %v5452_v51 = vld [vmem:[%s6167_s24 + $0x4a8] ss:$16 sps:$4 sm:$0xff]  }
  0x7c   : > { %3550 = vmatpush1.bf16.msra.mxu0 %v5329_v27  ;;  %3894 = vmatpush1.bf16.msra.mxu1 %v5332_v28  ;;  %v5419_v27 = vld [vmem:[%s6167_s24 + $0x400] ss:$16 sps:$4 sm:$0xff]   ;;  %v5422_v28 = vld [vmem:[%s6167_s24 + $0x408] ss:$16 sps:$4 sm:$0xff]  }
  0x7d   : > { %3551 = vmatprep.subr.bf16.mxu0 %v5337_v29  ;;  %3895 = vmatprep.subr.bf16.mxu1 %v5340_v30  ;;  %v5427_v29 = vld [vmem:[%s6167_s24 + $0x424] ss:$16 sps:$4 sm:$0xff]   ;;  %v5430_v30 = vld [vmem:[%s6167_s24 + $0x42c] ss:$16 sps:$4 sm:$0xff]  }
  0x80   : > { %3552 = vmatpush1.bf16.msra.mxu0 %v5335_v31  ;;  %3896 = vmatpush1.bf16.msra.mxu1 %v5338_v32  ;;  %v6324_v31 = vld [vmem:[%s6174_s30 + $0x10] sm:$0xff] }
  0x81   : > { %3553 = vmatprep.subr.bf16.mxu0 %v5343_v33  ;;  %3897 = vmatprep.subr.bf16.mxu1 %v5346_v34  ;;  %v6327_v32 = vld [vmem:[%s6174_s30 + $0x50] sm:$0x11] }
  0x82   : > { %v4578_v33 = vcombine.high %v6324_v31, %v6327_v32  ;;  %v5425_v34 = vld [vmem:[%s6167_s24 + $0x420] ss:$16 sps:$4 sm:$0xff]  }
  0x84   : > { %3554 = vmatpush1.bf16.msra.mxu0 %v5341_v35  ;;  %3898 = vmatpush1.bf16.msra.mxu1 %v5344_v36  ;;  %v5428_v35 = vld [vmem:[%s6167_s24 + $0x428] ss:$16 sps:$4 sm:$0xff]   ;;  %v5433_v36 = vld [vmem:[%s6167_s24 + $0x444] ss:$16 sps:$4 sm:$0xff]  }
  0x85   : > { %3555 = vmatprep.subr.bf16.mxu0 %v5349_v37  ;;  %3899 = vmatprep.subr.bf16.mxu1 %v5352_v38  ;;  %v5436_v37 = vld [vmem:[%s6167_s24 + $0x44c] ss:$16 sps:$4 sm:$0xff]   ;;  %v5431_v38 = vld [vmem:[%s6167_s24 + $0x440] ss:$16 sps:$4 sm:$0xff]  }
  0x88   : > { %3556 = vmatpush1.bf16.msra.mxu0 %v5347_v39  ;;  %3900 = vmatpush1.bf16.msra.mxu1 %v5350_v40  ;;  %v5434_v39 = vld [vmem:[%s6167_s24 + $0x448] ss:$16 sps:$4 sm:$0xff]   ;;  %v5439_v40 = vld [vmem:[%s6167_s24 + $0x464] ss:$16 sps:$4 sm:$0xff]  }
  0x89   : > { %3557 = vmatprep.subr.bf16.mxu0 %v5355_v41  ;;  %3901 = vmatprep.subr.bf16.mxu1 %v5358_v42  ;;  %v5442_v41 = vld [vmem:[%s6167_s24 + $0x46c] ss:$16 sps:$4 sm:$0xff]   ;;  %v5437_v42 = vld [vmem:[%s6167_s24 + $0x460] ss:$16 sps:$4 sm:$0xff]  }
  0x8c   : > { %3558 = vmatpush1.bf16.msra.mxu0 %v5353_v43  ;;  %3902 = vmatpush1.bf16.msra.mxu1 %v5356_v44  ;;  %v5440_v43 = vld [vmem:[%s6167_s24 + $0x468] ss:$16 sps:$4 sm:$0xff]   ;;  %v5445_v44 = vld [vmem:[%s6167_s24 + $0x484] ss:$16 sps:$4 sm:$0xff]  }
  0x8d   : > { %3559 = vmatprep.subr.bf16.mxu0 %v5361_v45  ;;  %3903 = vmatprep.subr.bf16.mxu1 %v5364_v46  ;;  %v5448_v45 = vld [vmem:[%s6167_s24 + $0x48c] ss:$16 sps:$4 sm:$0xff]   ;;  %v5443_v46 = vld [vmem:[%s6167_s24 + $0x480] ss:$16 sps:$4 sm:$0xff]  }
  0x90   : > { %3560 = vmatpush1.bf16.msra.mxu0 %v5359_v49  ;;  %3904 = vmatpush1.bf16.msra.mxu1 %v5362_v50  ;;  %v5454_v49 = vld [vmem:[%s6167_s24 + $0x4ac] ss:$16 sps:$4 sm:$0xff]   ;;  %v5449_v50 = vld [vmem:[%s6167_s24 + $0x4a0] ss:$16 sps:$4 sm:$0xff]  }
  0x91   : > { %3561 = vmatprep.subr.bf16.mxu0 %v5367_v52  ;;  %3905 = vmatprep.subr.bf16.mxu1 %v5370_v53  ;;  %v5457_v52 = vld [vmem:[%s6167_s24 + $0x4c4] ss:$16 sps:$4 sm:$0xff]   ;;  %v5460_v53 = vld [vmem:[%s6167_s24 + $0x4cc] ss:$16 sps:$4 sm:$0xff]  }
  0x94   : > { %3562 = vmatpush1.bf16.msra.mxu0 %v5365_v54  ;;  %3906 = vmatpush1.bf16.msra.mxu1 %v5368_v55  ;;  %v5455_v54 = vld [vmem:[%s6167_s24 + $0x4c0] ss:$16 sps:$4 sm:$0xff]   ;;  %v5458_v55 = vld [vmem:[%s6167_s24 + $0x4c8] ss:$16 sps:$4 sm:$0xff]  }
  0x95   : > { %3563 = vmatprep.subr.bf16.mxu0 %v5373_v56  ;;  %3907 = vmatprep.subr.bf16.mxu1 %v5376_v57  ;;  %v5463_v56 = vld [vmem:[%s6167_s24 + $0x4e4] ss:$16 sps:$4 sm:$0xff]   ;;  %v5466_v57 = vld [vmem:[%s6167_s24 + $0x4ec] ss:$16 sps:$4 sm:$0xff]  }
  0x98   : > { %3564 = vmatpush1.bf16.msra.mxu0 %v5371_v58  ;;  %3908 = vmatpush1.bf16.msra.mxu1 %v5374_v59  ;;  %v5461_v58 = vld [vmem:[%s6167_s24 + $0x4e0] ss:$16 sps:$4 sm:$0xff]   ;;  %v5464_v59 = vld [vmem:[%s6167_s24 + $0x4e8] ss:$16 sps:$4 sm:$0xff]  }
  0x99   : > { %3565 = vmatprep.subr.bf16.mxu0 %v5379_v60  ;;  %3909 = vmatprep.subr.bf16.mxu1 %v5382_v61  ;;  %v5469_v60 = vld [vmem:[%s6167_s24 + $0x504] ss:$16 sps:$4 sm:$0xff]   ;;  %v5472_v61 = vld [vmem:[%s6167_s24 + $0x50c] ss:$16 sps:$4 sm:$0xff]  }
  0x9c   : > { %3566 = vmatpush1.bf16.msra.mxu0 %v5377_v62  ;;  %3910 = vmatpush1.bf16.msra.mxu1 %v5380_v63  ;;  %v5467_v62 = vld [vmem:[%s6167_s24 + $0x500] ss:$16 sps:$4 sm:$0xff]   ;;  %v5470_v63 = vld [vmem:[%s6167_s24 + $0x508] ss:$16 sps:$4 sm:$0xff]  }
  0x9d   : > { %3567 = vmatprep.subr.bf16.mxu0 %v5385_v0  ;;  %3911 = vmatprep.subr.bf16.mxu1 %v5388_v1  ;;  %v5475_v0 = vld [vmem:[%s6167_s24 + $0x524] ss:$16 sps:$4 sm:$0xff]   ;;  %v5478_v1 = vld [vmem:[%s6167_s24 + $0x52c] ss:$16 sps:$4 sm:$0xff]  }
  0xa0   : > { %3568 = vmatpush1.bf16.msra.mxu0 %v5383_v2  ;;  %3912 = vmatpush1.bf16.msra.mxu1 %v5386_v3  ;;  %v5473_v2 = vld [vmem:[%s6167_s24 + $0x520] ss:$16 sps:$4 sm:$0xff]   ;;  %v5476_v3 = vld [vmem:[%s6167_s24 + $0x528] ss:$16 sps:$4 sm:$0xff]  }
  0xa1   : > { %3569 = vmatprep.subr.bf16.mxu0 %v5391_v4  ;;  %3913 = vmatprep.subr.bf16.mxu1 %v5394_v5  ;;  %v5481_v4 = vld [vmem:[%s6167_s24 + $0x544] ss:$16 sps:$4 sm:$0xff]   ;;  %v5484_v5 = vld [vmem:[%s6167_s24 + $0x54c] ss:$16 sps:$4 sm:$0xff]  }
  0xa4   : > { %3570 = vmatpush1.bf16.msra.mxu0 %v5389_v6  ;;  %3914 = vmatpush1.bf16.msra.mxu1 %v5392_v7  ;;  %v5479_v6 = vld [vmem:[%s6167_s24 + $0x540] ss:$16 sps:$4 sm:$0xff]   ;;  %v5482_v7 = vld [vmem:[%s6167_s24 + $0x548] ss:$16 sps:$4 sm:$0xff]  }
  0xa5   : > { %3571 = vmatprep.subr.bf16.mxu0 %v5397_v8  ;;  %3915 = vmatprep.subr.bf16.mxu1 %v5400_v9  ;;  %v5487_v8 = vld [vmem:[%s6167_s24 + $0x564] ss:$16 sps:$4 sm:$0xff]   ;;  %v5490_v9 = vld [vmem:[%s6167_s24 + $0x56c] ss:$16 sps:$4 sm:$0xff]  }
  0xa8   : > { %3572 = vmatpush1.bf16.msra.mxu0 %v5395_v10  ;;  %3916 = vmatpush1.bf16.msra.mxu1 %v5398_v11  ;;  %v5485_v10 = vld [vmem:[%s6167_s24 + $0x560] ss:$16 sps:$4 sm:$0xff]   ;;  %v5488_v11 = vld [vmem:[%s6167_s24 + $0x568] ss:$16 sps:$4 sm:$0xff]  }
  0xa9   : > { %3573 = vmatprep.subr.bf16.mxu0 %v5403_v12  ;;  %3917 = vmatprep.subr.bf16.mxu1 %v5406_v13  ;;  %v5493_v12 = vld [vmem:[%s6167_s24 + $0x584] ss:$16 sps:$4 sm:$0xff]   ;;  %v5496_v13 = vld [vmem:[%s6167_s24 + $0x58c] ss:$16 sps:$4 sm:$0xff]  }
  0xac   : > { %3574 = vmatpush1.bf16.msra.mxu0 %v5401_v14  ;;  %3918 = vmatpush1.bf16.msra.mxu1 %v5404_v15  ;;  %v5491_v14 = vld [vmem:[%s6167_s24 + $0x580] ss:$16 sps:$4 sm:$0xff]   ;;  %v5494_v15 = vld [vmem:[%s6167_s24 + $0x588] ss:$16 sps:$4 sm:$0xff]  }
  0xad   : > { %3575 = vmatprep.subr.bf16.mxu0 %v5409_v16  ;;  %3919 = vmatprep.subr.bf16.mxu1 %v5412_v17  ;;  %v5499_v16 = vld [vmem:[%s6167_s24 + $0x5a4] ss:$16 sps:$4 sm:$0xff]   ;;  %v5502_v17 = vld [vmem:[%s6167_s24 + $0x5ac] ss:$16 sps:$4 sm:$0xff]  }
  0xb0   : > { %3576 = vmatpush1.bf16.msra.mxu0 %v5407_v18  ;;  %3920 = vmatpush1.bf16.msra.mxu1 %v5410_v19  ;;  %v5497_v18 = vld [vmem:[%s6167_s24 + $0x5a0] ss:$16 sps:$4 sm:$0xff]   ;;  %v5500_v19 = vld [vmem:[%s6167_s24 + $0x5a8] ss:$16 sps:$4 sm:$0xff]  }
  0xb1   : > { %3577 = vmatprep.subr.bf16.mxu0 %v5415_v20  ;;  %3921 = vmatprep.subr.bf16.mxu1 %v5418_v21  ;;  %v5505_v20 = vld [vmem:[%s6167_s24 + $0x5c4] ss:$16 sps:$4 sm:$0xff]   ;;  %v5508_v21 = vld [vmem:[%s6167_s24 + $0x5cc] ss:$16 sps:$4 sm:$0xff]  }
  0xb4   : > { %3578 = vmatpush1.bf16.msra.mxu0 %v5413_v22  ;;  %3922 = vmatpush1.bf16.msra.mxu1 %v5416_v23  ;;  %v5503_v22 = vld [vmem:[%s6167_s24 + $0x5c0] ss:$16 sps:$4 sm:$0xff]   ;;  %v5506_v23 = vld [vmem:[%s6167_s24 + $0x5c8] ss:$16 sps:$4 sm:$0xff]  }
  0xb5   : > { %3590 = vmatprep.subr.bf16.mxu0 %v5421_v24  ;;  %3934 = vmatprep.subr.bf16.mxu1 %v5424_v25  ;;  %v5511_v24 = vld [vmem:[%s6167_s24 + $0x5e4] ss:$16 sps:$4 sm:$0xff]   ;;  %v5514_v25 = vld [vmem:[%s6167_s24 + $0x5ec] ss:$16 sps:$4 sm:$0xff]  }
  0xb7   : > { %3580 = vmatmul.mubr.bf16.vlgmr.msra.gmra.mrb[0].mxu0 %v4575_v26  ;;  %3924 = vmatmul.mubr.bf16.vlgmr.msra.gmra.mrb[0].mxu1 %v4575_v26  ;;  %v5509_v26 = vld [vmem:[%s6167_s24 + $0x5e0] ss:$16 sps:$4 sm:$0xff]  }
  0xb8   : > { %3591 = vmatpush1.bf16.msra.mxu0 %v5419_v27  ;;  %3935 = vmatpush1.bf16.msra.mxu1 %v5422_v28  ;;  %v5512_v27 = vld [vmem:[%s6167_s24 + $0x5e8] ss:$16 sps:$4 sm:$0xff]   ;;  %v5517_v28 = vld [vmem:[%s6167_s24 + $0x604] ss:$16 sps:$4 sm:$0xff]  }
  0xb9   : > { %3592 = vmatprep.subr.bf16.mxu0 %v5427_v29  ;;  %3936 = vmatprep.subr.bf16.mxu1 %v5430_v30  ;;  %v5520_v29 = vld [vmem:[%s6167_s24 + $0x60c] ss:$16 sps:$4 sm:$0xff]   ;;  %v5515_v30 = vld [vmem:[%s6167_s24 + $0x600] ss:$16 sps:$4 sm:$0xff]  }
  0xba   : > { %3622 = vmatprep.mubr.bf16.mxu0 %v4578_v33  ;;  %3966 = vmatprep.mubr.bf16.mxu1 %v4578_v33  ;;  %v5518_v33 = vld [vmem:[%s6167_s24 + $0x608] ss:$16 sps:$4 sm:$0xff]  }
  0xbc   : > { %3593 = vmatpush1.bf16.msra.mxu0 %v5425_v34  ;;  %3937 = vmatpush1.bf16.msra.mxu1 %v5428_v35  ;;  %v4577_v34 = vcombine.low %v6324_v31, %v6327_v32  ;;  %v6396_v35 = vld [vmem:[%s6174_s30 + $0x18] sm:$0xff]  ;;  %v5521_v31 = vld [vmem:[%s6167_s24 + $0x620] ss:$16 sps:$4 sm:$0xff]  }
  0xbd   : > { %3594 = vmatprep.subr.bf16.mxu0 %v5433_v36  ;;  %3938 = vmatprep.subr.bf16.mxu1 %v5436_v37  ;;  %v6399_v36 = vld [vmem:[%s6174_s30 + $0x58] sm:$0x11]  ;;  %v5523_v37 = vld [vmem:[%s6167_s24 + $0x624] ss:$16 sps:$4 sm:$0xff]  }
  0xbe   : > { %v5524_v32 = vld [vmem:[%s6167_s24 + $0x628] ss:$16 sps:$4 sm:$0xff]  }
  0xc0   : > { %3595 = vmatpush1.bf16.msra.mxu0 %v5431_v38  ;;  %3939 = vmatpush1.bf16.msra.mxu1 %v5434_v39  ;;  %v5526_v38 = vld [vmem:[%s6167_s24 + $0x62c] ss:$16 sps:$4 sm:$0xff]   ;;  %v4580_v39 = vcombine.high %v6396_v35, %v6399_v36 }
  0xc1   : > { %3596 = vmatprep.subr.bf16.mxu0 %v5439_v40  ;;  %3940 = vmatprep.subr.bf16.mxu1 %v5442_v41  ;;  %v5529_v40 = vld [vmem:[%s6167_s24 + $0x644] ss:$16 sps:$4 sm:$0xff]   ;;  %v5532_v41 = vld [vmem:[%s6167_s24 + $0x64c] ss:$16 sps:$4 sm:$0xff]  }
  0xc4   : > { %3597 = vmatpush1.bf16.msra.mxu0 %v5437_v42  ;;  %3941 = vmatpush1.bf16.msra.mxu1 %v5440_v43  ;;  %v5527_v42 = vld [vmem:[%s6167_s24 + $0x640] ss:$16 sps:$4 sm:$0xff]   ;;  %v5530_v43 = vld [vmem:[%s6167_s24 + $0x648] ss:$16 sps:$4 sm:$0xff]  }
  0xc5   : > { %3598 = vmatprep.subr.bf16.mxu0 %v5445_v44  ;;  %3942 = vmatprep.subr.bf16.mxu1 %v5448_v45  ;;  %v5535_v44 = vld [vmem:[%s6167_s24 + $0x664] ss:$16 sps:$4 sm:$0xff]   ;;  %v5538_v45 = vld [vmem:[%s6167_s24 + $0x66c] ss:$16 sps:$4 sm:$0xff]  }
  0xc8   : > { %3599 = vmatpush1.bf16.msra.mxu0 %v5443_v46  ;;  %3943 = vmatpush1.bf16.msra.mxu1 %v5446_v47  ;;  %v5533_v46 = vld [vmem:[%s6167_s24 + $0x660] ss:$16 sps:$4 sm:$0xff]   ;;  %v5536_v47 = vld [vmem:[%s6167_s24 + $0x668] ss:$16 sps:$4 sm:$0xff]  }
  0xc9   : > { %3600 = vmatprep.subr.bf16.mxu0 %v5451_v48  ;;  %3944 = vmatprep.subr.bf16.mxu1 %v5454_v49  ;;  %v5541_v48 = vld [vmem:[%s6167_s24 + $0x684] ss:$16 sps:$4 sm:$0xff]   ;;  %v5544_v49 = vld [vmem:[%s6167_s24 + $0x68c] ss:$16 sps:$4 sm:$0xff]  }
  0xcc   : > { %3601 = vmatpush1.bf16.msra.mxu0 %v5449_v50  ;;  %3945 = vmatpush1.bf16.msra.mxu1 %v5452_v51  ;;  %v5539_v50 = vld [vmem:[%s6167_s24 + $0x680] ss:$16 sps:$4 sm:$0xff]   ;;  %v5542_v51 = vld [vmem:[%s6167_s24 + $0x688] ss:$16 sps:$4 sm:$0xff]  }
  0xcd   : > { %3602 = vmatprep.subr.bf16.mxu0 %v5457_v52  ;;  %3946 = vmatprep.subr.bf16.mxu1 %v5460_v53  ;;  %v5547_v52 = vld [vmem:[%s6167_s24 + $0x6a4] ss:$16 sps:$4 sm:$0xff]   ;;  %v5550_v53 = vld [vmem:[%s6167_s24 + $0x6ac] ss:$16 sps:$4 sm:$0xff]  }
  0xd0   : > { %3603 = vmatpush1.bf16.msra.mxu0 %v5455_v54  ;;  %3947 = vmatpush1.bf16.msra.mxu1 %v5458_v55  ;;  %v5545_v54 = vld [vmem:[%s6167_s24 + $0x6a0] ss:$16 sps:$4 sm:$0xff]   ;;  %v5548_v55 = vld [vmem:[%s6167_s24 + $0x6a8] ss:$16 sps:$4 sm:$0xff]  }
  0xd1   : > { %3604 = vmatprep.subr.bf16.mxu0 %v5463_v56  ;;  %3948 = vmatprep.subr.bf16.mxu1 %v5466_v57  ;;  %v5553_v56 = vld [vmem:[%s6167_s24 + $0x6c4] ss:$16 sps:$4 sm:$0xff]   ;;  %v5556_v57 = vld [vmem:[%s6167_s24 + $0x6cc] ss:$16 sps:$4 sm:$0xff]  }
  0xd4   : > { %3605 = vmatpush1.bf16.msra.mxu0 %v5461_v58  ;;  %3949 = vmatpush1.bf16.msra.mxu1 %v5464_v59  ;;  %v5551_v58 = vld [vmem:[%s6167_s24 + $0x6c0] ss:$16 sps:$4 sm:$0xff]   ;;  %v5554_v59 = vld [vmem:[%s6167_s24 + $0x6c8] ss:$16 sps:$4 sm:$0xff]  }
  0xd5   : > { %3606 = vmatprep.subr.bf16.mxu0 %v5469_v60  ;;  %3950 = vmatprep.subr.bf16.mxu1 %v5472_v61  ;;  %v5559_v60 = vld [vmem:[%s6167_s24 + $0x6e4] ss:$16 sps:$4 sm:$0xff]   ;;  %v5562_v61 = vld [vmem:[%s6167_s24 + $0x6ec] ss:$16 sps:$4 sm:$0xff]  }
  0xd8   : > { %3607 = vmatpush1.bf16.msra.mxu0 %v5467_v62  ;;  %3951 = vmatpush1.bf16.msra.mxu1 %v5470_v63  ;;  %v5557_v62 = vld [vmem:[%s6167_s24 + $0x6e0] ss:$16 sps:$4 sm:$0xff]   ;;  %v5560_v63 = vld [vmem:[%s6167_s24 + $0x6e8] ss:$16 sps:$4 sm:$0xff]  }
  0xd9   : > { %3608 = vmatprep.subr.bf16.mxu0 %v5475_v0  ;;  %3952 = vmatprep.subr.bf16.mxu1 %v5478_v1  ;;  %v5565_v0 = vld [vmem:[%s6167_s24 + $0x704] ss:$16 sps:$4 sm:$0xff]   ;;  %v5568_v1 = vld [vmem:[%s6167_s24 + $0x70c] ss:$16 sps:$4 sm:$0xff]  }
  0xdc   : > { %3609 = vmatpush1.bf16.msra.mxu0 %v5473_v2  ;;  %3953 = vmatpush1.bf16.msra.mxu1 %v5476_v3  ;;  %v5563_v2 = vld [vmem:[%s6167_s24 + $0x700] ss:$16 sps:$4 sm:$0xff]   ;;  %v5566_v3 = vld [vmem:[%s6167_s24 + $0x708] ss:$16 sps:$4 sm:$0xff]  }
  0xdd   : > { %3610 = vmatprep.subr.bf16.mxu0 %v5481_v4  ;;  %3954 = vmatprep.subr.bf16.mxu1 %v5484_v5  ;;  %v5571_v4 = vld [vmem:[%s6167_s24 + $0x724] ss:$16 sps:$4 sm:$0xff]   ;;  %v5574_v5 = vld [vmem:[%s6167_s24 + $0x72c] ss:$16 sps:$4 sm:$0xff]  }
  0xe0   : > { %3611 = vmatpush1.bf16.msra.mxu0 %v5479_v6  ;;  %3955 = vmatpush1.bf16.msra.mxu1 %v5482_v7  ;;  %v5569_v6 = vld [vmem:[%s6167_s24 + $0x720] ss:$16 sps:$4 sm:$0xff]   ;;  %v5572_v7 = vld [vmem:[%s6167_s24 + $0x728] ss:$16 sps:$4 sm:$0xff]  }
  0xe1   : > { %3612 = vmatprep.subr.bf16.mxu0 %v5487_v8  ;;  %3956 = vmatprep.subr.bf16.mxu1 %v5490_v9  ;;  %v5577_v8 = vld [vmem:[%s6167_s24 + $0x744] ss:$16 sps:$4 sm:$0xff]   ;;  %v5580_v9 = vld [vmem:[%s6167_s24 + $0x74c] ss:$16 sps:$4 sm:$0xff]  }
  0xe4   : > { %3613 = vmatpush1.bf16.msra.mxu0 %v5485_v10  ;;  %3957 = vmatpush1.bf16.msra.mxu1 %v5488_v11  ;;  %v5575_v10 = vld [vmem:[%s6167_s24 + $0x740] ss:$16 sps:$4 sm:$0xff]   ;;  %v5578_v11 = vld [vmem:[%s6167_s24 + $0x748] ss:$16 sps:$4 sm:$0xff]  }
  0xe5   : > { %3614 = vmatprep.subr.bf16.mxu0 %v5493_v12  ;;  %3958 = vmatprep.subr.bf16.mxu1 %v5496_v13  ;;  %v5583_v12 = vld [vmem:[%s6167_s24 + $0x764] ss:$16 sps:$4 sm:$0xff]   ;;  %v5586_v13 = vld [vmem:[%s6167_s24 + $0x76c] ss:$16 sps:$4 sm:$0xff]  }
  0xe8   : > { %3615 = vmatpush1.bf16.msra.mxu0 %v5491_v14  ;;  %3959 = vmatpush1.bf16.msra.mxu1 %v5494_v15  ;;  %v5581_v14 = vld [vmem:[%s6167_s24 + $0x760] ss:$16 sps:$4 sm:$0xff]   ;;  %v5584_v15 = vld [vmem:[%s6167_s24 + $0x768] ss:$16 sps:$4 sm:$0xff]  }
  0xe9   : > { %3616 = vmatprep.subr.bf16.mxu0 %v5499_v16  ;;  %3960 = vmatprep.subr.bf16.mxu1 %v5502_v17  ;;  %v5589_v16 = vld [vmem:[%s6167_s24 + $0x784] ss:$16 sps:$4 sm:$0xff]   ;;  %v5592_v17 = vld [vmem:[%s6167_s24 + $0x78c] ss:$16 sps:$4 sm:$0xff]  }
  0xec   : > { %3617 = vmatpush1.bf16.msra.mxu0 %v5497_v18  ;;  %3961 = vmatpush1.bf16.msra.mxu1 %v5500_v19  ;;  %v5587_v18 = vld [vmem:[%s6167_s24 + $0x780] ss:$16 sps:$4 sm:$0xff]   ;;  %v5590_v19 = vld [vmem:[%s6167_s24 + $0x788] ss:$16 sps:$4 sm:$0xff]  }
  0xed   : > { %3618 = vmatprep.subr.bf16.mxu0 %v5505_v20  ;;  %3962 = vmatprep.subr.bf16.mxu1 %v5508_v21  ;;  %v5595_v20 = vld [vmem:[%s6167_s24 + $0x7a4] ss:$16 sps:$4 sm:$0xff]   ;;  %v5598_v21 = vld [vmem:[%s6167_s24 + $0x7ac] ss:$16 sps:$4 sm:$0xff]  }
  0xf0   : > { %3619 = vmatpush1.bf16.msra.mxu0 %v5503_v22  ;;  %3963 = vmatpush1.bf16.msra.mxu1 %v5506_v23  ;;  %v5593_v22 = vld [vmem:[%s6167_s24 + $0x7a0] ss:$16 sps:$4 sm:$0xff]   ;;  %v5596_v23 = vld [vmem:[%s6167_s24 + $0x7a8] ss:$16 sps:$4 sm:$0xff]  }
  0xf1   : > { %3620 = vmatprep.subr.bf16.mxu0 %v5511_v24  ;;  %3964 = vmatprep.subr.bf16.mxu1 %v5514_v25  ;;  %v5601_v24 = vld [vmem:[%s6167_s24 + $0x7c4] ss:$16 sps:$4 sm:$0xff]   ;;  %v5604_v25 = vld [vmem:[%s6167_s24 + $0x7cc] ss:$16 sps:$4 sm:$0xff]  }
  0xf4   : > { %3621 = vmatpush1.bf16.msra.mxu0 %v5509_v26  ;;  %3965 = vmatpush1.bf16.msra.mxu1 %v5512_v27  ;;  %v5599_v26 = vld [vmem:[%s6167_s24 + $0x7c0] ss:$16 sps:$4 sm:$0xff]   ;;  %v5602_v27 = vld [vmem:[%s6167_s24 + $0x7c8] ss:$16 sps:$4 sm:$0xff]  }
  0xf5   : > { %3633 = vmatprep.subr.bf16.mxu0 %v5517_v28  ;;  %3977 = vmatprep.subr.bf16.mxu1 %v5520_v29  ;;  %v5607_v28 = vld [vmem:[%s6167_s24 + $0x7e4] ss:$16 sps:$4 sm:$0xff]   ;;  %v5610_v29 = vld [vmem:[%s6167_s24 + $0x7ec] ss:$16 sps:$4 sm:$0xff]  }
  0xf7   : > { %3623 = vmatmul.mubr.bf16.vlgmr.msra.gmra.mrb[0].mxu0 %v4577_v34  ;;  %3967 = vmatmul.mubr.bf16.vlgmr.msra.gmra.mrb[0].mxu1 %v4577_v34  ;;  %v5613_v34 = vld [vmem:[%s6167_s24 + $0x804] ss:$16 sps:$4 sm:$0xff]  }
  0xf8   : > { %3634 = vmatpush1.bf16.msra.mxu0 %v5515_v30  ;;  %3978 = vmatpush1.bf16.msra.mxu1 %v5518_v33  ;;  %v5605_v30 = vld [vmem:[%s6167_s24 + $0x7e0] ss:$16 sps:$4 sm:$0xff]   ;;  %v5608_v33 = vld [vmem:[%s6167_s24 + $0x7e8] ss:$16 sps:$4 sm:$0xff]  }
  0xf9   : > { %3635 = vmatprep.subr.bf16.mxu0 %v5523_v37  ;;  %3979 = vmatprep.subr.bf16.mxu1 %v5526_v38  ;;  %v5616_v37 = vld [vmem:[%s6167_s24 + $0x80c] ss:$16 sps:$4 sm:$0xff]   ;;  %v6466_v38 = vld [vmem:[%s6174_s30 + $0x20] sm:$0xff] }
  0xfa   : > { %3665 = vmatprep.mubr.bf16.mxu0 %v4580_v39  ;;  %4009 = vmatprep.mubr.bf16.mxu1 %v4580_v39  ;;  %v4579_v39 = vcombine.low %v6396_v35, %v6399_v36  ;;  %v5617_v35 = vld [vmem:[%s6167_s24 + $0x820] ss:$16 sps:$4 sm:$0xff]   ;;  %v5620_v36 = vld [vmem:[%s6167_s24 + $0x828] ss:$16 sps:$4 sm:$0xff]  }
  0xfc   : > { %3636 = vmatpush1.bf16.msra.mxu0 %v5521_v31  ;;  %3980 = vmatpush1.bf16.msra.mxu1 %v5524_v32  ;;  %v6471_v31 = vld [vmem:[%s6174_s30 + $0x60] sm:$0x11] }
  0xfd   : > { %3637 = vmatprep.subr.bf16.mxu0 %v5529_v40  ;;  %3981 = vmatprep.subr.bf16.mxu1 %v5532_v41  ;;  %v5611_v32 = vld [vmem:[%s6167_s24 + $0x800] ss:$16 sps:$4 sm:$0xff]   ;;  %v5614_v40 = vld [vmem:[%s6167_s24 + $0x808] ss:$16 sps:$4 sm:$0xff]   ;;  %v5619_v41 = vld [vmem:[%s6167_s24 + $0x824] ss:$16 sps:$4 sm:$0xff]  }
 0x100   : > { %3638 = vmatpush1.bf16.msra.mxu0 %v5527_v42  ;;  %3982 = vmatpush1.bf16.msra.mxu1 %v5530_v43  ;;  %v5622_v42 = vld [vmem:[%s6167_s24 + $0x82c] ss:$16 sps:$4 sm:$0xff]   ;;  %v4582_v43 = vcombine.high %v6466_v38, %v6471_v31 }
 0x101   : > { %3639 = vmatprep.subr.bf16.mxu0 %v5535_v44  ;;  %3983 = vmatprep.subr.bf16.mxu1 %v5538_v45  ;;  %v5625_v44 = vld [vmem:[%s6167_s24 + $0x844] ss:$16 sps:$4 sm:$0xff]   ;;  %v5628_v45 = vld [vmem:[%s6167_s24 + $0x84c] ss:$16 sps:$4 sm:$0xff]  }
 0x104   : > { %3640 = vmatpush1.bf16.msra.mxu0 %v5533_v46  ;;  %3984 = vmatpush1.bf16.msra.mxu1 %v5536_v47  ;;  %v5623_v46 = vld [vmem:[%s6167_s24 + $0x840] ss:$16 sps:$4 sm:$0xff]   ;;  %v5626_v47 = vld [vmem:[%s6167_s24 + $0x848] ss:$16 sps:$4 sm:$0xff]  }
 0x105   : > { %3641 = vmatprep.subr.bf16.mxu0 %v5541_v48  ;;  %3985 = vmatprep.subr.bf16.mxu1 %v5544_v49  ;;  %v5631_v48 = vld [vmem:[%s6167_s24 + $0x864] ss:$16 sps:$4 sm:$0xff]   ;;  %v5634_v49 = vld [vmem:[%s6167_s24 + $0x86c] ss:$16 sps:$4 sm:$0xff]  }
 0x108   : > { %3642 = vmatpush1.bf16.msra.mxu0 %v5539_v50  ;;  %3986 = vmatpush1.bf16.msra.mxu1 %v5542_v51  ;;  %v5629_v50 = vld [vmem:[%s6167_s24 + $0x860] ss:$16 sps:$4 sm:$0xff]   ;;  %v5632_v51 = vld [vmem:[%s6167_s24 + $0x868] ss:$16 sps:$4 sm:$0xff]  }
 0x109   : > { %3643 = vmatprep.subr.bf16.mxu0 %v5547_v52  ;;  %3987 = vmatprep.subr.bf16.mxu1 %v5550_v53  ;;  %v5637_v52 = vld [vmem:[%s6167_s24 + $0x884] ss:$16 sps:$4 sm:$0xff]   ;;  %v5640_v53 = vld [vmem:[%s6167_s24 + $0x88c] ss:$16 sps:$4 sm:$0xff]  }
 0x10c   : > { %3644 = vmatpush1.bf16.msra.mxu0 %v5545_v54  ;;  %3988 = vmatpush1.bf16.msra.mxu1 %v5548_v55  ;;  %v5635_v54 = vld [vmem:[%s6167_s24 + $0x880] ss:$16 sps:$4 sm:$0xff]   ;;  %v5638_v55 = vld [vmem:[%s6167_s24 + $0x888] ss:$16 sps:$4 sm:$0xff]  }
 0x10d   : > { %3645 = vmatprep.subr.bf16.mxu0 %v5553_v56  ;;  %3989 = vmatprep.subr.bf16.mxu1 %v5556_v57  ;;  %v5643_v56 = vld [vmem:[%s6167_s24 + $0x8a4] ss:$16 sps:$4 sm:$0xff]   ;;  %v5646_v57 = vld [vmem:[%s6167_s24 + $0x8ac] ss:$16 sps:$4 sm:$0xff]  }
 0x110   : > { %3646 = vmatpush1.bf16.msra.mxu0 %v5551_v58  ;;  %3990 = vmatpush1.bf16.msra.mxu1 %v5554_v59  ;;  %v5641_v58 = vld [vmem:[%s6167_s24 + $0x8a0] ss:$16 sps:$4 sm:$0xff]   ;;  %v5644_v59 = vld [vmem:[%s6167_s24 + $0x8a8] ss:$16 sps:$4 sm:$0xff]  }
 0x111   : > { %3647 = vmatprep.subr.bf16.mxu0 %v5559_v60  ;;  %3991 = vmatprep.subr.bf16.mxu1 %v5562_v61  ;;  %v5649_v60 = vld [vmem:[%s6167_s24 + $0x8c4] ss:$16 sps:$4 sm:$0xff]   ;;  %v5652_v61 = vld [vmem:[%s6167_s24 + $0x8cc] ss:$16 sps:$4 sm:$0xff]  }
 0x114   : > { %3648 = vmatpush1.bf16.msra.mxu0 %v5557_v62  ;;  %3992 = vmatpush1.bf16.msra.mxu1 %v5560_v63  ;;  %v5647_v62 = vld [vmem:[%s6167_s24 + $0x8c0] ss:$16 sps:$4 sm:$0xff]   ;;  %v5650_v63 = vld [vmem:[%s6167_s24 + $0x8c8] ss:$16 sps:$4 sm:$0xff]  }
 0x115   : > { %3649 = vmatprep.subr.bf16.mxu0 %v5565_v0  ;;  %3993 = vmatprep.subr.bf16.mxu1 %v5568_v1  ;;  %v5655_v0 = vld [vmem:[%s6167_s24 + $0x8e4] ss:$16 sps:$4 sm:$0xff]   ;;  %v5658_v1 = vld [vmem:[%s6167_s24 + $0x8ec] ss:$16 sps:$4 sm:$0xff]  }
 0x118   : > { %3650 = vmatpush1.bf16.msra.mxu0 %v5563_v2  ;;  %3994 = vmatpush1.bf16.msra.mxu1 %v5566_v3  ;;  %v5653_v2 = vld [vmem:[%s6167_s24 + $0x8e0] ss:$16 sps:$4 sm:$0xff]   ;;  %v5656_v3 = vld [vmem:[%s6167_s24 + $0x8e8] ss:$16 sps:$4 sm:$0xff]  }
 0x119   : > { %3651 = vmatprep.subr.bf16.mxu0 %v5571_v4  ;;  %3995 = vmatprep.subr.bf16.mxu1 %v5574_v5  ;;  %v5661_v4 = vld [vmem:[%s6167_s24 + $0x904] ss:$16 sps:$4 sm:$0xff]   ;;  %v5664_v5 = vld [vmem:[%s6167_s24 + $0x90c] ss:$16 sps:$4 sm:$0xff]  }
 0x11c   : > { %3652 = vmatpush1.bf16.msra.mxu0 %v5569_v6  ;;  %3996 = vmatpush1.bf16.msra.mxu1 %v5572_v7  ;;  %v5659_v6 = vld [vmem:[%s6167_s24 + $0x900] ss:$16 sps:$4 sm:$0xff]   ;;  %v5662_v7 = vld [vmem:[%s6167_s24 + $0x908] ss:$16 sps:$4 sm:$0xff]  }
 0x11d   : > { %3653 = vmatprep.subr.bf16.mxu0 %v5577_v8  ;;  %3997 = vmatprep.subr.bf16.mxu1 %v5580_v9  ;;  %v5667_v8 = vld [vmem:[%s6167_s24 + $0x924] ss:$16 sps:$4 sm:$0xff]   ;;  %v5670_v9 = vld [vmem:[%s6167_s24 + $0x92c] ss:$16 sps:$4 sm:$0xff]  }
 0x120   : > { %3654 = vmatpush1.bf16.msra.mxu0 %v5575_v10  ;;  %3998 = vmatpush1.bf16.msra.mxu1 %v5578_v11  ;;  %v5665_v10 = vld [vmem:[%s6167_s24 + $0x920] ss:$16 sps:$4 sm:$0xff]   ;;  %v5668_v11 = vld [vmem:[%s6167_s24 + $0x928] ss:$16 sps:$4 sm:$0xff]  }
 0x121   : > { %3655 = vmatprep.subr.bf16.mxu0 %v5583_v12  ;;  %3999 = vmatprep.subr.bf16.mxu1 %v5586_v13  ;;  %v5673_v12 = vld [vmem:[%s6167_s24 + $0x944] ss:$16 sps:$4 sm:$0xff]   ;;  %v5676_v13 = vld [vmem:[%s6167_s24 + $0x94c] ss:$16 sps:$4 sm:$0xff]  }
 0x124   : > { %3656 = vmatpush1.bf16.msra.mxu0 %v5581_v14  ;;  %4000 = vmatpush1.bf16.msra.mxu1 %v5584_v15  ;;  %v5671_v14 = vld [vmem:[%s6167_s24 + $0x940] ss:$16 sps:$4 sm:$0xff]   ;;  %v5674_v15 = vld [vmem:[%s6167_s24 + $0x948] ss:$16 sps:$4 sm:$0xff]  }
 0x125   : > { %3657 = vmatprep.subr.bf16.mxu0 %v5589_v16  ;;  %4001 = vmatprep.subr.bf16.mxu1 %v5592_v17  ;;  %v5679_v16 = vld [vmem:[%s6167_s24 + $0x964] ss:$16 sps:$4 sm:$0xff]   ;;  %v5682_v17 = vld [vmem:[%s6167_s24 + $0x96c] ss:$16 sps:$4 sm:$0xff]  }
 0x128   : > { %3658 = vmatpush1.bf16.msra.mxu0 %v5587_v18  ;;  %4002 = vmatpush1.bf16.msra.mxu1 %v5590_v19  ;;  %v5677_v18 = vld [vmem:[%s6167_s24 + $0x960] ss:$16 sps:$4 sm:$0xff]   ;;  %v5680_v19 = vld [vmem:[%s6167_s24 + $0x968] ss:$16 sps:$4 sm:$0xff]  }
 0x129   : > { %3659 = vmatprep.subr.bf16.mxu0 %v5595_v20  ;;  %4003 = vmatprep.subr.bf16.mxu1 %v5598_v21  ;;  %v5685_v20 = vld [vmem:[%s6167_s24 + $0x984] ss:$16 sps:$4 sm:$0xff]   ;;  %v5688_v21 = vld [vmem:[%s6167_s24 + $0x98c] ss:$16 sps:$4 sm:$0xff]  }
 0x12c   : > { %3660 = vmatpush1.bf16.msra.mxu0 %v5593_v22  ;;  %4004 = vmatpush1.bf16.msra.mxu1 %v5596_v23  ;;  %v5683_v22 = vld [vmem:[%s6167_s24 + $0x980] ss:$16 sps:$4 sm:$0xff]   ;;  %v5686_v23 = vld [vmem:[%s6167_s24 + $0x988] ss:$16 sps:$4 sm:$0xff]  }
 0x12d   : > { %3661 = vmatprep.subr.bf16.mxu0 %v5601_v24  ;;  %4005 = vmatprep.subr.bf16.mxu1 %v5604_v25  ;;  %v5691_v24 = vld [vmem:[%s6167_s24 + $0x9a4] ss:$16 sps:$4 sm:$0xff]   ;;  %v5694_v25 = vld [vmem:[%s6167_s24 + $0x9ac] ss:$16 sps:$4 sm:$0xff]  }
 0x130   : > { %3662 = vmatpush1.bf16.msra.mxu0 %v5599_v26  ;;  %4006 = vmatpush1.bf16.msra.mxu1 %v5602_v27  ;;  %v5689_v26 = vld [vmem:[%s6167_s24 + $0x9a0] ss:$16 sps:$4 sm:$0xff]   ;;  %v5692_v27 = vld [vmem:[%s6167_s24 + $0x9a8] ss:$16 sps:$4 sm:$0xff]  }
 0x131   : > { %3663 = vmatprep.subr.bf16.mxu0 %v5607_v28  ;;  %4007 = vmatprep.subr.bf16.mxu1 %v5610_v29  ;;  %v5697_v28 = vld [vmem:[%s6167_s24 + $0x9c4] ss:$16 sps:$4 sm:$0xff]   ;;  %v5700_v29 = vld [vmem:[%s6167_s24 + $0x9cc] ss:$16 sps:$4 sm:$0xff]  }
 0x134   : > { %3664 = vmatpush1.bf16.msra.mxu0 %v5605_v30  ;;  %4008 = vmatpush1.bf16.msra.mxu1 %v5608_v33  ;;  %v5695_v30 = vld [vmem:[%s6167_s24 + $0x9c0] ss:$16 sps:$4 sm:$0xff]   ;;  %v5698_v33 = vld [vmem:[%s6167_s24 + $0x9c8] ss:$16 sps:$4 sm:$0xff]  }
 0x135   : > { %3676 = vmatprep.subr.bf16.mxu0 %v5613_v34  ;;  %4020 = vmatprep.subr.bf16.mxu1 %v5616_v37  ;;  %v5703_v34 = vld [vmem:[%s6167_s24 + $0x9e4] ss:$16 sps:$4 sm:$0xff]   ;;  %v5706_v37 = vld [vmem:[%s6167_s24 + $0x9ec] ss:$16 sps:$4 sm:$0xff]  }
 0x137   : > { %3666 = vmatmul.mubr.bf16.vlgmr.msra.gmra.mrb[0].mxu0 %v4579_v39  ;;  %4010 = vmatmul.mubr.bf16.vlgmr.msra.gmra.mrb[0].mxu1 %v4579_v39  ;;  %v5701_v39 = vld [vmem:[%s6167_s24 + $0x9e0] ss:$16 sps:$4 sm:$0xff]  }
 0x138   : > { %3677 = vmatpush1.bf16.msra.mxu0 %v5611_v32  ;;  %4021 = vmatpush1.bf16.msra.mxu1 %v5614_v40  ;;  %v5704_v32 = vld [vmem:[%s6167_s24 + $0x9e8] ss:$16 sps:$4 sm:$0xff]   ;;  %v5709_v40 = vld [vmem:[%s6167_s24 + $0xa04] ss:$16 sps:$4 sm:$0xff]  }
 0x139   : > { %3678 = vmatprep.subr.bf16.mxu0 %v5619_v41  ;;  %4022 = vmatprep.subr.bf16.mxu1 %v5622_v42  ;;  %v5712_v41 = vld [vmem:[%s6167_s24 + $0xa0c] ss:$16 sps:$4 sm:$0xff]  }
 0x13a   : > { %3708 = vmatprep.mubr.bf16.mxu0 %v4582_v43  ;;  %4052 = vmatprep.mubr.bf16.mxu1 %v4582_v43  ;;  %v6540_v42 = vld [vmem:[%s6174_s30 + $0x28] sm:$0xff] }
 0x13b   : > { %v6543_v43 = vld [vmem:[%s6174_s30 + $0x68] sm:$0x11] }
 0x13c   : > { %3679 = vmatpush1.bf16.msra.mxu0 %v5617_v35  ;;  %4023 = vmatpush1.bf16.msra.mxu1 %v5620_v36  ;;  %v4581_v35 = vcombine.low %v6466_v38, %v6471_v31  ;;  %v5707_v36 = vld [vmem:[%s6167_s24 + $0xa00] ss:$16 sps:$4 sm:$0xff]   ;;  %v5716_v31 = vld [vmem:[%s6167_s24 + $0xa28] ss:$16 sps:$4 sm:$0xff]  }
 0x13d   : > { %3680 = vmatprep.subr.bf16.mxu0 %v5625_v44  ;;  %4024 = vmatprep.subr.bf16.mxu1 %v5628_v45  ;;  %v5710_v44 = vld [vmem:[%s6167_s24 + $0xa08] ss:$16 sps:$4 sm:$0xff]   ;;  %v5715_v45 = vld [vmem:[%s6167_s24 + $0xa24] ss:$16 sps:$4 sm:$0xff]   ;;  %v5713_v38 = vld [vmem:[%s6167_s24 + $0xa20] ss:$16 sps:$4 sm:$0xff]  }
 0x140   : > { %3681 = vmatpush1.bf16.msra.mxu0 %v5623_v46  ;;  %4025 = vmatpush1.bf16.msra.mxu1 %v5626_v47  ;;  %v5718_v46 = vld [vmem:[%s6167_s24 + $0xa2c] ss:$16 sps:$4 sm:$0xff]   ;;  %v4584_v47 = vcombine.high %v6540_v42, %v6543_v43 }
 0x141   : > { %3682 = vmatprep.subr.bf16.mxu0 %v5631_v48  ;;  %4026 = vmatprep.subr.bf16.mxu1 %v5634_v49  ;;  %v5721_v48 = vld [vmem:[%s6167_s24 + $0xa44] ss:$16 sps:$4 sm:$0xff]   ;;  %v5724_v49 = vld [vmem:[%s6167_s24 + $0xa4c] ss:$16 sps:$4 sm:$0xff]  }
 0x144   : > { %3683 = vmatpush1.bf16.msra.mxu0 %v5629_v50  ;;  %4027 = vmatpush1.bf16.msra.mxu1 %v5632_v51  ;;  %v5719_v50 = vld [vmem:[%s6167_s24 + $0xa40] ss:$16 sps:$4 sm:$0xff]   ;;  %v5722_v51 = vld [vmem:[%s6167_s24 + $0xa48] ss:$16 sps:$4 sm:$0xff]  }
 0x145   : > { %3684 = vmatprep.subr.bf16.mxu0 %v5637_v52  ;;  %4028 = vmatprep.subr.bf16.mxu1 %v5640_v53  ;;  %v5727_v52 = vld [vmem:[%s6167_s24 + $0xa64] ss:$16 sps:$4 sm:$0xff]   ;;  %v5730_v53 = vld [vmem:[%s6167_s24 + $0xa6c] ss:$16 sps:$4 sm:$0xff]  }
 0x148   : > { %3685 = vmatpush1.bf16.msra.mxu0 %v5635_v54  ;;  %4029 = vmatpush1.bf16.msra.mxu1 %v5638_v55  ;;  %v5725_v54 = vld [vmem:[%s6167_s24 + $0xa60] ss:$16 sps:$4 sm:$0xff]   ;;  %v5728_v55 = vld [vmem:[%s6167_s24 + $0xa68] ss:$16 sps:$4 sm:$0xff]  }
 0x149   : > { %3686 = vmatprep.subr.bf16.mxu0 %v5643_v56  ;;  %4030 = vmatprep.subr.bf16.mxu1 %v5646_v57  ;;  %v5733_v56 = vld [vmem:[%s6167_s24 + $0xa84] ss:$16 sps:$4 sm:$0xff]   ;;  %v5736_v57 = vld [vmem:[%s6167_s24 + $0xa8c] ss:$16 sps:$4 sm:$0xff]  }
 0x14c   : > { %3687 = vmatpush1.bf16.msra.mxu0 %v5641_v58  ;;  %4031 = vmatpush1.bf16.msra.mxu1 %v5644_v59  ;;  %v5731_v58 = vld [vmem:[%s6167_s24 + $0xa80] ss:$16 sps:$4 sm:$0xff]   ;;  %v5734_v59 = vld [vmem:[%s6167_s24 + $0xa88] ss:$16 sps:$4 sm:$0xff]  }
 0x14d   : > { %3688 = vmatprep.subr.bf16.mxu0 %v5649_v60  ;;  %4032 = vmatprep.subr.bf16.mxu1 %v5652_v61  ;;  %v5739_v60 = vld [vmem:[%s6167_s24 + $0xaa4] ss:$16 sps:$4 sm:$0xff]   ;;  %v5742_v61 = vld [vmem:[%s6167_s24 + $0xaac] ss:$16 sps:$4 sm:$0xff]  }
 0x150   : > { %3689 = vmatpush1.bf16.msra.mxu0 %v5647_v62  ;;  %4033 = vmatpush1.bf16.msra.mxu1 %v5650_v63  ;;  %v5737_v62 = vld [vmem:[%s6167_s24 + $0xaa0] ss:$16 sps:$4 sm:$0xff]   ;;  %v5740_v63 = vld [vmem:[%s6167_s24 + $0xaa8] ss:$16 sps:$4 sm:$0xff]  }
 0x151   : > { %3690 = vmatprep.subr.bf16.mxu0 %v5655_v0  ;;  %4034 = vmatprep.subr.bf16.mxu1 %v5658_v1  ;;  %v5745_v0 = vld [vmem:[%s6167_s24 + $0xac4] ss:$16 sps:$4 sm:$0xff]   ;;  %v5748_v1 = vld [vmem:[%s6167_s24 + $0xacc] ss:$16 sps:$4 sm:$0xff]  }
 0x154   : > { %3691 = vmatpush1.bf16.msra.mxu0 %v5653_v2  ;;  %4035 = vmatpush1.bf16.msra.mxu1 %v5656_v3  ;;  %v5743_v2 = vld [vmem:[%s6167_s24 + $0xac0] ss:$16 sps:$4 sm:$0xff]   ;;  %v5746_v3 = vld [vmem:[%s6167_s24 + $0xac8] ss:$16 sps:$4 sm:$0xff]  }
 0x155   : > { %3692 = vmatprep.subr.bf16.mxu0 %v5661_v4  ;;  %4036 = vmatprep.subr.bf16.mxu1 %v5664_v5  ;;  %v5751_v4 = vld [vmem:[%s6167_s24 + $0xae4] ss:$16 sps:$4 sm:$0xff]   ;;  %v5754_v5 = vld [vmem:[%s6167_s24 + $0xaec] ss:$16 sps:$4 sm:$0xff]  }
 0x158   : > { %3693 = vmatpush1.bf16.msra.mxu0 %v5659_v6  ;;  %4037 = vmatpush1.bf16.msra.mxu1 %v5662_v7  ;;  %v5749_v6 = vld [vmem:[%s6167_s24 + $0xae0] ss:$16 sps:$4 sm:$0xff]   ;;  %v5752_v7 = vld [vmem:[%s6167_s24 + $0xae8] ss:$16 sps:$4 sm:$0xff]  }
 0x159   : > { %3694 = vmatprep.subr.bf16.mxu0 %v5667_v8  ;;  %4038 = vmatprep.subr.bf16.mxu1 %v5670_v9  ;;  %v5757_v8 = vld [vmem:[%s6167_s24 + $0xb04] ss:$16 sps:$4 sm:$0xff]   ;;  %v5760_v9 = vld [vmem:[%s6167_s24 + $0xb0c] ss:$16 sps:$4 sm:$0xff]  }
 0x15c   : > { %3695 = vmatpush1.bf16.msra.mxu0 %v5665_v10  ;;  %4039 = vmatpush1.bf16.msra.mxu1 %v5668_v11  ;;  %v5755_v10 = vld [vmem:[%s6167_s24 + $0xb00] ss:$16 sps:$4 sm:$0xff]   ;;  %v5758_v11 = vld [vmem:[%s6167_s24 + $0xb08] ss:$16 sps:$4 sm:$0xff]  }
 0x15d   : > { %3696 = vmatprep.subr.bf16.mxu0 %v5673_v12  ;;  %4040 = vmatprep.subr.bf16.mxu1 %v5676_v13  ;;  %v5763_v12 = vld [vmem:[%s6167_s24 + $0xb24] ss:$16 sps:$4 sm:$0xff]   ;;  %v5766_v13 = vld [vmem:[%s6167_s24 + $0xb2c] ss:$16 sps:$4 sm:$0xff]  }
 0x160   : > { %3697 = vmatpush1.bf16.msra.mxu0 %v5671_v14  ;;  %4041 = vmatpush1.bf16.msra.mxu1 %v5674_v15  ;;  %v5761_v14 = vld [vmem:[%s6167_s24 + $0xb20] ss:$16 sps:$4 sm:$0xff]   ;;  %v5764_v15 = vld [vmem:[%s6167_s24 + $0xb28] ss:$16 sps:$4 sm:$0xff]  }
 0x161   : > { %3698 = vmatprep.subr.bf16.mxu0 %v5679_v16  ;;  %4042 = vmatprep.subr.bf16.mxu1 %v5682_v17  ;;  %v5769_v16 = vld [vmem:[%s6167_s24 + $0xb44] ss:$16 sps:$4 sm:$0xff]   ;;  %v5772_v17 = vld [vmem:[%s6167_s24 + $0xb4c] ss:$16 sps:$4 sm:$0xff]  }
 0x164   : > { %3699 = vmatpush1.bf16.msra.mxu0 %v5677_v18  ;;  %4043 = vmatpush1.bf16.msra.mxu1 %v5680_v19  ;;  %v5767_v18 = vld [vmem:[%s6167_s24 + $0xb40] ss:$16 sps:$4 sm:$0xff]   ;;  %v5770_v19 = vld [vmem:[%s6167_s24 + $0xb48] ss:$16 sps:$4 sm:$0xff]  }
 0x165   : > { %3700 = vmatprep.subr.bf16.mxu0 %v5685_v20  ;;  %4044 = vmatprep.subr.bf16.mxu1 %v5688_v21  ;;  %v5775_v20 = vld [vmem:[%s6167_s24 + $0xb64] ss:$16 sps:$4 sm:$0xff]   ;;  %v5778_v21 = vld [vmem:[%s6167_s24 + $0xb6c] ss:$16 sps:$4 sm:$0xff]  }
 0x168   : > { %3701 = vmatpush1.bf16.msra.mxu0 %v5683_v22  ;;  %4045 = vmatpush1.bf16.msra.mxu1 %v5686_v23  ;;  %v5773_v22 = vld [vmem:[%s6167_s24 + $0xb60] ss:$16 sps:$4 sm:$0xff]   ;;  %v5776_v23 = vld [vmem:[%s6167_s24 + $0xb68] ss:$16 sps:$4 sm:$0xff]  }
 0x169   : > { %3702 = vmatprep.subr.bf16.mxu0 %v5691_v24  ;;  %4046 = vmatprep.subr.bf16.mxu1 %v5694_v25  ;;  %v5781_v24 = vld [vmem:[%s6167_s24 + $0xb84] ss:$16 sps:$4 sm:$0xff]   ;;  %v5784_v25 = vld [vmem:[%s6167_s24 + $0xb8c] ss:$16 sps:$4 sm:$0xff]  }
 0x16c   : > { %3703 = vmatpush1.bf16.msra.mxu0 %v5689_v26  ;;  %4047 = vmatpush1.bf16.msra.mxu1 %v5692_v27  ;;  %v5779_v26 = vld [vmem:[%s6167_s24 + $0xb80] ss:$16 sps:$4 sm:$0xff]   ;;  %v5782_v27 = vld [vmem:[%s6167_s24 + $0xb88] ss:$16 sps:$4 sm:$0xff]  }
 0x16d   : > { %3704 = vmatprep.subr.bf16.mxu0 %v5697_v28  ;;  %4048 = vmatprep.subr.bf16.mxu1 %v5700_v29  ;;  %v5787_v28 = vld [vmem:[%s6167_s24 + $0xba4] ss:$16 sps:$4 sm:$0xff]   ;;  %v5790_v29 = vld [vmem:[%s6167_s24 + $0xbac] ss:$16 sps:$4 sm:$0xff]  }
 0x170   : > { %3705 = vmatpush1.bf16.msra.mxu0 %v5695_v30  ;;  %4049 = vmatpush1.bf16.msra.mxu1 %v5698_v33  ;;  %v5785_v30 = vld [vmem:[%s6167_s24 + $0xba0] ss:$16 sps:$4 sm:$0xff]   ;;  %v5788_v33 = vld [vmem:[%s6167_s24 + $0xba8] ss:$16 sps:$4 sm:$0xff]  }
 0x171   : > { %3706 = vmatprep.subr.bf16.mxu0 %v5703_v34  ;;  %4050 = vmatprep.subr.bf16.mxu1 %v5706_v37  ;;  %v5793_v34 = vld [vmem:[%s6167_s24 + $0xbc4] ss:$16 sps:$4 sm:$0xff]   ;;  %v5796_v37 = vld [vmem:[%s6167_s24 + $0xbcc] ss:$16 sps:$4 sm:$0xff]  }
 0x174   : > { %3707 = vmatpush1.bf16.msra.mxu0 %v5701_v39  ;;  %4051 = vmatpush1.bf16.msra.mxu1 %v5704_v32  ;;  %v5791_v39 = vld [vmem:[%s6167_s24 + $0xbc0] ss:$16 sps:$4 sm:$0xff]   ;;  %v5794_v32 = vld [vmem:[%s6167_s24 + $0xbc8] ss:$16 sps:$4 sm:$0xff]  }
 0x175   : > { %3719 = vmatprep.subr.bf16.mxu0 %v5709_v40  ;;  %4063 = vmatprep.subr.bf16.mxu1 %v5712_v41  ;;  %v5799_v40 = vld [vmem:[%s6167_s24 + $0xbe4] ss:$16 sps:$4 sm:$0xff]   ;;  %v5802_v41 = vld [vmem:[%s6167_s24 + $0xbec] ss:$16 sps:$4 sm:$0xff]  }
 0x177   : > { %3709 = vmatmul.mubr.bf16.vlgmr.msra.gmra.mrb[0].mxu0 %v4581_v35  ;;  %4053 = vmatmul.mubr.bf16.vlgmr.msra.gmra.mrb[0].mxu1 %v4581_v35  ;;  %v5797_v35 = vld [vmem:[%s6167_s24 + $0xbe0] ss:$16 sps:$4 sm:$0xff]  }
 0x178   : > { %3720 = vmatpush1.bf16.msra.mxu0 %v5707_v36  ;;  %4064 = vmatpush1.bf16.msra.mxu1 %v5710_v44  ;;  %v5800_v36 = vld [vmem:[%s6167_s24 + $0xbe8] ss:$16 sps:$4 sm:$0xff]   ;;  %v5805_v44 = vld [vmem:[%s6167_s24 + $0xc04] ss:$16 sps:$4 sm:$0xff]  }
 0x179   : > { %3721 = vmatprep.subr.bf16.mxu0 %v5715_v45  ;;  %4065 = vmatprep.subr.bf16.mxu1 %v5718_v46  ;;  %v5808_v45 = vld [vmem:[%s6167_s24 + $0xc0c] ss:$16 sps:$4 sm:$0xff]   ;;  %v4583_v46 = vcombine.low %v6540_v42, %v6543_v43  ;;  %v5809_v43 = vld [vmem:[%s6167_s24 + $0xc20] ss:$16 sps:$4 sm:$0xff]  }
 0x17a   : > { %3751 = vmatprep.mubr.bf16.mxu0 %v4584_v47  ;;  %4095 = vmatprep.mubr.bf16.mxu1 %v4584_v47  ;;  %v6616_v47 = vld [vmem:[%s6174_s30 + $0x30] sm:$0xff] }
 0x17c   : > { %3722 = vmatpush1.bf16.msra.mxu0 %v5713_v38  ;;  %4066 = vmatpush1.bf16.msra.mxu1 %v5716_v31  ;;  %v6619_v38 = vld [vmem:[%s6174_s30 + $0x70] sm:$0x11] }
 0x17d   : > { %3723 = vmatprep.subr.bf16.mxu0 %v5721_v48  ;;  %4067 = vmatprep.subr.bf16.mxu1 %v5724_v49  ;;  %v5803_v31 = vld [vmem:[%s6167_s24 + $0xc00] ss:$16 sps:$4 sm:$0xff]   ;;  %v5806_v48 = vld [vmem:[%s6167_s24 + $0xc08] ss:$16 sps:$4 sm:$0xff]   ;;  %v5811_v49 = vld [vmem:[%s6167_s24 + $0xc24] ss:$16 sps:$4 sm:$0xff]   ;;  %v4586_v42 = vcombine.high %v6616_v47, %v6619_v38 }
 0x180   : > { %3724 = vmatpush1.bf16.msra.mxu0 %v5719_v50  ;;  %4068 = vmatpush1.bf16.msra.mxu1 %v5722_v51  ;;  %v5814_v50 = vld [vmem:[%s6167_s24 + $0xc2c] ss:$16 sps:$4 sm:$0xff]   ;;  %v5812_v51 = vld [vmem:[%s6167_s24 + $0xc28] ss:$16 sps:$4 sm:$0xff]  }
 0x181   : > { %3725 = vmatprep.subr.bf16.mxu0 %v5727_v52  ;;  %4069 = vmatprep.subr.bf16.mxu1 %v5730_v53  ;;  %v5817_v52 = vld [vmem:[%s6167_s24 + $0xc44] ss:$16 sps:$4 sm:$0xff]   ;;  %v5820_v53 = vld [vmem:[%s6167_s24 + $0xc4c] ss:$16 sps:$4 sm:$0xff]  }
 0x184   : > { %3726 = vmatpush1.bf16.msra.mxu0 %v5725_v54  ;;  %4070 = vmatpush1.bf16.msra.mxu1 %v5728_v55  ;;  %v5815_v54 = vld [vmem:[%s6167_s24 + $0xc40] ss:$16 sps:$4 sm:$0xff]   ;;  %v5818_v55 = vld [vmem:[%s6167_s24 + $0xc48] ss:$16 sps:$4 sm:$0xff]  }
 0x185   : > { %3727 = vmatprep.subr.bf16.mxu0 %v5733_v56  ;;  %4071 = vmatprep.subr.bf16.mxu1 %v5736_v57  ;;  %v5823_v56 = vld [vmem:[%s6167_s24 + $0xc64] ss:$16 sps:$4 sm:$0xff]   ;;  %v5826_v57 = vld [vmem:[%s6167_s24 + $0xc6c] ss:$16 sps:$4 sm:$0xff]  }
 0x188   : > { %3728 = vmatpush1.bf16.msra.mxu0 %v5731_v58  ;;  %4072 = vmatpush1.bf16.msra.mxu1 %v5734_v59  ;;  %v5821_v58 = vld [vmem:[%s6167_s24 + $0xc60] ss:$16 sps:$4 sm:$0xff]   ;;  %v5824_v59 = vld [vmem:[%s6167_s24 + $0xc68] ss:$16 sps:$4 sm:$0xff]  }
 0x189   : > { %3729 = vmatprep.subr.bf16.mxu0 %v5739_v60  ;;  %4073 = vmatprep.subr.bf16.mxu1 %v5742_v61  ;;  %v5829_v60 = vld [vmem:[%s6167_s24 + $0xc84] ss:$16 sps:$4 sm:$0xff]   ;;  %v5832_v61 = vld [vmem:[%s6167_s24 + $0xc8c] ss:$16 sps:$4 sm:$0xff]  }
 0x18c   : > { %3730 = vmatpush1.bf16.msra.mxu0 %v5737_v62  ;;  %4074 = vmatpush1.bf16.msra.mxu1 %v5740_v63  ;;  %v5827_v62 = vld [vmem:[%s6167_s24 + $0xc80] ss:$16 sps:$4 sm:$0xff]   ;;  %v5830_v63 = vld [vmem:[%s6167_s24 + $0xc88] ss:$16 sps:$4 sm:$0xff]  }
 0x18d   : > { %3731 = vmatprep.subr.bf16.mxu0 %v5745_v0  ;;  %4075 = vmatprep.subr.bf16.mxu1 %v5748_v1  ;;  %v5835_v0 = vld [vmem:[%s6167_s24 + $0xca4] ss:$16 sps:$4 sm:$0xff]   ;;  %v5838_v1 = vld [vmem:[%s6167_s24 + $0xcac] ss:$16 sps:$4 sm:$0xff]  }
 0x190   : > { %3732 = vmatpush1.bf16.msra.mxu0 %v5743_v2  ;;  %4076 = vmatpush1.bf16.msra.mxu1 %v5746_v3  ;;  %v5833_v2 = vld [vmem:[%s6167_s24 + $0xca0] ss:$16 sps:$4 sm:$0xff]   ;;  %v5836_v3 = vld [vmem:[%s6167_s24 + $0xca8] ss:$16 sps:$4 sm:$0xff]  }
 0x191   : > { %3733 = vmatprep.subr.bf16.mxu0 %v5751_v4  ;;  %4077 = vmatprep.subr.bf16.mxu1 %v5754_v5  ;;  %v5841_v4 = vld [vmem:[%s6167_s24 + $0xcc4] ss:$16 sps:$4 sm:$0xff]   ;;  %v5844_v5 = vld [vmem:[%s6167_s24 + $0xccc] ss:$16 sps:$4 sm:$0xff]  }
 0x194   : > { %3734 = vmatpush1.bf16.msra.mxu0 %v5749_v6  ;;  %4078 = vmatpush1.bf16.msra.mxu1 %v5752_v7  ;;  %v5839_v6 = vld [vmem:[%s6167_s24 + $0xcc0] ss:$16 sps:$4 sm:$0xff]   ;;  %v5842_v7 = vld [vmem:[%s6167_s24 + $0xcc8] ss:$16 sps:$4 sm:$0xff]  }
 0x195   : > { %3735 = vmatprep.subr.bf16.mxu0 %v5757_v8  ;;  %4079 = vmatprep.subr.bf16.mxu1 %v5760_v9  ;;  %v5847_v8 = vld [vmem:[%s6167_s24 + $0xce4] ss:$16 sps:$4 sm:$0xff]   ;;  %v5850_v9 = vld [vmem:[%s6167_s24 + $0xcec] ss:$16 sps:$4 sm:$0xff]  }
 0x198   : > { %3736 = vmatpush1.bf16.msra.mxu0 %v5755_v10  ;;  %4080 = vmatpush1.bf16.msra.mxu1 %v5758_v11  ;;  %v5845_v10 = vld [vmem:[%s6167_s24 + $0xce0] ss:$16 sps:$4 sm:$0xff]   ;;  %v5848_v11 = vld [vmem:[%s6167_s24 + $0xce8] ss:$16 sps:$4 sm:$0xff]  }
 0x199   : > { %3737 = vmatprep.subr.bf16.mxu0 %v5763_v12  ;;  %4081 = vmatprep.subr.bf16.mxu1 %v5766_v13  ;;  %v5853_v12 = vld [vmem:[%s6167_s24 + $0xd04] ss:$16 sps:$4 sm:$0xff]   ;;  %v5856_v13 = vld [vmem:[%s6167_s24 + $0xd0c] ss:$16 sps:$4 sm:$0xff]  }
 0x19c   : > { %3738 = vmatpush1.bf16.msra.mxu0 %v5761_v14  ;;  %4082 = vmatpush1.bf16.msra.mxu1 %v5764_v15  ;;  %v5851_v14 = vld [vmem:[%s6167_s24 + $0xd00] ss:$16 sps:$4 sm:$0xff]   ;;  %v5854_v15 = vld [vmem:[%s6167_s24 + $0xd08] ss:$16 sps:$4 sm:$0xff]  }
 0x19d   : > { %3739 = vmatprep.subr.bf16.mxu0 %v5769_v16  ;;  %4083 = vmatprep.subr.bf16.mxu1 %v5772_v17  ;;  %v5859_v16 = vld [vmem:[%s6167_s24 + $0xd24] ss:$16 sps:$4 sm:$0xff]   ;;  %v5862_v17 = vld [vmem:[%s6167_s24 + $0xd2c] ss:$16 sps:$4 sm:$0xff]  }
 0x1a0   : > { %3740 = vmatpush1.bf16.msra.mxu0 %v5767_v18  ;;  %4084 = vmatpush1.bf16.msra.mxu1 %v5770_v19  ;;  %v5857_v18 = vld [vmem:[%s6167_s24 + $0xd20] ss:$16 sps:$4 sm:$0xff]   ;;  %v5860_v19 = vld [vmem:[%s6167_s24 + $0xd28] ss:$16 sps:$4 sm:$0xff]  }
 0x1a1   : > { %3741 = vmatprep.subr.bf16.mxu0 %v5775_v20  ;;  %4085 = vmatprep.subr.bf16.mxu1 %v5778_v21  ;;  %v5865_v20 = vld [vmem:[%s6167_s24 + $0xd44] ss:$16 sps:$4 sm:$0xff]   ;;  %v5868_v21 = vld [vmem:[%s6167_s24 + $0xd4c] ss:$16 sps:$4 sm:$0xff]  }
 0x1a4   : > { %3742 = vmatpush1.bf16.msra.mxu0 %v5773_v22  ;;  %4086 = vmatpush1.bf16.msra.mxu1 %v5776_v23  ;;  %v5863_v22 = vld [vmem:[%s6167_s24 + $0xd40] ss:$16 sps:$4 sm:$0xff]   ;;  %v5866_v23 = vld [vmem:[%s6167_s24 + $0xd48] ss:$16 sps:$4 sm:$0xff]  }
 0x1a5   : > { %3743 = vmatprep.subr.bf16.mxu0 %v5781_v24  ;;  %4087 = vmatprep.subr.bf16.mxu1 %v5784_v25  ;;  %v5871_v24 = vld [vmem:[%s6167_s24 + $0xd64] ss:$16 sps:$4 sm:$0xff]   ;;  %v5874_v25 = vld [vmem:[%s6167_s24 + $0xd6c] ss:$16 sps:$4 sm:$0xff]  }
 0x1a8   : > { %3744 = vmatpush1.bf16.msra.mxu0 %v5779_v26  ;;  %4088 = vmatpush1.bf16.msra.mxu1 %v5782_v27  ;;  %v5869_v26 = vld [vmem:[%s6167_s24 + $0xd60] ss:$16 sps:$4 sm:$0xff]   ;;  %v5872_v27 = vld [vmem:[%s6167_s24 + $0xd68] ss:$16 sps:$4 sm:$0xff]  }
 0x1a9   : > { %3745 = vmatprep.subr.bf16.mxu0 %v5787_v28  ;;  %4089 = vmatprep.subr.bf16.mxu1 %v5790_v29  ;;  %v5877_v28 = vld [vmem:[%s6167_s24 + $0xd84] ss:$16 sps:$4 sm:$0xff]   ;;  %v5880_v29 = vld [vmem:[%s6167_s24 + $0xd8c] ss:$16 sps:$4 sm:$0xff]  }
 0x1ac   : > { %3746 = vmatpush1.bf16.msra.mxu0 %v5785_v30  ;;  %4090 = vmatpush1.bf16.msra.mxu1 %v5788_v33  ;;  %v5875_v30 = vld [vmem:[%s6167_s24 + $0xd80] ss:$16 sps:$4 sm:$0xff]   ;;  %v5878_v33 = vld [vmem:[%s6167_s24 + $0xd88] ss:$16 sps:$4 sm:$0xff]  }
 0x1ad   : > { %3747 = vmatprep.subr.bf16.mxu0 %v5793_v34  ;;  %4091 = vmatprep.subr.bf16.mxu1 %v5796_v37  ;;  %v5883_v34 = vld [vmem:[%s6167_s24 + $0xda4] ss:$16 sps:$4 sm:$0xff]   ;;  %v5886_v37 = vld [vmem:[%s6167_s24 + $0xdac] ss:$16 sps:$4 sm:$0xff]  }
 0x1b0   : > { %3748 = vmatpush1.bf16.msra.mxu0 %v5791_v39  ;;  %4092 = vmatpush1.bf16.msra.mxu1 %v5794_v32  ;;  %v5881_v39 = vld [vmem:[%s6167_s24 + $0xda0] ss:$16 sps:$4 sm:$0xff]   ;;  %v5884_v32 = vld [vmem:[%s6167_s24 + $0xda8] ss:$16 sps:$4 sm:$0xff]  }
 0x1b1   : > { %3749 = vmatprep.subr.bf16.mxu0 %v5799_v40  ;;  %4093 = vmatprep.subr.bf16.mxu1 %v5802_v41  ;;  %v5889_v40 = vld [vmem:[%s6167_s24 + $0xdc4] ss:$16 sps:$4 sm:$0xff]   ;;  %v5892_v41 = vld [vmem:[%s6167_s24 + $0xdcc] ss:$16 sps:$4 sm:$0xff]  }
 0x1b4   : > { %3750 = vmatpush1.bf16.msra.mxu0 %v5797_v35  ;;  %4094 = vmatpush1.bf16.msra.mxu1 %v5800_v36  ;;  %v5887_v35 = vld [vmem:[%s6167_s24 + $0xdc0] ss:$16 sps:$4 sm:$0xff]   ;;  %v5890_v36 = vld [vmem:[%s6167_s24 + $0xdc8] ss:$16 sps:$4 sm:$0xff]  }
 0x1b5   : > { %3762 = vmatprep.subr.bf16.mxu0 %v5805_v44  ;;  %4106 = vmatprep.subr.bf16.mxu1 %v5808_v45  ;;  %v5895_v44 = vld [vmem:[%s6167_s24 + $0xde4] ss:$16 sps:$4 sm:$0xff]   ;;  %v5898_v45 = vld [vmem:[%s6167_s24 + $0xdec] ss:$16 sps:$4 sm:$0xff]  }
 0x1b7   : > { %3752 = vmatmul.mubr.bf16.vlgmr.msra.gmra.mrb[0].mxu0 %v4583_v46  ;;  %4096 = vmatmul.mubr.bf16.vlgmr.msra.gmra.mrb[0].mxu1 %v4583_v46  ;;  %v5893_v46 = vld [vmem:[%s6167_s24 + $0xde0] ss:$16 sps:$4 sm:$0xff]  }
 0x1b8   : > { %3763 = vmatpush1.bf16.msra.mxu0 %v5803_v31  ;;  %4107 = vmatpush1.bf16.msra.mxu1 %v5806_v48  ;;  %v5896_v31 = vld [vmem:[%s6167_s24 + $0xde8] ss:$16 sps:$4 sm:$0xff]   ;;  %v5901_v48 = vld [vmem:[%s6167_s24 + $0xe04] ss:$16 sps:$4 sm:$0xff]  }
 0x1b9   : > { %3764 = vmatprep.subr.bf16.mxu0 %v5811_v49  ;;  %4108 = vmatprep.subr.bf16.mxu1 %v5814_v50  ;;  %v5904_v49 = vld [vmem:[%s6167_s24 + $0xe0c] ss:$16 sps:$4 sm:$0xff]   ;;  %v4585_v50 = vcombine.low %v6616_v47, %v6619_v38  ;;  %v5905_v38 = vld [vmem:[%s6167_s24 + $0xe20] ss:$16 sps:$4 sm:$0xff]  }
 0x1ba   : > { %3794 = vmatprep.mubr.bf16.mxu0 %v4586_v42  ;;  %4138 = vmatprep.mubr.bf16.mxu1 %v4586_v42  ;;  %v6690_v42 = vld [vmem:[%s6174_s30 + $0x38] sm:$0xff] }
 0x1bc   : > { %3765 = vmatpush1.bf16.msra.mxu0 %v5809_v43  ;;  %4109 = vmatpush1.bf16.msra.mxu1 %v5812_v51  ;;  %v6693_v43 = vld [vmem:[%s6174_s30 + $0x78] sm:$0x11]  ;;  %v5899_v51 = vld [vmem:[%s6167_s24 + $0xe00] ss:$16 sps:$4 sm:$0xff]  }
 0x1bd   : > { %3766 = vmatprep.subr.bf16.mxu0 %v5817_v52  ;;  %4110 = vmatprep.subr.bf16.mxu1 %v5820_v53  ;;  %v5902_v52 = vld [vmem:[%s6167_s24 + $0xe08] ss:$16 sps:$4 sm:$0xff]   ;;  %v5907_v53 = vld [vmem:[%s6167_s24 + $0xe24] ss:$16 sps:$4 sm:$0xff]   ;;  %v4588_v47 = vcombine.high %v6690_v42, %v6693_v43 }
 0x1c0   : > { %3767 = vmatpush1.bf16.msra.mxu0 %v5815_v54  ;;  %4111 = vmatpush1.bf16.msra.mxu1 %v5818_v55  ;;  %v5910_v54 = vld [vmem:[%s6167_s24 + $0xe2c] ss:$16 sps:$4 sm:$0xff]   ;;  %v5908_v55 = vld [vmem:[%s6167_s24 + $0xe28] ss:$16 sps:$4 sm:$0xff]  }
 0x1c1   : > { %3768 = vmatprep.subr.bf16.mxu0 %v5823_v56  ;;  %4112 = vmatprep.subr.bf16.mxu1 %v5826_v57  ;;  %v5913_v56 = vld [vmem:[%s6167_s24 + $0xe44] ss:$16 sps:$4 sm:$0xff]   ;;  %v5916_v57 = vld [vmem:[%s6167_s24 + $0xe4c] ss:$16 sps:$4 sm:$0xff]  }
 0x1c4   : > { %3769 = vmatpush1.bf16.msra.mxu0 %v5821_v58  ;;  %4113 = vmatpush1.bf16.msra.mxu1 %v5824_v59  ;;  %v5911_v58 = vld [vmem:[%s6167_s24 + $0xe40] ss:$16 sps:$4 sm:$0xff]   ;;  %v5914_v59 = vld [vmem:[%s6167_s24 + $0xe48] ss:$16 sps:$4 sm:$0xff]  }
 0x1c5   : > { %3770 = vmatprep.subr.bf16.mxu0 %v5829_v60  ;;  %4114 = vmatprep.subr.bf16.mxu1 %v5832_v61  ;;  %v5919_v60 = vld [vmem:[%s6167_s24 + $0xe64] ss:$16 sps:$4 sm:$0xff]   ;;  %v5922_v61 = vld [vmem:[%s6167_s24 + $0xe6c] ss:$16 sps:$4 sm:$0xff]  }
 0x1c8   : > { %3771 = vmatpush1.bf16.msra.mxu0 %v5827_v62  ;;  %4115 = vmatpush1.bf16.msra.mxu1 %v5830_v63  ;;  %v5917_v62 = vld [vmem:[%s6167_s24 + $0xe60] ss:$16 sps:$4 sm:$0xff]   ;;  %v5920_v63 = vld [vmem:[%s6167_s24 + $0xe68] ss:$16 sps:$4 sm:$0xff]  }
 0x1c9   : > { %3772 = vmatprep.subr.bf16.mxu0 %v5835_v0  ;;  %4116 = vmatprep.subr.bf16.mxu1 %v5838_v1  ;;  %v5925_v0 = vld [vmem:[%s6167_s24 + $0xe84] ss:$16 sps:$4 sm:$0xff]   ;;  %v5928_v1 = vld [vmem:[%s6167_s24 + $0xe8c] ss:$16 sps:$4 sm:$0xff]  }
 0x1cc   : > { %3773 = vmatpush1.bf16.msra.mxu0 %v5833_v2  ;;  %4117 = vmatpush1.bf16.msra.mxu1 %v5836_v3  ;;  %v5923_v2 = vld [vmem:[%s6167_s24 + $0xe80] ss:$16 sps:$4 sm:$0xff]   ;;  %v5926_v3 = vld [vmem:[%s6167_s24 + $0xe88] ss:$16 sps:$4 sm:$0xff]  }
 0x1cd   : > { %3774 = vmatprep.subr.bf16.mxu0 %v5841_v4  ;;  %4118 = vmatprep.subr.bf16.mxu1 %v5844_v5  ;;  %v5931_v4 = vld [vmem:[%s6167_s24 + $0xea4] ss:$16 sps:$4 sm:$0xff]   ;;  %v5934_v5 = vld [vmem:[%s6167_s24 + $0xeac] ss:$16 sps:$4 sm:$0xff]  }
 0x1d0   : > { %3775 = vmatpush1.bf16.msra.mxu0 %v5839_v6  ;;  %4119 = vmatpush1.bf16.msra.mxu1 %v5842_v7  ;;  %v5929_v6 = vld [vmem:[%s6167_s24 + $0xea0] ss:$16 sps:$4 sm:$0xff]   ;;  %v5932_v7 = vld [vmem:[%s6167_s24 + $0xea8] ss:$16 sps:$4 sm:$0xff]  }
 0x1d1   : > { %3776 = vmatprep.subr.bf16.mxu0 %v5847_v8  ;;  %4120 = vmatprep.subr.bf16.mxu1 %v5850_v9  ;;  %v5937_v8 = vld [vmem:[%s6167_s24 + $0xec4] ss:$16 sps:$4 sm:$0xff]   ;;  %v5940_v9 = vld [vmem:[%s6167_s24 + $0xecc] ss:$16 sps:$4 sm:$0xff]  }
 0x1d4   : > { %3777 = vmatpush1.bf16.msra.mxu0 %v5845_v10  ;;  %4121 = vmatpush1.bf16.msra.mxu1 %v5848_v11  ;;  %v5935_v10 = vld [vmem:[%s6167_s24 + $0xec0] ss:$16 sps:$4 sm:$0xff]   ;;  %v5938_v11 = vld [vmem:[%s6167_s24 + $0xec8] ss:$16 sps:$4 sm:$0xff]  }
 0x1d5   : > { %3778 = vmatprep.subr.bf16.mxu0 %v5853_v12  ;;  %4122 = vmatprep.subr.bf16.mxu1 %v5856_v13  ;;  %v5943_v12 = vld [vmem:[%s6167_s24 + $0xee4] ss:$16 sps:$4 sm:$0xff]   ;;  %v5946_v13 = vld [vmem:[%s6167_s24 + $0xeec] ss:$16 sps:$4 sm:$0xff]  }
 0x1d8   : > { %3779 = vmatpush1.bf16.msra.mxu0 %v5851_v14  ;;  %4123 = vmatpush1.bf16.msra.mxu1 %v5854_v15  ;;  %v5941_v14 = vld [vmem:[%s6167_s24 + $0xee0] ss:$16 sps:$4 sm:$0xff]   ;;  %v5944_v15 = vld [vmem:[%s6167_s24 + $0xee8] ss:$16 sps:$4 sm:$0xff]  }
 0x1d9   : > { %3780 = vmatprep.subr.bf16.mxu0 %v5859_v16  ;;  %4124 = vmatprep.subr.bf16.mxu1 %v5862_v17  ;;  %v5949_v16 = vld [vmem:[%s6167_s24 + $0xf04] ss:$16 sps:$4 sm:$0xff]   ;;  %v5952_v17 = vld [vmem:[%s6167_s24 + $0xf0c] ss:$16 sps:$4 sm:$0xff]  }
 0x1dc   : > { %3781 = vmatpush1.bf16.msra.mxu0 %v5857_v18  ;;  %4125 = vmatpush1.bf16.msra.mxu1 %v5860_v19  ;;  %v5947_v18 = vld [vmem:[%s6167_s24 + $0xf00] ss:$16 sps:$4 sm:$0xff]   ;;  %v5950_v19 = vld [vmem:[%s6167_s24 + $0xf08] ss:$16 sps:$4 sm:$0xff]  }
 0x1dd   : > { %3782 = vmatprep.subr.bf16.mxu0 %v5865_v20  ;;  %4126 = vmatprep.subr.bf16.mxu1 %v5868_v21  ;;  %v5955_v20 = vld [vmem:[%s6167_s24 + $0xf24] ss:$16 sps:$4 sm:$0xff]   ;;  %v5958_v21 = vld [vmem:[%s6167_s24 + $0xf2c] ss:$16 sps:$4 sm:$0xff]  }
 0x1e0   : > { %3783 = vmatpush1.bf16.msra.mxu0 %v5863_v22  ;;  %4127 = vmatpush1.bf16.msra.mxu1 %v5866_v23  ;;  %v5953_v22 = vld [vmem:[%s6167_s24 + $0xf20] ss:$16 sps:$4 sm:$0xff]   ;;  %v5956_v23 = vld [vmem:[%s6167_s24 + $0xf28] ss:$16 sps:$4 sm:$0xff]  }
 0x1e1   : > { %3784 = vmatprep.subr.bf16.mxu0 %v5871_v24  ;;  %4128 = vmatprep.subr.bf16.mxu1 %v5874_v25  ;;  %v5961_v24 = vld [vmem:[%s6167_s24 + $0xf44] ss:$16 sps:$4 sm:$0xff]   ;;  %v5964_v25 = vld [vmem:[%s6167_s24 + $0xf4c] ss:$16 sps:$4 sm:$0xff]  }
 0x1e4   : > { %3785 = vmatpush1.bf16.msra.mxu0 %v5869_v26  ;;  %4129 = vmatpush1.bf16.msra.mxu1 %v5872_v27  ;;  %v5959_v26 = vld [vmem:[%s6167_s24 + $0xf40] ss:$16 sps:$4 sm:$0xff]   ;;  %v5962_v27 = vld [vmem:[%s6167_s24 + $0xf48] ss:$16 sps:$4 sm:$0xff]  }
 0x1e5   : > { %3786 = vmatprep.subr.bf16.mxu0 %v5877_v28  ;;  %4130 = vmatprep.subr.bf16.mxu1 %v5880_v29  ;;  %v5967_v28 = vld [vmem:[%s6167_s24 + $0xf64] ss:$16 sps:$4 sm:$0xff]   ;;  %v5970_v29 = vld [vmem:[%s6167_s24 + $0xf6c] ss:$16 sps:$4 sm:$0xff]  }
 0x1e8   : > { %3787 = vmatpush1.bf16.msra.mxu0 %v5875_v30  ;;  %4131 = vmatpush1.bf16.msra.mxu1 %v5878_v33  ;;  %v5965_v30 = vld [vmem:[%s6167_s24 + $0xf60] ss:$16 sps:$4 sm:$0xff]   ;;  %v5968_v33 = vld [vmem:[%s6167_s24 + $0xf68] ss:$16 sps:$4 sm:$0xff]  }
 0x1e9   : > { %3788 = vmatprep.subr.bf16.mxu0 %v5883_v34  ;;  %4132 = vmatprep.subr.bf16.mxu1 %v5886_v37  ;;  %v5973_v34 = vld [vmem:[%s6167_s24 + $0xf84] ss:$16 sps:$4 sm:$0xff]   ;;  %v5976_v37 = vld [vmem:[%s6167_s24 + $0xf8c] ss:$16 sps:$4 sm:$0xff]  }
 0x1ec   : > { %3789 = vmatpush1.bf16.msra.mxu0 %v5881_v39  ;;  %4133 = vmatpush1.bf16.msra.mxu1 %v5884_v32  ;;  %v5971_v39 = vld [vmem:[%s6167_s24 + $0xf80] ss:$16 sps:$4 sm:$0xff]   ;;  %v5974_v32 = vld [vmem:[%s6167_s24 + $0xf88] ss:$16 sps:$4 sm:$0xff]  }
 0x1ed   : > { %3790 = vmatprep.subr.bf16.mxu0 %v5889_v40  ;;  %4134 = vmatprep.subr.bf16.mxu1 %v5892_v41  ;;  %v5979_v40 = vld [vmem:[%s6167_s24 + $0xfa4] ss:$16 sps:$4 sm:$0xff]   ;;  %v5982_v41 = vld [vmem:[%s6167_s24 + $0xfac] ss:$16 sps:$4 sm:$0xff]  }
 0x1f0   : > { %3791 = vmatpush1.bf16.msra.mxu0 %v5887_v35  ;;  %4135 = vmatpush1.bf16.msra.mxu1 %v5890_v36  ;;  %v5977_v35 = vld [vmem:[%s6167_s24 + $0xfa0] ss:$16 sps:$4 sm:$0xff]   ;;  %v5980_v36 = vld [vmem:[%s6167_s24 + $0xfa8] ss:$16 sps:$4 sm:$0xff]  }
 0x1f1   : > { %3792 = vmatprep.subr.bf16.mxu0 %v5895_v44  ;;  %4136 = vmatprep.subr.bf16.mxu1 %v5898_v45  ;;  %v5985_v44 = vld [vmem:[%s6167_s24 + $0xfc4] ss:$16 sps:$4 sm:$0xff]   ;;  %v5988_v45 = vld [vmem:[%s6167_s24 + $0xfcc] ss:$16 sps:$4 sm:$0xff]  }
 0x1f4   : > { %3793 = vmatpush1.bf16.msra.mxu0 %v5893_v46  ;;  %4137 = vmatpush1.bf16.msra.mxu1 %v5896_v31  ;;  %v5983_v46 = vld [vmem:[%s6167_s24 + $0xfc0] ss:$16 sps:$4 sm:$0xff]   ;;  %v5986_v31 = vld [vmem:[%s6167_s24 + $0xfc8] ss:$16 sps:$4 sm:$0xff]  }
 0x1f5   : > { %3805 = vmatprep.subr.bf16.mxu0 %v5901_v48  ;;  %4149 = vmatprep.subr.bf16.mxu1 %v5904_v49  ;;  %v5991_v48 = vld [vmem:[%s6167_s24 + $0xfe4] ss:$16 sps:$4 sm:$0xff]   ;;  %v5994_v49 = vld [vmem:[%s6167_s24 + $0xfec] ss:$16 sps:$4 sm:$0xff]  }
 0x1f7   : > { %3795 = vmatmul.mubr.bf16.vlgmr.msra.gmra.mrb[0].mxu0 %v4585_v50  ;;  %4139 = vmatmul.mubr.bf16.vlgmr.msra.gmra.mrb[0].mxu1 %v4585_v50  ;;  %v5989_v50 = vld [vmem:[%s6167_s24 + $0xfe0] ss:$16 sps:$4 sm:$0xff]  }
 0x1f8   : > { %3806 = vmatpush1.bf16.msra.mxu0 %v5899_v51  ;;  %4150 = vmatpush1.bf16.msra.mxu1 %v5902_v52  ;;  %v5992_v51 = vld [vmem:[%s6167_s24 + $0xfe8] ss:$16 sps:$4 sm:$0xff]   ;;  %v4587_v52 = vcombine.low %v6690_v42, %v6693_v43 }
 0x1f9   : > { %3807 = vmatprep.subr.bf16.mxu0 %v5907_v53  ;;  %4151 = vmatprep.subr.bf16.mxu1 %v5910_v54  ;;  %v328_v53 = vld [vmem:[#allocation2] sm:$0xff]  ;;  %v330_v54 = vld [vmem:[#allocation2 + $0x10] sm:$0xff] }
 0x1fa   : > { %3837 = vmatprep.mubr.bf16.mxu0 %v4588_v47  ;;  %4181 = vmatprep.mubr.bf16.mxu1 %v4588_v47  ;;  %v329_v47 = vld [vmem:[#allocation2 + $0x8] sm:$0xff] }
 0x1fc   : > { %3808 = vmatpush1.bf16.msra.mxu0 %v5905_v38  ;;  %4152 = vmatpush1.bf16.msra.mxu1 %v5908_v55  ;;  %v331_v38 = vld [vmem:[#allocation2 + $0x18] sm:$0xff] }
 0x1fd   : > { %3809 = vmatprep.subr.bf16.mxu0 %v5913_v56  ;;  %4153 = vmatprep.subr.bf16.mxu1 %v5916_v57  ;;  %v332_v57 = vld [vmem:[#allocation2 + $0x20] sm:$0x1] }
 0x200   : > { %3810 = vmatpush1.bf16.msra.mxu0 %v5911_v58  ;;  %4154 = vmatpush1.bf16.msra.mxu1 %v5914_v59  ;;  %v334_v58 = vld [vmem:[#allocation2 + $0x30] sm:$0x1] }
 0x201   : > { %3811 = vmatprep.subr.bf16.mxu0 %v5919_v60  ;;  %4155 = vmatprep.subr.bf16.mxu1 %v5922_v61 }
 0x204   : > { %3812 = vmatpush1.bf16.msra.mxu0 %v5917_v62  ;;  %4156 = vmatpush1.bf16.msra.mxu1 %v5920_v63  ;;  %v333_v63 = vld [vmem:[#allocation2 + $0x28] sm:$0x1] }
 0x205   : > { %3813 = vmatprep.subr.bf16.mxu0 %v5925_v0  ;;  %4157 = vmatprep.subr.bf16.mxu1 %v5928_v1  ;;  %v335_v0 = vld [vmem:[#allocation2 + $0x38] sm:$0x1] }
 0x208   : > { %3814 = vmatpush1.bf16.msra.mxu0 %v5923_v2  ;;  %4158 = vmatpush1.bf16.msra.mxu1 %v5926_v3 }
 0x209   : > { %3815 = vmatprep.subr.bf16.mxu0 %v5931_v4  ;;  %4159 = vmatprep.subr.bf16.mxu1 %v5934_v5 }
 0x20c   : > { %3816 = vmatpush1.bf16.msra.mxu0 %v5929_v6  ;;  %4160 = vmatpush1.bf16.msra.mxu1 %v5932_v7 }
 0x20d   : > { %3817 = vmatprep.subr.bf16.mxu0 %v5937_v8  ;;  %4161 = vmatprep.subr.bf16.mxu1 %v5940_v9  ;;  %v4222_v9 = vlaneseq (!%p5101_p13) }
 0x210   : > { %3818 = vmatpush1.bf16.msra.mxu0 %v5935_v10  ;;  %4162 = vmatpush1.bf16.msra.mxu1 %v5938_v11  ;;  %v4223_v10 = vshrl.u32 (!%p5101_p13), %v4222_v9, 7  ;;  %v4220_v11 = vld [vmem:[%s6887_s2] sm:$0xf] (!%p5101_p13) }
 0x211   : > { %3819 = vmatprep.subr.bf16.mxu0 %v5943_v12  ;;  %4163 = vmatprep.subr.bf16.mxu1 %v5946_v13 }
 0x214   : > { %3820 = vmatpush1.bf16.msra.mxu0 %v5941_v14  ;;  %4164 = vmatpush1.bf16.msra.mxu1 %v5944_v15  ;;  %v4224_v14 = vsub.s32 (!%p5101_p13), 0, %v4223_v10  ;;  %v4228_v15 = vsub.s32 (!%p5101_p13), 1, %v4223_v10 }
 0x215   : > { %3821 = vmatprep.subr.bf16.mxu0 %v5949_v16  ;;  %4165 = vmatprep.subr.bf16.mxu1 %v5952_v17  ;;  %v4232_v16 = vsub.s32 (!%p5101_p13), 2, %v4223_v10  ;;  %v4236_v17 = vsub.s32 (!%p5101_p13), 3, %v4223_v10 }
 0x218   : > { %3822 = vmatpush1.bf16.msra.mxu0 %v5947_v18  ;;  %4166 = vmatpush1.bf16.msra.mxu1 %v5950_v19 }
 0x219   : > { %3823 = vmatprep.subr.bf16.mxu0 %v5955_v20  ;;  %4167 = vmatprep.subr.bf16.mxu1 %v5958_v21  ;;  %v4225_v21 = vrot.slane (!%p5101_p13), %v4220_v11, %v4224_v14 }
 0x21c   : > { %3824 = vmatpush1.bf16.msra.mxu0 %v5953_v22  ;;  %4168 = vmatpush1.bf16.msra.mxu1 %v5956_v23  ;;  %v4229_v22 = vrot.slane (!%p5101_p13), %v4220_v11, %v4228_v15 }
 0x21d   : > { %3825 = vmatprep.subr.bf16.mxu0 %v5961_v24  ;;  %4169 = vmatprep.subr.bf16.mxu1 %v5964_v25 }
 0x220   : > { %3826 = vmatpush1.bf16.msra.mxu0 %v5959_v26  ;;  %4170 = vmatpush1.bf16.msra.mxu1 %v5962_v27  ;;  %v4233_v26 = vrot.slane (!%p5101_p13), %v4220_v11, %v4232_v16  ;;  %v4237_v27 = vrot.slane (!%p5101_p13), %v4220_v11, %v4236_v17 }
 0x221   : > { %3827 = vmatprep.subr.bf16.mxu0 %v5967_v28  ;;  %4171 = vmatprep.subr.bf16.mxu1 %v5970_v29 }
 0x224   : > { %3828 = vmatpush1.bf16.msra.mxu0 %v5965_v30  ;;  %4172 = vmatpush1.bf16.msra.mxu1 %v5968_v33 }
 0x225   : > { %3829 = vmatprep.subr.bf16.mxu0 %v5973_v34  ;;  %4173 = vmatprep.subr.bf16.mxu1 %v5976_v37 }
 0x228   : > { %3830 = vmatpush1.bf16.msra.mxu0 %v5971_v39  ;;  %4174 = vmatpush1.bf16.msra.mxu1 %v5974_v32 }
 0x229   : > { %3831 = vmatprep.subr.bf16.mxu0 %v5979_v40  ;;  %4175 = vmatprep.subr.bf16.mxu1 %v5982_v41 }
 0x22c   : > { %3832 = vmatpush1.bf16.msra.mxu0 %v5977_v35  ;;  %4176 = vmatpush1.bf16.msra.mxu1 %v5980_v36 }
 0x22d   : > { %3833 = vmatprep.subr.bf16.mxu0 %v5985_v44  ;;  %4177 = vmatprep.subr.bf16.mxu1 %v5988_v45 }
 0x230   : > { %3834 = vmatpush1.bf16.msra.mxu0 %v5983_v46  ;;  %4178 = vmatpush1.bf16.msra.mxu1 %v5986_v31 }
 0x231   : > { %3835 = vmatprep.subr.bf16.mxu0 %v5991_v48  ;;  %4179 = vmatprep.subr.bf16.mxu1 %v5994_v49 }
 0x234   : > { %3836 = vmatpush1.bf16.msra.mxu0 %v5989_v50  ;;  %4180 = vmatpush1.bf16.msra.mxu1 %v5992_v51 }
 0x237   : > { %3838 = vmatmul.mubr.bf16.vlgmr.msra.gmra.mrb[0].mxu0 %v4587_v52  ;;  %4182 = vmatmul.mubr.bf16.vlgmr.msra.gmra.mrb[0].mxu1 %v4587_v52 }
 0x30a   : > { %v3839_v55 = vpop.f32.mrb[0].mxu0  ;;  %v4183_v56 = vpop.f32.mrb[0].mxu1  ;;  %4211 = sbr.rel (%p5101_p13) target bundleno = 844 (0x34c), region = 63 }
 0x30b   : > { %v4192_v59 = vadd.f32 %v3839_v55, %v328_v53  ;;  %v4194_v60 = vadd.f32 %v4183_v56, %v330_v54  ;;  %v3841_v61 = vpop.f32.mrb[1].mxu0  ;;  %v4185_v62 = vpop.f32.mrb[1].mxu1 }
 0x30c   : > { %v4193_v1 = vadd.f32 %v3841_v61, %v329_v47  ;;  %v4195_v42 = vadd.f32 %v4185_v62, %v331_v38  ;;  %v3843_v43 = vpop.f32.mrb[2].mxu0  ;;  %v4187_v2 = vpop.f32.mrb[2].mxu1 }
 0x30d   : > { %4200 = vst [vmem:[#allocation2] sm:$0xff] %v4192_v59  ;;  %4202 = vst [vmem:[#allocation2 + $0x10] sm:$0xff] %v4194_v60  ;;  %v4196_v3 = vadd.f32 %v3843_v43, %v332_v57  ;;  %v4198_v4 = vadd.f32 %v4187_v2, %v334_v58  ;;  %v3845_v5 = vpop.f32.mrb[3].mxu0  ;;  %v4189_v6 = vpop.f32.mrb[3].mxu1 }
 0x30e   : > { %4201 = vst [vmem:[#allocation2 + $0x8] sm:$0xff] %v4193_v1  ;;  %4203 = vst [vmem:[#allocation2 + $0x18] sm:$0xff] %v4195_v42  ;;  %v4197_v7 = vadd.f32 %v3845_v5, %v333_v63  ;;  %v4199_v8 = vadd.f32 %v4189_v6, %v335_v0 }
 0x30f   : > { %4204 = vst [vmem:[#allocation2 + $0x20] sm:$0x1] %v4196_v3  ;;  %4206 = vst [vmem:[#allocation2 + $0x30] sm:$0x1] %v4198_v4 }
 0x310   : > { %4205 = vst [vmem:[#allocation2 + $0x28] sm:$0x1] %v4197_v7  ;;  %4207 = vst [vmem:[#allocation2 + $0x38] sm:$0x1] %v4199_v8 }
 0x314   : > { %v4212_v12 = vld [vmem:[#allocation2] sm:$0xff]  ;;  %v4214_v20 = vld [vmem:[#allocation2 + $0x10] sm:$0xff] }
 0x315   : > { %v4213_v13 = vld [vmem:[#allocation2 + $0x8] sm:$0xff]  ;;  %v4215_v23 = vld [vmem:[#allocation2 + $0x18] sm:$0xff]  ;;  %v6765_v28 = vadd.f32 %v4225_v21, %v4212_v12  ;;  %v6773_v34 = vadd.f32 %v4233_v26, %v4214_v20 }
 0x316   : > { %v4216_v18 = vld [vmem:[#allocation2 + $0x20] sm:$0x1]  ;;  %v4218_v24 = vld [vmem:[#allocation2 + $0x30] sm:$0x1]  ;;  %v6767_v29 = vadd.f32 %v4229_v22, %v4213_v13  ;;  %v6775_v37 = vadd.f32 %v4237_v27, %v4215_v23 }
 0x317   : > { %v4217_v19 = vld [vmem:[#allocation2 + $0x28] sm:$0x1]  ;;  %v4219_v25 = vld [vmem:[#allocation2 + $0x38] sm:$0x1]  ;;  %v6769_v30 = vadd.f32 %v4225_v21, %v4216_v18  ;;  %v6777_v39 = vadd.f32 %v4233_v26, %v4218_v24  ;;  %v4283_v35 = vmul.f32 %v6765_v28, %v6765_v28  ;;  %v4285_v50 = vmul.f32 %v6773_v34, %v6773_v34 }
 0x318   : > { %v6771_v33 = vadd.f32 %v4229_v22, %v4217_v19  ;;  %v6779_v32 = vadd.f32 %v4237_v27, %v4219_v25  ;;  %v4284_v36 = vmul.f32 %v6767_v29, %v6767_v29  ;;  %v4286_v51 = vmul.f32 %v6775_v37, %v6775_v37 }
 0x319   : > { %v4251_v40 = vsel %vm4250_vm0, %v6769_v30, 0.0  ;;  %v4287_v46 = vmul.f32 %v6769_v30, %v6769_v30  ;;  %v4267_v48 = vsel %vm4250_vm0, %v6777_v39, 0.0  ;;  %v4289_v60 = vmul.f32 %v6777_v39, %v6777_v39 }
 0x31a   : > { %v4259_v41 = vsel %vm4250_vm0, %v6771_v33, 0.0  ;;  %v4252_v44 = vadd.f32 %v4251_v40, %v6765_v28  ;;  %v4288_v31 = vmul.f32 %v6771_v33, %v6771_v33  ;;  %v4275_v49 = vsel %vm4250_vm0, %v6779_v32, 0.0 }
 0x31b   : > { %v4260_v45 = vadd.f32 %v4259_v41, %v6767_v29  ;;  %v4291_v54 = vsel %vm4250_vm0, %v4287_v46, 0.0  ;;  %v4268_v56 = vadd.f32 %v4267_v48, %v6773_v34  ;;  %v4276_v57 = vadd.f32 %v4275_v49, %v6775_v37 }
 0x31c   : > { %v4253_v52 = vrot.slane %v4252_v44, 4  ;;  %v4299_v47 = vsel %vm4250_vm0, %v4288_v31, 0.0  ;;  %v4292_v38 = vadd.f32 %v4291_v54, %v4283_v35  ;;  %v4290_v61 = vmul.f32 %v6779_v32, %v6779_v32 }
 0x31d   : > { %v4261_v53 = vrot.slane %v4260_v45, 4  ;;  %v4300_v55 = vadd.f32 %v4299_v47, %v4284_v36  ;;  %v4269_v0 = vrot.slane %v4268_v56, 4  ;;  %v4277_v1 = vrot.slane %v4276_v57, 4 }
 0x31e   : > { %v4254_v58 = vadd.f32 %v4253_v52, %v4252_v44  ;;  %v4293_v62 = vrot.slane %v4292_v38, 4  ;;  %v4307_v2 = vsel %vm4250_vm0, %v4289_v60, 0.0  ;;  %v4315_v3 = vsel %vm4250_vm0, %v4290_v61, 0.0 }
 0x31f   : > { %v4262_v59 = vadd.f32 %v4261_v53, %v4260_v45  ;;  %v4301_v63 = vrot.slane %v4300_v55, 4  ;;  %v4270_v6 = vadd.f32 %v4269_v0, %v4268_v56  ;;  %v4278_v7 = vadd.f32 %v4277_v1, %v4276_v57 }
 0x320   : > { %v4255_v42 = vrot.slane %v4254_v58, 2  ;;  %v4294_v4 = vadd.f32 %v4293_v62, %v4292_v38  ;;  %v4308_v10 = vadd.f32 %v4307_v2, %v4285_v50  ;;  %v4316_v11 = vadd.f32 %v4315_v3, %v4286_v51 }
 0x321   : > { %v4263_v43 = vrot.slane %v4262_v59, 2  ;;  %v4302_v5 = vadd.f32 %v4301_v63, %v4300_v55  ;;  %v4271_v14 = vrot.slane %v4270_v6, 2  ;;  %v4279_v15 = vrot.slane %v4278_v7, 2 }
 0x322   : > { %v4256_v8 = vadd.f32 %v4255_v42, %v4254_v58  ;;  %v4295_v12 = vrot.slane %v4294_v4, 2  ;;  %v4309_v18 = vrot.slane %v4308_v10, 4  ;;  %v4317_v19 = vrot.slane %v4316_v11, 4 }
 0x323   : > { %v4264_v9 = vadd.f32 %v4263_v43, %v4262_v59  ;;  %v4303_v13 = vrot.slane %v4302_v5, 2  ;;  %v4272_v22 = vadd.f32 %v4271_v14, %v4270_v6  ;;  %v4280_v23 = vadd.f32 %v4279_v15, %v4278_v7 }
 0x324   : > { %v4257_v16 = vrot.slane %v4256_v8, 1  ;;  %v4296_v20 = vadd.f32 %v4295_v12, %v4294_v4  ;;  %v4310_v26 = vadd.f32 %v4309_v18, %v4308_v10  ;;  %v4318_v27 = vadd.f32 %v4317_v19, %v4316_v11 }
 0x325   : > { %v4265_v17 = vrot.slane %v4264_v9, 1  ;;  %v4304_v21 = vadd.f32 %v4303_v13, %v4302_v5  ;;  %v4273_v35 = vrot.slane %v4272_v22, 1  ;;  %v4281_v36 = vrot.slane %v4280_v23, 1 }
 0x326   : > { %v4258_v24 = vadd.f32 %v4257_v16, %v4256_v8  ;;  %v4297_v40 = vrot.slane %v4296_v20, 1  ;;  %v4311_v46 = vrot.slane %v4310_v26, 2  ;;  %v4319_v31 = vrot.slane %v4318_v27, 2 }
 0x327   : > { %v4266_v25 = vadd.f32 %v4265_v17, %v4264_v9  ;;  %v4305_v41 = vrot.slane %v4304_v21, 1  ;;  %v4274_v50 = vadd.f32 %v4273_v35, %v4272_v22  ;;  %v4282_v51 = vadd.f32 %v4281_v36, %v4280_v23 }
 0x328   : > { %v4323_v44 = vmul.f32 0.11111111, %v4258_v24  ;;  %v4298_v48 = vadd.f32 %v4297_v40, %v4296_v20  ;;  %v4312_v38 = vadd.f32 %v4311_v46, %v4310_v26  ;;  %v4320_v55 = vadd.f32 %v4319_v31, %v4318_v27 }
 0x329   : > { %v4324_v45 = vmul.f32 0.11111111, %v4266_v25  ;;  %v4306_v49 = vadd.f32 %v4305_v41, %v4304_v21  ;;  %v6813_v56 = vmul.f32 0.11111111, %v4274_v50  ;;  %v6815_v57 = vmul.f32 0.11111111, %v4282_v51 }
 0x32a   : > { %v4331_v52 = vmul.f32 %v4323_v44, %v4323_v44  ;;  %v4327_v54 = vmul.f32 0.11111111, %v4298_v48  ;;  %v4313_v60 = vrot.slane %v4312_v38, 1  ;;  %v4321_v61 = vrot.slane %v4320_v55, 1  ;;  %v4424_v41 = vld [vmem:[%s6172_s29 + $0x10] sm:$0x11] }
 0x32b   : > { %v4332_v53 = vmul.f32 %v4324_v45, %v4324_v45  ;;  %v4328_v47 = vmul.f32 0.11111111, %v4306_v49  ;;  %v4333_v62 = vmul.f32 %v6813_v56, %v6813_v56  ;;  %v4334_v43 = vmul.f32 %v6815_v57, %v6815_v57 }
 0x32c   : > { %v4335_v58 = vsub.f32 %v4327_v54, %v4331_v52  ;;  %v4314_v1 = vadd.f32 %v4313_v60, %v4312_v38  ;;  %v4322_v42 = vadd.f32 %v4321_v61, %v4320_v55  ;;  %v4343_v12 = vsub.f32 %v6765_v28, %v4323_v44 }
 0x32d   : > { %v4336_v59 = vsub.f32 %v4328_v47, %v4332_v53  ;;  %v4347_v13 = vsub.f32 %v6769_v30, %v4323_v44  ;;  %v4344_v14 = vsub.f32 %v6767_v29, %v4324_v45  ;;  %v4348_v15 = vsub.f32 %v6771_v33, %v4324_v45 }
 0x32e   : > { %v4339_v63 = vmax.f32 %v4335_v58, 0.0  ;;  %v4329_v4 = vmul.f32 0.11111111, %v4314_v1  ;;  %v4330_v5 = vmul.f32 0.11111111, %v4322_v42  ;;  %v4345_v19 = vsub.f32 %v6773_v34, %v6813_v56 }
 0x32f   : > { %v4340_v0 = vmax.f32 %v4336_v59, 0.0  ;;  %v4346_v20 = vsub.f32 %v6775_v37, %v6815_v57  ;;  %v4349_v30 = vsub.f32 %v6777_v39, %v6813_v56  ;;  %v4350_v33 = vsub.f32 %v6779_v32, %v6815_v57  ;;  %v4427_v57 = vld [vmem:[%s6172_s29 + $0x18] sm:$0x11] }
 0x330   : > { %v4351_v2 = vadd.f32 1e-05, %v4339_v63  ;;  %v4337_v6 = vsub.f32 %v4329_v4, %v4333_v62  ;;  %v4338_v7 = vsub.f32 %v4330_v5, %v4334_v43 }
 0x331   : > { %v4352_v3 = vadd.f32 1e-05, %v4340_v0 }
 0x332   : > { %5995 = vrsqrt.f32 %v4351_v2  ;;  %v4341_v8 = vmax.f32 %v4337_v6, 0.0  ;;  %v4342_v9 = vmax.f32 %v4338_v7, 0.0 }
 0x333   : > { %5997 = vrsqrt.f32 %v4352_v3 }
 0x334   : > { %v4353_v10 = vadd.f32 1e-05, %v4341_v8  ;;  %v4354_v11 = vadd.f32 1e-05, %v4342_v9 }
 0x336   : > { %5999 = vrsqrt.f32 %v4353_v10 }
 0x337   : > { %6001 = vrsqrt.f32 %v4354_v11 }
 0x33c   : > { %v5996_v16 = vpop.eup %5995 }
 0x33d   : > { %v5998_v17 = vpop.eup %5997  ;;  %v4359_v18 = vmul.f32 %v5996_v16, %v4343_v12  ;;  %v4363_v28 = vmul.f32 %v5996_v16, %v4347_v13 }
 0x33e   : > { %v4360_v21 = vmul.f32 %v5998_v17, %v4344_v14  ;;  %v4364_v22 = vmul.f32 %v5998_v17, %v4348_v15 }
 0x33f   : > { %vm4367_vm5 = vcmp.ge.f32.partialorder %v4359_v18, 0.0  ;;  %v4375_v34 = vmul.f32 0.2, %v4359_v18  ;;  %vm4371_vm6 = vcmp.ge.f32.partialorder %v4363_v28, 0.0  ;;  %v4379_v23 = vmul.f32 0.2, %v4363_v28 }
 0x340   : > { %vm4368_vm8 = vcmp.ge.f32.partialorder %v4360_v21, 0.0  ;;  %v4376_v24 = vmul.f32 0.2, %v4360_v21  ;;  %vm4372_vm9 = vcmp.ge.f32.partialorder %v4364_v22, 0.0  ;;  %v4380_v25 = vmul.f32 0.2, %v4364_v22  ;;  %v6000_v27 = vpop.eup %5999 }
 0x341   : > { %v4383_v39 = vsel %vm4367_vm5, %v4359_v18, %v4375_v34  ;;  %v4387_v26 = vsel %vm4371_vm6, %v4363_v28, %v4379_v23  ;;  %v6002_v35 = vpop.eup %6001  ;;  %v4361_v44 = vmul.f32 %v6000_v27, %v4345_v19  ;;  %v4365_v46 = vmul.f32 %v6000_v27, %v4349_v30 }
 0x342   : > { %v4384_v32 = vsel %vm4368_vm8, %v4360_v21, %v4376_v24  ;;  %v4388_v40 = vsel %vm4372_vm9, %v4364_v22, %v4380_v25  ;;  %v4362_v31 = vmul.f32 %v6002_v35, %v4346_v20  ;;  %v4366_v48 = vmul.f32 %v6002_v35, %v4350_v33 }
 0x343   : > { %v5110_v36 = vpack.c.bf16 %v4384_v32, %v4383_v39  ;;  %v5112_v45 = vpack.c.bf16 %v4388_v40, %v4387_v26  ;;  %vm4369_vm11 = vcmp.ge.f32.partialorder %v4361_v44, 0.0  ;;  %v4377_v49 = vmul.f32 0.2, %v4361_v44 }
 0x344   : > { %vm4373_vm12 = vcmp.ge.f32.partialorder %v4365_v46, 0.0  ;;  %vm4370_vm13 = vcmp.ge.f32.partialorder %v4362_v31, 0.0  ;;  %v4378_v51 = vmul.f32 0.2, %v4362_v31  ;;  %vm4374_vm14 = vcmp.ge.f32.partialorder %v4366_v48, 0.0 }
 0x345   : > { %4415 = vst [vmem:[%s6172_s29] sm:$0xff] %v5110_v36  ;;  %v4425_v50 = vsel %vm4423_vm10, %v5112_v45, %v4424_v41  ;;  %v4381_v52 = vmul.f32 0.2, %v4365_v46  ;;  %v4385_v53 = vsel %vm4369_vm11, %v4361_v44, %v4377_v49  ;;  %v4382_v54 = vmul.f32 0.2, %v4366_v48 }
 0x346   : > { %4426 = vst [vmem:[%s6172_s29 + $0x10] sm:$0x11] %v4425_v50  ;;  %v4386_v47 = vsel %vm4370_vm13, %v4362_v31, %v4378_v51 }
 0x347   : > { %v4389_v38 = vsel %vm4373_vm12, %v4365_v46, %v4381_v52  ;;  %v5111_v55 = vpack.c.bf16 %v4386_v47, %v4385_v53  ;;  %v4390_v56 = vsel %vm4374_vm14, %v4366_v48, %v4382_v54 }
 0x348   : > { %v5113_v58 = vpack.c.bf16 %v4390_v56, %v4389_v38 }
 0x349   : > { %4416 = vst [vmem:[%s6172_s29 + $0x8] sm:$0xff] %v5111_v55 }
 0x34a   : > { %v4428_v59 = vsel %vm4423_vm10, %v5113_v58, %v4427_v57 }
 0x34b   : > { %4429 = vst [vmem:[%s6172_s29 + $0x18] sm:$0x11] %v4428_v59 }
 0x34c PF: > { %s13_s18 = sadd.s32 1, %s6057_s18   ;;  %s6893_s12 = smov %s6037_s13 }
 0x34d   : > { %p10_p0 = scmp.ge.s32.totalorder %s13_s18, 6   ;;  %s6894_s13 = smov %s6131_s25 }
 0x34e   : > { %s6895_s14 = smov %s6049_s16  ;;  %s6896_s15 = smov %s6053_s17 }
 0x34f   : > { %s6897_s16 = smov %s6900_s19  ;;  %s6898_s17 = smov %s6904_s20 }
 0x350   :  { %12 = sbr.rel (!%p10_p0) target bundleno = 4 (0x4), region = 104 }

</bundles_post_ra>
